<compile_context>
chip_gen: v6e
topology: v6e:2x2x1
jax: 0.10.0
libtpu: 0.0.40
codegen_flags: <defaults>
</compile_context>

<pallas_src>
import functools

import jax
import jax.numpy as jnp
from jax import lax
from jax.experimental import pallas as pl
from jax.experimental.pallas import tpu as pltpu

TOKEN_LENGTH = 32     # token_length == binary_len == vocab_size in the reference
LN_EPS = 1e-5
FFN_DIM = 2048        # nn.TransformerEncoderLayer default dim_feedforward


def _replicated_spec(shape):
    """Full-array block, same block for every grid step (no re-DMA)."""
    zeros = (0,) * len(shape)
    return pl.BlockSpec(shape, lambda b, _z=zeros: _z)


# ----------------------------------------------------------------------------
# Fused kernel: binary embedding -> N encoder layers -> fc_out, per batch elem
# ----------------------------------------------------------------------------
def _fused_node_kernel(x_ref, tab_ref,
                       wqkv_ref, bqkv_ref, wo_ref, bo_ref,
                       g1_ref, b1_ref, w1_ref, c1_ref,
                       w2_ref, c2_ref, g2_ref, b2_ref,
                       wout_ref, bout_ref, o_ref,
                       *, num_layers, num_heads, embed_dim):
    E = embed_dim
    dh = E // num_heads
    scale = 1.0 / float(dh) ** 0.5
    bf = lambda a: a.astype(jnp.bfloat16)

    def layer_norm(y, g, b):
        mu = jnp.mean(y, axis=-1, keepdims=True)
        var = jnp.mean(jnp.square(y - mu), axis=-1, keepdims=True)
        return (y - mu) * lax.rsqrt(var + LN_EPS) * g + b

    # --- BinaryEmbedding (fused): amplitude column * row-tiled table --------
    amp = x_ref[0] * 2.0 - 1.0                      # (S, 1)
    h = amp * tab_ref[...]                          # (S, E) f32

    # --- TransformerEncoder: post-norm layers, ReLU FFN, eval-mode dropout --
    for l in range(num_layers):
        # fused QKV projection: one MXU pass, N = 3E lanes
        qkv = (jnp.dot(bf(h), wqkv_ref[l], preferred_element_type=jnp.float32)
               + bqkv_ref[l])                       # (S, 3E)
        heads = []
        for hd in range(num_heads):                 # static loop, lane slices
            lo = hd * dh
            qh = qkv[:, lo:lo + dh]
            kh = qkv[:, E + lo:E + lo + dh]
            vh = qkv[:, 2 * E + lo:2 * E + lo + dh]
            s = lax.dot_general(bf(qh), bf(kh), (((1,), (1,)), ((), ())),
                                preferred_element_type=jnp.float32) * scale
            s = s - jnp.max(s, axis=-1, keepdims=True)
            p = jnp.exp(s)
            p = p / jnp.sum(p, axis=-1, keepdims=True)
            heads.append(jnp.dot(bf(p), bf(vh),
                                 preferred_element_type=jnp.float32))
        ctx = jnp.concatenate(heads, axis=-1)       # (S, E)
        attn = (jnp.dot(bf(ctx), wo_ref[l], preferred_element_type=jnp.float32)
                + bo_ref[l])
        # residual + LayerNorm 1 (post-norm)
        x1 = layer_norm(h + attn, g1_ref[l], b1_ref[l])
        # FFN: linear1 -> ReLU -> linear2
        ff = jnp.maximum(
            jnp.dot(bf(x1), w1_ref[l], preferred_element_type=jnp.float32)
            + c1_ref[l], 0.0)                       # (S, F)
        ff = (jnp.dot(bf(ff), w2_ref[l], preferred_element_type=jnp.float32)
              + c2_ref[l])                          # (S, E)
        # residual + LayerNorm 2
        h = layer_norm(x1 + ff, g2_ref[l], b2_ref[l])

    # --- fc_out projection ---------------------------------------------------
    o_ref[0] = (jnp.dot(bf(h), wout_ref[...], preferred_element_type=jnp.float32)
                + bout_ref[...])


def modified_transformer_node_forward(prep, x):
    """x: (batch, seq_len, TOKEN_LENGTH) tensor of 0/1 bits."""
    B, seq_len, L = x.shape
    assert L == TOKEN_LENGTH, f"expected binary length {TOKEN_LENGTH}, got {L}"
    E = prep["emb_table"].shape[1]
    S = seq_len * L
    eout = prep["bout"].shape[-1]
    num_layers = prep["wqkv"].shape[0]
    num_heads = prep["num_heads"]

    # amplitude column (free reshape) + row-tiled table reproduce
    # BinaryEmbedding followed by view(B, seq_len*bin_len, E)
    x_col = x.reshape(B, S, 1).astype(jnp.float32)
    tab_full = jnp.tile(prep["emb_table"], (seq_len, 1))        # (S, E), tiny

    weights = (prep["wqkv"], prep["bqkv"], prep["wo"], prep["bo"],
               prep["g1"], prep["b1"], prep["w1"], prep["c1"],
               prep["w2"], prep["c2"], prep["g2"], prep["b2"],
               prep["wout"], prep["bout"])

    kernel = functools.partial(_fused_node_kernel, num_layers=num_layers,
                               num_heads=num_heads, embed_dim=E)
    return pl.pallas_call(
        kernel,
        out_shape=jax.ShapeDtypeStruct((B, S, eout), jnp.float32),
        grid=(B,),
        in_specs=[pl.BlockSpec((1, S, 1), lambda b: (b, 0, 0)),
                  _replicated_spec(tab_full.shape)]
                 + [_replicated_spec(w.shape) for w in weights],
        out_specs=pl.BlockSpec((1, S, eout), lambda b: (b, 0, 0)),
        compiler_params=pltpu.CompilerParams(
            dimension_semantics=("parallel",)),
    )(x_col, tab_full, *weights)


# ----------------------------------------------------------------------------
# Parameters: deterministic init in PyTorch layout + one-time kernel prep
# ----------------------------------------------------------------------------
def init_params(key, embed_size, hidden_size, num_heads, num_layers,
                ffn_dim=FFN_DIM):
    keys = iter(jax.random.split(key, 8 + 8 * num_layers))
    nrm = lambda shape, s=0.05: s * jax.random.normal(next(keys), shape,
                                                      jnp.float32)
    E = hidden_size
    params = {
        "num_heads": num_heads,
        "embedding_weight": nrm((TOKEN_LENGTH, E)),     # nn.Embedding(32, hidden)
        "fc_out_weight": nrm((embed_size, E)),          # Linear(hidden, embed)
        "fc_out_bias": nrm((embed_size,)),
        "layers": [],
    }
    for _ in range(num_layers):
        params["layers"].append({
            "in_proj_weight": nrm((3 * E, E)),
            "in_proj_bias": nrm((3 * E,)),
            "out_proj_weight": nrm((E, E)),
            "out_proj_bias": nrm((E,)),
            "linear1_weight": nrm((ffn_dim, E)),
            "linear1_bias": nrm((ffn_dim,)),
            "linear2_weight": nrm((E, ffn_dim)),
            "linear2_bias": nrm((E,)),
            "norm1_weight": jnp.ones((E,), jnp.float32),
            "norm1_bias": jnp.zeros((E,), jnp.float32),
            "norm2_weight": jnp.ones((E,), jnp.float32),
            "norm2_bias": jnp.zeros((E,), jnp.float32),
        })
    return params


def prepare_params(params):
    """Pre-transpose + stack per-layer weights once; bf16 for MXU operands."""
    ls = params["layers"]
    bfT = lambda n: jnp.stack([lp[n].T for lp in ls]).astype(jnp.bfloat16)
    row = lambda n: jnp.stack([lp[n] for lp in ls])[:, None, :]
    return {
        "num_heads": params["num_heads"],
        "emb_table": params["embedding_weight"].astype(jnp.float32),
        "wqkv": bfT("in_proj_weight"),                    # (NL, E, 3E)
        "bqkv": row("in_proj_bias"),                      # (NL, 1, 3E)
        "wo": bfT("out_proj_weight"),                     # (NL, E, E)
        "bo": row("out_proj_bias"),
        "g1": row("norm1_weight"), "b1": row("norm1_bias"),
        "w1": bfT("linear1_weight"),                      # (NL, E, F)
        "c1": row("linear1_bias"),                        # (NL, 1, F)
        "w2": bfT("linear2_weight"),                      # (NL, F, E)
        "c2": row("linear2_bias"),
        "g2": row("norm2_weight"), "b2": row("norm2_bias"),
        "wout": params["fc_out_weight"].T.astype(jnp.bfloat16),   # (E, embed)
        "bout": params["fc_out_bias"][None, :].astype(jnp.float32),
    }


# ----------------------------------------------------------------------------
# Pure-JAX reference (same bf16-operand / f32-accumulate math) for validation
# ----------------------------------------------------------------------------
def reference_forward(prep, x):
    B, seq_len, L = x.shape
    S = seq_len * L
    tab = jnp.tile(prep["emb_table"], (seq_len, 1))
    E = tab.shape[1]
    H = prep["num_heads"]
    dh = E // H
    scale = 1.0 / float(dh) ** 0.5
    num_layers = prep["wqkv"].shape[0]
    bf = lambda a: a.astype(jnp.bfloat16)

    def ln(y, g, b):
        mu = jnp.mean(y, -1, keepdims=True)
        var = jnp.mean(jnp.square(y - mu), -1, keepdims=True)
        return (y - mu) * lax.rsqrt(var + LN_EPS) * g + b

    def one(xb):                                        # xb: (seq_len, L)
        h = (xb.reshape(S, 1) * 2.0 - 1.0) * tab
        for l in range(num_layers):
            qkv = jnp.dot(bf(h), prep["wqkv"][l],
                          preferred_element_type=jnp.float32) + prep["bqkv"][l]
            heads = []
            for hd in range(H):
                lo = hd * dh
                qh = qkv[:, lo:lo + dh]
                kh = qkv[:, E + lo:E + lo + dh]
                vh = qkv[:, 2 * E + lo:2 * E + lo + dh]
                s = jnp.dot(bf(qh), bf(kh).T,
                            preferred_element_type=jnp.float32) * scale
                p = jax.nn.softmax(s, axis=-1)
                heads.append(jnp.dot(bf(p), bf(vh),
                                     preferred_element_type=jnp.float32))
            ctx = jnp.concatenate(heads, -1)
            attn = jnp.dot(bf(ctx), prep["wo"][l],
                           preferred_element_type=jnp.float32) + prep["bo"][l]
            x1 = ln(h + attn, prep["g1"][l], prep["b1"][l])
            ff = jax.nn.relu(jnp.dot(bf(x1), prep["w1"][l],
                                     preferred_element_type=jnp.float32)
                             + prep["c1"][l])
            ff = jnp.dot(bf(ff), prep["w2"][l],
                         preferred_element_type=jnp.float32) + prep["c2"][l]
            h = ln(x1 + ff, prep["g2"][l], prep["b2"][l])
        return jnp.dot(bf(h), prep["wout"],
                       preferred_element_type=jnp.float32) + prep["bout"]

    return jax.vmap(one)(x)


if __name__ == "__main__":
    batch = 2
    seq_len = 2                 # tokens -> S = seq_len * TOKEN_LENGTH = 64
    hidden_size = 32            # d_model (divisible by num_heads)
    embed_size = 64             # fc_out output width
    num_heads = 4
    num_layers = 2

    root = jax.random.PRNGKey(0)
    k_x, k_p = jax.random.split(root)
    # binary (0/1) bit inputs, as BinaryEmbedding expects
    x = jax.random.bernoulli(
        k_x, 0.5, (batch, seq_len, TOKEN_LENGTH)).astype(jnp.float32)

    params = init_params(k_p, embed_size, hidden_size, num_heads, num_layers)
    prep = prepare_params(params)

    out = modified_transformer_node_forward(prep, x)
    out = jax.block_until_ready(out)
    assert out.shape == (batch, seq_len * TOKEN_LENGTH, embed_size)
    assert bool(jnp.all(jnp.isfinite(out)))

    ref = jax.block_until_ready(reference_forward(prep, x))
    max_err = float(jnp.max(jnp.abs(out - ref)))
    assert max_err < 3e-2, f"max abs error vs reference: {max_err}"

    print("KERNEL_OK")
</pallas_src>

<mosaic_0001>
module attributes {stable_mosaic.version = 11 : i64} {
  func.func @_fused_node_kernel(%arg0: i32, %arg1: memref<1x64x1xf32, #tpu.memory_space<vmem>>, %arg2: memref<64x32xf32, #tpu.memory_space<vmem>>, %arg3: memref<2x32x96xbf16, #tpu.memory_space<vmem>>, %arg4: memref<2x1x96xf32, #tpu.memory_space<vmem>>, %arg5: memref<2x32x32xbf16, #tpu.memory_space<vmem>>, %arg6: memref<2x1x32xf32, #tpu.memory_space<vmem>>, %arg7: memref<2x1x32xf32, #tpu.memory_space<vmem>>, %arg8: memref<2x1x32xf32, #tpu.memory_space<vmem>>, %arg9: memref<2x32x2048xbf16, #tpu.memory_space<vmem>>, %arg10: memref<2x1x2048xf32, #tpu.memory_space<vmem>>, %arg11: memref<2x2048x32xbf16, #tpu.memory_space<vmem>>, %arg12: memref<2x1x32xf32, #tpu.memory_space<vmem>>, %arg13: memref<2x1x32xf32, #tpu.memory_space<vmem>>, %arg14: memref<2x1x32xf32, #tpu.memory_space<vmem>>, %arg15: memref<32x64xbf16, #tpu.memory_space<vmem>>, %arg16: memref<1x64xf32, #tpu.memory_space<vmem>>, %arg17: memref<1x64x64xf32, #tpu.memory_space<vmem>>) attributes {dimension_semantics = [#tpu.dimension_semantics<parallel>], iteration_bounds = array<i64: 2>, scalar_prefetch = 0 : i64, scratch_operands = 0 : i64, tpu.core_type = #tpu.core_type<tc>, window_params = [{transform_indices = @transform_0, window_bounds = array<i64: 1, 64, 1>}, {pipeline_mode = #tpu.pipeline_mode<synchronous>, transform_indices = @transform_1, window_bounds = array<i64: 64, 32>}, {pipeline_mode = #tpu.pipeline_mode<synchronous>, transform_indices = @transform_2, window_bounds = array<i64: 2, 32, 96>}, {pipeline_mode = #tpu.pipeline_mode<synchronous>, transform_indices = @transform_3, window_bounds = array<i64: 2, 1, 96>}, {pipeline_mode = #tpu.pipeline_mode<synchronous>, transform_indices = @transform_4, window_bounds = array<i64: 2, 32, 32>}, {pipeline_mode = #tpu.pipeline_mode<synchronous>, transform_indices = @transform_5, window_bounds = array<i64: 2, 1, 32>}, {pipeline_mode = #tpu.pipeline_mode<synchronous>, transform_indices = @transform_6, window_bounds = array<i64: 2, 1, 32>}, {pipeline_mode = #tpu.pipeline_mode<synchronous>, transform_indices = @transform_7, window_bounds = array<i64: 2, 1, 32>}, {pipeline_mode = #tpu.pipeline_mode<synchronous>, transform_indices = @transform_8, window_bounds = array<i64: 2, 32, 2048>}, {pipeline_mode = #tpu.pipeline_mode<synchronous>, transform_indices = @transform_9, window_bounds = array<i64: 2, 1, 2048>}, {pipeline_mode = #tpu.pipeline_mode<synchronous>, transform_indices = @transform_10, window_bounds = array<i64: 2, 2048, 32>}, {pipeline_mode = #tpu.pipeline_mode<synchronous>, transform_indices = @transform_11, window_bounds = array<i64: 2, 1, 32>}, {pipeline_mode = #tpu.pipeline_mode<synchronous>, transform_indices = @transform_12, window_bounds = array<i64: 2, 1, 32>}, {pipeline_mode = #tpu.pipeline_mode<synchronous>, transform_indices = @transform_13, window_bounds = array<i64: 2, 1, 32>}, {pipeline_mode = #tpu.pipeline_mode<synchronous>, transform_indices = @transform_14, window_bounds = array<i64: 32, 64>}, {pipeline_mode = #tpu.pipeline_mode<synchronous>, transform_indices = @transform_15, window_bounds = array<i64: 1, 64>}, {transform_indices = @transform_16, window_bounds = array<i64: 1, 64, 64>}]} {
    %c0 = arith.constant 0 : index
    %c0_0 = arith.constant 0 : index
    %c0_1 = arith.constant 0 : index
    %0 = vector.load %arg1[%c0, %c0_0, %c0_1] : memref<1x64x1xf32, #tpu.memory_space<vmem>>, vector<1x64x1xf32>
    %1 = vector.shape_cast %0 : vector<1x64x1xf32> to vector<64x1xf32>
    %cst = arith.constant 2.000000e+00 : f32
    %2 = vector.broadcast %cst : f32 to vector<64x1xf32>
    %3 = arith.mulf %1, %2 : vector<64x1xf32>
    %cst_2 = arith.constant 1.000000e+00 : f32
    %4 = vector.broadcast %cst_2 : f32 to vector<64x1xf32>
    %5 = arith.subf %3, %4 : vector<64x1xf32>
    %c0_3 = arith.constant 0 : index
    %c0_4 = arith.constant 0 : index
    %6 = vector.load %arg2[%c0_3, %c0_4] : memref<64x32xf32, #tpu.memory_space<vmem>>, vector<64x32xf32>
    %7 = vector.broadcast %5 : vector<64x1xf32> to vector<64x32xf32>
    %8 = arith.mulf %7, %6 : vector<64x32xf32>
    %9 = arith.truncf %8 : vector<64x32xf32> to vector<64x32xbf16>
    %c0_5 = arith.constant 0 : index
    %c0_6 = arith.constant 0 : index
    %c0_7 = arith.constant 0 : index
    %10 = vector.load %arg3[%c0_5, %c0_6, %c0_7] : memref<2x32x96xbf16, #tpu.memory_space<vmem>>, vector<1x32x96xbf16>
    %11 = vector.shape_cast %10 : vector<1x32x96xbf16> to vector<32x96xbf16>
    %cst_8 = arith.constant dense<0.000000e+00> : vector<64x96xf32>
    %12 = tpu.matmul %9, %11, %cst_8 {dimension_numbers = #tpu.dot_dimension_numbers<[1], [0], [0], [1], [0, 0, 1, 1], [], []>} : vector<64x32xbf16>, vector<32x96xbf16>, vector<64x96xf32> -> vector<64x96xf32>
    %c0_9 = arith.constant 0 : index
    %c0_10 = arith.constant 0 : index
    %c0_11 = arith.constant 0 : index
    %13 = vector.load %arg4[%c0_9, %c0_10, %c0_11] : memref<2x1x96xf32, #tpu.memory_space<vmem>>, vector<1x1x96xf32>
    %14 = vector.shape_cast %13 : vector<1x1x96xf32> to vector<1x96xf32>
    %15 = vector.broadcast %14 : vector<1x96xf32> to vector<64x96xf32>
    %16 = arith.addf %12, %15 : vector<64x96xf32>
    %17 = vector.extract_strided_slice %16 {offsets = [0, 0], sizes = [64, 8], strides = [1, 1]} : vector<64x96xf32> to vector<64x8xf32>
    %18 = vector.extract_strided_slice %16 {offsets = [0, 32], sizes = [64, 8], strides = [1, 1]} : vector<64x96xf32> to vector<64x8xf32>
    %19 = vector.extract_strided_slice %16 {offsets = [0, 64], sizes = [64, 8], strides = [1, 1]} : vector<64x96xf32> to vector<64x8xf32>
    %20 = arith.truncf %17 : vector<64x8xf32> to vector<64x8xbf16>
    %21 = arith.truncf %18 : vector<64x8xf32> to vector<64x8xbf16>
    %cst_12 = arith.constant dense<0.000000e+00> : vector<64x64xf32>
    %22 = tpu.matmul %20, %21, %cst_12 {dimension_numbers = #tpu.dot_dimension_numbers<[1], [1], [0], [0], [0, 0, 1, 0], [], []>} : vector<64x8xbf16>, vector<64x8xbf16>, vector<64x64xf32> -> vector<64x64xf32>
    %cst_13 = arith.constant 0.353553385 : f32
    %23 = vector.broadcast %cst_13 : f32 to vector<64x64xf32>
    %24 = arith.mulf %22, %23 : vector<64x64xf32>
    %cst_14 = arith.constant dense<0xFF800000> : vector<64xf32>
    %25 = vector.multi_reduction <maximumf>, %24, %cst_14 [1] : vector<64x64xf32> to vector<64xf32>
    %26 = vector.shape_cast %25 : vector<64xf32> to vector<64x1xf32>
    %27 = vector.broadcast %26 : vector<64x1xf32> to vector<64x64xf32>
    %28 = arith.subf %24, %27 : vector<64x64xf32>
    %29 = math.exp %28 : vector<64x64xf32>
    %cst_15 = arith.constant dense<0.000000e+00> : vector<64xf32>
    %30 = vector.multi_reduction <add>, %29, %cst_15 [1] : vector<64x64xf32> to vector<64xf32>
    %31 = vector.shape_cast %30 : vector<64xf32> to vector<64x1xf32>
    %32 = vector.broadcast %31 : vector<64x1xf32> to vector<64x64xf32>
    %33 = arith.divf %29, %32 : vector<64x64xf32>
    %34 = arith.truncf %33 : vector<64x64xf32> to vector<64x64xbf16>
    %35 = arith.truncf %19 : vector<64x8xf32> to vector<64x8xbf16>
    %cst_16 = arith.constant dense<0.000000e+00> : vector<64x8xf32>
    %36 = tpu.matmul %34, %35, %cst_16 {dimension_numbers = #tpu.dot_dimension_numbers<[1], [0], [0], [1], [0, 0, 1, 1], [], []>} : vector<64x64xbf16>, vector<64x8xbf16>, vector<64x8xf32> -> vector<64x8xf32>
    %37 = vector.extract_strided_slice %16 {offsets = [0, 8], sizes = [64, 8], strides = [1, 1]} : vector<64x96xf32> to vector<64x8xf32>
    %38 = vector.extract_strided_slice %16 {offsets = [0, 40], sizes = [64, 8], strides = [1, 1]} : vector<64x96xf32> to vector<64x8xf32>
    %39 = vector.extract_strided_slice %16 {offsets = [0, 72], sizes = [64, 8], strides = [1, 1]} : vector<64x96xf32> to vector<64x8xf32>
    %40 = arith.truncf %37 : vector<64x8xf32> to vector<64x8xbf16>
    %41 = arith.truncf %38 : vector<64x8xf32> to vector<64x8xbf16>
    %cst_17 = arith.constant dense<0.000000e+00> : vector<64x64xf32>
    %42 = tpu.matmul %40, %41, %cst_17 {dimension_numbers = #tpu.dot_dimension_numbers<[1], [1], [0], [0], [0, 0, 1, 0], [], []>} : vector<64x8xbf16>, vector<64x8xbf16>, vector<64x64xf32> -> vector<64x64xf32>
    %cst_18 = arith.constant 0.353553385 : f32
    %43 = vector.broadcast %cst_18 : f32 to vector<64x64xf32>
    %44 = arith.mulf %42, %43 : vector<64x64xf32>
    %cst_19 = arith.constant dense<0xFF800000> : vector<64xf32>
    %45 = vector.multi_reduction <maximumf>, %44, %cst_19 [1] : vector<64x64xf32> to vector<64xf32>
    %46 = vector.shape_cast %45 : vector<64xf32> to vector<64x1xf32>
    %47 = vector.broadcast %46 : vector<64x1xf32> to vector<64x64xf32>
    %48 = arith.subf %44, %47 : vector<64x64xf32>
    %49 = math.exp %48 : vector<64x64xf32>
    %cst_20 = arith.constant dense<0.000000e+00> : vector<64xf32>
    %50 = vector.multi_reduction <add>, %49, %cst_20 [1] : vector<64x64xf32> to vector<64xf32>
    %51 = vector.shape_cast %50 : vector<64xf32> to vector<64x1xf32>
    %52 = vector.broadcast %51 : vector<64x1xf32> to vector<64x64xf32>
    %53 = arith.divf %49, %52 : vector<64x64xf32>
    %54 = arith.truncf %53 : vector<64x64xf32> to vector<64x64xbf16>
    %55 = arith.truncf %39 : vector<64x8xf32> to vector<64x8xbf16>
    %cst_21 = arith.constant dense<0.000000e+00> : vector<64x8xf32>
    %56 = tpu.matmul %54, %55, %cst_21 {dimension_numbers = #tpu.dot_dimension_numbers<[1], [0], [0], [1], [0, 0, 1, 1], [], []>} : vector<64x64xbf16>, vector<64x8xbf16>, vector<64x8xf32> -> vector<64x8xf32>
    %57 = vector.extract_strided_slice %16 {offsets = [0, 16], sizes = [64, 8], strides = [1, 1]} : vector<64x96xf32> to vector<64x8xf32>
    %58 = vector.extract_strided_slice %16 {offsets = [0, 48], sizes = [64, 8], strides = [1, 1]} : vector<64x96xf32> to vector<64x8xf32>
    %59 = vector.extract_strided_slice %16 {offsets = [0, 80], sizes = [64, 8], strides = [1, 1]} : vector<64x96xf32> to vector<64x8xf32>
    %60 = arith.truncf %57 : vector<64x8xf32> to vector<64x8xbf16>
    %61 = arith.truncf %58 : vector<64x8xf32> to vector<64x8xbf16>
    %cst_22 = arith.constant dense<0.000000e+00> : vector<64x64xf32>
    %62 = tpu.matmul %60, %61, %cst_22 {dimension_numbers = #tpu.dot_dimension_numbers<[1], [1], [0], [0], [0, 0, 1, 0], [], []>} : vector<64x8xbf16>, vector<64x8xbf16>, vector<64x64xf32> -> vector<64x64xf32>
    %cst_23 = arith.constant 0.353553385 : f32
    %63 = vector.broadcast %cst_23 : f32 to vector<64x64xf32>
    %64 = arith.mulf %62, %63 : vector<64x64xf32>
    %cst_24 = arith.constant dense<0xFF800000> : vector<64xf32>
    %65 = vector.multi_reduction <maximumf>, %64, %cst_24 [1] : vector<64x64xf32> to vector<64xf32>
    %66 = vector.shape_cast %65 : vector<64xf32> to vector<64x1xf32>
    %67 = vector.broadcast %66 : vector<64x1xf32> to vector<64x64xf32>
    %68 = arith.subf %64, %67 : vector<64x64xf32>
    %69 = math.exp %68 : vector<64x64xf32>
    %cst_25 = arith.constant dense<0.000000e+00> : vector<64xf32>
    %70 = vector.multi_reduction <add>, %69, %cst_25 [1] : vector<64x64xf32> to vector<64xf32>
    %71 = vector.shape_cast %70 : vector<64xf32> to vector<64x1xf32>
    %72 = vector.broadcast %71 : vector<64x1xf32> to vector<64x64xf32>
    %73 = arith.divf %69, %72 : vector<64x64xf32>
    %74 = arith.truncf %73 : vector<64x64xf32> to vector<64x64xbf16>
    %75 = arith.truncf %59 : vector<64x8xf32> to vector<64x8xbf16>
    %cst_26 = arith.constant dense<0.000000e+00> : vector<64x8xf32>
    %76 = tpu.matmul %74, %75, %cst_26 {dimension_numbers = #tpu.dot_dimension_numbers<[1], [0], [0], [1], [0, 0, 1, 1], [], []>} : vector<64x64xbf16>, vector<64x8xbf16>, vector<64x8xf32> -> vector<64x8xf32>
    %77 = vector.extract_strided_slice %16 {offsets = [0, 24], sizes = [64, 8], strides = [1, 1]} : vector<64x96xf32> to vector<64x8xf32>
    %78 = vector.extract_strided_slice %16 {offsets = [0, 56], sizes = [64, 8], strides = [1, 1]} : vector<64x96xf32> to vector<64x8xf32>
    %79 = vector.extract_strided_slice %16 {offsets = [0, 88], sizes = [64, 8], strides = [1, 1]} : vector<64x96xf32> to vector<64x8xf32>
    %80 = arith.truncf %77 : vector<64x8xf32> to vector<64x8xbf16>
    %81 = arith.truncf %78 : vector<64x8xf32> to vector<64x8xbf16>
    %cst_27 = arith.constant dense<0.000000e+00> : vector<64x64xf32>
    %82 = tpu.matmul %80, %81, %cst_27 {dimension_numbers = #tpu.dot_dimension_numbers<[1], [1], [0], [0], [0, 0, 1, 0], [], []>} : vector<64x8xbf16>, vector<64x8xbf16>, vector<64x64xf32> -> vector<64x64xf32>
    %cst_28 = arith.constant 0.353553385 : f32
    %83 = vector.broadcast %cst_28 : f32 to vector<64x64xf32>
    %84 = arith.mulf %82, %83 : vector<64x64xf32>
    %cst_29 = arith.constant dense<0xFF800000> : vector<64xf32>
    %85 = vector.multi_reduction <maximumf>, %84, %cst_29 [1] : vector<64x64xf32> to vector<64xf32>
    %86 = vector.shape_cast %85 : vector<64xf32> to vector<64x1xf32>
    %87 = vector.broadcast %86 : vector<64x1xf32> to vector<64x64xf32>
    %88 = arith.subf %84, %87 : vector<64x64xf32>
    %89 = math.exp %88 : vector<64x64xf32>
    %cst_30 = arith.constant dense<0.000000e+00> : vector<64xf32>
    %90 = vector.multi_reduction <add>, %89, %cst_30 [1] : vector<64x64xf32> to vector<64xf32>
    %91 = vector.shape_cast %90 : vector<64xf32> to vector<64x1xf32>
    %92 = vector.broadcast %91 : vector<64x1xf32> to vector<64x64xf32>
    %93 = arith.divf %89, %92 : vector<64x64xf32>
    %94 = arith.truncf %93 : vector<64x64xf32> to vector<64x64xbf16>
    %95 = arith.truncf %79 : vector<64x8xf32> to vector<64x8xbf16>
    %cst_31 = arith.constant dense<0.000000e+00> : vector<64x8xf32>
    %96 = tpu.matmul %94, %95, %cst_31 {dimension_numbers = #tpu.dot_dimension_numbers<[1], [0], [0], [1], [0, 0, 1, 1], [], []>} : vector<64x64xbf16>, vector<64x8xbf16>, vector<64x8xf32> -> vector<64x8xf32>
    %97 = tpu.concatenate %36, %56, %76, %96 in 1 : vector<64x8xf32>, vector<64x8xf32>, vector<64x8xf32>, vector<64x8xf32> -> vector<64x32xf32>
    %98 = arith.truncf %97 : vector<64x32xf32> to vector<64x32xbf16>
    %c0_32 = arith.constant 0 : index
    %c0_33 = arith.constant 0 : index
    %c0_34 = arith.constant 0 : index
    %99 = vector.load %arg5[%c0_32, %c0_33, %c0_34] : memref<2x32x32xbf16, #tpu.memory_space<vmem>>, vector<1x32x32xbf16>
    %100 = vector.shape_cast %99 : vector<1x32x32xbf16> to vector<32x32xbf16>
    %cst_35 = arith.constant dense<0.000000e+00> : vector<64x32xf32>
    %101 = tpu.matmul %98, %100, %cst_35 {dimension_numbers = #tpu.dot_dimension_numbers<[1], [0], [0], [1], [0, 0, 1, 1], [], []>} : vector<64x32xbf16>, vector<32x32xbf16>, vector<64x32xf32> -> vector<64x32xf32>
    %c0_36 = arith.constant 0 : index
    %c0_37 = arith.constant 0 : index
    %c0_38 = arith.constant 0 : index
    %102 = vector.load %arg6[%c0_36, %c0_37, %c0_38] : memref<2x1x32xf32, #tpu.memory_space<vmem>>, vector<1x1x32xf32>
    %103 = vector.shape_cast %102 : vector<1x1x32xf32> to vector<1x32xf32>
    %104 = vector.broadcast %103 : vector<1x32xf32> to vector<64x32xf32>
    %105 = arith.addf %101, %104 : vector<64x32xf32>
    %106 = arith.addf %8, %105 : vector<64x32xf32>
    %c0_39 = arith.constant 0 : index
    %c0_40 = arith.constant 0 : index
    %c0_41 = arith.constant 0 : index
    %107 = vector.load %arg7[%c0_39, %c0_40, %c0_41] : memref<2x1x32xf32, #tpu.memory_space<vmem>>, vector<1x1x32xf32>
    %108 = vector.shape_cast %107 : vector<1x1x32xf32> to vector<1x32xf32>
    %c0_42 = arith.constant 0 : index
    %c0_43 = arith.constant 0 : index
    %c0_44 = arith.constant 0 : index
    %109 = vector.load %arg8[%c0_42, %c0_43, %c0_44] : memref<2x1x32xf32, #tpu.memory_space<vmem>>, vector<1x1x32xf32>
    %110 = vector.shape_cast %109 : vector<1x1x32xf32> to vector<1x32xf32>
    %cst_45 = arith.constant dense<0.000000e+00> : vector<64xf32>
    %111 = vector.multi_reduction <add>, %106, %cst_45 [1] : vector<64x32xf32> to vector<64xf32>
    %112 = vector.shape_cast %111 : vector<64xf32> to vector<64x1xf32>
    %cst_46 = arith.constant 3.200000e+01 : f32
    %113 = vector.broadcast %cst_46 : f32 to vector<64x1xf32>
    %114 = arith.divf %112, %113 : vector<64x1xf32>
    %115 = vector.broadcast %114 : vector<64x1xf32> to vector<64x32xf32>
    %116 = arith.subf %106, %115 : vector<64x32xf32>
    %117 = arith.mulf %116, %116 : vector<64x32xf32>
    %cst_47 = arith.constant dense<0.000000e+00> : vector<64xf32>
    %118 = vector.multi_reduction <add>, %117, %cst_47 [1] : vector<64x32xf32> to vector<64xf32>
    %119 = vector.shape_cast %118 : vector<64xf32> to vector<64x1xf32>
    %cst_48 = arith.constant 3.200000e+01 : f32
    %120 = vector.broadcast %cst_48 : f32 to vector<64x1xf32>
    %121 = arith.divf %119, %120 : vector<64x1xf32>
    %122 = vector.broadcast %114 : vector<64x1xf32> to vector<64x32xf32>
    %123 = arith.subf %106, %122 : vector<64x32xf32>
    %cst_49 = arith.constant 9.99999974E-6 : f32
    %124 = vector.broadcast %cst_49 : f32 to vector<64x1xf32>
    %125 = arith.addf %121, %124 : vector<64x1xf32>
    %126 = math.rsqrt %125 : vector<64x1xf32>
    %127 = vector.broadcast %126 : vector<64x1xf32> to vector<64x32xf32>
    %128 = arith.mulf %123, %127 : vector<64x32xf32>
    %129 = vector.broadcast %108 : vector<1x32xf32> to vector<64x32xf32>
    %130 = arith.mulf %128, %129 : vector<64x32xf32>
    %131 = vector.broadcast %110 : vector<1x32xf32> to vector<64x32xf32>
    %132 = arith.addf %130, %131 : vector<64x32xf32>
    %133 = arith.truncf %132 : vector<64x32xf32> to vector<64x32xbf16>
    %c0_50 = arith.constant 0 : index
    %c0_51 = arith.constant 0 : index
    %c0_52 = arith.constant 0 : index
    %134 = vector.load %arg9[%c0_50, %c0_51, %c0_52] : memref<2x32x2048xbf16, #tpu.memory_space<vmem>>, vector<1x32x2048xbf16>
    %135 = vector.shape_cast %134 : vector<1x32x2048xbf16> to vector<32x2048xbf16>
    %cst_53 = arith.constant dense<0.000000e+00> : vector<64x2048xf32>
    %136 = tpu.matmul %133, %135, %cst_53 {dimension_numbers = #tpu.dot_dimension_numbers<[1], [0], [0], [1], [0, 0, 1, 1], [], []>} : vector<64x32xbf16>, vector<32x2048xbf16>, vector<64x2048xf32> -> vector<64x2048xf32>
    %c0_54 = arith.constant 0 : index
    %c0_55 = arith.constant 0 : index
    %c0_56 = arith.constant 0 : index
    %137 = vector.load %arg10[%c0_54, %c0_55, %c0_56] : memref<2x1x2048xf32, #tpu.memory_space<vmem>>, vector<1x1x2048xf32>
    %138 = vector.shape_cast %137 : vector<1x1x2048xf32> to vector<1x2048xf32>
    %139 = vector.broadcast %138 : vector<1x2048xf32> to vector<64x2048xf32>
    %140 = arith.addf %136, %139 : vector<64x2048xf32>
    %cst_57 = arith.constant 0.000000e+00 : f32
    %141 = vector.broadcast %cst_57 : f32 to vector<64x2048xf32>
    %142 = arith.maximumf %140, %141 : vector<64x2048xf32>
    %143 = arith.truncf %142 : vector<64x2048xf32> to vector<64x2048xbf16>
    %c0_58 = arith.constant 0 : index
    %c0_59 = arith.constant 0 : index
    %c0_60 = arith.constant 0 : index
    %144 = vector.load %arg11[%c0_58, %c0_59, %c0_60] : memref<2x2048x32xbf16, #tpu.memory_space<vmem>>, vector<1x2048x32xbf16>
    %145 = vector.shape_cast %144 : vector<1x2048x32xbf16> to vector<2048x32xbf16>
    %cst_61 = arith.constant dense<0.000000e+00> : vector<64x32xf32>
    %146 = tpu.matmul %143, %145, %cst_61 {dimension_numbers = #tpu.dot_dimension_numbers<[1], [0], [0], [1], [0, 0, 1, 1], [], []>} : vector<64x2048xbf16>, vector<2048x32xbf16>, vector<64x32xf32> -> vector<64x32xf32>
    %c0_62 = arith.constant 0 : index
    %c0_63 = arith.constant 0 : index
    %c0_64 = arith.constant 0 : index
    %147 = vector.load %arg12[%c0_62, %c0_63, %c0_64] : memref<2x1x32xf32, #tpu.memory_space<vmem>>, vector<1x1x32xf32>
    %148 = vector.shape_cast %147 : vector<1x1x32xf32> to vector<1x32xf32>
    %149 = vector.broadcast %148 : vector<1x32xf32> to vector<64x32xf32>
    %150 = arith.addf %146, %149 : vector<64x32xf32>
    %151 = arith.addf %132, %150 : vector<64x32xf32>
    %c0_65 = arith.constant 0 : index
    %c0_66 = arith.constant 0 : index
    %c0_67 = arith.constant 0 : index
    %152 = vector.load %arg13[%c0_65, %c0_66, %c0_67] : memref<2x1x32xf32, #tpu.memory_space<vmem>>, vector<1x1x32xf32>
    %153 = vector.shape_cast %152 : vector<1x1x32xf32> to vector<1x32xf32>
    %c0_68 = arith.constant 0 : index
    %c0_69 = arith.constant 0 : index
    %c0_70 = arith.constant 0 : index
    %154 = vector.load %arg14[%c0_68, %c0_69, %c0_70] : memref<2x1x32xf32, #tpu.memory_space<vmem>>, vector<1x1x32xf32>
    %155 = vector.shape_cast %154 : vector<1x1x32xf32> to vector<1x32xf32>
    %cst_71 = arith.constant dense<0.000000e+00> : vector<64xf32>
    %156 = vector.multi_reduction <add>, %151, %cst_71 [1] : vector<64x32xf32> to vector<64xf32>
    %157 = vector.shape_cast %156 : vector<64xf32> to vector<64x1xf32>
    %cst_72 = arith.constant 3.200000e+01 : f32
    %158 = vector.broadcast %cst_72 : f32 to vector<64x1xf32>
    %159 = arith.divf %157, %158 : vector<64x1xf32>
    %160 = vector.broadcast %159 : vector<64x1xf32> to vector<64x32xf32>
    %161 = arith.subf %151, %160 : vector<64x32xf32>
    %162 = arith.mulf %161, %161 : vector<64x32xf32>
    %cst_73 = arith.constant dense<0.000000e+00> : vector<64xf32>
    %163 = vector.multi_reduction <add>, %162, %cst_73 [1] : vector<64x32xf32> to vector<64xf32>
    %164 = vector.shape_cast %163 : vector<64xf32> to vector<64x1xf32>
    %cst_74 = arith.constant 3.200000e+01 : f32
    %165 = vector.broadcast %cst_74 : f32 to vector<64x1xf32>
    %166 = arith.divf %164, %165 : vector<64x1xf32>
    %167 = vector.broadcast %159 : vector<64x1xf32> to vector<64x32xf32>
    %168 = arith.subf %151, %167 : vector<64x32xf32>
    %cst_75 = arith.constant 9.99999974E-6 : f32
    %169 = vector.broadcast %cst_75 : f32 to vector<64x1xf32>
    %170 = arith.addf %166, %169 : vector<64x1xf32>
    %171 = math.rsqrt %170 : vector<64x1xf32>
    %172 = vector.broadcast %171 : vector<64x1xf32> to vector<64x32xf32>
    %173 = arith.mulf %168, %172 : vector<64x32xf32>
    %174 = vector.broadcast %153 : vector<1x32xf32> to vector<64x32xf32>
    %175 = arith.mulf %173, %174 : vector<64x32xf32>
    %176 = vector.broadcast %155 : vector<1x32xf32> to vector<64x32xf32>
    %177 = arith.addf %175, %176 : vector<64x32xf32>
    %178 = arith.truncf %177 : vector<64x32xf32> to vector<64x32xbf16>
    %c1 = arith.constant 1 : index
    %c0_76 = arith.constant 0 : index
    %c0_77 = arith.constant 0 : index
    %179 = vector.load %arg3[%c1, %c0_76, %c0_77] : memref<2x32x96xbf16, #tpu.memory_space<vmem>>, vector<1x32x96xbf16>
    %180 = vector.shape_cast %179 : vector<1x32x96xbf16> to vector<32x96xbf16>
    %cst_78 = arith.constant dense<0.000000e+00> : vector<64x96xf32>
    %181 = tpu.matmul %178, %180, %cst_78 {dimension_numbers = #tpu.dot_dimension_numbers<[1], [0], [0], [1], [0, 0, 1, 1], [], []>} : vector<64x32xbf16>, vector<32x96xbf16>, vector<64x96xf32> -> vector<64x96xf32>
    %c1_79 = arith.constant 1 : index
    %c0_80 = arith.constant 0 : index
    %c0_81 = arith.constant 0 : index
    %182 = vector.load %arg4[%c1_79, %c0_80, %c0_81] : memref<2x1x96xf32, #tpu.memory_space<vmem>>, vector<1x1x96xf32>
    %183 = vector.shape_cast %182 : vector<1x1x96xf32> to vector<1x96xf32>
    %184 = vector.broadcast %183 : vector<1x96xf32> to vector<64x96xf32>
    %185 = arith.addf %181, %184 : vector<64x96xf32>
    %186 = vector.extract_strided_slice %185 {offsets = [0, 0], sizes = [64, 8], strides = [1, 1]} : vector<64x96xf32> to vector<64x8xf32>
    %187 = vector.extract_strided_slice %185 {offsets = [0, 32], sizes = [64, 8], strides = [1, 1]} : vector<64x96xf32> to vector<64x8xf32>
    %188 = vector.extract_strided_slice %185 {offsets = [0, 64], sizes = [64, 8], strides = [1, 1]} : vector<64x96xf32> to vector<64x8xf32>
    %189 = arith.truncf %186 : vector<64x8xf32> to vector<64x8xbf16>
    %190 = arith.truncf %187 : vector<64x8xf32> to vector<64x8xbf16>
    %cst_82 = arith.constant dense<0.000000e+00> : vector<64x64xf32>
    %191 = tpu.matmul %189, %190, %cst_82 {dimension_numbers = #tpu.dot_dimension_numbers<[1], [1], [0], [0], [0, 0, 1, 0], [], []>} : vector<64x8xbf16>, vector<64x8xbf16>, vector<64x64xf32> -> vector<64x64xf32>
    %cst_83 = arith.constant 0.353553385 : f32
    %192 = vector.broadcast %cst_83 : f32 to vector<64x64xf32>
    %193 = arith.mulf %191, %192 : vector<64x64xf32>
    %cst_84 = arith.constant dense<0xFF800000> : vector<64xf32>
    %194 = vector.multi_reduction <maximumf>, %193, %cst_84 [1] : vector<64x64xf32> to vector<64xf32>
    %195 = vector.shape_cast %194 : vector<64xf32> to vector<64x1xf32>
    %196 = vector.broadcast %195 : vector<64x1xf32> to vector<64x64xf32>
    %197 = arith.subf %193, %196 : vector<64x64xf32>
    %198 = math.exp %197 : vector<64x64xf32>
    %cst_85 = arith.constant dense<0.000000e+00> : vector<64xf32>
    %199 = vector.multi_reduction <add>, %198, %cst_85 [1] : vector<64x64xf32> to vector<64xf32>
    %200 = vector.shape_cast %199 : vector<64xf32> to vector<64x1xf32>
    %201 = vector.broadcast %200 : vector<64x1xf32> to vector<64x64xf32>
    %202 = arith.divf %198, %201 : vector<64x64xf32>
    %203 = arith.truncf %202 : vector<64x64xf32> to vector<64x64xbf16>
    %204 = arith.truncf %188 : vector<64x8xf32> to vector<64x8xbf16>
    %cst_86 = arith.constant dense<0.000000e+00> : vector<64x8xf32>
    %205 = tpu.matmul %203, %204, %cst_86 {dimension_numbers = #tpu.dot_dimension_numbers<[1], [0], [0], [1], [0, 0, 1, 1], [], []>} : vector<64x64xbf16>, vector<64x8xbf16>, vector<64x8xf32> -> vector<64x8xf32>
    %206 = vector.extract_strided_slice %185 {offsets = [0, 8], sizes = [64, 8], strides = [1, 1]} : vector<64x96xf32> to vector<64x8xf32>
    %207 = vector.extract_strided_slice %185 {offsets = [0, 40], sizes = [64, 8], strides = [1, 1]} : vector<64x96xf32> to vector<64x8xf32>
    %208 = vector.extract_strided_slice %185 {offsets = [0, 72], sizes = [64, 8], strides = [1, 1]} : vector<64x96xf32> to vector<64x8xf32>
    %209 = arith.truncf %206 : vector<64x8xf32> to vector<64x8xbf16>
    %210 = arith.truncf %207 : vector<64x8xf32> to vector<64x8xbf16>
    %cst_87 = arith.constant dense<0.000000e+00> : vector<64x64xf32>
    %211 = tpu.matmul %209, %210, %cst_87 {dimension_numbers = #tpu.dot_dimension_numbers<[1], [1], [0], [0], [0, 0, 1, 0], [], []>} : vector<64x8xbf16>, vector<64x8xbf16>, vector<64x64xf32> -> vector<64x64xf32>
    %cst_88 = arith.constant 0.353553385 : f32
    %212 = vector.broadcast %cst_88 : f32 to vector<64x64xf32>
    %213 = arith.mulf %211, %212 : vector<64x64xf32>
    %cst_89 = arith.constant dense<0xFF800000> : vector<64xf32>
    %214 = vector.multi_reduction <maximumf>, %213, %cst_89 [1] : vector<64x64xf32> to vector<64xf32>
    %215 = vector.shape_cast %214 : vector<64xf32> to vector<64x1xf32>
    %216 = vector.broadcast %215 : vector<64x1xf32> to vector<64x64xf32>
    %217 = arith.subf %213, %216 : vector<64x64xf32>
    %218 = math.exp %217 : vector<64x64xf32>
    %cst_90 = arith.constant dense<0.000000e+00> : vector<64xf32>
    %219 = vector.multi_reduction <add>, %218, %cst_90 [1] : vector<64x64xf32> to vector<64xf32>
    %220 = vector.shape_cast %219 : vector<64xf32> to vector<64x1xf32>
    %221 = vector.broadcast %220 : vector<64x1xf32> to vector<64x64xf32>
    %222 = arith.divf %218, %221 : vector<64x64xf32>
    %223 = arith.truncf %222 : vector<64x64xf32> to vector<64x64xbf16>
    %224 = arith.truncf %208 : vector<64x8xf32> to vector<64x8xbf16>
    %cst_91 = arith.constant dense<0.000000e+00> : vector<64x8xf32>
    %225 = tpu.matmul %223, %224, %cst_91 {dimension_numbers = #tpu.dot_dimension_numbers<[1], [0], [0], [1], [0, 0, 1, 1], [], []>} : vector<64x64xbf16>, vector<64x8xbf16>, vector<64x8xf32> -> vector<64x8xf32>
    %226 = vector.extract_strided_slice %185 {offsets = [0, 16], sizes = [64, 8], strides = [1, 1]} : vector<64x96xf32> to vector<64x8xf32>
    %227 = vector.extract_strided_slice %185 {offsets = [0, 48], sizes = [64, 8], strides = [1, 1]} : vector<64x96xf32> to vector<64x8xf32>
    %228 = vector.extract_strided_slice %185 {offsets = [0, 80], sizes = [64, 8], strides = [1, 1]} : vector<64x96xf32> to vector<64x8xf32>
    %229 = arith.truncf %226 : vector<64x8xf32> to vector<64x8xbf16>
    %230 = arith.truncf %227 : vector<64x8xf32> to vector<64x8xbf16>
    %cst_92 = arith.constant dense<0.000000e+00> : vector<64x64xf32>
    %231 = tpu.matmul %229, %230, %cst_92 {dimension_numbers = #tpu.dot_dimension_numbers<[1], [1], [0], [0], [0, 0, 1, 0], [], []>} : vector<64x8xbf16>, vector<64x8xbf16>, vector<64x64xf32> -> vector<64x64xf32>
    %cst_93 = arith.constant 0.353553385 : f32
    %232 = vector.broadcast %cst_93 : f32 to vector<64x64xf32>
    %233 = arith.mulf %231, %232 : vector<64x64xf32>
    %cst_94 = arith.constant dense<0xFF800000> : vector<64xf32>
    %234 = vector.multi_reduction <maximumf>, %233, %cst_94 [1] : vector<64x64xf32> to vector<64xf32>
    %235 = vector.shape_cast %234 : vector<64xf32> to vector<64x1xf32>
    %236 = vector.broadcast %235 : vector<64x1xf32> to vector<64x64xf32>
    %237 = arith.subf %233, %236 : vector<64x64xf32>
    %238 = math.exp %237 : vector<64x64xf32>
    %cst_95 = arith.constant dense<0.000000e+00> : vector<64xf32>
    %239 = vector.multi_reduction <add>, %238, %cst_95 [1] : vector<64x64xf32> to vector<64xf32>
    %240 = vector.shape_cast %239 : vector<64xf32> to vector<64x1xf32>
    %241 = vector.broadcast %240 : vector<64x1xf32> to vector<64x64xf32>
    %242 = arith.divf %238, %241 : vector<64x64xf32>
    %243 = arith.truncf %242 : vector<64x64xf32> to vector<64x64xbf16>
    %244 = arith.truncf %228 : vector<64x8xf32> to vector<64x8xbf16>
    %cst_96 = arith.constant dense<0.000000e+00> : vector<64x8xf32>
    %245 = tpu.matmul %243, %244, %cst_96 {dimension_numbers = #tpu.dot_dimension_numbers<[1], [0], [0], [1], [0, 0, 1, 1], [], []>} : vector<64x64xbf16>, vector<64x8xbf16>, vector<64x8xf32> -> vector<64x8xf32>
    %246 = vector.extract_strided_slice %185 {offsets = [0, 24], sizes = [64, 8], strides = [1, 1]} : vector<64x96xf32> to vector<64x8xf32>
    %247 = vector.extract_strided_slice %185 {offsets = [0, 56], sizes = [64, 8], strides = [1, 1]} : vector<64x96xf32> to vector<64x8xf32>
    %248 = vector.extract_strided_slice %185 {offsets = [0, 88], sizes = [64, 8], strides = [1, 1]} : vector<64x96xf32> to vector<64x8xf32>
    %249 = arith.truncf %246 : vector<64x8xf32> to vector<64x8xbf16>
    %250 = arith.truncf %247 : vector<64x8xf32> to vector<64x8xbf16>
    %cst_97 = arith.constant dense<0.000000e+00> : vector<64x64xf32>
    %251 = tpu.matmul %249, %250, %cst_97 {dimension_numbers = #tpu.dot_dimension_numbers<[1], [1], [0], [0], [0, 0, 1, 0], [], []>} : vector<64x8xbf16>, vector<64x8xbf16>, vector<64x64xf32> -> vector<64x64xf32>
    %cst_98 = arith.constant 0.353553385 : f32
    %252 = vector.broadcast %cst_98 : f32 to vector<64x64xf32>
    %253 = arith.mulf %251, %252 : vector<64x64xf32>
    %cst_99 = arith.constant dense<0xFF800000> : vector<64xf32>
    %254 = vector.multi_reduction <maximumf>, %253, %cst_99 [1] : vector<64x64xf32> to vector<64xf32>
    %255 = vector.shape_cast %254 : vector<64xf32> to vector<64x1xf32>
    %256 = vector.broadcast %255 : vector<64x1xf32> to vector<64x64xf32>
    %257 = arith.subf %253, %256 : vector<64x64xf32>
    %258 = math.exp %257 : vector<64x64xf32>
    %cst_100 = arith.constant dense<0.000000e+00> : vector<64xf32>
    %259 = vector.multi_reduction <add>, %258, %cst_100 [1] : vector<64x64xf32> to vector<64xf32>
    %260 = vector.shape_cast %259 : vector<64xf32> to vector<64x1xf32>
    %261 = vector.broadcast %260 : vector<64x1xf32> to vector<64x64xf32>
    %262 = arith.divf %258, %261 : vector<64x64xf32>
    %263 = arith.truncf %262 : vector<64x64xf32> to vector<64x64xbf16>
    %264 = arith.truncf %248 : vector<64x8xf32> to vector<64x8xbf16>
    %cst_101 = arith.constant dense<0.000000e+00> : vector<64x8xf32>
    %265 = tpu.matmul %263, %264, %cst_101 {dimension_numbers = #tpu.dot_dimension_numbers<[1], [0], [0], [1], [0, 0, 1, 1], [], []>} : vector<64x64xbf16>, vector<64x8xbf16>, vector<64x8xf32> -> vector<64x8xf32>
    %266 = tpu.concatenate %205, %225, %245, %265 in 1 : vector<64x8xf32>, vector<64x8xf32>, vector<64x8xf32>, vector<64x8xf32> -> vector<64x32xf32>
    %267 = arith.truncf %266 : vector<64x32xf32> to vector<64x32xbf16>
    %c1_102 = arith.constant 1 : index
    %c0_103 = arith.constant 0 : index
    %c0_104 = arith.constant 0 : index
    %268 = vector.load %arg5[%c1_102, %c0_103, %c0_104] : memref<2x32x32xbf16, #tpu.memory_space<vmem>>, vector<1x32x32xbf16>
    %269 = vector.shape_cast %268 : vector<1x32x32xbf16> to vector<32x32xbf16>
    %cst_105 = arith.constant dense<0.000000e+00> : vector<64x32xf32>
    %270 = tpu.matmul %267, %269, %cst_105 {dimension_numbers = #tpu.dot_dimension_numbers<[1], [0], [0], [1], [0, 0, 1, 1], [], []>} : vector<64x32xbf16>, vector<32x32xbf16>, vector<64x32xf32> -> vector<64x32xf32>
    %c1_106 = arith.constant 1 : index
    %c0_107 = arith.constant 0 : index
    %c0_108 = arith.constant 0 : index
    %271 = vector.load %arg6[%c1_106, %c0_107, %c0_108] : memref<2x1x32xf32, #tpu.memory_space<vmem>>, vector<1x1x32xf32>
    %272 = vector.shape_cast %271 : vector<1x1x32xf32> to vector<1x32xf32>
    %273 = vector.broadcast %272 : vector<1x32xf32> to vector<64x32xf32>
    %274 = arith.addf %270, %273 : vector<64x32xf32>
    %275 = arith.addf %177, %274 : vector<64x32xf32>
    %c1_109 = arith.constant 1 : index
    %c0_110 = arith.constant 0 : index
    %c0_111 = arith.constant 0 : index
    %276 = vector.load %arg7[%c1_109, %c0_110, %c0_111] : memref<2x1x32xf32, #tpu.memory_space<vmem>>, vector<1x1x32xf32>
    %277 = vector.shape_cast %276 : vector<1x1x32xf32> to vector<1x32xf32>
    %c1_112 = arith.constant 1 : index
    %c0_113 = arith.constant 0 : index
    %c0_114 = arith.constant 0 : index
    %278 = vector.load %arg8[%c1_112, %c0_113, %c0_114] : memref<2x1x32xf32, #tpu.memory_space<vmem>>, vector<1x1x32xf32>
    %279 = vector.shape_cast %278 : vector<1x1x32xf32> to vector<1x32xf32>
    %cst_115 = arith.constant dense<0.000000e+00> : vector<64xf32>
    %280 = vector.multi_reduction <add>, %275, %cst_115 [1] : vector<64x32xf32> to vector<64xf32>
    %281 = vector.shape_cast %280 : vector<64xf32> to vector<64x1xf32>
    %cst_116 = arith.constant 3.200000e+01 : f32
    %282 = vector.broadcast %cst_116 : f32 to vector<64x1xf32>
    %283 = arith.divf %281, %282 : vector<64x1xf32>
    %284 = vector.broadcast %283 : vector<64x1xf32> to vector<64x32xf32>
    %285 = arith.subf %275, %284 : vector<64x32xf32>
    %286 = arith.mulf %285, %285 : vector<64x32xf32>
    %cst_117 = arith.constant dense<0.000000e+00> : vector<64xf32>
    %287 = vector.multi_reduction <add>, %286, %cst_117 [1] : vector<64x32xf32> to vector<64xf32>
    %288 = vector.shape_cast %287 : vector<64xf32> to vector<64x1xf32>
    %cst_118 = arith.constant 3.200000e+01 : f32
    %289 = vector.broadcast %cst_118 : f32 to vector<64x1xf32>
    %290 = arith.divf %288, %289 : vector<64x1xf32>
    %291 = vector.broadcast %283 : vector<64x1xf32> to vector<64x32xf32>
    %292 = arith.subf %275, %291 : vector<64x32xf32>
    %cst_119 = arith.constant 9.99999974E-6 : f32
    %293 = vector.broadcast %cst_119 : f32 to vector<64x1xf32>
    %294 = arith.addf %290, %293 : vector<64x1xf32>
    %295 = math.rsqrt %294 : vector<64x1xf32>
    %296 = vector.broadcast %295 : vector<64x1xf32> to vector<64x32xf32>
    %297 = arith.mulf %292, %296 : vector<64x32xf32>
    %298 = vector.broadcast %277 : vector<1x32xf32> to vector<64x32xf32>
    %299 = arith.mulf %297, %298 : vector<64x32xf32>
    %300 = vector.broadcast %279 : vector<1x32xf32> to vector<64x32xf32>
    %301 = arith.addf %299, %300 : vector<64x32xf32>
    %302 = arith.truncf %301 : vector<64x32xf32> to vector<64x32xbf16>
    %c1_120 = arith.constant 1 : index
    %c0_121 = arith.constant 0 : index
    %c0_122 = arith.constant 0 : index
    %303 = vector.load %arg9[%c1_120, %c0_121, %c0_122] : memref<2x32x2048xbf16, #tpu.memory_space<vmem>>, vector<1x32x2048xbf16>
    %304 = vector.shape_cast %303 : vector<1x32x2048xbf16> to vector<32x2048xbf16>
    %cst_123 = arith.constant dense<0.000000e+00> : vector<64x2048xf32>
    %305 = tpu.matmul %302, %304, %cst_123 {dimension_numbers = #tpu.dot_dimension_numbers<[1], [0], [0], [1], [0, 0, 1, 1], [], []>} : vector<64x32xbf16>, vector<32x2048xbf16>, vector<64x2048xf32> -> vector<64x2048xf32>
    %c1_124 = arith.constant 1 : index
    %c0_125 = arith.constant 0 : index
    %c0_126 = arith.constant 0 : index
    %306 = vector.load %arg10[%c1_124, %c0_125, %c0_126] : memref<2x1x2048xf32, #tpu.memory_space<vmem>>, vector<1x1x2048xf32>
    %307 = vector.shape_cast %306 : vector<1x1x2048xf32> to vector<1x2048xf32>
    %308 = vector.broadcast %307 : vector<1x2048xf32> to vector<64x2048xf32>
    %309 = arith.addf %305, %308 : vector<64x2048xf32>
    %cst_127 = arith.constant 0.000000e+00 : f32
    %310 = vector.broadcast %cst_127 : f32 to vector<64x2048xf32>
    %311 = arith.maximumf %309, %310 : vector<64x2048xf32>
    %312 = arith.truncf %311 : vector<64x2048xf32> to vector<64x2048xbf16>
    %c1_128 = arith.constant 1 : index
    %c0_129 = arith.constant 0 : index
    %c0_130 = arith.constant 0 : index
    %313 = vector.load %arg11[%c1_128, %c0_129, %c0_130] : memref<2x2048x32xbf16, #tpu.memory_space<vmem>>, vector<1x2048x32xbf16>
    %314 = vector.shape_cast %313 : vector<1x2048x32xbf16> to vector<2048x32xbf16>
    %cst_131 = arith.constant dense<0.000000e+00> : vector<64x32xf32>
    %315 = tpu.matmul %312, %314, %cst_131 {dimension_numbers = #tpu.dot_dimension_numbers<[1], [0], [0], [1], [0, 0, 1, 1], [], []>} : vector<64x2048xbf16>, vector<2048x32xbf16>, vector<64x32xf32> -> vector<64x32xf32>
    %c1_132 = arith.constant 1 : index
    %c0_133 = arith.constant 0 : index
    %c0_134 = arith.constant 0 : index
    %316 = vector.load %arg12[%c1_132, %c0_133, %c0_134] : memref<2x1x32xf32, #tpu.memory_space<vmem>>, vector<1x1x32xf32>
    %317 = vector.shape_cast %316 : vector<1x1x32xf32> to vector<1x32xf32>
    %318 = vector.broadcast %317 : vector<1x32xf32> to vector<64x32xf32>
    %319 = arith.addf %315, %318 : vector<64x32xf32>
    %320 = arith.addf %301, %319 : vector<64x32xf32>
    %c1_135 = arith.constant 1 : index
    %c0_136 = arith.constant 0 : index
    %c0_137 = arith.constant 0 : index
    %321 = vector.load %arg13[%c1_135, %c0_136, %c0_137] : memref<2x1x32xf32, #tpu.memory_space<vmem>>, vector<1x1x32xf32>
    %322 = vector.shape_cast %321 : vector<1x1x32xf32> to vector<1x32xf32>
    %c1_138 = arith.constant 1 : index
    %c0_139 = arith.constant 0 : index
    %c0_140 = arith.constant 0 : index
    %323 = vector.load %arg14[%c1_138, %c0_139, %c0_140] : memref<2x1x32xf32, #tpu.memory_space<vmem>>, vector<1x1x32xf32>
    %324 = vector.shape_cast %323 : vector<1x1x32xf32> to vector<1x32xf32>
    %cst_141 = arith.constant dense<0.000000e+00> : vector<64xf32>
    %325 = vector.multi_reduction <add>, %320, %cst_141 [1] : vector<64x32xf32> to vector<64xf32>
    %326 = vector.shape_cast %325 : vector<64xf32> to vector<64x1xf32>
    %cst_142 = arith.constant 3.200000e+01 : f32
    %327 = vector.broadcast %cst_142 : f32 to vector<64x1xf32>
    %328 = arith.divf %326, %327 : vector<64x1xf32>
    %329 = vector.broadcast %328 : vector<64x1xf32> to vector<64x32xf32>
    %330 = arith.subf %320, %329 : vector<64x32xf32>
    %331 = arith.mulf %330, %330 : vector<64x32xf32>
    %cst_143 = arith.constant dense<0.000000e+00> : vector<64xf32>
    %332 = vector.multi_reduction <add>, %331, %cst_143 [1] : vector<64x32xf32> to vector<64xf32>
    %333 = vector.shape_cast %332 : vector<64xf32> to vector<64x1xf32>
    %cst_144 = arith.constant 3.200000e+01 : f32
    %334 = vector.broadcast %cst_144 : f32 to vector<64x1xf32>
    %335 = arith.divf %333, %334 : vector<64x1xf32>
    %336 = vector.broadcast %328 : vector<64x1xf32> to vector<64x32xf32>
    %337 = arith.subf %320, %336 : vector<64x32xf32>
    %cst_145 = arith.constant 9.99999974E-6 : f32
    %338 = vector.broadcast %cst_145 : f32 to vector<64x1xf32>
    %339 = arith.addf %335, %338 : vector<64x1xf32>
    %340 = math.rsqrt %339 : vector<64x1xf32>
    %341 = vector.broadcast %340 : vector<64x1xf32> to vector<64x32xf32>
    %342 = arith.mulf %337, %341 : vector<64x32xf32>
    %343 = vector.broadcast %322 : vector<1x32xf32> to vector<64x32xf32>
    %344 = arith.mulf %342, %343 : vector<64x32xf32>
    %345 = vector.broadcast %324 : vector<1x32xf32> to vector<64x32xf32>
    %346 = arith.addf %344, %345 : vector<64x32xf32>
    %347 = arith.truncf %346 : vector<64x32xf32> to vector<64x32xbf16>
    %c0_146 = arith.constant 0 : index
    %c0_147 = arith.constant 0 : index
    %348 = vector.load %arg15[%c0_146, %c0_147] : memref<32x64xbf16, #tpu.memory_space<vmem>>, vector<32x64xbf16>
    %cst_148 = arith.constant dense<0.000000e+00> : vector<64x64xf32>
    %349 = tpu.matmul %347, %348, %cst_148 {dimension_numbers = #tpu.dot_dimension_numbers<[1], [0], [0], [1], [0, 0, 1, 1], [], []>} : vector<64x32xbf16>, vector<32x64xbf16>, vector<64x64xf32> -> vector<64x64xf32>
    %c0_149 = arith.constant 0 : index
    %c0_150 = arith.constant 0 : index
    %350 = vector.load %arg16[%c0_149, %c0_150] : memref<1x64xf32, #tpu.memory_space<vmem>>, vector<1x64xf32>
    %351 = vector.broadcast %350 : vector<1x64xf32> to vector<64x64xf32>
    %352 = arith.addf %349, %351 : vector<64x64xf32>
    %c0_151 = arith.constant 0 : index
    %c0_152 = arith.constant 0 : index
    %c0_153 = arith.constant 0 : index
    %353 = vector.load %arg17[%c0_151, %c0_152, %c0_153] : memref<1x64x64xf32, #tpu.memory_space<vmem>>, vector<1x64x64xf32>
    %354 = vector.shape_cast %353 : vector<1x64x64xf32> to vector<64x64xf32>
    %355 = vector.shape_cast %352 : vector<64x64xf32> to vector<1x64x64xf32>
    tpu.vector_store %arg17[%c0_151, %c0_152, %c0_153], %355 {strides = array<i32>} : memref<1x64x64xf32, #tpu.memory_space<vmem>>, vector<1x64x64xf32>,
    return
  }
  func.func @transform_0(%arg0: i32) -> (i32, i32, i32) {
    %c0_i32 = arith.constant 0 : i32
    %c0_i32_0 = arith.constant 0 : i32
    %c0_i32_1 = arith.constant 0 : i32
    return %arg0, %c0_i32, %c0_i32_0 : i32, i32, i32
  }
  func.func @transform_1(%arg0: i32) -> (i32, i32) {
    %c0_i32 = arith.constant 0 : i32
    %c0_i32_0 = arith.constant 0 : i32
    %c0_i32_1 = arith.constant 0 : i32
    return %c0_i32, %c0_i32_0 : i32, i32
  }
  func.func @transform_2(%arg0: i32) -> (i32, i32, i32) {
    %c0_i32 = arith.constant 0 : i32
    %c0_i32_0 = arith.constant 0 : i32
    %c0_i32_1 = arith.constant 0 : i32
    %c0_i32_2 = arith.constant 0 : i32
    return %c0_i32, %c0_i32_0, %c0_i32_1 : i32, i32, i32
  }
  func.func @transform_3(%arg0: i32) -> (i32, i32, i32) {
    %c0_i32 = arith.constant 0 : i32
    %c0_i32_0 = arith.constant 0 : i32
    %c0_i32_1 = arith.constant 0 : i32
    %c0_i32_2 = arith.constant 0 : i32
    return %c0_i32, %c0_i32_0, %c0_i32_1 : i32, i32, i32
  }
  func.func @transform_4(%arg0: i32) -> (i32, i32, i32) {
    %c0_i32 = arith.constant 0 : i32
    %c0_i32_0 = arith.constant 0 : i32
    %c0_i32_1 = arith.constant 0 : i32
    %c0_i32_2 = arith.constant 0 : i32
    return %c0_i32, %c0_i32_0, %c0_i32_1 : i32, i32, i32
  }
  func.func @transform_5(%arg0: i32) -> (i32, i32, i32) {
    %c0_i32 = arith.constant 0 : i32
    %c0_i32_0 = arith.constant 0 : i32
    %c0_i32_1 = arith.constant 0 : i32
    %c0_i32_2 = arith.constant 0 : i32
    return %c0_i32, %c0_i32_0, %c0_i32_1 : i32, i32, i32
  }
  func.func @transform_6(%arg0: i32) -> (i32, i32, i32) {
    %c0_i32 = arith.constant 0 : i32
    %c0_i32_0 = arith.constant 0 : i32
    %c0_i32_1 = arith.constant 0 : i32
    %c0_i32_2 = arith.constant 0 : i32
    return %c0_i32, %c0_i32_0, %c0_i32_1 : i32, i32, i32
  }
  func.func @transform_7(%arg0: i32) -> (i32, i32, i32) {
    %c0_i32 = arith.constant 0 : i32
    %c0_i32_0 = arith.constant 0 : i32
    %c0_i32_1 = arith.constant 0 : i32
    %c0_i32_2 = arith.constant 0 : i32
    return %c0_i32, %c0_i32_0, %c0_i32_1 : i32, i32, i32
  }
  func.func @transform_8(%arg0: i32) -> (i32, i32, i32) {
    %c0_i32 = arith.constant 0 : i32
    %c0_i32_0 = arith.constant 0 : i32
    %c0_i32_1 = arith.constant 0 : i32
    %c0_i32_2 = arith.constant 0 : i32
    return %c0_i32, %c0_i32_0, %c0_i32_1 : i32, i32, i32
  }
  func.func @transform_9(%arg0: i32) -> (i32, i32, i32) {
    %c0_i32 = arith.constant 0 : i32
    %c0_i32_0 = arith.constant 0 : i32
    %c0_i32_1 = arith.constant 0 : i32
    %c0_i32_2 = arith.constant 0 : i32
    return %c0_i32, %c0_i32_0, %c0_i32_1 : i32, i32, i32
  }
  func.func @transform_10(%arg0: i32) -> (i32, i32, i32) {
    %c0_i32 = arith.constant 0 : i32
    %c0_i32_0 = arith.constant 0 : i32
    %c0_i32_1 = arith.constant 0 : i32
    %c0_i32_2 = arith.constant 0 : i32
    return %c0_i32, %c0_i32_0, %c0_i32_1 : i32, i32, i32
  }
  func.func @transform_11(%arg0: i32) -> (i32, i32, i32) {
    %c0_i32 = arith.constant 0 : i32
    %c0_i32_0 = arith.constant 0 : i32
    %c0_i32_1 = arith.constant 0 : i32
    %c0_i32_2 = arith.constant 0 : i32
    return %c0_i32, %c0_i32_0, %c0_i32_1 : i32, i32, i32
  }
  func.func @transform_12(%arg0: i32) -> (i32, i32, i32) {
    %c0_i32 = arith.constant 0 : i32
    %c0_i32_0 = arith.constant 0 : i32
    %c0_i32_1 = arith.constant 0 : i32
    %c0_i32_2 = arith.constant 0 : i32
    return %c0_i32, %c0_i32_0, %c0_i32_1 : i32, i32, i32
  }
  func.func @transform_13(%arg0: i32) -> (i32, i32, i32) {
    %c0_i32 = arith.constant 0 : i32
    %c0_i32_0 = arith.constant 0 : i32
    %c0_i32_1 = arith.constant 0 : i32
    %c0_i32_2 = arith.constant 0 : i32
    return %c0_i32, %c0_i32_0, %c0_i32_1 : i32, i32, i32
  }
  func.func @transform_14(%arg0: i32) -> (i32, i32) {
    %c0_i32 = arith.constant 0 : i32
    %c0_i32_0 = arith.constant 0 : i32
    %c0_i32_1 = arith.constant 0 : i32
    return %c0_i32, %c0_i32_0 : i32, i32
  }
  func.func @transform_15(%arg0: i32) -> (i32, i32) {
    %c0_i32 = arith.constant 0 : i32
    %c0_i32_0 = arith.constant 0 : i32
    %c0_i32_1 = arith.constant 0 : i32
    return %c0_i32, %c0_i32_0 : i32, i32
  }
  func.func @transform_16(%arg0: i32) -> (i32, i32, i32) {
    %c0_i32 = arith.constant 0 : i32
    %c0_i32_0 = arith.constant 0 : i32
    %c0_i32_1 = arith.constant 0 : i32
    return %arg0, %c0_i32, %c0_i32_0 : i32, i32, i32
  }
}

</mosaic_0001>

<bundles_post_ra>
// kernel: tpu_custom_call.1
= control target key start
LH: loop header
LB: loop body
LE: loop exit
PB: predicated region body
PF: predicated region fallthrough
CT: control target
= control target key end

     0   :  { %s16114_s0 = inlined_call_operand.vmem [shape: f32[2,64,1], index: 0, kind: input, shape index: {}]   ;;  %s16115_s1 = inlined_call_operand.vmem [shape: f32[64,32], index: 1, kind: input, shape index: {}]   ;;  %s16116_s2 = inlined_call_operand.vmem [shape: bf16[2,32,96], index: 2, kind: input, shape index: {}]   ;;  %s16117_s3 = inlined_call_operand.vmem [shape: f32[2,1,96], index: 3, kind: input, shape index: {}]   ;;  %s16118_s4 = inlined_call_operand.vmem [shape: bf16[2,32,32], index: 4, kind: input, shape index: {}]   ;;  %s16119_s5 = inlined_call_operand.vmem [shape: f32[2,1,32], index: 5, kind: input, shape index: {}]   ;;  %s16120_s6 = inlined_call_operand.vmem [shape: f32[2,1,32], index: 6, kind: input, shape index: {}]   ;;  %s16121_s7 = inlined_call_operand.vmem [shape: f32[2,1,32], index: 7, kind: input, shape index: {}]   ;;  %s16122_s8 = inlined_call_operand.vmem [shape: bf16[2,32,2048], index: 8, kind: input, shape index: {}]   ;;  %s16123_s9 = inlined_call_operand.vmem [shape: f32[2,1,2048], index: 9, kind: input, shape index: {}]   ;;  %s16124_s10 = inlined_call_operand.vmem [shape: bf16[2,2048,32], index: 10, kind: input, shape index: {}]   ;;  %s16125_s11 = inlined_call_operand.vmem [shape: f32[2,1,32], index: 11, kind: input, shape index: {}]   ;;  %s16126_s12 = inlined_call_operand.vmem [shape: f32[2,1,32], index: 12, kind: input, shape index: {}]   ;;  %s16127_s13 = inlined_call_operand.vmem [shape: f32[2,1,32], index: 13, kind: input, shape index: {}]   ;;  %s16128_s14 = inlined_call_operand.vmem [shape: bf16[32,64], index: 14, kind: input, shape index: {}]   ;;  %s16129_s15 = inlined_call_operand.vmem [shape: f32[1,64], index: 15, kind: input, shape index: {}]   ;;  %s16130_s16 = inlined_call_operand.hbm [shape: f32[2,64,64], index: 16, kind: output, shape index: {}]  }
   0x1   :  { %16194 = sst [smem:[#allocation39_spill]] %s16114_s0 }
   0x2   :  { %16195 = sst [smem:[#allocation40_spill]] %s16115_s1 }
   0x3   :  { %16196 = sst [smem:[#allocation41_spill]] %s16116_s2 }
   0x4   :  { %21 = vsyncpa [#allocation3], 0 }
   0x5   :  { %23 = vsyncpa [#allocation3 + $0x1], 0  ;;  %s12514_s21 = smov 0   ;;  %s12516_s22 = smov 0  }
   0x6   :  { %s12518_s23 = smov 0   ;;  %s12520_s24 = smov 0  }
   0x7 LB: > { %16197 = sst [smem:[#allocation5_spill]] %s12406_s23  ;;  %s12535_s25 = sadd.s32 4294967295, %s12410_s24   ;;  %s12410_s24 = sphi %s12520_s24, %s16328_s24   ;;  %s12406_s23 = sphi %s12518_s23, %s16330_s23   ;;  %s12402_s22 = sphi %s12516_s22, %s16332_s22   ;;  %s12398_s21 = sphi %s12514_s21, %s16331_s21  }
   0x8   : > { %s9621_s26 = sadd.s32 4294967294, %s12410_s24   ;;  %s12539_s27 = sadd.s32 1, %s12410_s24  }
   0x9   : > { %16198 = sst [smem:[#allocation6_spill]] %s12539_s27  ;;  %s377_s28 = sadd.s32 1, %s12406_s23 }
   0xa   : > { %s374_s29 = ssub.s32 %s12410_s24, %s12539_s27  ;;  %p387_p0 = scmp.ne.s32.totalorder %s12406_s23, %s12402_s22 }
   0xb   : > { %p375_p1 = scmp.eq.s32.totalorder %s374_s29, 0  ;;  %p388_p2 = scmp.eq.s32.totalorder %s12535_s25, 1 }
   0xc   : > { %p393_p3 = scmp.ne.s32.totalorder %s12402_s22, %s12398_s21  ;;  %p394_p4 = scmp.eq.s32.totalorder %s9621_s26, 1 }
   0xd   : > { %s12550_s30 = scalar_select %p375_p1, %s12406_s23, %s377_s28  }
   0xe   : > { %p12552_p5 = por %p388_p2, %p387_p0  ;;  %p12556_p6 = por %p394_p4, %p393_p3 }
   0xf   : > { %16199 = sst [smem:[#allocation7_spill]] %s12550_s30  ;;  %p9624_p7 = scmp.ge.s32.totalorder %s12410_s24, 1 }
  0x10   : > { %s16201_s17 = scalar_select %p12556_p6, 1, 0 }
  0x11   : > { %p465_p8 = scmp.lt.s32.totalorder %s12410_s24, 3 }
  0x12   : > { %16202 = sst [smem:[#allocation8_spill]] %s16201_s17 }
  0x13   : > { %p466_p9 = pnand %p9624_p7, %p465_p8 }
  0x15   : > { %469 = sbr.rel (%p466_p9) target bundleno = 8483 (0x2123), region = 84 }
  0x1a   : > { %p515_p10 = scmp.lt.s32.totalorder %s12535_s25, 1  ;;  %v16137_v0 = vmov 0   ;;  %s16203_s28 = sld [smem:[#allocation39_spill]]  ;;  %vm628_vm0 = vcmask 261120   ;;  %v9636_v58 = vld [vmem:[%s16117_s3] ss:$0 sm:$0xff] }
  0x1b   : > { %11643 = vset.pattern.permute.xlu1 %v16137_v0  ;;  %11642 = vset.pattern.permute.xlu0 %v16137_v0  ;;  %s16204_s2 = sld [smem:[#allocation41_spill]]  ;;  %vm722_vm1 = vcmask 64512   ;;  %vm820_vm2 = vcmask 523264   ;;  %s16161_s23 = smov 88   ;;  %vm1988_vm3 = vcmask 130048   ;;  %vm1997_vm4 = vcmask 195584  }
  0x1c   : > { %s516_s18 = scalar_select %p515_p10, %s12535_s25, 1 }
  0x1d   : > { %s16205_s1 = sld [smem:[#allocation40_spill]]  ;;  %s16159_s30 = smov 120  }
  0x1e   : > { %s10439_s19 = sshll.u32 %s516_s18, 6  ;;  %s16163_s18 = smov 96  }
  0x1f   : > { %s16149_s27 = smov 56   ;;  %s16147_s17 = smov 80  }
  0x20   : > { %s519_s29 = scalar_lea.vmem %s16203_s28, %s10439_s19  ;;  %s16151_s19 = smov 64  }
  0x21   : > { %v523_v1 = vld [vmem:[%s519_s29 + $0x10] sm:$0xff]  ;;  %v521_v2 = vld [vmem:[%s519_s29] sm:$0xff]  ;;  %v524_v3 = vld [vmem:[%s519_s29 + $0x18] sm:$0xff]  ;;  %s16145_s20 = smov 112   ;;  %s16141_s26 = smov 48  }
  0x22   : > { %v531_v4 = vmul.f32 2.0, %v523_v1  ;;  %v529_v5 = vmul.f32 2.0, %v521_v2  ;;  %v532_v6 = vmul.f32 2.0, %v524_v3  ;;  %v522_v7 = vld [vmem:[%s519_s29 + $0x8] sm:$0xff]  ;;  %v525_v9 = vld [vmem:[%s519_s29 + $0x20] sm:$0xff]  ;;  %v528_v16 = vld [vmem:[%s519_s29 + $0x38] sm:$0xff] }
  0x23   : > { %v526_v8 = vld [vmem:[%s519_s29 + $0x28] sm:$0xff]  ;;  %v530_v10 = vmul.f32 2.0, %v522_v7  ;;  %v533_v15 = vmul.f32 2.0, %v525_v9  ;;  %v527_v17 = vld [vmem:[%s519_s29 + $0x30] sm:$0xff]  ;;  %v11765_v18 = vld [vmem:[%s16204_s2] sm:$0xff]   ;;  %v536_v22 = vmul.f32 2.0, %v528_v16 }
  0x24   : > { %v9630_v11 = vadd.f32 -1.0, %v531_v4  ;;  %v9628_v12 = vadd.f32 -1.0, %v529_v5  ;;  %v534_v13 = vmul.f32 2.0, %v526_v8  ;;  %v11764_v14 = vld [vmem:[%s16204_s2 + $0x8] sm:$0xff]   ;;  %v9631_v19 = vadd.f32 -1.0, %v532_v6  ;;  %v547_v27 = vld [vmem:[%s16205_s1 + $0x10] sm:$0xff] }
  0x25   : > { %v9629_v20 = vadd.f32 -1.0, %v530_v10  ;;  %11239 = vmatprep.subr.bf16.mxu0 %v11764_v14  ;;  %v9632_v23 = vadd.f32 -1.0, %v533_v15  ;;  %v535_v24 = vmul.f32 2.0, %v527_v17  ;;  %v9635_v25 = vadd.f32 -1.0, %v536_v22  ;;  %v545_v29 = vld [vmem:[%s16205_s1] sm:$0xff]  ;;  %v548_v31 = vld [vmem:[%s16205_s1 + $0x18] sm:$0xff] }
  0x26   : > { %565 = vperm.xlu1 %11643, %v9630_v11   ;;  %555 = vperm.xlu0 %11642, %v9628_v12   ;;  %v9633_v21 = vadd.f32 -1.0, %v534_v13  ;;  %v546_v32 = vld [vmem:[%s16205_s1 + $0x8] sm:$0xff]  ;;  %v549_v36 = vld [vmem:[%s16205_s1 + $0x20] sm:$0xff]  ;;  %v552_v45 = vld [vmem:[%s16205_s1 + $0x38] sm:$0xff]  ;;  %s16139_s28 = smov 72   ;;  %s16135_s29 = smov 104  }
  0x27   : > { %11240 = vmatpush3.bf16.msra.mxu0 %v11764_v14  ;;  %v9634_v26 = vadd.f32 -1.0, %v535_v24  ;;  %v550_v35 = vld [vmem:[%s16205_s1 + $0x28] sm:$0xff]  ;;  %v551_v46 = vld [vmem:[%s16205_s1 + $0x30] sm:$0xff] }
  0x28   : > { %11241 = vmatprep.subr.bf16.mxu0 %v11765_v18 }
  0x2a   : > { %570 = vperm.xlu1 %11643, %v9631_v19   ;;  %560 = vperm.xlu0 %11642, %v9629_v20  }
  0x2b   : > { %11242 = vmatpush3.bf16.msra.mxu0 %v11765_v18 }
  0x2e   : > { %580 = vperm.xlu1 %11643, %v9633_v21   ;;  %575 = vperm.xlu0 %11642, %v9632_v23  }
  0x32   : > { %590 = vperm.xlu1 %11643, %v9635_v25   ;;  %585 = vperm.xlu0 %11642, %v9634_v26  }
  0xa1   : > { %v566_v28 = vpop.permute.xlu1 %565  ;;  %v556_v30 = vpop.permute.xlu0 %555 }
  0xa2   : > { %v12593_v37 = vmul.f32 %v566_v28, %v547_v27  ;;  %v12595_v38 = vmul.f32 %v556_v30, %v545_v29 }
  0xa5   : > { %v571_v33 = vpop.permute.xlu1 %570  ;;  %v561_v34 = vpop.permute.xlu0 %560 }
  0xa6   : > { %v12597_v39 = vmul.f32 %v571_v33, %v548_v31  ;;  %v12599_v40 = vmul.f32 %v561_v34, %v546_v32 }
  0xa8   : > { %v602_v41 = vpack.c.bf16 %v12597_v39, %v12593_v37  ;;  %v601_v42 = vpack.c.bf16 %v12599_v40, %v12595_v38 }
  0xa9   : > { %v581_v43 = vpop.permute.xlu1 %580  ;;  %v576_v44 = vpop.permute.xlu0 %575 }
  0xaa   : > { %v12611_v47 = vmul.f32 %v581_v43, %v550_v35  ;;  %v12613_v48 = vmul.f32 %v576_v44, %v549_v36  ;;  %11243 = vmatprep.mubr.msk.bf16.mxu0 %vm628_vm0, %v601_v42 }
  0xab   : > { %11244 = vmatmul.mubr.msk.bf16.vlgmr.msra.gmra.mxu0 %vm628_vm0, %v602_v41 }
  0xac   : > { %v603_v49 = vpack.c.bf16 %v12611_v47, %v12613_v48 }
  0xad   : > { %v591_v50 = vpop.permute.xlu1 %590  ;;  %v586_v51 = vpop.permute.xlu0 %585 }
  0xae   : > { %v12619_v52 = vmul.f32 %v591_v50, %v552_v45  ;;  %v12621_v53 = vmul.f32 %v586_v51, %v551_v46  ;;  %11247 = vmatprep.mubr.msk.bf16.mxu0 %vm628_vm0, %v603_v49 }
  0xb0   : > { %v604_v54 = vpack.c.bf16 %v12619_v52, %v12621_v53 }
  0xb3   : > { %11248 = vmatmul.mubr.msk.bf16.gmra.mxu0 %vm628_vm0, %v604_v54 }
 0x16b   : > { %v11245_v55 = vpop.f32.mrf.mxu0 }
 0x16c   : > { %v684_v10 = vadd.f32 %v11245_v55, %v9636_v58 }
 0x16d   : > { %v675_v56 = vpop.f32.mrf.mxu0 }
 0x16e   : > { %v676_v60 = vadd.f32 %v9636_v58, %v675_v56 }
 0x16f   : > { %v11246_v57 = vpop.f32.mrf.mxu0 }
 0x170   : > { %v687_v6 = vadd.f32 %v11246_v57, %v9636_v58 }
 0x171   : > { %v678_v59 = vpop.f32.mrf.mxu0 }
 0x172   : > { %v679_v61 = vadd.f32 %v9636_v58, %v678_v59  ;;  %v12640_v12 = vpack.c.bf16 %v687_v6, %v684_v10 }
 0x173   : > { %v11249_v62 = vpop.f32.mrf.mxu0 }
 0x174   : > { %v12630_v63 = vpack.c.bf16 %v679_v61, %v676_v60  ;;  %v700_v3 = vadd.f32 %v11249_v62, %v9636_v58 }
 0x175   : > { %v691_v1 = vpop.f32.mrf.mxu0 }
 0x176   : > { %11259 = vmatprep.mubr.msk.bf16.mxu1 %vm722_vm1, %v12630_v63  ;;  %v692_v7 = vadd.f32 %v9636_v58, %v691_v1 }
 0x177   : > { %v11250_v2 = vpop.f32.mrf.mxu0 }
 0x178   : > { %v703_v4 = vadd.f32 %v11250_v2, %v9636_v58 }
 0x179   : > { %v694_v5 = vpop.f32.mrf.mxu0 }
 0x17a   : > { %v12634_v8 = vpack.c.bf16 %v703_v4, %v700_v3  ;;  %v695_v9 = vadd.f32 %v9636_v58, %v694_v5 }
 0x17c   : > { %v12636_v11 = vpack.c.bf16 %v695_v9, %v692_v7  ;;  %720 = vrot.lane.b32.xlu0 %v12634_v8, %s16163_s18 }
 0x17e   : > { %718 = vrot.lane.b32.xlu1 %v12636_v11, %s16163_s18 }
 0x180   : > { %716 = vrot.lane.b32.xlu0 %v12640_v12, %s16163_s18 }
 0x182   : > { %714 = vrot.lane.b32.xlu1 %v12630_v63, %s16163_s18  ;;  %s16265_s18 = smov 112  }
 0x186   : > { %919 = vrot.lane.b32.xlu1 %v12634_v8, %s16151_s19 }
 0x1ee   : > { %v721_v13 = vpop.permute.xlu0 %720 }
 0x1ef   : > { %11555 = vmatprep.subr.msk.bf16.mxu1 %vm722_vm1, %v721_v13  ;;  %v745_v14 = vsel %vm722_vm1, %v721_v13, 0 }
 0x1f0   : > { %11252 = vmatpush3.bf16.xpose.msra.mxu1 %v745_v14  ;;  %v719_v15 = vpop.permute.xlu1 %718 }
 0x1f1   : > { %11556 = vmatprep.subr.msk.bf16.mxu1 %vm722_vm1, %v719_v15  ;;  %v742_v17 = vsel %vm722_vm1, %v719_v15, 0 }
 0x1f2   : > { %v717_v18 = vpop.permute.xlu0 %716 }
 0x1f3   : > { %v739_v20 = vsel %vm722_vm1, %v717_v18, 0 }
 0x1f4   : > { %v715_v16 = vpop.permute.xlu1 %714 }
 0x1f5   : > { %v736_v21 = vsel %vm722_vm1, %v715_v16, 0 }
 0x1f8   : > { %11254 = vmatpush3.bf16.xpose.msra.mxu1 %v742_v17  ;;  %v920_v19 = vpop.permute.xlu1 %919 }
 0x1f9   : > { %11557 = vmatprep.subr.msk.bf16.mxu1 %vm722_vm1, %v717_v18  ;;  %11267 = vmatprep.subr.bf16.mxu0 %v920_v19 }
 0x1fa   : > { %11268 = vmatpush3.bf16.msra.mxu0 %v920_v19 }
 0x200   : > { %11256 = vmatpush3.bf16.xpose.msra.mxu1 %v739_v20 }
 0x201   : > { %11558 = vmatprep.subr.msk.bf16.mxu1 %vm722_vm1, %v715_v16 }
 0x208   : > { %11258 = vmatpush3.bf16.xpose.msra.mxu1 %v736_v21 }
 0x20f   : > { %11260 = vmatmul.mubr.msk.bf16.vlgmr.msra.gmra.mxu1 %vm722_vm1, %v12640_v12 }
 0x210   : > { %11263 = vmatprep.mubr.msk.bf16.mxu1 %vm722_vm1, %v12636_v11 }
 0x217   : > { %11264 = vmatmul.mubr.msk.bf16.gmra.mxu1 %vm722_vm1, %v12634_v8 }
 0x2cf   : > { %v11261_v22 = vpop.f32.mrf.mxu1 }
 0x2d0   : > { %v814_v23 = vmul.f32 0.35355338, %v11261_v22 }
 0x2d1   : > { %v781_v24 = vpop.f32.mrf.mxu1 }
 0x2d2   : > { %v812_v25 = vmul.f32 0.35355338, %v781_v24  ;;  %v827_v26 = vsel %vm820_vm2, %v814_v23, -inf }
 0x2d3   : > { %828 = vmax.xlane.f32.xlu0 %v827_v26  ;;  %v11262_v27 = vpop.f32.mrf.mxu1 }
 0x2d4   : > { %v815_v29 = vmul.f32 0.35355338, %v11262_v27  ;;  %v821_v31 = vsel %vm820_vm2, %v812_v25, -inf }
 0x2d5   : > { %v784_v28 = vpop.f32.mrf.mxu1 }
 0x2d6   : > { %v813_v30 = vmul.f32 0.35355338, %v784_v28  ;;  %v830_v36 = vsel %vm820_vm2, %v815_v29, -inf }
 0x2d7   : > { %822 = vmax.xlane.f32.xlu0 %v821_v31  ;;  %v11265_v32 = vpop.f32.mrf.mxu1 }
 0x2d8   : > { %v12666_v33 = vmul.f32 0.35355338, %v11265_v32  ;;  %v824_v34 = vsel %vm820_vm2, %v813_v30, -inf }
 0x2d9   : > { %825 = vmax.xlane.f32.xlu1 %v824_v34  ;;  %v797_v35 = vpop.f32.mrf.mxu1 }
 0x2da   : > { %v816_v42 = vmul.f32 0.35355338, %v797_v35  ;;  %v839_v44 = vsel %vm820_vm2, %v12666_v33, -inf }
 0x2db   : > { %831 = vmax.xlane.f32.xlu0 %v830_v36  ;;  %v11266_v41 = vpop.f32.mrf.mxu1 }
 0x2dc   : > { %v819_v43 = vmul.f32 0.35355338, %v11266_v41  ;;  %v833_v50 = vsel %vm820_vm2, %v816_v42, -inf }
 0x2dd   : > { %840 = vmax.xlane.f32.xlu1 %v839_v44  ;;  %v800_v45 = vpop.f32.mrf.mxu1 }
 0x2de   : > { %v817_v46 = vmul.f32 0.35355338, %v800_v45  ;;  %v842_v49 = vsel %vm820_vm2, %v819_v43, -inf }
 0x2df   : > { %843 = vmax.xlane.f32.xlu0 %v842_v49 }
 0x2e0   : > { %v836_v51 = vsel %vm820_vm2, %v817_v46, -inf }
 0x2e1   : > { %834 = vmax.xlane.f32.xlu1 %v833_v50 }
 0x2e3   : > { %837 = vmax.xlane.f32.xlu0 %v836_v51 }
 0x2f2   : > { %915 = vrot.lane.b32.xlu1 %v12640_v12, %s16151_s19 }
 0x2f9   : > { %917 = vrot.lane.b32.xlu0 %v12636_v11, %s16151_s19 }
 0x35c   : > { %v829_v54 = vpop.xlane.xlu0 %828 }
 0x35d   : > { %v847_v55 = vsub.f32 %v814_v23, %v829_v54 }
 0x35f   : > { %v857_v56 = vmul.f32 1.442695, %v847_v55 }
 0x360   : > { %v823_v57 = vpop.xlane.xlu0 %822 }
 0x361   : > { %12030 = vpow2.f32 %v857_v56  ;;  %v845_v58 = vsub.f32 %v812_v25, %v823_v57 }
 0x362   : > { %v826_v59 = vpop.xlane.xlu1 %825 }
 0x363   : > { %v853_v60 = vmul.f32 1.442695, %v845_v58  ;;  %v846_v61 = vsub.f32 %v813_v30, %v826_v59 }
 0x364   : > { %v832_v62 = vpop.xlane.xlu0 %831 }
 0x365   : > { %12032 = vpow2.f32 %v853_v60  ;;  %v848_v1 = vsub.f32 %v815_v29, %v832_v62  ;;  %v855_v3 = vmul.f32 1.442695, %v846_v61 }
 0x366   : > { %v841_v2 = vpop.xlane.xlu1 %840 }
 0x367   : > { %v859_v4 = vmul.f32 1.442695, %v848_v1  ;;  %v851_v22 = vsub.f32 %v12666_v33, %v841_v2 }
 0x368   : > { %v844_v5 = vpop.xlane.xlu0 %843 }
 0x369   : > { %12034 = vpow2.f32 %v859_v4  ;;  %v852_v23 = vsub.f32 %v819_v43, %v844_v5  ;;  %v865_v25 = vmul.f32 1.442695, %v851_v22 }
 0x36a   : > { %12036 = vpow2.f32 %v855_v3  ;;  %v835_v6 = vpop.xlane.xlu1 %834 }
 0x36b   : > { %v849_v21 = vsub.f32 %v816_v42, %v835_v6  ;;  %v867_v26 = vmul.f32 1.442695, %v852_v23 }
 0x36c   : > { %v838_v7 = vpop.xlane.xlu0 %837 }
 0x36d   : > { %v861_v24 = vmul.f32 1.442695, %v849_v21  ;;  %v850_v27 = vsub.f32 %v817_v46, %v838_v7 }
 0x36e   : > { %v12679_v9 = vpop.eup %12030  ;;  %v916_v15 = vpop.permute.xlu1 %915 }
 0x36f   : > { %v875_v10 = vsel %vm820_vm2, %v12679_v9, 0.0  ;;  %12038 = vpow2.f32 %v861_v24  ;;  %v863_v28 = vmul.f32 1.442695, %v850_v27 }
 0x370   : > { %876 = vadd.xlane.f32.xlu1 %v875_v10  ;;  %v918_v13 = vpop.permute.xlu0 %917  ;;  %12040 = vpow2.f32 %v865_v25 }
 0x371   : > { %11269 = vmatprep.subr.bf16.mxu0 %v918_v13  ;;  %12042 = vpow2.f32 %v867_v26 }
 0x372   : > { %v12683_v14 = vpop.eup %12032  ;;  %11270 = vmatpush3.bf16.msra.mxu0 %v918_v13  ;;  %12044 = vpow2.f32 %v863_v28 }
 0x373   : > { %11271 = vmatprep.subr.bf16.mxu0 %v916_v15  ;;  %v869_v16 = vsel %vm820_vm2, %v12683_v14, 0.0 }
 0x374   : > { %870 = vadd.xlane.f32.xlu1 %v869_v16 }
 0x376   : > { %v12035_v17 = vpop.eup %12034  ;;  %11272 = vmatpush3.bf16.msra.mxu0 %v916_v15 }
 0x377   : > { %v878_v18 = vsel %vm820_vm2, %v12035_v17, 0.0  ;;  %v12037_v19 = vpop.eup %12036 }
 0x378   : > { %879 = vadd.xlane.f32.xlu0 %v878_v18  ;;  %v872_v20 = vsel %vm820_vm2, %v12037_v19, 0.0 }
 0x37c   : > { %873 = vadd.xlane.f32.xlu0 %v872_v20  ;;  %v12696_v29 = vpop.eup %12038 }
 0x37d   : > { %v12698_v30 = vpop.eup %12040  ;;  %v881_v31 = vsel %vm820_vm2, %v12696_v29, 0.0 }
 0x37e   : > { %v12702_v32 = vpop.eup %12042  ;;  %v887_v33 = vsel %vm820_vm2, %v12698_v30, 0.0 }
 0x37f   : > { %v890_v34 = vsel %vm820_vm2, %v12702_v32, 0.0  ;;  %v12708_v35 = vpop.eup %12044 }
 0x380   : > { %v884_v36 = vsel %vm820_vm2, %v12708_v35, 0.0 }
 0x385   : > { %1016 = vrot.lane.b32.xlu1 %v12634_v8, %s16161_s23 }
 0x389   : > { %1014 = vrot.lane.b32.xlu1 %v12636_v11, %s16161_s23 }
 0x392   : > { %913 = vrot.lane.b32.xlu0 %v12630_v63, %s16151_s19  ;;  %s16153_s19 = smov 24  }
 0x3ad   : > { %882 = vadd.xlane.f32.xlu1 %v881_v31 }
 0x3b1   : > { %888 = vadd.xlane.f32.xlu0 %v887_v33  ;;  %891 = vadd.xlane.f32.xlu1 %v890_v34 }
 0x3b5   : > { %885 = vadd.xlane.f32.xlu0 %v884_v36 }
 0x3c2   : > { %1010 = vrot.lane.b32.xlu1 %v12630_v63, %s16161_s23 }
 0x3c6   : > { %1004 = vrot.lane.b32.xlu1 %v12640_v12, %s16159_s30 }
 0x3ca   : > { %1008 = vrot.lane.b32.xlu1 %v12634_v8, %s16159_s30 }
 0x3cb   : > { %1012 = vrot.lane.b32.xlu0 %v12640_v12, %s16161_s23  ;;  %s16266_s23 = smov 48  }
 0x3ce   : > { %1213 = vrot.lane.b32.xlu1 %v12634_v8, %s16149_s27 }
 0x3cf   : > { %1002 = vrot.lane.b32.xlu0 %v12630_v63, %s16159_s30 }
 0x3d3   : > { %1006 = vrot.lane.b32.xlu0 %v12636_v11, %s16159_s30  ;;  %s16267_s30 = smov 72  }
 0x3f9   : > { %v877_v41 = vpop.xlane.xlu1 %876 }
 0x3fd   : > { %v871_v42 = vpop.xlane.xlu1 %870 }
 0x401   : > { %v880_v43 = vpop.xlane.xlu0 %879  ;;  %v1017_v46 = vpop.permute.xlu1 %1016 }
 0x402   : > { %12046 = vrcp.f32 %v880_v43  ;;  %v1040_v61 = vsel %vm722_vm1, %v1017_v46, 0 }
 0x403   : > { %12048 = vrcp.f32 %v871_v42 }
 0x404   : > { %12050 = vrcp.f32 %v877_v41 }
 0x405   : > { %v874_v44 = vpop.xlane.xlu0 %873  ;;  %v1015_v62 = vpop.permute.xlu1 %1014 }
 0x406   : > { %12052 = vrcp.f32 %v874_v44  ;;  %v1037_v1 = vsel %vm722_vm1, %v1015_v62, 0 }
 0x409   : > { %v914_v45 = vpop.permute.xlu0 %913 }
 0x40a   : > { %11273 = vmatprep.subr.bf16.mxu0 %v914_v45 }
 0x40b   : > { %11274 = vmatpush3.bf16.msra.mxu0 %v914_v45 }
 0x40c   : > { %11559 = vmatprep.subr.msk.bf16.mxu0 %vm722_vm1, %v1017_v46 }
 0x40f   : > { %v12047_v49 = vpop.eup %12046 }
 0x410   : > { %v12049_v50 = vpop.eup %12048  ;;  %v900_v55 = vmul.f32 %v12047_v49, %v12035_v17 }
 0x411   : > { %v12051_v51 = vpop.eup %12050  ;;  %v894_v56 = vmul.f32 %v12049_v50, %v12683_v14 }
 0x412   : > { %v898_v58 = vmul.f32 %v12051_v51, %v12679_v9 }
 0x413   : > { %v12053_v54 = vpop.eup %12052 }
 0x414   : > { %v896_v57 = vmul.f32 %v12053_v54, %v12037_v19  ;;  %v910_v60 = vpack.c.bf16 %v900_v55, %v898_v58 }
 0x416   : > { %v909_v59 = vpack.c.bf16 %v896_v57, %v894_v56 }
 0x418   : > { %11275 = vmatprep.mubr.msk.bf16.mxu0 %vm820_vm2, %v909_v59 }
 0x419   : > { %11276 = vmatmul.mubr.msk.bf16.vlgmr.msra.gmra.mxu0 %vm820_vm2, %v910_v60 }
 0x41a   : > { %11284 = vmatpush3.bf16.xpose.msra.mxu0 %v1040_v61 }
 0x41b   : > { %11560 = vmatprep.subr.msk.bf16.mxu0 %vm722_vm1, %v1015_v62 }
 0x422   : > { %11286 = vmatpush3.bf16.xpose.msra.mxu0 %v1037_v1 }
 0x436   : > { %v883_v2 = vpop.xlane.xlu1 %882 }
 0x43a   : > { %v889_v3 = vpop.xlane.xlu0 %888  ;;  %v892_v4 = vpop.xlane.xlu1 %891 }
 0x43b   : > { %12054 = vrcp.f32 %v889_v3 }
 0x43c   : > { %12056 = vrcp.f32 %v892_v4 }
 0x43d   : > { %12058 = vrcp.f32 %v883_v2 }
 0x43e   : > { %v886_v5 = vpop.xlane.xlu0 %885  ;;  %v1011_v6 = vpop.permute.xlu1 %1010 }
 0x43f   : > { %12060 = vrcp.f32 %v886_v5  ;;  %v1031_v18 = vsel %vm722_vm1, %v1011_v6, 0 }
 0x442   : > { %v1013_v7 = vpop.permute.xlu0 %1012  ;;  %v1005_v9 = vpop.permute.xlu1 %1004 }
 0x443   : > { %11561 = vmatprep.subr.msk.bf16.mxu0 %vm722_vm1, %v1013_v7  ;;  %v1034_v10 = vsel %vm722_vm1, %v1013_v7, 0 }
 0x444   : > { %11288 = vmatpush3.bf16.xpose.msra.mxu0 %v1034_v10 }
 0x445   : > { %11562 = vmatprep.subr.msk.bf16.mxu0 %vm722_vm1, %v1011_v6 }
 0x446   : > { %v1009_v13 = vpop.permute.xlu1 %1008  ;;  %v1003_v26 = vpop.permute.xlu0 %1002 }
 0x448   : > { %v12055_v14 = vpop.eup %12054 }
 0x449   : > { %v12057_v15 = vpop.eup %12056  ;;  %v906_v20 = vmul.f32 %v12055_v14, %v12698_v30 }
 0x44a   : > { %v12059_v16 = vpop.eup %12058  ;;  %v1214_v17 = vpop.permute.xlu1 %1213  ;;  %v908_v21 = vmul.f32 %v12057_v15, %v12702_v32 }
 0x44b   : > { %11299 = vmatprep.subr.bf16.mxu1 %v1214_v17  ;;  %v902_v22 = vmul.f32 %v12059_v16, %v12696_v29  ;;  %v1007_v27 = vpop.permute.xlu0 %1006 }
 0x44c   : > { %v12061_v19 = vpop.eup %12060  ;;  %11290 = vmatpush3.bf16.xpose.msra.mxu0 %v1031_v18  ;;  %11300 = vmatpush3.bf16.msra.mxu1 %v1214_v17  ;;  %v912_v25 = vpack.c.bf16 %v908_v21, %v906_v20 }
 0x44d   : > { %v904_v23 = vmul.f32 %v12061_v19, %v12708_v35 }
 0x44f   : > { %v911_v24 = vpack.c.bf16 %v904_v23, %v902_v22 }
 0x451   : > { %11279 = vmatprep.mubr.msk.bf16.mxu0 %vm820_vm2, %v911_v24 }
 0x452   : > { %11280 = vmatmul.mubr.msk.bf16.gmra.mxu0 %vm820_vm2, %v912_v25 }
 0x453   : > { %11291 = vmatprep.mubr.msk.bf16.mxu0 %vm722_vm1, %v1003_v26 }
 0x45a   : > { %11292 = vmatmul.mubr.msk.bf16.vlgmr.msra.gmra.mxu0 %vm722_vm1, %v1005_v9 }
 0x45b   : > { %11295 = vmatprep.mubr.msk.bf16.mxu0 %vm722_vm1, %v1007_v27 }
 0x462   : > { %11296 = vmatmul.mubr.msk.bf16.gmra.mxu0 %vm722_vm1, %v1009_v13 }
 0x4d9   : > { %v12748_v28 = vpop.f32.mrf.mxu0 }
 0x4db   : > { %v12750_v29 = vpop.f32.mrf.mxu0 }
 0x4dd   : > { %v12752_v30 = vpop.f32.mrf.mxu0 }
 0x4df   : > { %v12754_v31 = vpop.f32.mrf.mxu0 }
 0x512   : > { %v12756_v32 = vpop.f32.mrf.mxu0 }
 0x514   : > { %v12758_v33 = vpop.f32.mrf.mxu0 }
 0x516   : > { %v12760_v34 = vpop.f32.mrf.mxu0 }
 0x518   : > { %v12762_v35 = vpop.f32.mrf.mxu0 }
 0x51a   : > { %v11293_v36 = vpop.f32.mrf.mxu0 }
 0x51b   : > { %v1109_v41 = vmul.f32 0.35355338, %v11293_v36 }
 0x51c   : > { %v1076_v42 = vpop.f32.mrf.mxu0 }
 0x51d   : > { %v1107_v43 = vmul.f32 0.35355338, %v1076_v42  ;;  %v1121_v44 = vsel %vm820_vm2, %v1109_v41, -inf }
 0x51e   : > { %1122 = vmax.xlane.f32.xlu0 %v1121_v44  ;;  %v11294_v45 = vpop.f32.mrf.mxu0 }
 0x51f   : > { %v1110_v49 = vmul.f32 0.35355338, %v11294_v45  ;;  %v1115_v51 = vsel %vm820_vm2, %v1107_v43, -inf }
 0x520   : > { %v1079_v46 = vpop.f32.mrf.mxu0 }
 0x521   : > { %v1108_v50 = vmul.f32 0.35355338, %v1079_v46  ;;  %v1124_v58 = vsel %vm820_vm2, %v1110_v49, -inf }
 0x522   : > { %1116 = vmax.xlane.f32.xlu0 %v1115_v51  ;;  %v11297_v54 = vpop.f32.mrf.mxu0 }
 0x523   : > { %v12766_v55 = vmul.f32 0.35355338, %v11297_v54  ;;  %v1118_v56 = vsel %vm820_vm2, %v1108_v50, -inf }
 0x524   : > { %1119 = vmax.xlane.f32.xlu1 %v1118_v56  ;;  %v1092_v57 = vpop.f32.mrf.mxu0 }
 0x525   : > { %v1111_v60 = vmul.f32 0.35355338, %v1092_v57  ;;  %v1133_v62 = vsel %vm820_vm2, %v12766_v55, -inf }
 0x526   : > { %1125 = vmax.xlane.f32.xlu0 %v1124_v58  ;;  %v11298_v59 = vpop.f32.mrf.mxu0 }
 0x527   : > { %v1114_v61 = vmul.f32 0.35355338, %v11298_v59  ;;  %v1127_v4 = vsel %vm820_vm2, %v1111_v60, -inf }
 0x528   : > { %1134 = vmax.xlane.f32.xlu1 %v1133_v62  ;;  %v1095_v1 = vpop.f32.mrf.mxu0 }
 0x529   : > { %v1112_v2 = vmul.f32 0.35355338, %v1095_v1  ;;  %v1136_v3 = vsel %vm820_vm2, %v1114_v61, -inf }
 0x52a   : > { %1137 = vmax.xlane.f32.xlu0 %v1136_v3 }
 0x52b   : > { %v1130_v5 = vsel %vm820_vm2, %v1112_v2, -inf }
 0x52c   : > { %1128 = vmax.xlane.f32.xlu1 %v1127_v4 }
 0x52e   : > { %1131 = vmax.xlane.f32.xlu0 %v1130_v5 }
 0x53d   : > { %1209 = vrot.lane.b32.xlu1 %v12640_v12, %s16149_s27 }
 0x544   : > { %1211 = vrot.lane.b32.xlu0 %v12636_v11, %s16149_s27 }
 0x5a7   : > { %v1123_v6 = vpop.xlane.xlu0 %1122 }
 0x5a8   : > { %v1141_v7 = vsub.f32 %v1109_v41, %v1123_v6 }
 0x5aa   : > { %v1151_v9 = vmul.f32 1.442695, %v1141_v7 }
 0x5ab   : > { %v1117_v10 = vpop.xlane.xlu0 %1116 }
 0x5ac   : > { %12062 = vpow2.f32 %v1151_v9  ;;  %v1139_v13 = vsub.f32 %v1107_v43, %v1117_v10 }
 0x5ad   : > { %v1120_v14 = vpop.xlane.xlu1 %1119 }
 0x5ae   : > { %v1147_v15 = vmul.f32 1.442695, %v1139_v13  ;;  %v1140_v16 = vsub.f32 %v1108_v50, %v1120_v14 }
 0x5af   : > { %v1126_v17 = vpop.xlane.xlu0 %1125 }
 0x5b0   : > { %12064 = vpow2.f32 %v1147_v15  ;;  %v1142_v18 = vsub.f32 %v1110_v49, %v1126_v17  ;;  %v1149_v20 = vmul.f32 1.442695, %v1140_v16 }
 0x5b1   : > { %v1135_v19 = vpop.xlane.xlu1 %1134 }
 0x5b2   : > { %v1153_v21 = vmul.f32 1.442695, %v1142_v18  ;;  %v1145_v50 = vsub.f32 %v12766_v55, %v1135_v19 }
 0x5b3   : > { %v1138_v22 = vpop.xlane.xlu0 %1137 }
 0x5b4   : > { %12066 = vpow2.f32 %v1153_v21  ;;  %v1146_v51 = vsub.f32 %v1114_v61, %v1138_v22  ;;  %v1159_v56 = vmul.f32 1.442695, %v1145_v50 }
 0x5b5   : > { %12068 = vpow2.f32 %v1149_v20  ;;  %v1129_v23 = vpop.xlane.xlu1 %1128 }
 0x5b6   : > { %v1143_v49 = vsub.f32 %v1111_v60, %v1129_v23  ;;  %v1161_v57 = vmul.f32 1.442695, %v1146_v51 }
 0x5b7   : > { %v1132_v24 = vpop.xlane.xlu0 %1131 }
 0x5b8   : > { %v1155_v54 = vmul.f32 1.442695, %v1143_v49  ;;  %v1144_v58 = vsub.f32 %v1112_v2, %v1132_v24 }
 0x5b9   : > { %v12779_v25 = vpop.eup %12062  ;;  %v1210_v41 = vpop.permute.xlu1 %1209 }
 0x5ba   : > { %v1169_v26 = vsel %vm820_vm2, %v12779_v25, 0.0  ;;  %12070 = vpow2.f32 %v1155_v54  ;;  %v1157_v59 = vmul.f32 1.442695, %v1144_v58 }
 0x5bb   : > { %1170 = vadd.xlane.f32.xlu1 %v1169_v26  ;;  %v1212_v27 = vpop.permute.xlu0 %1211  ;;  %12072 = vpow2.f32 %v1159_v56 }
 0x5bc   : > { %11301 = vmatprep.subr.bf16.mxu1 %v1212_v27  ;;  %12074 = vpow2.f32 %v1161_v57 }
 0x5bd   : > { %v12783_v36 = vpop.eup %12064  ;;  %11302 = vmatpush3.bf16.msra.mxu1 %v1212_v27  ;;  %12076 = vpow2.f32 %v1157_v59 }
 0x5be   : > { %11303 = vmatprep.subr.bf16.mxu1 %v1210_v41  ;;  %v1163_v42 = vsel %vm820_vm2, %v12783_v36, 0.0 }
 0x5bf   : > { %1164 = vadd.xlane.f32.xlu1 %v1163_v42 }
 0x5c1   : > { %v12067_v43 = vpop.eup %12066  ;;  %11304 = vmatpush3.bf16.msra.mxu1 %v1210_v41 }
 0x5c2   : > { %v1172_v44 = vsel %vm820_vm2, %v12067_v43, 0.0  ;;  %v12069_v45 = vpop.eup %12068 }
 0x5c3   : > { %1173 = vadd.xlane.f32.xlu0 %v1172_v44  ;;  %v1166_v46 = vsel %vm820_vm2, %v12069_v45, 0.0 }
 0x5c7   : > { %1167 = vadd.xlane.f32.xlu0 %v1166_v46  ;;  %v12796_v62 = vpop.eup %12070 }
 0x5c8   : > { %v12798_v1 = vpop.eup %12072  ;;  %v1175_v3 = vsel %vm820_vm2, %v12796_v62, 0.0 }
 0x5c9   : > { %v12802_v60 = vpop.eup %12074  ;;  %v1181_v55 = vsel %vm820_vm2, %v12798_v1, 0.0 }
 0x5ca   : > { %v1184_v61 = vsel %vm820_vm2, %v12802_v60, 0.0  ;;  %v12808_v2 = vpop.eup %12076 }
 0x5cb   : > { %v1178_v4 = vsel %vm820_vm2, %v12808_v2, 0.0 }
 0x5d0   : > { %1310 = vrot.lane.b32.xlu1 %v12634_v8, %s16147_s17 }
 0x5d4   : > { %1308 = vrot.lane.b32.xlu1 %v12636_v11, %s16147_s17 }
 0x5dd   : > { %1207 = vrot.lane.b32.xlu0 %v12630_v63, %s16149_s27  ;;  %s16261_s27 = smov 120  }
 0x5f8   : > { %1176 = vadd.xlane.f32.xlu1 %v1175_v3 }
 0x5fc   : > { %1182 = vadd.xlane.f32.xlu0 %v1181_v55  ;;  %1185 = vadd.xlane.f32.xlu1 %v1184_v61 }
 0x600   : > { %1179 = vadd.xlane.f32.xlu0 %v1178_v4 }
 0x60d   : > { %1304 = vrot.lane.b32.xlu1 %v12630_v63, %s16147_s17 }
 0x611   : > { %1298 = vrot.lane.b32.xlu1 %v12640_v12, %s16145_s20 }
 0x615   : > { %1302 = vrot.lane.b32.xlu1 %v12634_v8, %s16145_s20 }
 0x616   : > { %1306 = vrot.lane.b32.xlu0 %v12640_v12, %s16147_s17  ;;  %s16262_s17 = smov 64  }
 0x619   : > { %1507 = vrot.lane.b32.xlu1 %v12634_v8, %s16141_s26 }
 0x61a   : > { %1296 = vrot.lane.b32.xlu0 %v12630_v63, %s16145_s20 }
 0x61e   : > { %1300 = vrot.lane.b32.xlu0 %v12636_v11, %s16145_s20  ;;  %s16259_s20 = smov 96  }
 0x644   : > { %v1171_v5 = vpop.xlane.xlu1 %1170 }
 0x648   : > { %v1165_v6 = vpop.xlane.xlu1 %1164 }
 0x64c   : > { %v1174_v7 = vpop.xlane.xlu0 %1173  ;;  %v1311_v13 = vpop.permute.xlu1 %1310 }
 0x64d   : > { %12078 = vrcp.f32 %v1174_v7  ;;  %v1334_v24 = vsel %vm722_vm1, %v1311_v13, 0 }
 0x64e   : > { %12080 = vrcp.f32 %v1165_v6 }
 0x64f   : > { %12082 = vrcp.f32 %v1171_v5 }
 0x650   : > { %v1168_v9 = vpop.xlane.xlu0 %1167  ;;  %v1309_v26 = vpop.permute.xlu1 %1308 }
 0x651   : > { %12084 = vrcp.f32 %v1168_v9  ;;  %v1331_v27 = vsel %vm722_vm1, %v1309_v26, 0 }
 0x654   : > { %v1208_v10 = vpop.permute.xlu0 %1207 }
 0x655   : > { %11305 = vmatprep.subr.bf16.mxu1 %v1208_v10 }
 0x656   : > { %11306 = vmatpush3.bf16.msra.mxu1 %v1208_v10 }
 0x657   : > { %11563 = vmatprep.subr.msk.bf16.mxu1 %vm722_vm1, %v1311_v13 }
 0x65a   : > { %v12079_v14 = vpop.eup %12078 }
 0x65b   : > { %v12081_v15 = vpop.eup %12080  ;;  %v1194_v18 = vmul.f32 %v12079_v14, %v12067_v43 }
 0x65c   : > { %v12083_v16 = vpop.eup %12082  ;;  %v1188_v19 = vmul.f32 %v12081_v15, %v12783_v36 }
 0x65d   : > { %v1192_v21 = vmul.f32 %v12083_v16, %v12779_v25 }
 0x65e   : > { %v12085_v17 = vpop.eup %12084 }
 0x65f   : > { %v1190_v20 = vmul.f32 %v12085_v17, %v12069_v45  ;;  %v1204_v23 = vpack.c.bf16 %v1194_v18, %v1192_v21 }
 0x661   : > { %v1203_v22 = vpack.c.bf16 %v1190_v20, %v1188_v19 }
 0x663   : > { %11307 = vmatprep.mubr.msk.bf16.mxu1 %vm820_vm2, %v1203_v22 }
 0x664   : > { %11308 = vmatmul.mubr.msk.bf16.vlgmr.msra.gmra.mxu1 %vm820_vm2, %v1204_v23 }
 0x665   : > { %11316 = vmatpush3.bf16.xpose.msra.mxu1 %v1334_v24 }
 0x666   : > { %11564 = vmatprep.subr.msk.bf16.mxu1 %vm722_vm1, %v1309_v26 }
 0x66d   : > { %11318 = vmatpush3.bf16.xpose.msra.mxu1 %v1331_v27 }
 0x681   : > { %v1177_v41 = vpop.xlane.xlu1 %1176 }
 0x685   : > { %v1183_v36 = vpop.xlane.xlu0 %1182  ;;  %v1186_v42 = vpop.xlane.xlu1 %1185 }
 0x686   : > { %12086 = vrcp.f32 %v1183_v36 }
 0x687   : > { %12088 = vrcp.f32 %v1186_v42 }
 0x688   : > { %12090 = vrcp.f32 %v1177_v41 }
 0x689   : > { %v1180_v25 = vpop.xlane.xlu0 %1179  ;;  %v1305_v43 = vpop.permute.xlu1 %1304 }
 0x68a   : > { %12092 = vrcp.f32 %v1180_v25  ;;  %v1325_v57 = vsel %vm722_vm1, %v1305_v43, 0 }
 0x68d   : > { %v1307_v44 = vpop.permute.xlu0 %1306  ;;  %v1299_v45 = vpop.permute.xlu1 %1298 }
 0x68e   : > { %11565 = vmatprep.subr.msk.bf16.mxu1 %vm722_vm1, %v1307_v44  ;;  %v1328_v46 = vsel %vm722_vm1, %v1307_v44, 0 }
 0x68f   : > { %11320 = vmatpush3.bf16.xpose.msra.mxu1 %v1328_v46 }
 0x690   : > { %11566 = vmatprep.subr.msk.bf16.mxu1 %vm722_vm1, %v1305_v43 }
 0x691   : > { %v1303_v49 = vpop.permute.xlu1 %1302  ;;  %v1297_v6 = vpop.permute.xlu0 %1296 }
 0x693   : > { %v12087_v50 = vpop.eup %12086 }
 0x694   : > { %v12089_v51 = vpop.eup %12088  ;;  %v1200_v59 = vmul.f32 %v12087_v50, %v12798_v1 }
 0x695   : > { %v12091_v54 = vpop.eup %12090  ;;  %v1508_v56 = vpop.permute.xlu1 %1507  ;;  %v1202_v3 = vmul.f32 %v12089_v51, %v12802_v60 }
 0x696   : > { %11331 = vmatprep.subr.bf16.mxu0 %v1508_v56  ;;  %v1196_v55 = vmul.f32 %v12091_v54, %v12796_v62  ;;  %v1301_v7 = vpop.permute.xlu0 %1300 }
 0x697   : > { %v12093_v58 = vpop.eup %12092  ;;  %11322 = vmatpush3.bf16.xpose.msra.mxu1 %v1325_v57  ;;  %11332 = vmatpush3.bf16.msra.mxu0 %v1508_v56  ;;  %v1206_v5 = vpack.c.bf16 %v1202_v3, %v1200_v59 }
 0x698   : > { %v1198_v61 = vmul.f32 %v12093_v58, %v12808_v2 }
 0x69a   : > { %v1205_v4 = vpack.c.bf16 %v1198_v61, %v1196_v55 }
 0x69c   : > { %11311 = vmatprep.mubr.msk.bf16.mxu1 %vm820_vm2, %v1205_v4 }
 0x69d   : > { %11312 = vmatmul.mubr.msk.bf16.gmra.mxu1 %vm820_vm2, %v1206_v5 }
 0x69e   : > { %11323 = vmatprep.mubr.msk.bf16.mxu1 %vm722_vm1, %v1297_v6 }
 0x6a5   : > { %11324 = vmatmul.mubr.msk.bf16.vlgmr.msra.gmra.mxu1 %vm722_vm1, %v1299_v45 }
 0x6a6   : > { %11327 = vmatprep.mubr.msk.bf16.mxu1 %vm722_vm1, %v1301_v7 }
 0x6ad   : > { %11328 = vmatmul.mubr.msk.bf16.gmra.mxu1 %vm722_vm1, %v1303_v49 }
 0x724   : > { %v12848_v1 = vpop.f32.mrf.mxu1 }
 0x726   : > { %v12850_v62 = vpop.f32.mrf.mxu1 }
 0x728   : > { %v12852_v60 = vpop.f32.mrf.mxu1 }
 0x729   : > { %v11649_v2 = vpack.i.bf16 %v12852_v60, %v12848_v1 }
 0x72a   : > { %v12856_v9 = vpop.f32.mrf.mxu1 }
 0x75d   : > { %v12858_v10 = vpop.f32.mrf.mxu1 }
 0x75f   : > { %v12860_v13 = vpop.f32.mrf.mxu1 }
 0x761   : > { %v12862_v14 = vpop.f32.mrf.mxu1 }
 0x762   : > { %v11679_v15 = vpack.i.bf16 %v12862_v14, %v12858_v10 }
 0x763   : > { %v12866_v16 = vpop.f32.mrf.mxu1 }
 0x765   : > { %v11325_v17 = vpop.f32.mrf.mxu1 }
 0x766   : > { %v1403_v18 = vmul.f32 0.35355338, %v11325_v17 }
 0x767   : > { %v1370_v19 = vpop.f32.mrf.mxu1 }
 0x768   : > { %v1401_v20 = vmul.f32 0.35355338, %v1370_v19  ;;  %v1415_v21 = vsel %vm820_vm2, %v1403_v18, -inf }
 0x769   : > { %1416 = vmax.xlane.f32.xlu0 %v1415_v21  ;;  %v11326_v22 = vpop.f32.mrf.mxu1 }
 0x76a   : > { %v1404_v24 = vmul.f32 0.35355338, %v11326_v22  ;;  %v1409_v27 = vsel %vm820_vm2, %v1401_v20, -inf }
 0x76b   : > { %v1373_v23 = vpop.f32.mrf.mxu1 }
 0x76c   : > { %v1402_v26 = vmul.f32 0.35355338, %v1373_v23  ;;  %v1418_v43 = vsel %vm820_vm2, %v1404_v24, -inf }
 0x76d   : > { %1410 = vmax.xlane.f32.xlu0 %v1409_v27  ;;  %v11329_v41 = vpop.f32.mrf.mxu1 }
 0x76e   : > { %v12870_v36 = vmul.f32 0.35355338, %v11329_v41  ;;  %v1412_v42 = vsel %vm820_vm2, %v1402_v26, -inf }
 0x76f   : > { %1413 = vmax.xlane.f32.xlu1 %v1412_v42  ;;  %v1386_v25 = vpop.f32.mrf.mxu1 }
 0x770   : > { %v1405_v45 = vmul.f32 0.35355338, %v1386_v25  ;;  %v1427_v49 = vsel %vm820_vm2, %v12870_v36, -inf }
 0x771   : > { %1419 = vmax.xlane.f32.xlu0 %v1418_v43  ;;  %v11330_v44 = vpop.f32.mrf.mxu1 }
 0x772   : > { %v1408_v46 = vmul.f32 0.35355338, %v11330_v44  ;;  %v1421_v56 = vsel %vm820_vm2, %v1405_v45, -inf }
 0x773   : > { %1428 = vmax.xlane.f32.xlu1 %v1427_v49  ;;  %v1389_v50 = vpop.f32.mrf.mxu1 }
 0x774   : > { %v1406_v51 = vmul.f32 0.35355338, %v1389_v50  ;;  %v1430_v54 = vsel %vm820_vm2, %v1408_v46, -inf }
 0x775   : > { %1431 = vmax.xlane.f32.xlu0 %v1430_v54 }
 0x776   : > { %v1424_v57 = vsel %vm820_vm2, %v1406_v51, -inf }
 0x777   : > { %1422 = vmax.xlane.f32.xlu1 %v1421_v56 }
 0x779   : > { %1425 = vmax.xlane.f32.xlu0 %v1424_v57 }
 0x788   : > { %1503 = vrot.lane.b32.xlu1 %v12640_v12, %s16141_s26 }
 0x78f   : > { %1505 = vrot.lane.b32.xlu0 %v12636_v11, %s16141_s26 }
 0x7f2   : > { %v1417_v58 = vpop.xlane.xlu0 %1416 }
 0x7f3   : > { %v1435_v59 = vsub.f32 %v1403_v18, %v1417_v58 }
 0x7f5   : > { %v1445_v3 = vmul.f32 1.442695, %v1435_v59 }
 0x7f6   : > { %v1411_v55 = vpop.xlane.xlu0 %1410 }
 0x7f7   : > { %12094 = vpow2.f32 %v1445_v3  ;;  %v1433_v61 = vsub.f32 %v1401_v20, %v1411_v55 }
 0x7f8   : > { %v1414_v4 = vpop.xlane.xlu1 %1413 }
 0x7f9   : > { %v1441_v5 = vmul.f32 1.442695, %v1433_v61  ;;  %v1434_v6 = vsub.f32 %v1402_v26, %v1414_v4 }
 0x7fa   : > { %v1420_v7 = vpop.xlane.xlu0 %1419 }
 0x7fb   : > { %12096 = vpow2.f32 %v1441_v5  ;;  %v1436_v17 = vsub.f32 %v1404_v24, %v1420_v7  ;;  %v1443_v21 = vmul.f32 1.442695, %v1434_v6 }
 0x7fc   : > { %v1429_v19 = vpop.xlane.xlu1 %1428 }
 0x7fd   : > { %v1447_v22 = vmul.f32 1.442695, %v1436_v17  ;;  %v1439_v56 = vsub.f32 %v12870_v36, %v1429_v19 }
 0x7fe   : > { %v1432_v23 = vpop.xlane.xlu0 %1431 }
 0x7ff   : > { %12098 = vpow2.f32 %v1447_v22  ;;  %v1440_v57 = vsub.f32 %v1408_v46, %v1432_v23  ;;  %v1453_v59 = vmul.f32 1.442695, %v1439_v56 }
 0x800   : > { %12100 = vpow2.f32 %v1443_v21  ;;  %v1423_v27 = vpop.xlane.xlu1 %1422 }
 0x801   : > { %v1437_v54 = vsub.f32 %v1405_v45, %v1423_v27  ;;  %v1455_v3 = vmul.f32 1.442695, %v1440_v57 }
 0x802   : > { %v1426_v41 = vpop.xlane.xlu0 %1425 }
 0x803   : > { %v1449_v58 = vmul.f32 1.442695, %v1437_v54  ;;  %v1438_v55 = vsub.f32 %v1406_v51, %v1426_v41 }
 0x804   : > { %v12883_v42 = vpop.eup %12094  ;;  %v1504_v25 = vpop.permute.xlu1 %1503 }
 0x805   : > { %v1463_v18 = vsel %vm820_vm2, %v12883_v42, 0.0  ;;  %12102 = vpow2.f32 %v1449_v58  ;;  %v1451_v61 = vmul.f32 1.442695, %v1438_v55 }
 0x806   : > { %1464 = vadd.xlane.f32.xlu1 %v1463_v18  ;;  %v1506_v20 = vpop.permute.xlu0 %1505  ;;  %12104 = vpow2.f32 %v1453_v59 }
 0x807   : > { %11333 = vmatprep.subr.bf16.mxu0 %v1506_v20  ;;  %12106 = vpow2.f32 %v1455_v3 }
 0x808   : > { %v12887_v26 = vpop.eup %12096  ;;  %11334 = vmatpush3.bf16.msra.mxu0 %v1506_v20  ;;  %12108 = vpow2.f32 %v1451_v61 }
 0x809   : > { %11335 = vmatprep.subr.bf16.mxu0 %v1504_v25  ;;  %v1457_v24 = vsel %vm820_vm2, %v12887_v26, 0.0 }
 0x80a   : > { %1458 = vadd.xlane.f32.xlu1 %v1457_v24 }
 0x80c   : > { %v12099_v43 = vpop.eup %12098  ;;  %11336 = vmatpush3.bf16.msra.mxu0 %v1504_v25 }
 0x80d   : > { %v1466_v44 = vsel %vm820_vm2, %v12099_v43, 0.0  ;;  %v12101_v49 = vpop.eup %12100 }
 0x80e   : > { %1467 = vadd.xlane.f32.xlu0 %v1466_v44  ;;  %v1460_v50 = vsel %vm820_vm2, %v12101_v49, 0.0 }
 0x812   : > { %1461 = vadd.xlane.f32.xlu0 %v1460_v50  ;;  %v12900_v4 = vpop.eup %12102 }
 0x813   : > { %v12902_v5 = vpop.eup %12104  ;;  %v1469_v6 = vsel %vm820_vm2, %v12900_v4, 0.0 }
 0x814   : > { %v12906_v45 = vpop.eup %12106  ;;  %v1475_v36 = vsel %vm820_vm2, %v12902_v5, 0.0 }
 0x815   : > { %v1478_v46 = vsel %vm820_vm2, %v12906_v45, 0.0  ;;  %v12912_v51 = vpop.eup %12108 }
 0x816   : > { %v1472_v7 = vsel %vm820_vm2, %v12912_v51, 0.0 }
 0x81b   : > { %1604 = vrot.lane.b32.xlu1 %v12634_v8, %s16139_s28 }
 0x81f   : > { %1602 = vrot.lane.b32.xlu1 %v12636_v11, %s16139_s28 }
 0x828   : > { %1501 = vrot.lane.b32.xlu0 %v12630_v63, %s16141_s26  ;;  %s16155_s26 = smov 16  }
 0x843   : > { %1470 = vadd.xlane.f32.xlu1 %v1469_v6 }
 0x847   : > { %1476 = vadd.xlane.f32.xlu0 %v1475_v36  ;;  %1479 = vadd.xlane.f32.xlu1 %v1478_v46 }
 0x84b   : > { %1473 = vadd.xlane.f32.xlu0 %v1472_v7 }
 0x858   : > { %1598 = vrot.lane.b32.xlu1 %v12630_v63, %s16139_s28 }
 0x85c   : > { %1592 = vrot.lane.b32.xlu1 %v12640_v12, %s16135_s29 }
 0x860   : > { %1596 = vrot.lane.b32.xlu1 %v12634_v8, %s16135_s29 }
 0x861   : > { %1600 = vrot.lane.b32.xlu0 %v12640_v12, %s16139_s28  ;;  %s16157_s28 = smov 8  }
 0x865   : > { %1590 = vrot.lane.b32.xlu0 %v12630_v63, %s16135_s29 }
 0x869   : > { %1594 = vrot.lane.b32.xlu0 %v12636_v11, %s16135_s29  ;;  %s16143_s29 = smov 40  }
 0x88f   : > { %v1465_v17 = vpop.xlane.xlu1 %1464 }
 0x893   : > { %v1459_v19 = vpop.xlane.xlu1 %1458 }
 0x897   : > { %v1468_v21 = vpop.xlane.xlu0 %1467  ;;  %v1605_v27 = vpop.permute.xlu1 %1604 }
 0x898   : > { %12110 = vrcp.f32 %v1468_v21  ;;  %v1628_v58 = vsel %vm722_vm1, %v1605_v27, 0 }
 0x899   : > { %12112 = vrcp.f32 %v1459_v19 }
 0x89a   : > { %12114 = vrcp.f32 %v1465_v17 }
 0x89b   : > { %v1462_v22 = vpop.xlane.xlu0 %1461  ;;  %v1603_v59 = vpop.permute.xlu1 %1602 }
 0x89c   : > { %12116 = vrcp.f32 %v1462_v22  ;;  %v1625_v3 = vsel %vm722_vm1, %v1603_v59, 0 }
 0x89f   : > { %v1502_v23 = vpop.permute.xlu0 %1501 }
 0x8a0   : > { %11337 = vmatprep.subr.bf16.mxu0 %v1502_v23 }
 0x8a1   : > { %11338 = vmatpush3.bf16.msra.mxu0 %v1502_v23 }
 0x8a2   : > { %11567 = vmatprep.subr.msk.bf16.mxu0 %vm722_vm1, %v1605_v27 }
 0x8a5   : > { %v12111_v41 = vpop.eup %12110 }
 0x8a6   : > { %v12113_v18 = vpop.eup %12112  ;;  %v1488_v24 = vmul.f32 %v12111_v41, %v12099_v43 }
 0x8a7   : > { %v12115_v20 = vpop.eup %12114  ;;  %v1482_v44 = vmul.f32 %v12113_v18, %v12887_v26 }
 0x8a8   : > { %v1486_v54 = vmul.f32 %v12115_v20, %v12883_v42 }
 0x8a9   : > { %v12117_v25 = vpop.eup %12116 }
 0x8aa   : > { %v1484_v50 = vmul.f32 %v12117_v25, %v12101_v49  ;;  %v1498_v57 = vpack.c.bf16 %v1488_v24, %v1486_v54 }
 0x8ac   : > { %v1497_v56 = vpack.c.bf16 %v1484_v50, %v1482_v44 }
 0x8ae   : > { %11339 = vmatprep.mubr.msk.bf16.mxu0 %vm820_vm2, %v1497_v56 }
 0x8af   : > { %11340 = vmatmul.mubr.msk.bf16.vlgmr.msra.gmra.mxu0 %vm820_vm2, %v1498_v57 }
 0x8b0   : > { %11348 = vmatpush3.bf16.xpose.msra.mxu0 %v1628_v58 }
 0x8b1   : > { %11568 = vmatprep.subr.msk.bf16.mxu0 %vm722_vm1, %v1603_v59 }
 0x8b8   : > { %11350 = vmatpush3.bf16.xpose.msra.mxu0 %v1625_v3 }
 0x8cc   : > { %v1471_v43 = vpop.xlane.xlu1 %1470 }
 0x8d0   : > { %v1477_v26 = vpop.xlane.xlu0 %1476  ;;  %v1480_v49 = vpop.xlane.xlu1 %1479 }
 0x8d1   : > { %12118 = vrcp.f32 %v1477_v26 }
 0x8d2   : > { %12120 = vrcp.f32 %v1480_v49 }
 0x8d3   : > { %12122 = vrcp.f32 %v1471_v43 }
 0x8d4   : > { %v1474_v42 = vpop.xlane.xlu0 %1473  ;;  %v1599_v6 = vpop.permute.xlu1 %1598 }
 0x8d5   : > { %12124 = vrcp.f32 %v1474_v42  ;;  %v1619_v17 = vsel %vm722_vm1, %v1599_v6, 0 }
 0x8d8   : > { %v1601_v55 = vpop.permute.xlu0 %1600  ;;  %v1593_v25 = vpop.permute.xlu1 %1592 }
 0x8d9   : > { %11569 = vmatprep.subr.msk.bf16.mxu0 %vm722_vm1, %v1601_v55  ;;  %v1622_v61 = vsel %vm722_vm1, %v1601_v55, 0 }
 0x8da   : > { %11352 = vmatpush3.bf16.xpose.msra.mxu0 %v1622_v61 }
 0x8db   : > { %11570 = vmatprep.subr.msk.bf16.mxu0 %vm722_vm1, %v1599_v6 }
 0x8dc   : > { %v1591_v20 = vpop.permute.xlu0 %1590 }
 0x8de   : > { %v12119_v36 = vpop.eup %12118 }
 0x8df   : > { %v12121_v46 = vpop.eup %12120  ;;  %v1494_v21 = vmul.f32 %v12119_v36, %v12902_v5  ;;  %v1597_v5 = vpop.permute.xlu1 %1596 }
 0x8e0   : > { %v12123_v7 = vpop.eup %12122  ;;  %v1496_v22 = vmul.f32 %v12121_v46, %v12906_v45  ;;  %v1595_v24 = vpop.permute.xlu0 %1594 }
 0x8e1   : > { %v1490_v23 = vmul.f32 %v12123_v7, %v12900_v4 }
 0x8e2   : > { %v12125_v19 = vpop.eup %12124  ;;  %11354 = vmatpush3.bf16.xpose.msra.mxu0 %v1619_v17  ;;  %v1500_v18 = vpack.c.bf16 %v1496_v22, %v1494_v21 }
 0x8e3   : > { %v1492_v27 = vmul.f32 %v12125_v19, %v12912_v51 }
 0x8e5   : > { %v1499_v41 = vpack.c.bf16 %v1492_v27, %v1490_v23 }
 0x8e7   : > { %11343 = vmatprep.mubr.msk.bf16.mxu0 %vm820_vm2, %v1499_v41 }
 0x8e8   : > { %11344 = vmatmul.mubr.msk.bf16.gmra.mxu0 %vm820_vm2, %v1500_v18 }
 0x8e9   : > { %11355 = vmatprep.mubr.msk.bf16.mxu0 %vm722_vm1, %v1591_v20 }
 0x8f0   : > { %11356 = vmatmul.mubr.msk.bf16.vlgmr.msra.gmra.mxu0 %vm722_vm1, %v1593_v25 }
 0x8f1   : > { %11359 = vmatprep.mubr.msk.bf16.mxu0 %vm722_vm1, %v1595_v24 }
 0x8f8   : > { %11360 = vmatmul.mubr.msk.bf16.gmra.mxu0 %vm722_vm1, %v1597_v5 }
 0x8f9   : > { %2577 = vmatprep.mubr.bf16.mxu0 %v16137_v0 }
 0x96f   : > { %v12951_v4 = vpop.f32.mrf.mxu0 }
 0x971   : > { %v12953_v45 = vpop.f32.mrf.mxu0 }
 0x973   : > { %v12955_v51 = vpop.f32.mrf.mxu0 }
 0x974   : > { %v11659_v44 = vpack.i.bf16 %v12955_v51, %v12951_v4 }
 0x975   : > { %v12959_v50 = vpop.f32.mrf.mxu0 }
 0x9a8   : > { %v12961_v54 = vpop.f32.mrf.mxu0 }
 0x9aa   : > { %v12963_v56 = vpop.f32.mrf.mxu0 }
 0x9ac   : > { %v12965_v57 = vpop.f32.mrf.mxu0 }
 0x9ad   : > { %v11689_v58 = vpack.i.bf16 %v12965_v57, %v12961_v54 }
 0x9ae   : > { %v12969_v59 = vpop.f32.mrf.mxu0 }
 0x9b0   : > { %v11357_v3 = vpop.f32.mrf.mxu0 }
 0x9b1   : > { %v1697_v42 = vmul.f32 0.35355338, %v11357_v3 }
 0x9b2   : > { %v1664_v43 = vpop.f32.mrf.mxu0 }
 0x9b3   : > { %v1695_v26 = vmul.f32 0.35355338, %v1664_v43  ;;  %v1709_v7 = vsel %vm820_vm2, %v1697_v42, -inf }
 0x9b4   : > { %v11358_v49 = vpop.f32.mrf.mxu0 }
 0x9b5   : > { %v1703_v55 = vsel %vm820_vm2, %v1695_v26, -inf  ;;  %v1698_v46 = vmul.f32 0.35355338, %v11358_v49 }
 0x9b6   : > { %1704 = vmax.xlane.f32.xlu0 %v1703_v55  ;;  %v1667_v61 = vpop.f32.mrf.mxu0 }
 0x9b7   : > { %v1696_v6 = vmul.f32 0.35355338, %v1667_v61  ;;  %v1712_v27 = vsel %vm820_vm2, %v1698_v46, -inf }
 0x9b8   : > { %v11361_v36 = vpop.f32.mrf.mxu0 }
 0x9b9   : > { %v1706_v17 = vsel %vm820_vm2, %v1696_v6, -inf  ;;  %v1701_v23 = vmul.f32 0.35355338, %v11361_v36 }
 0x9ba   : > { %1710 = vmax.xlane.f32.xlu0 %v1709_v7  ;;  %1707 = vmax.xlane.f32.xlu1 %v1706_v17  ;;  %v1680_v19 = vpop.f32.mrf.mxu0 }
 0x9bb   : > { %v1699_v21 = vmul.f32 0.35355338, %v1680_v19  ;;  %v1721_v24 = vsel %vm820_vm2, %v1701_v23, -inf }
 0x9bc   : > { %v11362_v22 = vpop.f32.mrf.mxu0 }
 0x9bd   : > { %v1715_v41 = vsel %vm820_vm2, %v1699_v21, -inf  ;;  %v1702_v25 = vmul.f32 0.35355338, %v11362_v22 }
 0x9be   : > { %1713 = vmax.xlane.f32.xlu0 %v1712_v27  ;;  %1716 = vmax.xlane.f32.xlu1 %v1715_v41  ;;  %v1683_v18 = vpop.f32.mrf.mxu0 }
 0x9bf   : > { %v1700_v20 = vmul.f32 0.35355338, %v1683_v18  ;;  %v1724_v3 = vsel %vm820_vm2, %v1702_v25, -inf }
 0x9c1   : > { %v1718_v5 = vsel %vm820_vm2, %v1700_v20, -inf }
 0x9c2   : > { %1722 = vmax.xlane.f32.xlu1 %v1721_v24  ;;  %1719 = vmax.xlane.f32.xlu0 %v1718_v5 }
 0x9c6   : > { %1725 = vmax.xlane.f32.xlu0 %v1724_v3 }
 0x9d3   : > { %1801 = vrot.lane.b32.xlu1 %v12634_v8, %s16143_s29 }
 0x9d7   : > { %1799 = vrot.lane.b32.xlu1 %v12636_v11, %s16143_s29 }
 0xa3f   : > { %v1705_v43 = vpop.xlane.xlu0 %1704 }
 0xa40   : > { %v1727_v49 = vsub.f32 %v1695_v26, %v1705_v43 }
 0xa42   : > { %v1735_v7 = vmul.f32 1.442695, %v1727_v49 }
 0xa43   : > { %v1711_v55 = vpop.xlane.xlu0 %1710  ;;  %v1708_v61 = vpop.xlane.xlu1 %1707 }
 0xa44   : > { %v1729_v36 = vsub.f32 %v1697_v42, %v1711_v55  ;;  %v1728_v19 = vsub.f32 %v1696_v6, %v1708_v61 }
 0xa46   : > { %v1739_v17 = vmul.f32 1.442695, %v1729_v36  ;;  %v1737_v18 = vmul.f32 1.442695, %v1728_v19 }
 0xa47   : > { %v1714_v22 = vpop.xlane.xlu0 %1713  ;;  %v1717_v27 = vpop.xlane.xlu1 %1716 }
 0xa48   : > { %12126 = vpow2.f32 %v1739_v17  ;;  %v1730_v41 = vsub.f32 %v1698_v46, %v1714_v22  ;;  %v1731_v11 = vsub.f32 %v1699_v21, %v1717_v27 }
 0xa49   : > { %12128 = vpow2.f32 %v1735_v7 }
 0xa4a   : > { %v1741_v24 = vmul.f32 1.442695, %v1730_v41  ;;  %v1743_v42 = vmul.f32 1.442695, %v1731_v11  ;;  %v11654_v11 = vpack.i.bf16 %v12959_v50, %v12953_v45 }
 0xa4b   : > { %v1720_v5 = vpop.xlane.xlu0 %1719  ;;  %v1723_v8 = vpop.xlane.xlu1 %1722 }
 0xa4c   : > { %12130 = vpow2.f32 %v1741_v24  ;;  %v1733_v3 = vsub.f32 %v1701_v23, %v1723_v8  ;;  %v1732_v55 = vsub.f32 %v1700_v20, %v1720_v5  ;;  %v11644_v8 = vpack.i.bf16 %v12856_v9, %v12850_v62 }
 0xa4d   : > { %12132 = vpow2.f32 %v1737_v18 }
 0xa4e   : > { %v1747_v26 = vmul.f32 1.442695, %v1733_v3  ;;  %v1745_v7 = vmul.f32 1.442695, %v1732_v55 }
 0xa4f   : > { %v1726_v43 = vpop.xlane.xlu0 %1725  ;;  %v1802_v0 = vpop.permute.xlu1 %1801 }
 0xa50   : > { %11363 = vmatprep.subr.bf16.mxu1 %v1802_v0  ;;  %12134 = vpow2.f32 %v1747_v26  ;;  %v1734_v6 = vsub.f32 %v1702_v25, %v1726_v43 }
 0xa51   : > { %11364 = vmatpush3.bf16.msra.mxu1 %v1802_v0  ;;  %12136 = vpow2.f32 %v1743_v42 }
 0xa52   : > { %v1749_v61 = vmul.f32 1.442695, %v1734_v6 }
 0xa53   : > { %v1800_v49 = vpop.permute.xlu1 %1799 }
 0xa54   : > { %11365 = vmatprep.subr.bf16.mxu1 %v1800_v49  ;;  %12138 = vpow2.f32 %v1749_v61 }
 0xa55   : > { %v12983_v46 = vpop.eup %12126  ;;  %11366 = vmatpush3.bf16.msra.mxu1 %v1800_v49  ;;  %12140 = vpow2.f32 %v1745_v7 }
 0xa56   : > { %v1757_v23 = vsel %vm820_vm2, %v12983_v46, 0.0  ;;  %v12129_v21 = vpop.eup %12128 }
 0xa57   : > { %1758 = vadd.xlane.f32.xlu1 %v1757_v23  ;;  %v1751_v0 = vsel %vm820_vm2, %v12129_v21, 0.0 }
 0xa59   : > { %v12131_v36 = vpop.eup %12130 }
 0xa5a   : > { %v1760_v25 = vsel %vm820_vm2, %v12131_v36, 0.0  ;;  %v12133_v17 = vpop.eup %12132 }
 0xa5b   : > { %1752 = vadd.xlane.f32.xlu1 %v1751_v0  ;;  %1761 = vadd.xlane.f32.xlu0 %v1760_v25  ;;  %v1754_v19 = vsel %vm820_vm2, %v12133_v17, 0.0 }
 0xa5d   : > { %v12990_v20 = vpop.eup %12134 }
 0xa5e   : > { %v1769_v22 = vsel %vm820_vm2, %v12990_v20, 0.0  ;;  %v12137_v27 = vpop.eup %12136 }
 0xa5f   : > { %1755 = vadd.xlane.f32.xlu0 %v1754_v19  ;;  %v1763_v41 = vsel %vm820_vm2, %v12137_v27, 0.0 }
 0xa61   : > { %v12139_v18 = vpop.eup %12138 }
 0xa62   : > { %v1772_v24 = vsel %vm820_vm2, %v12139_v18, 0.0  ;;  %v12141_v5 = vpop.eup %12140 }
 0xa63   : > { %1770 = vadd.xlane.f32.xlu0 %v1769_v22  ;;  %v1766_v3 = vsel %vm820_vm2, %v12141_v5, 0.0 }
 0xa67   : > { %1764 = vadd.xlane.f32.xlu0 %v1763_v41 }
 0xa6b   : > { %1773 = vadd.xlane.f32.xlu0 %v1772_v24 }
 0xa6c   : > { %1795 = vrot.lane.b32.xlu1 %v12630_v63, %s16143_s29 }
 0xa6f   : > { %1767 = vadd.xlane.f32.xlu0 %v1766_v3 }
 0xa70   : > { %11645 = vrot.lane.b32.xlu1 %v11644_v8, %s16157_s28 }
 0xa74   : > { %11650 = vrot.lane.b32.xlu1 %v11649_v2, %s16157_s28 }
 0xa78   : > { %11655 = vrot.lane.b32.xlu1 %v11654_v11, %s16155_s26 }
 0xa7c   : > { %11660 = vrot.lane.b32.xlu1 %v11659_v44, %s16155_s26 }
 0xa85   : > { %1797 = vrot.lane.b32.xlu0 %v12640_v12, %s16143_s29  ;;  %s16260_s29 = smov 88  }
 0xae0   : > { %v1759_v63 = vpop.xlane.xlu1 %1758 }
 0xae4   : > { %v1762_v62 = vpop.xlane.xlu0 %1761  ;;  %v1753_v9 = vpop.xlane.xlu1 %1752 }
 0xae5   : > { %12142 = vrcp.f32 %v1753_v9  ;;  %v11674_v9 = vpack.i.bf16 %v12866_v16, %v12860_v13 }
 0xae8   : > { %v1756_v1 = vpop.xlane.xlu0 %1755  ;;  %v1796_v49 = vpop.permute.xlu1 %1795 }
 0xae9   : > { %12144 = vrcp.f32 %v1756_v1 }
 0xaea   : > { %12146 = vrcp.f32 %v1762_v62 }
 0xaeb   : > { %12148 = vrcp.f32 %v1759_v63 }
 0xaec   : > { %v1771_v60 = vpop.xlane.xlu0 %1770  ;;  %v11646_v10 = vpop.permute.xlu1 %11645 }
 0xaf0   : > { %v1765_v2 = vpop.xlane.xlu0 %1764  ;;  %v11651_v14 = vpop.permute.xlu1 %11650 }
 0xaf1   : > { %12150 = vrcp.f32 %v1765_v2 }
 0xaf2   : > { %v12143_v45 = vpop.eup %12142 }
 0xaf3   : > { %v1776_v4 = vmul.f32 %v12143_v45, %v12129_v21 }
 0xaf4   : > { %v1774_v50 = vpop.xlane.xlu0 %1773 }
 0xaf5   : > { %12152 = vrcp.f32 %v1774_v50  ;;  %v11648_v50 = vunpack.i.h.bf16 %v11646_v10 }
 0xaf6   : > { %v12145_v26 = vpop.eup %12144  ;;  %12154 = vrcp.f32 %v1771_v60  ;;  %v11684_v60 = vpack.i.bf16 %v12969_v59, %v12963_v56  ;;  %v11647_v56 = vunpack.i.l.bf16 %v11646_v10  ;;  %v11653_v59 = vunpack.i.h.bf16 %v11651_v14 }
 0xaf7   : > { %v1778_v51 = vmul.f32 %v12145_v26, %v12133_v17  ;;  %v12147_v43 = vpop.eup %12146  ;;  %v11652_v26 = vunpack.i.l.bf16 %v11651_v14 }
 0xaf8   : > { %v1768_v44 = vpop.xlane.xlu0 %1767  ;;  %v12149_v6 = vpop.eup %12148  ;;  %v1782_v55 = vmul.f32 %v12147_v43, %v12131_v36  ;;  %v1981_v43 = vsel %vm722_vm1, %v12754_v31, %v11648_v50 }
 0xaf9   : > { %12156 = vrcp.f32 %v1768_v44  ;;  %v1791_v12 = vpack.c.bf16 %v1778_v51, %v1776_v4  ;;  %v1780_v61 = vmul.f32 %v12149_v6, %v12983_v46  ;;  %v11766_v46 = vld [vmem:[%s16118_s4 + $0x8] sm:$0xff]   ;;  %v1983_v6 = vsel %vm722_vm1, %v12752_v30, %v11653_v59 }
 0xafb   : > { %11371 = vmatprep.mubr.msk.bf16.mxu1 %vm820_vm2, %v1791_v12  ;;  %v1792_v21 = vpack.c.bf16 %v1782_v55, %v1780_v61 }
 0xafc   : > { %v1798_v42 = vpop.permute.xlu0 %1797 }
 0xafd   : > { %11367 = vmatprep.subr.bf16.mxu1 %v1798_v42 }
 0xafe   : > { %11368 = vmatpush3.bf16.msra.mxu1 %v1798_v42  ;;  %v12151_v23 = vpop.eup %12150  ;;  %v1980_v42 = vsel %vm722_vm1, %v12750_v29, %v11647_v56 }
 0xaff   : > { %11369 = vmatprep.subr.bf16.mxu1 %v1796_v49  ;;  %v1784_v17 = vmul.f32 %v12151_v23, %v12137_v27  ;;  %v11767_v27 = vld [vmem:[%s16118_s4] sm:$0xff]  }
 0xb02   : > { %11370 = vmatpush3.bf16.msra.mxu1 %v1796_v49  ;;  %v12153_v7 = vpop.eup %12152  ;;  %v1982_v49 = vsel %vm722_vm1, %v12748_v28, %v11652_v26 }
 0xb03   : > { %v12155_v0 = vpop.eup %12154  ;;  %v1790_v22 = vmul.f32 %v12153_v7, %v12139_v18  ;;  %11379 = vmatprep.subr.bf16.mxu1 %v11766_v46 }
 0xb04   : > { %v1788_v24 = vmul.f32 %v12155_v0, %v12990_v20 }
 0xb05   : > { %11372 = vmatmul.mubr.msk.bf16.vlgmr.msra.gmra.mxu1 %vm820_vm2, %v1792_v21 }
 0xb06   : > { %v12157_v25 = vpop.eup %12156  ;;  %v1794_v36 = vpack.c.bf16 %v1790_v22, %v1788_v24  ;;  %11380 = vmatpush3.bf16.msra.mxu1 %v11766_v46 }
 0xb07   : > { %v1786_v19 = vmul.f32 %v12157_v25, %v12141_v5  ;;  %11381 = vmatprep.subr.bf16.mxu1 %v11767_v27 }
 0xb09   : > { %v1793_v41 = vpack.c.bf16 %v1786_v19, %v1784_v17 }
 0xb0a   : > { %11382 = vmatpush3.bf16.msra.mxu1 %v11767_v27 }
 0xb0b   : > { %11375 = vmatprep.mubr.msk.bf16.mxu1 %vm820_vm2, %v1793_v41 }
 0xb0d   : > { %11376 = vmatmul.mubr.msk.bf16.gmra.mxu1 %vm820_vm2, %v1794_v36 }
 0xbc5   : > { %v11373_v18 = vpop.f32.mrf.mxu1 }
 0xbc7   : > { %v1853_v5 = vpop.f32.mrf.mxu1 }
 0xbc9   : > { %v11374_v20 = vpop.f32.mrf.mxu1 }
 0xbca   : > { %v11669_v8 = vpack.i.bf16 %v11374_v20, %v11373_v18 }
 0xbcb   : > { %v1856_v3 = vpop.f32.mrf.mxu1 }
 0xbcc   : > { %v11664_v11 = vpack.i.bf16 %v1856_v3, %v1853_v5  ;;  %11670 = vrot.lane.b32.xlu1 %v11669_v8, %s16153_s19 }
 0xbcd   : > { %v11377_v63 = vpop.f32.mrf.mxu1 }
 0xbce   : > { %11665 = vrot.lane.b32.xlu0 %v11664_v11, %s16153_s19 }
 0xbcf   : > { %v1869_v62 = vpop.f32.mrf.mxu1 }
 0xbd0   : > { %11680 = vrot.lane.b32.xlu1 %v11679_v15, %s16157_s28  ;;  %v11656_v15 = vpop.permute.xlu1 %11655 }
 0xbd1   : > { %v11378_v1 = vpop.f32.mrf.mxu1  ;;  %v11658_v57 = vunpack.i.h.bf16 %v11656_v15 }
 0xbd2   : > { %11675 = vrot.lane.b32.xlu0 %v11674_v9, %s16157_s28  ;;  %v11699_v45 = vpack.i.bf16 %v11378_v1, %v11377_v63  ;;  %s16268_s28 = smov 104  }
 0xbd3   : > { %v1872_v2 = vpop.f32.mrf.mxu1  ;;  %v1990_v31 = vsel %vm1988_vm3, %v1981_v43, %v11658_v57  ;;  %v9675_v57 = vld [vmem:[%s16119_s5] ss:$0 sm:$0xff] }
 0xbd4   : > { %11690 = vrot.lane.b32.xlu1 %v11689_v58, %s16155_s26  ;;  %v11694_v13 = vpack.i.bf16 %v1872_v2, %v1869_v62  ;;  %v11661_v16 = vpop.permute.xlu1 %11660  ;;  %v11657_v58 = vunpack.i.l.bf16 %v11656_v15 }
 0xbd5   : > { %v11663_v4 = vunpack.i.h.bf16 %v11661_v16  ;;  %v11662_v54 = vunpack.i.l.bf16 %v11661_v16 }
 0xbd6   : > { %11685 = vrot.lane.b32.xlu0 %v11684_v60, %s16155_s26  ;;  %v1989_v0 = vsel %vm1988_vm3, %v1980_v42, %v11657_v58  ;;  %s16264_s26 = smov 80  }
 0xbd7   : > { %v1991_v61 = vsel %vm1988_vm3, %v1982_v49, %v11662_v54  ;;  %v1992_v23 = vsel %vm1988_vm3, %v1983_v6, %v11663_v4  ;;  %v16206_v4 = vmov 0  }
 0xbd8   : > { %11700 = vrot.lane.b32.xlu1 %v11699_v45, %s16153_s19 }
 0xbda   : > { %11695 = vrot.lane.b32.xlu0 %v11694_v13, %s16153_s19  ;;  %s16263_s19 = smov 56  }
 0xc3e   : > { %v11671_v51 = vpop.permute.xlu1 %11670 }
 0xc3f   : > { %v11673_v44 = vunpack.i.h.bf16 %v11671_v51  ;;  %v11672_v12 = vunpack.i.l.bf16 %v11671_v51 }
 0xc40   : > { %v11666_v55 = vpop.permute.xlu0 %11665 }
 0xc41   : > { %v11668_v21 = vunpack.i.h.bf16 %v11666_v55  ;;  %v11667_v7 = vunpack.i.l.bf16 %v11666_v55  ;;  %v2000_v25 = vsel %vm1997_vm4, %v1991_v61, %v11672_v12  ;;  %v2001_v29 = vsel %vm1997_vm4, %v1992_v23, %v11673_v44 }
 0xc42   : > { %v11681_v17 = vpop.permute.xlu1 %11680  ;;  %v2007_v41 = vpack.c.bf16 %v2001_v29, %v2000_v25 }
 0xc43   : > { %v1998_v30 = vsel %vm1997_vm4, %v1989_v0, %v11667_v7  ;;  %v1999_v28 = vsel %vm1997_vm4, %v1990_v31, %v11668_v21  ;;  %v11683_v36 = vunpack.i.h.bf16 %v11681_v17  ;;  %v11682_v46 = vunpack.i.l.bf16 %v11681_v17 }
 0xc44   : > { %v11676_v19 = vpop.permute.xlu0 %11675  ;;  %v2006_v22 = vpack.c.bf16 %v1999_v28, %v1998_v30 }
 0xc45   : > { %v11678_v27 = vunpack.i.h.bf16 %v11676_v19  ;;  %v11677_v18 = vunpack.i.l.bf16 %v11676_v19  ;;  %v1987_v1 = vsel %vm722_vm1, %v12760_v34, %v11683_v36  ;;  %v1986_v60 = vsel %vm722_vm1, %v12756_v32, %v11682_v46 }
 0xc46   : > { %v11691_v24 = vpop.permute.xlu1 %11690  ;;  %11383 = vmatprep.mubr.msk.bf16.mxu1 %vm628_vm0, %v2006_v22 }
 0xc47   : > { %11384 = vmatmul.mubr.msk.bf16.vlgmr.msra.gmra.mxu1 %vm628_vm0, %v2007_v41  ;;  %v11693_v20 = vunpack.i.h.bf16 %v11691_v24  ;;  %v11692_v8 = vunpack.i.l.bf16 %v11691_v24  ;;  %v1985_v2 = vsel %vm722_vm1, %v12762_v35, %v11678_v27  ;;  %v1984_v45 = vsel %vm722_vm1, %v12758_v33, %v11677_v18 }
 0xc48   : > { %v11686_v5 = vpop.permute.xlu0 %11685 }
 0xc49   : > { %v11688_v3 = vunpack.i.h.bf16 %v11686_v5  ;;  %v11687_v11 = vunpack.i.l.bf16 %v11686_v5  ;;  %v1995_v10 = vsel %vm1988_vm3, %v1986_v60, %v11692_v8  ;;  %v1996_v14 = vsel %vm1988_vm3, %v1987_v1, %v11693_v20 }
 0xc4a   : > { %v11701_v63 = vpop.permute.xlu1 %11700 }
 0xc4b   : > { %v11703_v62 = vunpack.i.h.bf16 %v11701_v63  ;;  %v11702_v9 = vunpack.i.l.bf16 %v11701_v63  ;;  %v1993_v50 = vsel %vm1988_vm3, %v1984_v45, %v11687_v11  ;;  %v1994_v34 = vsel %vm1988_vm3, %v1985_v2, %v11688_v3 }
 0xc4c   : > { %v11696_v13 = vpop.permute.xlu0 %11695 }
 0xc4d   : > { %v11698_v15 = vunpack.i.h.bf16 %v11696_v13  ;;  %v11697_v16 = vunpack.i.l.bf16 %v11696_v13  ;;  %v2004_v56 = vsel %vm1997_vm4, %v1995_v10, %v11702_v9  ;;  %v2005_v32 = vsel %vm1997_vm4, %v1996_v14, %v11703_v62 }
 0xc4e   : > { %v2009_v26 = vpack.c.bf16 %v2005_v32, %v2004_v56 }
 0xc4f   : > { %v2003_v35 = vsel %vm1997_vm4, %v1994_v34, %v11698_v15  ;;  %v2002_v59 = vsel %vm1997_vm4, %v1993_v50, %v11697_v16 }
 0xc50   : > { %v2008_v33 = vpack.c.bf16 %v2003_v35, %v2002_v59 }
 0xc52   : > { %11387 = vmatprep.mubr.msk.bf16.mxu1 %vm628_vm0, %v2008_v33 }
 0xc53   : > { %11388 = vmatmul.mubr.msk.bf16.gmra.mxu1 %vm628_vm0, %v2009_v26 }
 0xc54   : > { %2650 = vmatprep.mubr.bf16.mxu1 %v16206_v4 }
 0xd07   : > { %v11385_v54 = vpop.f32.mrf.mxu1 }
 0xd08   : > { %v2088_v51 = vadd.f32 %v11385_v54, %v9675_v57 }
 0xd09   : > { %v2079_v58 = vpop.f32.mrf.mxu1 }
 0xd0a   : > { %v2080_v44 = vadd.f32 %v9675_v57, %v2079_v58  ;;  %v2112_v6 = vadd.f32 %v2088_v51, %v12593_v37 }
 0xd0b   : > { %v11386_v12 = vpop.f32.mrf.mxu1 }
 0xd0c   : > { %v2110_v43 = vadd.f32 %v2080_v44, %v12595_v38  ;;  %v2091_v49 = vadd.f32 %v11386_v12, %v9675_v57  ;;  %v2126_v0 = vsel %vm628_vm0, %v2112_v6, 0.0 }
 0xd0d   : > { %v2082_v42 = vpop.f32.mrf.mxu1 }
 0xd0e   : > { %v2083_v55 = vadd.f32 %v9675_v57, %v2082_v42  ;;  %v2120_v61 = vsel %vm628_vm0, %v2110_v43, 0.0  ;;  %v2113_v21 = vadd.f32 %v2091_v49, %v12597_v39 }
 0xd0f   : > { %2121 = vadd.xlane.f32.xlu0 %v2120_v61  ;;  %v2281_v61 = vld [vmem:[%s16122_s8 + $0xc0] sm:$0xff] }
 0xd10   : > { %v2111_v23 = vadd.f32 %v2083_v55, %v12599_v40  ;;  %v2129_v37 = vsel %vm628_vm0, %v2113_v21, 0.0  ;;  %v2273_v55 = vld [vmem:[%s16122_s8 + $0x80] sm:$0xff] }
 0xd12   : > { %v2123_v7 = vsel %vm628_vm0, %v2111_v23, 0.0 }
 0xd13   : > { %v11389_v31 = vpop.f32.mrf.mxu1  ;;  %2124 = vadd.xlane.f32.xlu1 %v2123_v7  ;;  %2127 = vadd.xlane.f32.xlu0 %v2126_v0  ;;  %v2282_v7 = vld [vmem:[%s16122_s8 + $0xc8] sm:$0xff]  ;;  %v9700_v0 = vcombine.low %v2273_v55, %v2281_v61 }
 0xd14   : > { %v2104_v25 = vadd.f32 %v11389_v31, %v9675_v57 }
 0xd15   : > { %v2095_v38 = vpop.f32.mrf.mxu1 }
 0xd16   : > { %v2096_v29 = vadd.f32 %v9675_v57, %v2095_v38  ;;  %v2116_v40 = vadd.f32 %v2104_v25, %v12621_v53  ;;  %v2257_v25 = vld [vmem:[%s16122_s8] sm:$0xff] }
 0xd17   : > { %v11390_v17 = vpop.f32.mrf.mxu1  ;;  %2130 = vadd.xlane.f32.xlu0 %v2129_v37  ;;  %v2258_v37 = vld [vmem:[%s16122_s8 + $0x8] sm:$0xff] }
 0xd18   : > { %v2114_v30 = vadd.f32 %v2096_v29, %v12613_v48  ;;  %v2107_v39 = vadd.f32 %v11390_v17, %v9675_v57  ;;  %v2138_v36 = vsel %vm628_vm0, %v2116_v40, 0.0  ;;  %v2265_v29 = vld [vmem:[%s16122_s8 + $0x40] sm:$0xff] }
 0xd19   : > { %v2098_v28 = vpop.f32.mrf.mxu1  ;;  %v9685_v17 = vcombine.high %v2257_v25, %v2265_v29 }
 0xd1a   : > { %v2099_v19 = vadd.f32 %v9675_v57, %v2098_v28  ;;  %v2132_v22 = vsel %vm628_vm0, %v2114_v30, 0.0  ;;  %v2117_v24 = vadd.f32 %v2107_v39, %v12619_v52  ;;  %v9684_v28 = vcombine.low %v2257_v25, %v2265_v29  ;;  %v13235_v29 = vld [vmem:[%s16122_s8 + $0xa0] sm:$0xff] }
 0xd1b   : > { %2133 = vadd.xlane.f32.xlu1 %v2132_v22  ;;  %v13173_v22 = vld [vmem:[%s16122_s8 + $0xd0] sm:$0xff] }
 0xd1c   : > { %v2115_v41 = vadd.f32 %v2099_v19, %v12611_v47  ;;  %v2141_v48 = vsel %vm628_vm0, %v2117_v24, 0.0  ;;  %v13168_v19 = vld [vmem:[%s16122_s8 + $0x90] sm:$0xff] }
 0xd1e   : > { %v2135_v46 = vsel %vm628_vm0, %v2115_v41, 0.0 }
 0xd1f   : > { %2139 = vadd.xlane.f32.xlu1 %v2138_v36  ;;  %2136 = vadd.xlane.f32.xlu0 %v2135_v46  ;;  %v9705_v36 = vcombine.high %v13168_v19, %v13173_v22  ;;  %v13187_v46 = vld [vmem:[%s16122_s8 + $0xd8] sm:$0xff] }
 0xd23   : > { %2142 = vadd.xlane.f32.xlu0 %v2141_v48 }
 0xd98   : > { %v2122_v27 = vpop.xlane.xlu0 %2121 }
 0xd99   : > { %v2145_v53 = vmul.f32 0.03125, %v2122_v27 }
 0xd9b   : > { %v13101_v18 = vsub.f32 %v2110_v43, %v2145_v53 }
 0xd9c   : > { %v2125_v5 = vpop.xlane.xlu1 %2124  ;;  %v2128_v20 = vpop.xlane.xlu0 %2127 }
 0xd9d   : > { %v2146_v8 = vmul.f32 0.03125, %v2125_v5  ;;  %v2147_v3 = vmul.f32 0.03125, %v2128_v20  ;;  %v2161_v47 = vmul.f32 %v13101_v18, %v13101_v18 }
 0xd9f   : > { %v13105_v52 = vsub.f32 %v2111_v23, %v2146_v8  ;;  %v13107_v11 = vsub.f32 %v2112_v6, %v2147_v3  ;;  %v2169_v63 = vsel %vm628_vm0, %v2161_v47, 0.0  ;;  %v2274_v23 = vld [vmem:[%s16122_s8 + $0x88] sm:$0xff] }
 0xda0   : > { %2170 = vadd.xlane.f32.xlu1 %v2169_v63  ;;  %v2131_v62 = vpop.xlane.xlu0 %2130  ;;  %v9702_v31 = vcombine.low %v2274_v23, %v2282_v7  ;;  %v9703_v38 = vcombine.high %v2274_v23, %v2282_v7 }
 0xda1   : > { %v2148_v9 = vmul.f32 0.03125, %v2131_v62  ;;  %v2162_v1 = vmul.f32 %v13105_v52, %v13105_v52  ;;  %v2163_v60 = vmul.f32 %v13107_v11, %v13107_v11 }
 0xda2   : > { %2630 = vmatprep.subr.bf16.mxu1 %v9703_v38  ;;  %v2268_v38 = vld [vmem:[%s16122_s8 + $0x58] sm:$0xff] }
 0xda3   : > { %v13114_v2 = vsub.f32 %v2113_v21, %v2148_v9  ;;  %v2172_v45 = vsel %vm628_vm0, %v2162_v1, 0.0  ;;  %v2175_v13 = vsel %vm628_vm0, %v2163_v60, 0.0  ;;  %v9701_v21 = vcombine.high %v2273_v55, %v2281_v61  ;;  %2631 = vmatpush1.bf16.msra.mxu1 %v9702_v31  ;;  %v2267_v31 = vld [vmem:[%s16122_s8 + $0x50] sm:$0xff] }
 0xda4   : > { %v2134_v10 = vpop.xlane.xlu1 %2133  ;;  %2173 = vadd.xlane.f32.xlu0 %v2172_v45  ;;  %2176 = vadd.xlane.f32.xlu1 %v2175_v13 }
 0xda5   : > { %v2149_v14 = vmul.f32 0.03125, %v2134_v10  ;;  %v2164_v15 = vmul.f32 %v13114_v2, %v13114_v2  ;;  %2557 = vmatprep.subr.bf16.mxu0 %v9701_v21  ;;  %v2259_v21 = vld [vmem:[%s16122_s8 + $0x10] sm:$0xff] }
 0xda6   : > { %2558 = vmatpush1.bf16.msra.mxu0 %v9700_v0 }
 0xda7   : > { %v13120_v16 = vsub.f32 %v2114_v30, %v2149_v14  ;;  %v2178_v50 = vsel %vm628_vm0, %v2164_v15, 0.0  ;;  %v2266_v30 = vld [vmem:[%s16122_s8 + $0x48] sm:$0xff]  ;;  %2559 = vmatprep.subr.bf16.mxu0 %v9685_v17 }
 0xda8   : > { %v2140_v34 = vpop.xlane.xlu1 %2139  ;;  %2179 = vadd.xlane.f32.xlu0 %v2178_v50  ;;  %v2137_v56 = vpop.xlane.xlu0 %2136  ;;  %v9687_v39 = vcombine.high %v2258_v37, %v2266_v30 }
 0xda9   : > { %v2151_v32 = vmul.f32 0.03125, %v2140_v34  ;;  %v2150_v35 = vmul.f32 0.03125, %v2137_v56  ;;  %v2165_v59 = vmul.f32 %v13120_v16, %v13120_v16 }
 0xdaa   : > { %2560 = vmatpush1.bf16.msra.mxu0 %v9684_v28  ;;  %2632 = vmatprep.subr.bf16.mxu1 %v9687_v39  ;;  %v13245_v28 = vld [vmem:[%s16122_s8 + $0xa8] sm:$0xff] }
 0xdab   : > { %v13125_v33 = vsub.f32 %v2116_v40, %v2151_v32  ;;  %v13127_v26 = vsub.f32 %v2115_v41, %v2150_v35  ;;  %v2181_v54 = vsel %vm628_vm0, %v2165_v59, 0.0  ;;  %v9686_v40 = vcombine.low %v2258_v37, %v2266_v30  ;;  %v13178_v41 = vld [vmem:[%s16122_s8 + $0x98] sm:$0xff]  ;;  %2703 = vmatprep.subr.bf16.mxu0 %v9705_v36  ;;  %v13240_v30 = vld [vmem:[%s16122_s8 + $0xe0] sm:$0xff] }
 0xdac   : > { %2182 = vadd.xlane.f32.xlu1 %v2181_v54  ;;  %v2143_v57 = vpop.xlane.xlu0 %2142  ;;  %v9706_v48 = vcombine.low %v13178_v41, %v13187_v46  ;;  %v9707_v27 = vcombine.high %v13178_v41, %v13187_v46  ;;  %v9689_v37 = vcombine.high %v2259_v21, %v2267_v31 }
 0xdad   : > { %v2152_v58 = vmul.f32 0.03125, %v2143_v57  ;;  %v2167_v51 = vmul.f32 %v13125_v33, %v13125_v33  ;;  %v2166_v44 = vmul.f32 %v13127_v26, %v13127_v26  ;;  %2633 = vmatpush1.bf16.msra.mxu1 %v9686_v40  ;;  %v13197_v57 = vld [vmem:[%s16120_s6] ss:$0 sm:$0xff]  ;;  %v13250_v40 = vld [vmem:[%s16122_s8 + $0xe8] sm:$0xff] }
 0xdae   : > { %2776 = vmatprep.subr.bf16.mxu1 %v9707_v27  ;;  %v9688_v27 = vcombine.low %v2259_v21, %v2267_v31 }
 0xdaf   : > { %v13134_v12 = vsub.f32 %v2117_v24, %v2152_v58  ;;  %v2187_v43 = vsel %vm628_vm0, %v2167_v51, 0.0  ;;  %v2184_v42 = vsel %vm628_vm0, %v2166_v44, 0.0  ;;  %v9704_v24 = vcombine.low %v13168_v19, %v13173_v22 }
 0xdb0   : > { %2188 = vadd.xlane.f32.xlu1 %v2187_v43  ;;  %2185 = vadd.xlane.f32.xlu0 %v2184_v42  ;;  %v9711_v19 = vcombine.high %v13245_v28, %v13250_v40 }
 0xdb1   : > { %v2168_v6 = vmul.f32 %v13134_v12, %v13134_v12 }
 0xdb3   : > { %v2190_v49 = vsel %vm628_vm0, %v2168_v6, 0.0 }
 0xdb4   : > { %2191 = vadd.xlane.f32.xlu0 %v2190_v49 }
 0xe29   : > { %v2171_v53 = vpop.xlane.xlu1 %2170 }
 0xe2a   : > { %v2193_v5 = vmul.f32 0.03125, %v2171_v53 }
 0xe2c   : > { %v2201_v20 = vadd.f32 1e-05, %v2193_v5 }
 0xe2d   : > { %v2177_v8 = vpop.xlane.xlu1 %2176  ;;  %v2174_v3 = vpop.xlane.xlu0 %2173 }
 0xe2e   : > { %12158 = vrsqrt.f32 %v2201_v20  ;;  %v2195_v47 = vmul.f32 0.03125, %v2177_v8  ;;  %v2194_v63 = vmul.f32 0.03125, %v2174_v3  ;;  %v9709_v20 = vcombine.high %v13235_v29, %v13240_v30 }
 0xe30   : > { %v2202_v62 = vadd.f32 1e-05, %v2194_v63  ;;  %v2203_v9 = vadd.f32 1e-05, %v2195_v47 }
 0xe31   : > { %v2180_v1 = vpop.xlane.xlu0 %2179 }
 0xe32   : > { %v2196_v60 = vmul.f32 0.03125, %v2180_v1  ;;  %12160 = vrsqrt.f32 %v2202_v62 }
 0xe33   : > { %12162 = vrsqrt.f32 %v2203_v9 }
 0xe34   : > { %v2204_v45 = vadd.f32 1e-05, %v2196_v60 }
 0xe35   : > { %v2183_v13 = vpop.xlane.xlu1 %2182 }
 0xe36   : > { %12164 = vrsqrt.f32 %v2204_v45  ;;  %v2197_v10 = vmul.f32 0.03125, %v2183_v13 }
 0xe38   : > { %v2205_v14 = vadd.f32 1e-05, %v2197_v10  ;;  %v2261_v10 = vld [vmem:[%s16122_s8 + $0x20] sm:$0xff] }
 0xe39   : > { %v2186_v15 = vpop.xlane.xlu0 %2185  ;;  %v2189_v50 = vpop.xlane.xlu1 %2188 }
 0xe3a   : > { %v2198_v34 = vmul.f32 0.03125, %v2186_v15  ;;  %12166 = vrsqrt.f32 %v2205_v14  ;;  %v2199_v59 = vmul.f32 0.03125, %v2189_v50  ;;  %v2269_v14 = vld [vmem:[%s16122_s8 + $0x60] sm:$0xff]  ;;  %v2262_v15 = vld [vmem:[%s16122_s8 + $0x28] sm:$0xff] }
 0xe3b   : > { %v12159_v56 = vpop.eup %12158  ;;  %v2270_v50 = vld [vmem:[%s16122_s8 + $0x68] sm:$0xff] }
 0xe3c   : > { %v2206_v32 = vadd.f32 1e-05, %v2198_v34  ;;  %v2217_v35 = vmul.f32 %v12159_v56, %v13101_v18  ;;  %v2207_v6 = vadd.f32 1e-05, %v2199_v59  ;;  %v13204_v18 = vld [vmem:[%s16121_s7] ss:$0 sm:$0xff]  ;;  %v9708_v34 = vcombine.low %v13235_v29, %v13240_v30 }
 0xe3d   : > { %v2192_v54 = vpop.xlane.xlu0 %2191  ;;  %v9710_v56 = vcombine.low %v13245_v28, %v13250_v40  ;;  %v9695_v59 = vcombine.high %v2262_v15, %v2270_v50  ;;  %v11770_v29 = vld [vmem:[%s16124_s10 + $0x38] sm:$0xff]   ;;  %v11773_v30 = vld [vmem:[%s16124_s10 + $0xf0] sm:$0xff]  }
 0xe3e   : > { %v2200_v58 = vmul.f32 0.03125, %v2192_v54  ;;  %12168 = vrsqrt.f32 %v2206_v32  ;;  %v2231_v43 = vmul.f32 %v13197_v57, %v2217_v35  ;;  %v2279_v32 = vld [vmem:[%s16122_s8 + $0xb0] sm:$0xff]  ;;  %v9693_v35 = vcombine.high %v2261_v10, %v2269_v14 }
 0xe3f   : > { %v12161_v51 = vpop.eup %12160  ;;  %v2287_v54 = vld [vmem:[%s16122_s8 + $0xf0] sm:$0xff] }
 0xe40   : > { %v2208_v44 = vadd.f32 1e-05, %v2200_v58  ;;  %v2218_v42 = vmul.f32 %v12161_v51, %v13105_v52  ;;  %v12163_v49 = vpop.eup %12162  ;;  %v13212_v7 = vadd.f32 %v13204_v18, %v2231_v43  ;;  %v2288_v58 = vld [vmem:[%s16122_s8 + $0xf8] sm:$0xff]  ;;  %v9692_v51 = vcombine.low %v2261_v10, %v2269_v14  ;;  %v11774_v28 = vld [vmem:[%s16124_s10 + $0x30] sm:$0xff]   ;;  %v11796_v10 = vld [vmem:[%s16124_s10 + $0x40] sm:$0xff]  }
 0xe41   : > { %v2219_v52 = vmul.f32 %v12163_v49, %v13107_v11  ;;  %v9713_v43 = vcombine.high %v2279_v32, %v2287_v54  ;;  %v2271_v49 = vld [vmem:[%s16122_s8 + $0x70] sm:$0xff]  ;;  %v11797_v14 = vld [vmem:[%s16124_s10 + $0xc0] sm:$0xff]  }
 0xe42   : > { %v2232_v61 = vmul.f32 %v13197_v57, %v2218_v42  ;;  %12170 = vrsqrt.f32 %v2208_v44  ;;  %v9694_v44 = vcombine.low %v2262_v15, %v2270_v50  ;;  %v11775_v40 = vld [vmem:[%s16124_s10 + $0xb0] sm:$0xff]   ;;  %v11798_v15 = vld [vmem:[%s16124_s10] sm:$0xff]  }
 0xe43   : > { %v12165_v55 = vpop.eup %12164  ;;  %12172 = vrsqrt.f32 %v2207_v6  ;;  %v2233_v39 = vmul.f32 %v13197_v57, %v2219_v52  ;;  %v2263_v6 = vld [vmem:[%s16122_s8 + $0x30] sm:$0xff]  ;;  %v11799_v50 = vld [vmem:[%s16124_s10 + $0x80] sm:$0xff]  }
 0xe44   : > { %v2220_v23 = vmul.f32 %v12165_v55, %v13114_v2  ;;  %v13216_v0 = vadd.f32 %v13204_v18, %v2232_v61  ;;  %v2260_v2 = vld [vmem:[%s16122_s8 + $0x18] sm:$0xff]  ;;  %v9712_v61 = vcombine.low %v2279_v32, %v2287_v54  ;;  %v9697_v21 = vcombine.high %v2263_v6, %v2271_v49 }
 0xe45   : > { %v9691_v17 = vcombine.high %v2260_v2, %v2268_v38  ;;  %v9690_v53 = vcombine.low %v2260_v2, %v2268_v38  ;;  %v13273_v41 = vadd.f32 %v13204_v18, %v2233_v39  ;;  %v2272_v55 = vld [vmem:[%s16122_s8 + $0x78] sm:$0xff]  ;;  %v9696_v31 = vcombine.low %v2263_v6, %v2271_v49  ;;  %v11777_v39 = vld [vmem:[%s16124_s10 + $0xe8] sm:$0xff]  }
 0xe46   : > { %v13229_v25 = vpack.c.bf16 %v13216_v0, %v13212_v7  ;;  %v2234_v11 = vmul.f32 %v13197_v57, %v2220_v23  ;;  %v11768_v38 = vld [vmem:[%s16124_s10 + $0x78] sm:$0xff]  }
 0xe47   : > { %v12167_v36 = vpop.eup %12166  ;;  %16208 = vst [vmem:[#allocation10_spill] sm:$0xff] %v13273_v41 }
 0xe48   : > { %9716 = vmatmul.mubr.msk.bf16.vlgmr.msra.gmra.mxu0 %vm628_vm0, %v13229_v25  ;;  %9720 = vmatmul.mubr.msk.bf16.vlgmr.msra.gmra.mxu1 %vm628_vm0, %v13229_v25  ;;  %v13264_v5 = vadd.f32 %v13204_v18, %v2234_v11  ;;  %v11769_v11 = vld [vmem:[%s16124_s10 + $0xf8] sm:$0xff]  }
 0xe49   : > { %2704 = vmatpush1.bf16.msra.mxu0 %v9704_v24  ;;  %2777 = vmatpush1.bf16.msra.mxu1 %v9706_v48  ;;  %v2221_v24 = vmul.f32 %v12167_v36, %v13120_v16  ;;  %v11778_v36 = vld [vmem:[%s16124_s10 + $0x28] sm:$0xff]  }
 0xe4a   : > { %16207 = vst [vmem:[#allocation9_spill] sm:$0xff] %v13264_v5  ;;  %2587 = vmatprep.mubr.bf16.mxu0 %v16206_v4  ;;  %2660 = vmatprep.mubr.bf16.mxu1 %v16206_v4  ;;  %v13279_v48 = vpack.c.bf16 %v13264_v5, %v13273_v41 }
 0xe4b   : > { %v12169_v22 = vpop.eup %12168  ;;  %2705 = vmatprep.subr.bf16.mxu0 %v9689_v37  ;;  %2778 = vmatprep.subr.bf16.mxu1 %v9691_v17  ;;  %v2235_v47 = vmul.f32 %v13197_v57, %v2221_v24  ;;  %v11771_v37 = vld [vmem:[%s16124_s10 + $0xb8] sm:$0xff]   ;;  %v11772_v17 = vld [vmem:[%s16124_s10 + $0x70] sm:$0xff]  }
 0xe4c   : > { %v2222_v46 = vmul.f32 %v12169_v22, %v13127_v26  ;;  %v11783_v22 = vld [vmem:[%s16124_s10 + $0xa0] sm:$0xff]   ;;  %v11784_v24 = vld [vmem:[%s16124_s10 + $0x58] sm:$0xff]  }
 0xe4d   : > { %2706 = vmatpush1.bf16.msra.mxu0 %v9688_v27  ;;  %2779 = vmatpush1.bf16.msra.mxu1 %v9690_v53  ;;  %v13294_v62 = vadd.f32 %v13204_v18, %v2235_v47  ;;  %v11779_v27 = vld [vmem:[%s16124_s10 + $0xa8] sm:$0xff]   ;;  %v11780_v53 = vld [vmem:[%s16124_s10 + $0x60] sm:$0xff]   ;;  %v11789_v47 = vld [vmem:[%s16124_s10 + $0xd0] sm:$0xff]  }
 0xe4e   : > { %v2236_v8 = vmul.f32 %v13197_v57, %v2222_v46  ;;  %2849 = vmatprep.subr.bf16.mxu0 %v9709_v20  ;;  %2922 = vmatprep.subr.bf16.mxu1 %v9711_v19  ;;  %v11781_v20 = vld [vmem:[%s16124_s10 + $0xe0] sm:$0xff]   ;;  %v11785_v46 = vld [vmem:[%s16124_s10 + $0xd8] sm:$0xff]  }
 0xe4f   : > { %v12171_v3 = vpop.eup %12170  ;;  %16210 = vst [vmem:[#allocation12_spill] sm:$0xff] %v13294_v62  ;;  %v11782_v19 = vld [vmem:[%s16124_s10 + $0x20] sm:$0xff]  }
 0xe50   : > { %9717 = vmatmul.mubr.msk.bf16.gmra.mxu0 %vm628_vm0, %v13279_v48  ;;  %9721 = vmatmul.mubr.msk.bf16.gmra.mxu1 %vm628_vm0, %v13279_v48  ;;  %v12173_v16 = vpop.eup %12172  ;;  %v13290_v26 = vadd.f32 %v13204_v18, %v2236_v8  ;;  %v2224_v63 = vmul.f32 %v12171_v3, %v13134_v12  ;;  %v11787_v8 = vld [vmem:[%s16124_s10 + $0x98] sm:$0xff]   ;;  %v11788_v3 = vld [vmem:[%s16124_s10 + $0x50] sm:$0xff]  }
 0xe51   : > { %2597 = vmatprep.mubr.bf16.mxu0 %v16206_v4  ;;  %2670 = vmatprep.mubr.bf16.mxu1 %v16206_v4  ;;  %v2223_v9 = vmul.f32 %v12173_v16, %v13125_v33  ;;  %v11790_v16 = vld [vmem:[%s16124_s10 + $0x10] sm:$0xff]  }
 0xe52   : > { %16209 = vst [vmem:[#allocation11_spill] sm:$0xff] %v13290_v26  ;;  %v13299_v1 = vpack.c.bf16 %v13290_v26, %v13294_v62  ;;  %v2238_v60 = vmul.f32 %v13197_v57, %v2224_v63  ;;  %v11791_v63 = vld [vmem:[%s16124_s10 + $0x90] sm:$0xff]  }
 0xe53   : > { %v2237_v45 = vmul.f32 %v13197_v57, %v2223_v9  ;;  %v2280_v57 = vld [vmem:[%s16122_s8 + $0xb8] sm:$0xff]  ;;  %v11792_v9 = vld [vmem:[%s16124_s10 + $0x48] sm:$0xff]  }
 0xe54   : > { %v13310_v33 = vadd.f32 %v13204_v18, %v2238_v60  ;;  %v9715_v42 = vcombine.high %v2280_v57, %v2288_v58  ;;  %v9714_v23 = vcombine.low %v2280_v57, %v2288_v58  ;;  %v11794_v60 = vld [vmem:[%s16124_s10 + $0x8] sm:$0xff]   ;;  %v13554_v58 = vld [vmem:[%s16123_s9] sm:$0xff] }
 0xe55   : > { %v13313_v12 = vadd.f32 %v13204_v18, %v2237_v45  ;;  %v2264_v18 = vld [vmem:[%s16122_s8 + $0x38] sm:$0xff]  ;;  %v11795_v45 = vld [vmem:[%s16124_s10 + $0x88] sm:$0xff]  }
 0xe56   : > { %16211 = vst [vmem:[#allocation13_spill] sm:$0xff] %v13310_v33  ;;  %v9699_v52 = vcombine.high %v2264_v18, %v2272_v55  ;;  %v9698_v2 = vcombine.low %v2264_v18, %v2272_v55 }
 0xe57   : > { %16212 = vst [vmem:[#allocation14_spill] sm:$0xff] %v13313_v12  ;;  %v13317_v13 = vpack.c.bf16 %v13310_v33, %v13313_v12 }
 0xe58   : > { %9718 = vmatmul.mubr.msk.bf16.gmra.mxu0 %vm628_vm0, %v13299_v1  ;;  %9722 = vmatmul.mubr.msk.bf16.gmra.mxu1 %vm628_vm0, %v13299_v1 }
 0xe59   : > { %2607 = vmatprep.mubr.bf16.mxu0 %v16206_v4  ;;  %2680 = vmatprep.mubr.bf16.mxu1 %v16206_v4 }
 0xe60   : > { %9719 = vmatmul.mubr.msk.bf16.gmra.mxu0 %vm628_vm0, %v13317_v13  ;;  %9723 = vmatmul.mubr.msk.bf16.gmra.mxu1 %vm628_vm0, %v13317_v13 }
 0xe61   : > { %2723 = vmatprep.mubr.bf16.mxu0 %v16206_v4  ;;  %2796 = vmatprep.mubr.bf16.mxu1 %v16206_v4 }
 0xe68   : > { %9724 = vmatmul.mubr.msk.bf16.vlgmr.msra.gmra.mxu0 %vm628_vm0, %v13229_v25  ;;  %9728 = vmatmul.mubr.msk.bf16.vlgmr.msra.gmra.mxu1 %vm628_vm0, %v13229_v25 }
 0xe69   : > { %2850 = vmatpush1.bf16.msra.mxu0 %v9708_v34  ;;  %2923 = vmatpush1.bf16.msra.mxu1 %v9710_v56  ;;  %v11800_v34 = vld [vmem:[%s16124_s10 + $0x178] sm:$0xff]   ;;  %v2293_v56 = vlaneseq }
 0xe6a   : > { %2733 = vmatprep.mubr.bf16.mxu0 %v16206_v4  ;;  %2806 = vmatprep.mubr.bf16.mxu1 %v16206_v4 }
 0xe6b   : > { %2851 = vmatprep.subr.bf16.mxu0 %v9693_v35  ;;  %2924 = vmatprep.subr.bf16.mxu1 %v9695_v59  ;;  %v13537_v32 = vshrl.u32 %v2293_v56, 7 }
 0xe6d   : > { %2852 = vmatpush1.bf16.msra.mxu0 %v9692_v51  ;;  %2925 = vmatpush1.bf16.msra.mxu1 %v9694_v44  ;;  %v13540_v35 = vsub.s32 1, %v13537_v32  ;;  %v13543_v59 = vsub.s32 3, %v13537_v32  ;;  %v13546_v54 = vsub.s32 0, %v13537_v32  ;;  %v13549_v57 = vsub.s32 2, %v13537_v32 }
 0xe6e   : > { %2995 = vmatprep.subr.bf16.mxu0 %v9713_v43  ;;  %3068 = vmatprep.subr.bf16.mxu1 %v9715_v42 }
 0xe6f   : > { %16213 = vst [vmem:[#allocation15_spill] sm:$0xff] %v13540_v35  ;;  %16214 = vst [vmem:[#allocation16_spill] sm:$0xff] %v13543_v59  ;;  %v13558_v43 = vrot.slane %v13554_v58, %v13540_v35  ;;  %v13562_v42 = vrot.slane %v13554_v58, %v13543_v59  ;;  %v13566_v6 = vrot.slane %v13554_v58, %v13546_v54 }
 0xe70   : > { %9725 = vmatmul.mubr.msk.bf16.gmra.mxu0 %vm628_vm0, %v13279_v48  ;;  %9729 = vmatmul.mubr.msk.bf16.gmra.mxu1 %vm628_vm0, %v13279_v48  ;;  %16215 = vst [vmem:[#allocation17_spill] sm:$0xff] %v13546_v54  ;;  %16216 = vst [vmem:[#allocation18_spill] sm:$0xff] %v13549_v57  ;;  %v13570_v49 = vrot.slane %v13554_v58, %v13549_v57 }
 0xe71   : > { %2743 = vmatprep.mubr.bf16.mxu0 %v16206_v4  ;;  %2816 = vmatprep.mubr.bf16.mxu1 %v16206_v4 }
 0xe78   : > { %9726 = vmatmul.mubr.msk.bf16.gmra.mxu0 %vm628_vm0, %v13299_v1  ;;  %9730 = vmatmul.mubr.msk.bf16.gmra.mxu1 %vm628_vm0, %v13299_v1 }
 0xe79   : > { %2753 = vmatprep.mubr.bf16.mxu0 %v16206_v4  ;;  %2826 = vmatprep.mubr.bf16.mxu1 %v16206_v4 }
 0xe80   : > { %9727 = vmatmul.mubr.msk.bf16.gmra.mxu0 %vm628_vm0, %v13317_v13  ;;  %9731 = vmatmul.mubr.msk.bf16.gmra.mxu1 %vm628_vm0, %v13317_v13 }
 0xe81   : > { %2869 = vmatprep.mubr.bf16.mxu0 %v16206_v4  ;;  %2942 = vmatprep.mubr.bf16.mxu1 %v16206_v4 }
 0xe88   : > { %9732 = vmatmul.mubr.msk.bf16.vlgmr.msra.gmra.mxu0 %vm628_vm0, %v13229_v25  ;;  %9736 = vmatmul.mubr.msk.bf16.vlgmr.msra.gmra.mxu1 %vm628_vm0, %v13229_v25 }
 0xe89   : > { %2996 = vmatpush1.bf16.msra.mxu0 %v9712_v61  ;;  %3069 = vmatpush1.bf16.msra.mxu1 %v9714_v23 }
 0xe8a   : > { %2879 = vmatprep.mubr.bf16.mxu0 %v16206_v4  ;;  %2952 = vmatprep.mubr.bf16.mxu1 %v16206_v4 }
 0xe8b   : > { %2997 = vmatprep.subr.bf16.mxu0 %v9697_v21  ;;  %3070 = vmatprep.subr.bf16.mxu1 %v9699_v52 }
 0xe8d   : > { %2998 = vmatpush1.bf16.msra.mxu0 %v9696_v31  ;;  %3071 = vmatpush1.bf16.msra.mxu1 %v9698_v2 }
 0xe8e   : > { %10517 = vmatprep.subr.bf16.mxu0 %v11768_v38  ;;  %10557 = vmatprep.subr.bf16.mxu1 %v11769_v11 }
 0xe90   : > { %9733 = vmatmul.mubr.msk.bf16.gmra.mxu0 %vm628_vm0, %v13279_v48  ;;  %9737 = vmatmul.mubr.msk.bf16.gmra.mxu1 %vm628_vm0, %v13279_v48 }
 0xe91   : > { %2889 = vmatprep.mubr.bf16.mxu0 %v16206_v4  ;;  %2962 = vmatprep.mubr.bf16.mxu1 %v16206_v4 }
 0xe98   : > { %9734 = vmatmul.mubr.msk.bf16.gmra.mxu0 %vm628_vm0, %v13299_v1  ;;  %9738 = vmatmul.mubr.msk.bf16.gmra.mxu1 %vm628_vm0, %v13299_v1 }
 0xe99   : > { %2899 = vmatprep.mubr.bf16.mxu0 %v16206_v4  ;;  %2972 = vmatprep.mubr.bf16.mxu1 %v16206_v4 }
 0xea0   : > { %9735 = vmatmul.mubr.msk.bf16.gmra.mxu0 %vm628_vm0, %v13317_v13  ;;  %9739 = vmatmul.mubr.msk.bf16.gmra.mxu1 %vm628_vm0, %v13317_v13 }
 0xea1   : > { %3015 = vmatprep.mubr.bf16.mxu0 %v16206_v4  ;;  %3088 = vmatprep.mubr.bf16.mxu1 %v16206_v4 }
 0xea8   : > { %9740 = vmatmul.mubr.msk.bf16.vlgmr.msra.gmra.mxu0 %vm628_vm0, %v13229_v25  ;;  %9744 = vmatmul.mubr.msk.bf16.vlgmr.msra.gmra.mxu1 %vm628_vm0, %v13229_v25  ;;  %v11776_v25 = vld [vmem:[%s16124_s10 + $0x68] sm:$0xff]  }
 0xea9   : > { %3025 = vmatprep.mubr.bf16.mxu0 %v16206_v4  ;;  %3098 = vmatprep.mubr.bf16.mxu1 %v16206_v4 }
 0xeaa   : > { %10518 = vmatpush3.bf16.msra.mxu0 %v11770_v29  ;;  %10558 = vmatpush3.bf16.msra.mxu1 %v11771_v37 }
 0xeab   : > { %10519 = vmatprep.subr.bf16.mxu0 %v11772_v17  ;;  %10559 = vmatprep.subr.bf16.mxu1 %v11773_v30 }
 0xeae   : > { %10520 = vmatpush3.bf16.msra.mxu0 %v11774_v28  ;;  %10560 = vmatpush3.bf16.msra.mxu1 %v11775_v40 }
 0xeaf   : > { %10521 = vmatprep.subr.bf16.mxu0 %v11776_v25  ;;  %10561 = vmatprep.subr.bf16.mxu1 %v11777_v39 }
 0xeb0   : > { %9741 = vmatmul.mubr.msk.bf16.gmra.mxu0 %vm628_vm0, %v13279_v48  ;;  %9745 = vmatmul.mubr.msk.bf16.gmra.mxu1 %vm628_vm0, %v13279_v48  ;;  %v11786_v48 = vld [vmem:[%s16124_s10 + $0x18] sm:$0xff]  }
 0xeb1   : > { %3035 = vmatprep.mubr.bf16.mxu0 %v16206_v4  ;;  %3108 = vmatprep.mubr.bf16.mxu1 %v16206_v4 }
 0xeb2   : > { %10522 = vmatpush3.bf16.msra.mxu0 %v11778_v36  ;;  %10562 = vmatpush3.bf16.msra.mxu1 %v11779_v27 }
 0xeb3   : > { %10523 = vmatprep.subr.bf16.mxu0 %v11780_v53  ;;  %10563 = vmatprep.subr.bf16.mxu1 %v11781_v20 }
 0xeb6   : > { %10524 = vmatpush3.bf16.msra.mxu0 %v11782_v19  ;;  %10564 = vmatpush3.bf16.msra.mxu1 %v11783_v22 }
 0xeb7   : > { %10525 = vmatprep.subr.bf16.mxu0 %v11784_v24  ;;  %10565 = vmatprep.subr.bf16.mxu1 %v11785_v46 }
 0xeb8   : > { %9742 = vmatmul.mubr.msk.bf16.gmra.mxu0 %vm628_vm0, %v13299_v1  ;;  %9746 = vmatmul.mubr.msk.bf16.gmra.mxu1 %vm628_vm0, %v13299_v1  ;;  %v11793_v1 = vld [vmem:[%s16124_s10 + $0xc8] sm:$0xff]  }
 0xeb9   : > { %3045 = vmatprep.mubr.bf16.mxu0 %v16206_v4  ;;  %3118 = vmatprep.mubr.bf16.mxu1 %v16206_v4 }
 0xeba   : > { %10526 = vmatpush3.bf16.msra.mxu0 %v11786_v48  ;;  %10566 = vmatpush3.bf16.msra.mxu1 %v11787_v8 }
 0xebb   : > { %10527 = vmatprep.subr.bf16.mxu0 %v11788_v3  ;;  %10567 = vmatprep.subr.bf16.mxu1 %v11789_v47  ;;  %v11802_v3 = vld [vmem:[%s16124_s10 + $0x138] sm:$0xff]  }
 0xebc   : > { %v11803_v47 = vld [vmem:[%s16124_s10 + $0x1b8] sm:$0xff]  }
 0xebe   : > { %10528 = vmatpush3.bf16.msra.mxu0 %v11790_v16  ;;  %10568 = vmatpush3.bf16.msra.mxu1 %v11791_v63 }
 0xebf   : > { %10529 = vmatprep.subr.bf16.mxu0 %v11792_v9  ;;  %10569 = vmatprep.subr.bf16.mxu1 %v11793_v1 }
 0xec0   : > { %9743 = vmatmul.mubr.msk.bf16.gmra.mxu0 %vm628_vm0, %v13317_v13  ;;  %9747 = vmatmul.mubr.msk.bf16.gmra.mxu1 %vm628_vm0, %v13317_v13  ;;  %v11801_v13 = vld [vmem:[%s16124_s10 + $0x1f8] sm:$0xff]  }
 0xec2   : > { %10530 = vmatpush3.bf16.msra.mxu0 %v11794_v60  ;;  %10570 = vmatpush3.bf16.msra.mxu1 %v11795_v45  ;;  %v11804_v60 = vld [vmem:[%s16124_s10 + $0x170] sm:$0xff]  }
 0xec3   : > { %10531 = vmatprep.subr.bf16.mxu0 %v11796_v10  ;;  %10571 = vmatprep.subr.bf16.mxu1 %v11797_v14  ;;  %v11805_v45 = vld [vmem:[%s16124_s10 + $0x1f0] sm:$0xff]  }
 0xec6   : > { %10532 = vmatpush3.bf16.msra.mxu0 %v11798_v15  ;;  %10572 = vmatpush3.bf16.msra.mxu1 %v11799_v50 }
 0xec7   : > { %10597 = vmatprep.subr.bf16.mxu0 %v11800_v34  ;;  %10637 = vmatprep.subr.bf16.mxu1 %v11801_v13 }
 0xf08   : > { %v2579_v51 = vpop.f32.mrf.mxu0  ;;  %v2652_v44 = vpop.f32.mrf.mxu1 }
 0xf09   : > { %v2580_v38 = vadd.f32 %v2579_v51, %v13566_v6  ;;  %v2653_v11 = vadd.f32 %v2652_v44, %v13570_v49 }
 0xf0a   : > { %v2581_v18 = vpop.f32.mrf.mxu0  ;;  %v2654_v55 = vpop.f32.mrf.mxu1 }
 0xf0b   : > { %v2582_v21 = vadd.f32 %v2581_v18, %v13558_v43  ;;  %v2655_v52 = vadd.f32 %v2654_v55, %v13562_v42  ;;  %v3129_v19 = vmax.f32 %v2580_v38, 0.0  ;;  %v3131_v22 = vmax.f32 %v2653_v11, 0.0  ;;  %v11806_v55 = vld [vmem:[%s16124_s10 + $0x130] sm:$0xff]   ;;  %v11809_v38 = vld [vmem:[%s16124_s10 + $0x1e8] sm:$0xff]  }
 0xf0c   : > { %v2583_v61 = vpop.f32.mrf.mxu0  ;;  %v2656_v23 = vpop.f32.mrf.mxu1 }
 0xf0d   : > { %v2584_v31 = vadd.f32 %v2583_v61, %v13566_v6  ;;  %v2657_v2 = vadd.f32 %v2656_v23, %v13570_v49  ;;  %v3130_v36 = vmax.f32 %v2582_v21, 0.0  ;;  %v3132_v27 = vmax.f32 %v2655_v52, 0.0  ;;  %v11807_v61 = vld [vmem:[%s16124_s10 + $0x1b0] sm:$0xff]  }
 0xf0e   : > { %v2585_v29 = vpop.f32.mrf.mxu0  ;;  %v2658_v37 = vpop.f32.mrf.mxu1 }
 0xf0f   : > { %v2586_v17 = vadd.f32 %v2585_v29, %v13558_v43  ;;  %v2659_v30 = vadd.f32 %v2658_v37, %v13562_v42  ;;  %v3145_v28 = vmax.f32 %v2584_v31, 0.0  ;;  %v3147_v40 = vmax.f32 %v2657_v2, 0.0  ;;  %v11808_v2 = vld [vmem:[%s16124_s10 + $0x168] sm:$0xff]  }
 0xf10   : > { %v2589_v25 = vpop.f32.mrf.mxu0  ;;  %v2662_v39 = vpop.f32.mrf.mxu1 }
 0xf11   : > { %v3146_v53 = vmax.f32 %v2586_v17, 0.0  ;;  %v3148_v20 = vmax.f32 %v2659_v30, 0.0  ;;  %v3257_v16 = vpack.c.bf16 %v3145_v28, %v3129_v19  ;;  %v3259_v63 = vpack.c.bf16 %v3147_v40, %v3131_v22 }
 0xf12   : > { %v2591_v24 = vpop.f32.mrf.mxu0  ;;  %v2664_v46 = vpop.f32.mrf.mxu1  ;;  %v2590_v50 = vadd.f32 %v2589_v25, %v13566_v6  ;;  %v2663_v34 = vadd.f32 %v2662_v39, %v13570_v49 }
 0xf13   : > { %v3258_v48 = vpack.c.bf16 %v3146_v53, %v3130_v36  ;;  %v3260_v8 = vpack.c.bf16 %v3148_v20, %v3132_v27  ;;  %v2592_v10 = vadd.f32 %v2591_v24, %v13558_v43  ;;  %v2665_v13 = vadd.f32 %v2664_v46, %v13562_v42  ;;  %v11810_v36 = vld [vmem:[%s16124_s10 + $0x128] sm:$0xff]   ;;  %v11812_v46 = vld [vmem:[%s16124_s10 + $0x160] sm:$0xff]  }
 0xf14   : > { %v2593_v9 = vpop.f32.mrf.mxu0  ;;  %v2666_v1 = vpop.f32.mrf.mxu1  ;;  %v3161_v17 = vmax.f32 %v2590_v50, 0.0  ;;  %v3163_v30 = vmax.f32 %v2663_v34, 0.0  ;;  %v11811_v24 = vld [vmem:[%s16124_s10 + $0x1a8] sm:$0xff]  }
 0xf15   : > { %v2594_v14 = vadd.f32 %v2593_v9, %v13566_v6  ;;  %v2667_v15 = vadd.f32 %v2666_v1, %v13570_v49  ;;  %4384 = vmatprep.mubr.bf16.mxu0 %v3258_v48  ;;  %4449 = vmatprep.mubr.bf16.mxu1 %v3260_v8  ;;  %v3162_v11 = vmax.f32 %v2592_v10, 0.0  ;;  %v3164_v28 = vmax.f32 %v2665_v13, 0.0 }
 0xf16   : > { %v2595_v56 = vpop.f32.mrf.mxu0  ;;  %v2668_v51 = vpop.f32.mrf.mxu1  ;;  %4385 = vmatmul.mubr.bf16.vlgmr.msra.gmra.mxu0 %v3257_v16  ;;  %4450 = vmatmul.mubr.bf16.vlgmr.msra.gmra.mxu1 %v3259_v63  ;;  %v11813_v16 = vld [vmem:[%s16124_s10 + $0x1e0] sm:$0xff]  }
 0xf17   : > { %v2596_v44 = vadd.f32 %v2595_v56, %v13558_v43  ;;  %v2669_v18 = vadd.f32 %v2668_v51, %v13562_v42  ;;  %10598 = vmatpush3.bf16.msra.mxu0 %v11802_v3  ;;  %10638 = vmatpush3.bf16.msra.mxu1 %v11803_v47  ;;  %v3177_v23 = vmax.f32 %v2594_v14, 0.0  ;;  %v3179_v21 = vmax.f32 %v2667_v15, 0.0  ;;  %v11814_v14 = vld [vmem:[%s16124_s10 + $0x120] sm:$0xff]   ;;  %v11816_v51 = vld [vmem:[%s16124_s10 + $0x158] sm:$0xff]  }
 0xf18   : > { %v2599_v52 = vpop.f32.mrf.mxu0  ;;  %v2672_v31 = vpop.f32.mrf.mxu1  ;;  %10599 = vmatprep.subr.bf16.mxu0 %v11804_v60  ;;  %10639 = vmatprep.subr.bf16.mxu1 %v11805_v45  ;;  %v11815_v56 = vld [vmem:[%s16124_s10 + $0x1a0] sm:$0xff]  }
 0xf19   : > { %v3178_v29 = vmax.f32 %v2596_v44, 0.0  ;;  %v3180_v37 = vmax.f32 %v2669_v18, 0.0  ;;  %v3273_v27 = vpack.c.bf16 %v3177_v23, %v3161_v17  ;;  %v3275_v53 = vpack.c.bf16 %v3179_v21, %v3163_v30 }
 0xf1a   : > { %v2601_v40 = vpop.f32.mrf.mxu0  ;;  %v2674_v25 = vpop.f32.mrf.mxu1  ;;  %v2600_v63 = vadd.f32 %v2599_v52, %v13566_v6  ;;  %v2673_v9 = vadd.f32 %v2672_v31, %v13570_v49 }
 0xf1b   : > { %10600 = vmatpush3.bf16.msra.mxu0 %v11806_v55  ;;  %10640 = vmatpush3.bf16.msra.mxu1 %v11807_v61  ;;  %v3274_v39 = vpack.c.bf16 %v3178_v29, %v3162_v11  ;;  %v3276_v22 = vpack.c.bf16 %v3180_v37, %v3164_v28  ;;  %v2602_v48 = vadd.f32 %v2601_v40, %v13558_v43  ;;  %v11818_v29 = vld [vmem:[%s16124_s10 + $0x118] sm:$0xff]   ;;  %v13648_v37 = vsub.s32 5, %v13537_v32 }
 0xf1c   : > { %v2603_v20 = vpop.f32.mrf.mxu0  ;;  %v2676_v19 = vpop.f32.mrf.mxu1  ;;  %10601 = vmatprep.subr.bf16.mxu0 %v11808_v2  ;;  %10641 = vmatprep.subr.bf16.mxu1 %v11809_v38  ;;  %v2675_v8 = vadd.f32 %v2674_v25, %v13562_v42  ;;  %v3193_v23 = vmax.f32 %v2600_v63, 0.0  ;;  %v3195_v21 = vmax.f32 %v2673_v9, 0.0  ;;  %v11817_v2 = vld [vmem:[%s16124_s10 + $0x1d8] sm:$0xff]  }
 0xf1d   : > { %v2604_v3 = vadd.f32 %v2603_v20, %v13566_v6  ;;  %v2677_v47 = vadd.f32 %v2676_v19, %v13570_v49  ;;  %4392 = vmatprep.mubr.bf16.mxu0 %v3274_v39  ;;  %4457 = vmatprep.mubr.bf16.mxu1 %v3276_v22  ;;  %v3194_v44 = vmax.f32 %v2602_v48, 0.0  ;;  %16217 = vst [vmem:[#allocation19_spill] sm:$0xff] %v13648_v37  ;;  %v11819_v39 = vld [vmem:[%s16124_s10 + $0x198] sm:$0xff]   ;;  %v11821_v22 = vld [vmem:[%s16124_s10 + $0x1d0] sm:$0xff]  }
 0xf1e   : > { %v2605_v1 = vpop.f32.mrf.mxu0  ;;  %v2678_v60 = vpop.f32.mrf.mxu1  ;;  %4393 = vmatmul.mubr.bf16.gmra.mxu0 %v3273_v27  ;;  %4458 = vmatmul.mubr.bf16.gmra.mxu1 %v3275_v53  ;;  %v3196_v18 = vmax.f32 %v2675_v8, 0.0  ;;  %v11820_v27 = vld [vmem:[%s16124_s10 + $0x150] sm:$0xff]  }
 0xf1f   : > { %v2606_v45 = vadd.f32 %v2605_v1, %v13558_v43  ;;  %v2679_v10 = vadd.f32 %v2678_v60, %v13562_v42  ;;  %10602 = vmatpush3.bf16.msra.mxu0 %v11810_v36  ;;  %v3209_v15 = vmax.f32 %v2604_v3, 0.0  ;;  %v3211_v50 = vmax.f32 %v2677_v47, 0.0  ;;  %10642 = vmatpush3.bf16.msra.mxu1 %v11811_v24 }
 0xf20   : > { %v2609_v34 = vpop.f32.mrf.mxu0  ;;  %v2682_v13 = vpop.f32.mrf.mxu1  ;;  %10603 = vmatprep.subr.bf16.mxu0 %v11812_v46  ;;  %10643 = vmatprep.subr.bf16.mxu1 %v11813_v16  ;;  %v13655_v36 = vsub.s32 7, %v13537_v32  ;;  %v13669_v3 = vsub.s32 4, %v13537_v32  ;;  %v13672_v47 = vsub.s32 6, %v13537_v32 }
 0xf21   : > { %v3210_v55 = vmax.f32 %v2606_v45, 0.0  ;;  %v3212_v61 = vmax.f32 %v2679_v10, 0.0  ;;  %v3289_v17 = vpack.c.bf16 %v3209_v15, %v3193_v23  ;;  %v3291_v30 = vpack.c.bf16 %v3211_v50, %v3195_v21  ;;  %v11826_v21 = vld [vmem:[%s16124_s10 + $0x108] sm:$0xff]  }
 0xf22   : > { %v2611_v52 = vpop.f32.mrf.mxu0  ;;  %v2684_v31 = vpop.f32.mrf.mxu1  ;;  %16218 = vst [vmem:[#allocation20_spill] sm:$0xff] %v13655_v36  ;;  %v2610_v24 = vadd.f32 %v2609_v34, %v13566_v6  ;;  %v2683_v46 = vadd.f32 %v2682_v13, %v13570_v49  ;;  %16219 = vst [vmem:[#allocation21_spill] sm:$0xff] %v13669_v3  ;;  %v13681_v45 = vrot.slane %v13554_v58, %v13648_v37 }
 0xf23   : > { %10604 = vmatpush3.bf16.msra.mxu0 %v11814_v14  ;;  %v3290_v38 = vpack.c.bf16 %v3210_v55, %v3194_v44  ;;  %v3292_v11 = vpack.c.bf16 %v3212_v61, %v3196_v18  ;;  %v2612_v28 = vadd.f32 %v2611_v52, %v13558_v43  ;;  %10644 = vmatpush3.bf16.msra.mxu1 %v11815_v56  ;;  %v11825_v55 = vld [vmem:[%s16124_s10 + $0x1c8] sm:$0xff]  }
 0xf24   : > { %v2613_v40 = vpop.f32.mrf.mxu0  ;;  %v2686_v25 = vpop.f32.mrf.mxu1  ;;  %10605 = vmatprep.subr.bf16.mxu0 %v11816_v51  ;;  %v2685_v53 = vadd.f32 %v2684_v31, %v13562_v42  ;;  %10645 = vmatprep.subr.bf16.mxu1 %v11817_v2  ;;  %16220 = vst [vmem:[#allocation22_spill] sm:$0xff] %v13672_v47  ;;  %v13685_v32 = vrot.slane %v13554_v58, %v13655_v36  ;;  %v3225_v34 = vmax.f32 %v2610_v24, 0.0  ;;  %v3227_v13 = vmax.f32 %v2683_v46, 0.0 }
 0xf25   : > { %v2614_v20 = vadd.f32 %v2613_v40, %v13566_v6  ;;  %v2687_v19 = vadd.f32 %v2686_v25, %v13570_v49  ;;  %4400 = vmatprep.mubr.bf16.mxu0 %v3290_v38  ;;  %4465 = vmatprep.mubr.bf16.mxu1 %v3292_v11  ;;  %v11822_v6 = vld [vmem:[%s16124_s10 + $0x110] sm:$0xff]   ;;  %v3226_v10 = vmax.f32 %v2612_v28, 0.0  ;;  %v13695_v56 = vrot.slane %v13554_v58, %v13669_v3  ;;  %v11827_v11 = vld [vmem:[%s16124_s10 + $0x188] sm:$0xff]   ;;  %v11829_v40 = vld [vmem:[%s16124_s10 + $0x1c0] sm:$0xff]  }
 0xf26   : > { %v2615_v48 = vpop.f32.mrf.mxu0  ;;  %v2688_v8 = vpop.f32.mrf.mxu1  ;;  %4401 = vmatmul.mubr.bf16.gmra.mxu0 %v3289_v17  ;;  %4466 = vmatmul.mubr.bf16.gmra.mxu1 %v3291_v30  ;;  %v3228_v14 = vmax.f32 %v2685_v53, 0.0  ;;  %v13699_v51 = vrot.slane %v13554_v58, %v13672_v47 }
 0xf27   : > { %v2616_v16 = vadd.f32 %v2615_v48, %v13558_v43  ;;  %v2689_v63 = vadd.f32 %v2688_v8, %v13562_v42  ;;  %10606 = vmatpush3.bf16.msra.mxu0 %v11818_v29  ;;  %v3241_v49 = vmax.f32 %v2614_v20, 0.0  ;;  %v3243_v9 = vmax.f32 %v2687_v19, 0.0  ;;  %10646 = vmatpush3.bf16.msra.mxu1 %v11819_v39  ;;  %v11823_v43 = vld [vmem:[%s16124_s10 + $0x190] sm:$0xff]   ;;  %v11824_v42 = vld [vmem:[%s16124_s10 + $0x148] sm:$0xff]   ;;  %v11828_v29 = vld [vmem:[%s16124_s10 + $0x140] sm:$0xff]  }
 0xf28   : > { %v2725_v1 = vpop.f32.mrf.mxu0  ;;  %v2798_v60 = vpop.f32.mrf.mxu1  ;;  %10607 = vmatprep.subr.bf16.mxu0 %v11820_v27  ;;  %10647 = vmatprep.subr.bf16.mxu1 %v11821_v22  ;;  %v11830_v22 = vld [vmem:[%s16124_s10 + $0x100] sm:$0xff]  }
 0xf29   : > { %v3242_v15 = vmax.f32 %v2616_v16, 0.0  ;;  %v3244_v50 = vmax.f32 %v2689_v63, 0.0  ;;  %v3305_v52 = vpack.c.bf16 %v3241_v49, %v3225_v34  ;;  %v3307_v31 = vpack.c.bf16 %v3243_v9, %v3227_v13  ;;  %v11831_v16 = vld [vmem:[%s16124_s10 + $0x180] sm:$0xff]   ;;  %v11832_v63 = vld [vmem:[%s16124_s10 + $0x278] sm:$0xff]  }
 0xf2a   : > { %v2727_v44 = vpop.f32.mrf.mxu0  ;;  %v2800_v18 = vpop.f32.mrf.mxu1  ;;  %v2726_v25 = vadd.f32 %v2725_v1, %v13695_v56  ;;  %v2799_v39 = vadd.f32 %v2798_v60, %v13699_v51  ;;  %v11834_v34 = vld [vmem:[%s16124_s10 + $0x238] sm:$0xff]  }
 0xf2b   : > { %10608 = vmatpush3.bf16.msra.mxu0 %v11822_v6  ;;  %v3306_v61 = vpack.c.bf16 %v3242_v15, %v3226_v10  ;;  %v3308_v23 = vpack.c.bf16 %v3244_v50, %v3228_v14  ;;  %v2728_v2 = vadd.f32 %v2727_v44, %v13681_v45  ;;  %10648 = vmatpush3.bf16.msra.mxu1 %v11823_v43  ;;  %v11833_v14 = vld [vmem:[%s16124_s10 + $0x2f8] sm:$0xff]  }
 0xf2c   : > { %v2729_v58 = vpop.f32.mrf.mxu0  ;;  %v2802_v38 = vpop.f32.mrf.mxu1  ;;  %10609 = vmatprep.subr.bf16.mxu0 %v11824_v42  ;;  %v2801_v17 = vadd.f32 %v2800_v18, %v13685_v32  ;;  %10649 = vmatprep.subr.bf16.mxu1 %v11825_v55  ;;  %v3133_v60 = vmax.f32 %v2726_v25, 0.0  ;;  %v3135_v43 = vmax.f32 %v2799_v39, 0.0 }
 0xf2d   : > { %v2730_v30 = vadd.f32 %v2729_v58, %v13695_v56  ;;  %v2803_v28 = vadd.f32 %v2802_v38, %v13699_v51  ;;  %4408 = vmatprep.mubr.bf16.mxu0 %v3306_v61  ;;  %4473 = vmatprep.mubr.bf16.mxu1 %v3308_v23  ;;  %v3134_v6 = vmax.f32 %v2728_v2, 0.0  ;;  %v11835_v23 = vld [vmem:[%s16124_s10 + $0x2b8] sm:$0xff]   ;;  %v11837_v58 = vld [vmem:[%s16124_s10 + $0x2f0] sm:$0xff]  }
 0xf2e   : > { %v2731_v27 = vpop.f32.mrf.mxu0  ;;  %v2804_v53 = vpop.f32.mrf.mxu1  ;;  %4409 = vmatmul.mubr.bf16.gmra.mxu0 %v3305_v52  ;;  %4474 = vmatmul.mubr.bf16.gmra.mxu1 %v3307_v31  ;;  %v3136_v49 = vmax.f32 %v2801_v17, 0.0 }
 0xf2f   : > { %v2732_v20 = vadd.f32 %v2731_v27, %v13681_v45  ;;  %v2805_v19 = vadd.f32 %v2804_v53, %v13685_v32  ;;  %10610 = vmatpush3.bf16.msra.mxu0 %v11826_v21  ;;  %v3149_v24 = vmax.f32 %v2730_v30, 0.0  ;;  %v3151_v46 = vmax.f32 %v2803_v28, 0.0  ;;  %10650 = vmatpush3.bf16.msra.mxu1 %v11827_v11  ;;  %v11836_v21 = vld [vmem:[%s16124_s10 + $0x270] sm:$0xff]  }
 0xf30   : > { %v2735_v48 = vpop.f32.mrf.mxu0  ;;  %v2808_v8 = vpop.f32.mrf.mxu1  ;;  %10611 = vmatprep.subr.bf16.mxu0 %v11828_v29  ;;  %10651 = vmatprep.subr.bf16.mxu1 %v11829_v40  ;;  %v11838_v40 = vld [vmem:[%s16124_s10 + $0x230] sm:$0xff]  }
 0xf31   : > { %v3150_v9 = vmax.f32 %v2732_v20, 0.0  ;;  %v3152_v1 = vmax.f32 %v2805_v19, 0.0  ;;  %v3261_v13 = vpack.c.bf16 %v3149_v24, %v3133_v60  ;;  %v3263_v44 = vpack.c.bf16 %v3151_v46, %v3135_v43  ;;  %v11839_v20 = vld [vmem:[%s16124_s10 + $0x2b0] sm:$0xff]   ;;  %v11840_v19 = vld [vmem:[%s16124_s10 + $0x268] sm:$0xff]  }
 0xf32   : > { %v2737_v42 = vpop.f32.mrf.mxu0  ;;  %v2810_v10 = vpop.f32.mrf.mxu1  ;;  %v2736_v38 = vadd.f32 %v2735_v48, %v13695_v56  ;;  %v2809_v11 = vadd.f32 %v2808_v8, %v13699_v51  ;;  %v11842_v60 = vld [vmem:[%s16124_s10 + $0x228] sm:$0xff]  }
 0xf33   : > { %10612 = vmatpush3.bf16.msra.mxu0 %v11830_v22  ;;  %v3262_v15 = vpack.c.bf16 %v3150_v9, %v3134_v6  ;;  %v3264_v50 = vpack.c.bf16 %v3152_v1, %v3136_v49  ;;  %v2738_v18 = vadd.f32 %v2737_v42, %v13681_v45  ;;  %10652 = vmatpush3.bf16.msra.mxu1 %v11831_v16  ;;  %v11841_v49 = vld [vmem:[%s16124_s10 + $0x2e8] sm:$0xff]  }
 0xf34   : > { %v2739_v55 = vpop.f32.mrf.mxu0  ;;  %v2812_v61 = vpop.f32.mrf.mxu1  ;;  %10677 = vmatprep.subr.bf16.mxu0 %v11832_v63  ;;  %v2811_v52 = vadd.f32 %v2810_v10, %v13685_v32  ;;  %10717 = vmatprep.subr.bf16.mxu1 %v11833_v14  ;;  %v3165_v8 = vmax.f32 %v2736_v38, 0.0  ;;  %v3167_v16 = vmax.f32 %v2809_v11, 0.0 }
 0xf35   : > { %v2740_v31 = vadd.f32 %v2739_v55, %v13695_v56  ;;  %v2813_v2 = vadd.f32 %v2812_v61, %v13699_v51  ;;  %4514 = vmatprep.mubr.bf16.mxu0 %v3262_v15  ;;  %4579 = vmatprep.mubr.bf16.mxu1 %v3264_v50  ;;  %v3166_v22 = vmax.f32 %v2738_v18, 0.0  ;;  %v11843_v50 = vld [vmem:[%s16124_s10 + $0x2a8] sm:$0xff]   ;;  %v11845_v55 = vld [vmem:[%s16124_s10 + $0x2e0] sm:$0xff]  }
 0xf36   : > { %v2741_v29 = vpop.f32.mrf.mxu0  ;;  %v2814_v17 = vpop.f32.mrf.mxu1  ;;  %4515 = vmatmul.mubr.bf16.vlgmr.msra.gmra.mxu0 %v3261_v13  ;;  %4580 = vmatmul.mubr.bf16.vlgmr.msra.gmra.mxu1 %v3263_v44  ;;  %v3168_v24 = vmax.f32 %v2811_v52, 0.0 }
 0xf37   : > { %v2742_v30 = vadd.f32 %v2741_v29, %v13681_v45  ;;  %v2815_v28 = vadd.f32 %v2814_v17, %v13685_v32  ;;  %10678 = vmatpush3.bf16.msra.mxu0 %v11834_v34  ;;  %v3181_v25 = vmax.f32 %v2740_v31, 0.0  ;;  %v3183_v39 = vmax.f32 %v2813_v2, 0.0  ;;  %10718 = vmatpush3.bf16.msra.mxu1 %v11835_v23  ;;  %v11844_v34 = vld [vmem:[%s16124_s10 + $0x260] sm:$0xff]  }
 0xf38   : > { %v2745_v27 = vpop.f32.mrf.mxu0  ;;  %v2818_v53 = vpop.f32.mrf.mxu1  ;;  %10679 = vmatprep.subr.bf16.mxu0 %v11836_v21  ;;  %10719 = vmatprep.subr.bf16.mxu1 %v11837_v58  ;;  %v11846_v58 = vld [vmem:[%s16124_s10 + $0x220] sm:$0xff]  }
 0xf39   : > { %v3182_v46 = vmax.f32 %v2742_v30, 0.0  ;;  %v3184_v48 = vmax.f32 %v2815_v28, 0.0  ;;  %v3277_v43 = vpack.c.bf16 %v3181_v25, %v3165_v8  ;;  %v3279_v42 = vpack.c.bf16 %v3183_v39, %v3167_v16  ;;  %v11847_v30 = vld [vmem:[%s16124_s10 + $0x2a0] sm:$0xff]   ;;  %v11848_v28 = vld [vmem:[%s16124_s10 + $0x258] sm:$0xff]  }
 0xf3a   : > { %v2747_v63 = vpop.f32.mrf.mxu0  ;;  %v2820_v6 = vpop.f32.mrf.mxu1  ;;  %v2746_v61 = vadd.f32 %v2745_v27, %v13695_v56  ;;  %v2819_v23 = vadd.f32 %v2818_v53, %v13699_v51  ;;  %v11850_v8 = vld [vmem:[%s16124_s10 + $0x218] sm:$0xff]  }
 0xf3b   : > { %10680 = vmatpush3.bf16.msra.mxu0 %v11838_v40  ;;  %v3278_v9 = vpack.c.bf16 %v3182_v46, %v3166_v22  ;;  %v3280_v1 = vpack.c.bf16 %v3184_v48, %v3168_v24  ;;  %v2748_v10 = vadd.f32 %v2747_v63, %v13681_v45  ;;  %10720 = vmatpush3.bf16.msra.mxu1 %v11839_v20  ;;  %v11849_v24 = vld [vmem:[%s16124_s10 + $0x2d8] sm:$0xff]  }
 0xf3c   : > { %v2749_v14 = vpop.f32.mrf.mxu0  ;;  %v2822_v15 = vpop.f32.mrf.mxu1  ;;  %10681 = vmatprep.subr.bf16.mxu0 %v11840_v19  ;;  %v2821_v13 = vadd.f32 %v2820_v6, %v13685_v32  ;;  %10721 = vmatprep.subr.bf16.mxu1 %v11841_v49  ;;  %v3197_v53 = vmax.f32 %v2746_v61, 0.0  ;;  %v3199_v20 = vmax.f32 %v2819_v23, 0.0 }
 0xf3d   : > { %v2750_v44 = vadd.f32 %v2749_v14, %v13695_v56  ;;  %v2823_v18 = vadd.f32 %v2822_v15, %v13699_v51  ;;  %4522 = vmatprep.mubr.bf16.mxu0 %v3278_v9  ;;  %4587 = vmatprep.mubr.bf16.mxu1 %v3280_v1  ;;  %v3198_v40 = vmax.f32 %v2748_v10, 0.0  ;;  %v11851_v1 = vld [vmem:[%s16124_s10 + $0x298] sm:$0xff]   ;;  %v11853_v14 = vld [vmem:[%s16124_s10 + $0x2d0] sm:$0xff]  }
 0xf3e   : > { %v2751_v21 = vpop.f32.mrf.mxu0  ;;  %v2824_v52 = vpop.f32.mrf.mxu1  ;;  %4523 = vmatmul.mubr.bf16.gmra.mxu0 %v3277_v43  ;;  %4588 = vmatmul.mubr.bf16.gmra.mxu1 %v3279_v42  ;;  %v3200_v25 = vmax.f32 %v2821_v13, 0.0 }
 0xf3f   : > { %v2752_v31 = vadd.f32 %v2751_v21, %v13681_v45  ;;  %v2825_v2 = vadd.f32 %v2824_v52, %v13685_v32  ;;  %10682 = vmatpush3.bf16.msra.mxu0 %v11842_v60  ;;  %v3213_v38 = vmax.f32 %v2750_v44, 0.0  ;;  %v3215_v11 = vmax.f32 %v2823_v18, 0.0  ;;  %10722 = vmatpush3.bf16.msra.mxu1 %v11843_v50  ;;  %v11852_v60 = vld [vmem:[%s16124_s10 + $0x250] sm:$0xff]  }
 0xf40   : > { %v2755_v29 = vpop.f32.mrf.mxu0  ;;  %v2828_v17 = vpop.f32.mrf.mxu1  ;;  %10683 = vmatprep.subr.bf16.mxu0 %v11844_v34  ;;  %10723 = vmatprep.subr.bf16.mxu1 %v11845_v55  ;;  %v13823_v55 = vld [vmem:[%s16123_s9 + $0x8] sm:$0xff]  ;;  %v11855_v52 = vld [vmem:[%s16124_s10 + $0x290] sm:$0xff]  }
 0xf41   : > { %v3214_v39 = vmax.f32 %v2752_v31, 0.0  ;;  %v3216_v27 = vmax.f32 %v2825_v2, 0.0  ;;  %v3293_v16 = vpack.c.bf16 %v3213_v38, %v3197_v53  ;;  %v3295_v63 = vpack.c.bf16 %v3215_v11, %v3199_v20  ;;  %v11856_v31 = vld [vmem:[%s16124_s10 + $0x248] sm:$0xff]  }
 0xf42   : > { %v2757_v19 = vpop.f32.mrf.mxu0  ;;  %v2830_v22 = vpop.f32.mrf.mxu1  ;;  %v2756_v15 = vadd.f32 %v2755_v29, %v13695_v56  ;;  %v2829_v50 = vadd.f32 %v2828_v17, %v13699_v51  ;;  %v11858_v20 = vld [vmem:[%s16124_s10 + $0x208] sm:$0xff]  }
 0xf43   : > { %10684 = vmatpush3.bf16.msra.mxu0 %v11846_v58  ;;  %v3294_v46 = vpack.c.bf16 %v3214_v39, %v3198_v40  ;;  %v3296_v48 = vpack.c.bf16 %v3216_v27, %v3200_v25  ;;  %v2758_v6 = vadd.f32 %v2757_v19, %v13681_v45  ;;  %10724 = vmatpush3.bf16.msra.mxu1 %v11847_v30  ;;  %v11857_v39 = vld [vmem:[%s16124_s10 + $0x2c8] sm:$0xff]  }
 0xf44   : > { %v2759_v49 = vpop.f32.mrf.mxu0  ;;  %v2832_v9 = vpop.f32.mrf.mxu1  ;;  %10685 = vmatprep.subr.bf16.mxu0 %v11848_v28  ;;  %v2831_v43 = vadd.f32 %v2830_v22, %v13685_v32  ;;  %10725 = vmatprep.subr.bf16.mxu1 %v11849_v24  ;;  %v3229_v29 = vmax.f32 %v2756_v15, 0.0  ;;  %v3231_v17 = vmax.f32 %v2829_v50, 0.0  ;;  %v13844_v30 = vrot.slane %v13823_v55, %v13546_v54  ;;  %v11862_v15 = vld [vmem:[%s16124_s10 + $0x200] sm:$0xff]  }
 0xf45   : > { %v2760_v42 = vadd.f32 %v2759_v49, %v13695_v56  ;;  %v2833_v10 = vadd.f32 %v2832_v9, %v13699_v51  ;;  %4530 = vmatprep.mubr.bf16.mxu0 %v3294_v46  ;;  %4595 = vmatprep.mubr.bf16.mxu1 %v3296_v48  ;;  %v11854_v56 = vld [vmem:[%s16124_s10 + $0x210] sm:$0xff]   ;;  %v3230_v2 = vmax.f32 %v2758_v6, 0.0  ;;  %v13848_v28 = vrot.slane %v13823_v55, %v13549_v57  ;;  %v11861_v9 = vld [vmem:[%s16124_s10 + $0x2c0] sm:$0xff]  }
 0xf46   : > { %v2761_v34 = vpop.f32.mrf.mxu0  ;;  %v2834_v13 = vpop.f32.mrf.mxu1  ;;  %4531 = vmatmul.mubr.bf16.gmra.mxu0 %v3293_v16  ;;  %4596 = vmatmul.mubr.bf16.gmra.mxu1 %v3295_v63  ;;  %v3232_v58 = vmax.f32 %v2831_v43, 0.0  ;;  %v11860_v16 = vld [vmem:[%s16124_s10 + $0x240] sm:$0xff]  }
 0xf47   : > { %v2762_v44 = vadd.f32 %v2761_v34, %v13681_v45  ;;  %v2835_v18 = vadd.f32 %v2834_v13, %v13685_v32  ;;  %10686 = vmatpush3.bf16.msra.mxu0 %v11850_v8  ;;  %v3245_v51 = vmax.f32 %v2760_v42, 0.0  ;;  %v3247_v61 = vmax.f32 %v2833_v10, 0.0  ;;  %10726 = vmatpush3.bf16.msra.mxu1 %v11851_v1  ;;  %v11859_v8 = vld [vmem:[%s16124_s10 + $0x288] sm:$0xff]  }
 0xf48   : > { %v2871_v23 = vpop.f32.mrf.mxu0  ;;  %v2944_v21 = vpop.f32.mrf.mxu1  ;;  %v13830_v45 = vrot.slane %v13823_v55, %v13540_v35  ;;  %v13834_v32 = vrot.slane %v13823_v55, %v13543_v59  ;;  %10687 = vmatprep.subr.bf16.mxu0 %v11852_v60  ;;  %10727 = vmatprep.subr.bf16.mxu1 %v11853_v14 }
 0xf49   : > { %v3246_v38 = vmax.f32 %v2762_v44, 0.0  ;;  %v3248_v11 = vmax.f32 %v2835_v18, 0.0  ;;  %v3309_v19 = vpack.c.bf16 %v3245_v51, %v3229_v29  ;;  %v3311_v22 = vpack.c.bf16 %v3247_v61, %v3231_v17  ;;  %v11863_v18 = vld [vmem:[%s16124_s10 + $0x280] sm:$0xff]   ;;  %v11866_v17 = vld [vmem:[%s16124_s10 + $0x338] sm:$0xff]  }
 0xf4a   : > { %v2873_v40 = vpop.f32.mrf.mxu0  ;;  %v2946_v25 = vpop.f32.mrf.mxu1  ;;  %v2872_v1 = vadd.f32 %v2871_v23, %v13844_v30  ;;  %v2945_v60 = vadd.f32 %v2944_v21, %v13848_v28 }
 0xf4b   : > { %10688 = vmatpush3.bf16.msra.mxu0 %v11854_v56  ;;  %v3310_v27 = vpack.c.bf16 %v3246_v38, %v3230_v2  ;;  %v3312_v53 = vpack.c.bf16 %v3248_v11, %v3232_v58  ;;  %v2874_v24 = vadd.f32 %v2873_v40, %v13830_v45  ;;  %10728 = vmatpush3.bf16.msra.mxu1 %v11855_v52  ;;  %v11864_v56 = vld [vmem:[%s16124_s10 + $0x378] sm:$0xff]  }
 0xf4c   : > { %v2875_v46 = vpop.f32.mrf.mxu0  ;;  %v2948_v48 = vpop.f32.mrf.mxu1  ;;  %10689 = vmatprep.subr.bf16.mxu0 %v11856_v31  ;;  %v2947_v63 = vadd.f32 %v2946_v25, %v13834_v32  ;;  %10729 = vmatprep.subr.bf16.mxu1 %v11857_v39  ;;  %v3137_v52 = vmax.f32 %v2872_v1, 0.0  ;;  %v3139_v31 = vmax.f32 %v2945_v60, 0.0  ;;  %v11865_v38 = vld [vmem:[%s16124_s10 + $0x3f8] sm:$0xff]   ;;  %v11870_v1 = vld [vmem:[%s16124_s10 + $0x330] sm:$0xff]  }
 0xf4d   : > { %v2876_v6 = vadd.f32 %v2875_v46, %v13844_v30  ;;  %v2949_v49 = vadd.f32 %v2948_v48, %v13848_v28  ;;  %4538 = vmatprep.mubr.bf16.mxu0 %v3310_v27  ;;  %4603 = vmatprep.mubr.bf16.mxu1 %v3312_v53  ;;  %v3138_v51 = vmax.f32 %v2874_v24, 0.0  ;;  %v11869_v48 = vld [vmem:[%s16124_s10 + $0x3f0] sm:$0xff]  }
 0xf4e   : > { %v2877_v43 = vpop.f32.mrf.mxu0  ;;  %v2950_v42 = vpop.f32.mrf.mxu1  ;;  %4539 = vmatmul.mubr.bf16.gmra.mxu0 %v3309_v19  ;;  %4604 = vmatmul.mubr.bf16.gmra.mxu1 %v3311_v22  ;;  %v3140_v61 = vmax.f32 %v2947_v63, 0.0  ;;  %v11868_v19 = vld [vmem:[%s16124_s10 + $0x370] sm:$0xff]  }
 0xf4f   : > { %v2878_v10 = vadd.f32 %v2877_v43, %v13830_v45  ;;  %v2951_v14 = vadd.f32 %v2950_v42, %v13834_v32  ;;  %10690 = vmatpush3.bf16.msra.mxu0 %v11858_v20  ;;  %v3153_v50 = vmax.f32 %v2876_v6, 0.0  ;;  %v3155_v34 = vmax.f32 %v2949_v49, 0.0  ;;  %10730 = vmatpush3.bf16.msra.mxu1 %v11859_v8  ;;  %v11867_v20 = vld [vmem:[%s16124_s10 + $0x3b8] sm:$0xff]  }
 0xf50   : > { %v2881_v13 = vpop.f32.mrf.mxu0  ;;  %v2954_v44 = vpop.f32.mrf.mxu1  ;;  %10691 = vmatprep.subr.bf16.mxu0 %v11860_v16  ;;  %10731 = vmatprep.subr.bf16.mxu1 %v11861_v9 }
 0xf51   : > { %v3154_v23 = vmax.f32 %v2878_v10, 0.0  ;;  %v3156_v21 = vmax.f32 %v2951_v14, 0.0  ;;  %v3265_v40 = vpack.c.bf16 %v3153_v50, %v3137_v52  ;;  %v3267_v25 = vpack.c.bf16 %v3155_v34, %v3139_v31  ;;  %v11871_v14 = vld [vmem:[%s16124_s10 + $0x3b0] sm:$0xff]   ;;  %v11874_v31 = vld [vmem:[%s16124_s10 + $0x328] sm:$0xff]  }
 0xf52   : > { %v2883_v2 = vpop.f32.mrf.mxu0  ;;  %v2956_v58 = vpop.f32.mrf.mxu1  ;;  %v2882_v8 = vadd.f32 %v2881_v13, %v13844_v30  ;;  %v2955_v16 = vadd.f32 %v2954_v44, %v13848_v28 }
 0xf53   : > { %10692 = vmatpush3.bf16.msra.mxu0 %v11862_v15  ;;  %v3266_v11 = vpack.c.bf16 %v3154_v23, %v3138_v51  ;;  %v3268_v29 = vpack.c.bf16 %v3156_v21, %v3140_v61  ;;  %v2884_v39 = vadd.f32 %v2883_v2, %v13830_v45  ;;  %10732 = vmatpush3.bf16.msra.mxu1 %v11863_v18  ;;  %v11872_v15 = vld [vmem:[%s16124_s10 + $0x368] sm:$0xff]  }
 0xf54   : > { %v2885_v27 = vpop.f32.mrf.mxu0  ;;  %v2958_v53 = vpop.f32.mrf.mxu1  ;;  %10757 = vmatprep.subr.bf16.mxu0 %v11864_v56  ;;  %v2957_v22 = vadd.f32 %v2956_v58, %v13834_v32  ;;  %10797 = vmatprep.subr.bf16.mxu1 %v11865_v38  ;;  %v3169_v18 = vmax.f32 %v2882_v8, 0.0  ;;  %v3171_v56 = vmax.f32 %v2955_v16, 0.0  ;;  %v11873_v23 = vld [vmem:[%s16124_s10 + $0x3e8] sm:$0xff]   ;;  %v11878_v8 = vld [vmem:[%s16124_s10 + $0x320] sm:$0xff]  }
 0xf55   : > { %v2886_v24 = vadd.f32 %v2885_v27, %v13844_v30  ;;  %v2959_v46 = vadd.f32 %v2958_v53, %v13848_v28  ;;  %4644 = vmatprep.mubr.bf16.mxu0 %v3266_v11  ;;  %4709 = vmatprep.mubr.bf16.mxu1 %v3268_v29  ;;  %v3170_v50 = vmax.f32 %v2884_v39, 0.0  ;;  %v11877_v53 = vld [vmem:[%s16124_s10 + $0x3e0] sm:$0xff]  }
 0xf56   : > { %v2887_v63 = vpop.f32.mrf.mxu0  ;;  %v2960_v6 = vpop.f32.mrf.mxu1  ;;  %4645 = vmatmul.mubr.bf16.vlgmr.msra.gmra.mxu0 %v3265_v40  ;;  %4710 = vmatmul.mubr.bf16.vlgmr.msra.gmra.mxu1 %v3267_v25  ;;  %v3172_v34 = vmax.f32 %v2957_v22, 0.0  ;;  %v11876_v40 = vld [vmem:[%s16124_s10 + $0x360] sm:$0xff]  }
 0xf57   : > { %v2888_v49 = vadd.f32 %v2887_v63, %v13830_v45  ;;  %v2961_v9 = vadd.f32 %v2960_v6, %v13834_v32  ;;  %10758 = vmatpush3.bf16.msra.mxu0 %v11866_v17  ;;  %v3185_v60 = vmax.f32 %v2886_v24, 0.0  ;;  %v3187_v43 = vmax.f32 %v2959_v46, 0.0  ;;  %10798 = vmatpush3.bf16.msra.mxu1 %v11867_v20  ;;  %v11875_v17 = vld [vmem:[%s16124_s10 + $0x3a8] sm:$0xff]  }
 0xf58   : > { %v2891_v42 = vpop.f32.mrf.mxu0  ;;  %v2964_v10 = vpop.f32.mrf.mxu1  ;;  %10759 = vmatprep.subr.bf16.mxu0 %v11868_v19  ;;  %10799 = vmatprep.subr.bf16.mxu1 %v11869_v48 }
 0xf59   : > { %v3186_v13 = vmax.f32 %v2888_v49, 0.0  ;;  %v3188_v44 = vmax.f32 %v2961_v9, 0.0  ;;  %v3281_v2 = vpack.c.bf16 %v3185_v60, %v3169_v18  ;;  %v3283_v58 = vpack.c.bf16 %v3187_v43, %v3171_v56  ;;  %v11879_v9 = vld [vmem:[%s16124_s10 + $0x3a0] sm:$0xff]   ;;  %v11882_v56 = vld [vmem:[%s16124_s10 + $0x318] sm:$0xff]  }
 0xf5a   : > { %v2893_v51 = vpop.f32.mrf.mxu0  ;;  %v2966_v61 = vpop.f32.mrf.mxu1  ;;  %v2892_v20 = vadd.f32 %v2891_v42, %v13844_v30  ;;  %v2965_v19 = vadd.f32 %v2964_v10, %v13848_v28 }
 0xf5b   : > { %10760 = vmatpush3.bf16.msra.mxu0 %v11870_v1  ;;  %v3282_v21 = vpack.c.bf16 %v3186_v13, %v3170_v50  ;;  %v3284_v52 = vpack.c.bf16 %v3188_v44, %v3172_v34  ;;  %v2894_v38 = vadd.f32 %v2893_v51, %v13830_v45  ;;  %10800 = vmatpush3.bf16.msra.mxu1 %v11871_v14  ;;  %v11880_v1 = vld [vmem:[%s16124_s10 + $0x358] sm:$0xff]  }
 0xf5c   : > { %v2895_v11 = vpop.f32.mrf.mxu0  ;;  %v2968_v29 = vpop.f32.mrf.mxu1  ;;  %10761 = vmatprep.subr.bf16.mxu0 %v11872_v15  ;;  %v2967_v25 = vadd.f32 %v2966_v61, %v13834_v32  ;;  %10801 = vmatprep.subr.bf16.mxu1 %v11873_v23  ;;  %v3201_v14 = vmax.f32 %v2892_v20, 0.0  ;;  %v3203_v15 = vmax.f32 %v2965_v19, 0.0  ;;  %v11881_v13 = vld [vmem:[%s16124_s10 + $0x3d8] sm:$0xff]   ;;  %v11886_v20 = vld [vmem:[%s16124_s10 + $0x310] sm:$0xff]  }
 0xf5d   : > { %v2896_v39 = vadd.f32 %v2895_v11, %v13844_v30  ;;  %v2969_v27 = vadd.f32 %v2968_v29, %v13848_v28  ;;  %4652 = vmatprep.mubr.bf16.mxu0 %v3282_v21  ;;  %4717 = vmatprep.mubr.bf16.mxu1 %v3284_v52  ;;  %v3202_v60 = vmax.f32 %v2894_v38, 0.0  ;;  %v11885_v29 = vld [vmem:[%s16124_s10 + $0x3d0] sm:$0xff]  }
 0xf5e   : > { %v2897_v22 = vpop.f32.mrf.mxu0  ;;  %v2970_v24 = vpop.f32.mrf.mxu1  ;;  %4653 = vmatmul.mubr.bf16.gmra.mxu0 %v3281_v2  ;;  %4718 = vmatmul.mubr.bf16.gmra.mxu1 %v3283_v58  ;;  %v3204_v43 = vmax.f32 %v2967_v25, 0.0  ;;  %v11884_v2 = vld [vmem:[%s16124_s10 + $0x350] sm:$0xff]  }
 0xf5f   : > { %v2898_v46 = vadd.f32 %v2897_v22, %v13830_v45  ;;  %v2971_v48 = vadd.f32 %v2970_v24, %v13834_v32  ;;  %10762 = vmatpush3.bf16.msra.mxu0 %v11874_v31  ;;  %v3217_v16 = vmax.f32 %v2896_v39, 0.0  ;;  %v3219_v63 = vmax.f32 %v2969_v27, 0.0  ;;  %10802 = vmatpush3.bf16.msra.mxu1 %v11875_v17  ;;  %v11883_v31 = vld [vmem:[%s16124_s10 + $0x398] sm:$0xff]  }
 0xf60   : > { %v2901_v6 = vpop.f32.mrf.mxu0  ;;  %v2974_v49 = vpop.f32.mrf.mxu1  ;;  %10763 = vmatprep.subr.bf16.mxu0 %v11876_v40  ;;  %10803 = vmatprep.subr.bf16.mxu1 %v11877_v53 }
 0xf61   : > { %v3218_v42 = vmax.f32 %v2898_v46, 0.0  ;;  %v3220_v10 = vmax.f32 %v2971_v48, 0.0  ;;  %v3297_v51 = vpack.c.bf16 %v3217_v16, %v3201_v14  ;;  %v3299_v61 = vpack.c.bf16 %v3219_v63, %v3203_v15  ;;  %v11888_v46 = vld [vmem:[%s16124_s10 + $0x348] sm:$0xff]  }
 0xf62   : > { %v2903_v50 = vpop.f32.mrf.mxu0  ;;  %v2976_v34 = vpop.f32.mrf.mxu1  ;;  %v2902_v17 = vadd.f32 %v2901_v6, %v13844_v30  ;;  %v2975_v40 = vadd.f32 %v2974_v49, %v13848_v28  ;;  %v11890_v15 = vld [vmem:[%s16124_s10 + $0x308] sm:$0xff]  }
 0xf63   : > { %10764 = vmatpush3.bf16.msra.mxu0 %v11878_v8  ;;  %v3298_v44 = vpack.c.bf16 %v3218_v42, %v3202_v60  ;;  %v3300_v18 = vpack.c.bf16 %v3220_v10, %v3204_v43  ;;  %v2904_v23 = vadd.f32 %v2903_v50, %v13830_v45  ;;  %10804 = vmatpush3.bf16.msra.mxu1 %v11879_v9  ;;  %v11889_v42 = vld [vmem:[%s16124_s10 + $0x3c8] sm:$0xff]  }
 0xf64   : > { %v2905_v21 = vpop.f32.mrf.mxu0  ;;  %v2978_v52 = vpop.f32.mrf.mxu1  ;;  %10765 = vmatprep.subr.bf16.mxu0 %v11880_v1  ;;  %v2977_v58 = vadd.f32 %v2976_v34, %v13834_v32  ;;  %10805 = vmatprep.subr.bf16.mxu1 %v11881_v13  ;;  %v3233_v6 = vmax.f32 %v2902_v17, 0.0  ;;  %v3235_v49 = vmax.f32 %v2975_v40, 0.0  ;;  %v13988_v9 = vrot.slane %v13823_v55, %v13669_v3 }
 0xf65   : > { %v2906_v38 = vadd.f32 %v2905_v21, %v13844_v30  ;;  %v2979_v11 = vadd.f32 %v2978_v52, %v13848_v28  ;;  %4660 = vmatprep.mubr.bf16.mxu0 %v3298_v44  ;;  %4725 = vmatprep.mubr.bf16.mxu1 %v3300_v18  ;;  %v13974_v28 = vrot.slane %v13823_v55, %v13648_v37  ;;  %v3234_v48 = vmax.f32 %v2904_v23, 0.0  ;;  %v11891_v18 = vld [vmem:[%s16124_s10 + $0x388] sm:$0xff]   ;;  %v11893_v21 = vld [vmem:[%s16124_s10 + $0x3c0] sm:$0xff]  }
 0xf66   : > { %v2907_v25 = vpop.f32.mrf.mxu0  ;;  %v2980_v39 = vpop.f32.mrf.mxu1  ;;  %4661 = vmatmul.mubr.bf16.gmra.mxu0 %v3297_v51  ;;  %4726 = vmatmul.mubr.bf16.gmra.mxu1 %v3299_v61  ;;  %v3236_v8 = vmax.f32 %v2977_v58, 0.0  ;;  %v13992_v1 = vrot.slane %v13823_v55, %v13672_v47 }
 0xf67   : > { %v2908_v27 = vadd.f32 %v2907_v25, %v13830_v45  ;;  %v2981_v53 = vadd.f32 %v2980_v39, %v13834_v32  ;;  %10766 = vmatpush3.bf16.msra.mxu0 %v11882_v56  ;;  %v3249_v19 = vmax.f32 %v2906_v38, 0.0  ;;  %v3251_v22 = vmax.f32 %v2979_v11, 0.0  ;;  %10806 = vmatpush3.bf16.msra.mxu1 %v11883_v31  ;;  %v11887_v32 = vld [vmem:[%s16124_s10 + $0x390] sm:$0xff]   ;;  %v11892_v56 = vld [vmem:[%s16124_s10 + $0x340] sm:$0xff]  }
 0xf68   : > { %v3017_v30 = vpop.f32.mrf.mxu0  ;;  %v3090_v24 = vpop.f32.mrf.mxu1  ;;  %v13978_v45 = vrot.slane %v13823_v55, %v13655_v36  ;;  %10767 = vmatprep.subr.bf16.mxu0 %v11884_v2  ;;  %10807 = vmatprep.subr.bf16.mxu1 %v11885_v29  ;;  %v11894_v29 = vld [vmem:[%s16124_s10 + $0x300] sm:$0xff]  }
 0xf69   : > { %v3250_v16 = vmax.f32 %v2908_v27, 0.0  ;;  %v3252_v63 = vmax.f32 %v2981_v53, 0.0  ;;  %v3313_v50 = vpack.c.bf16 %v3249_v19, %v3233_v6  ;;  %v3315_v34 = vpack.c.bf16 %v3251_v22, %v3235_v49  ;;  %v11895_v27 = vld [vmem:[%s16124_s10 + $0x380] sm:$0xff]  }
 0xf6a   : > { %v3019_v60 = vpop.f32.mrf.mxu0  ;;  %v3092_v43 = vpop.f32.mrf.mxu1  ;;  %v3018_v52 = vadd.f32 %v3017_v30, %v13988_v9  ;;  %v3091_v31 = vadd.f32 %v3090_v24, %v13992_v1 }
 0xf6b   : > { %10768 = vmatpush3.bf16.msra.mxu0 %v11886_v20  ;;  %v3314_v10 = vpack.c.bf16 %v3250_v16, %v3234_v48  ;;  %v3316_v14 = vpack.c.bf16 %v3252_v63, %v3236_v8  ;;  %v3020_v13 = vadd.f32 %v3019_v60, %v13974_v28  ;;  %10808 = vmatpush3.bf16.msra.mxu1 %v11887_v32 }
 0xf6c   : > { %v3021_v55 = vpop.f32.mrf.mxu0  ;;  %v3094_v44 = vpop.f32.mrf.mxu1  ;;  %10769 = vmatprep.subr.bf16.mxu0 %v11888_v46  ;;  %v3093_v51 = vadd.f32 %v3092_v43, %v13978_v45  ;;  %10809 = vmatprep.subr.bf16.mxu1 %v11889_v42  ;;  %v3141_v30 = vmax.f32 %v3018_v52, 0.0  ;;  %v3143_v24 = vmax.f32 %v3091_v31, 0.0 }
 0xf6d   : > { %v3022_v61 = vadd.f32 %v3021_v55, %v13988_v9  ;;  %v3095_v23 = vadd.f32 %v3094_v44, %v13992_v1  ;;  %4668 = vmatprep.mubr.bf16.mxu0 %v3314_v10  ;;  %4733 = vmatprep.mubr.bf16.mxu1 %v3316_v14  ;;  %v3142_v53 = vmax.f32 %v3020_v13, 0.0 }
 0xf6e   : > { %v3023_v2 = vpop.f32.mrf.mxu0  ;;  %v3096_v58 = vpop.f32.mrf.mxu1  ;;  %4669 = vmatmul.mubr.bf16.gmra.mxu0 %v3313_v50  ;;  %4734 = vmatmul.mubr.bf16.gmra.mxu1 %v3315_v34  ;;  %v3144_v20 = vmax.f32 %v3093_v51, 0.0 }
 0xf6f   : > { %v3024_v38 = vadd.f32 %v3023_v2, %v13974_v28  ;;  %v3097_v11 = vadd.f32 %v3096_v58, %v13978_v45  ;;  %10770 = vmatpush3.bf16.msra.mxu0 %v11890_v15  ;;  %v3157_v17 = vmax.f32 %v3022_v61, 0.0  ;;  %v3159_v40 = vmax.f32 %v3095_v23, 0.0  ;;  %10810 = vmatpush3.bf16.msra.mxu1 %v11891_v18 }
 0xf70   : > { %v3027_v25 = vpop.f32.mrf.mxu0  ;;  %v3100_v39 = vpop.f32.mrf.mxu1  ;;  %10771 = vmatprep.subr.bf16.mxu0 %v11892_v56  ;;  %10811 = vmatprep.subr.bf16.mxu1 %v11893_v21 }
 0xf71   : > { %v3158_v19 = vmax.f32 %v3024_v38, 0.0  ;;  %v3160_v22 = vmax.f32 %v3097_v11, 0.0  ;;  %v3269_v16 = vpack.c.bf16 %v3157_v17, %v3141_v30  ;;  %v3271_v63 = vpack.c.bf16 %v3159_v40, %v3143_v24 }
 0xf72   : > { %v3029_v32 = vpop.f32.mrf.mxu0  ;;  %v3102_v46 = vpop.f32.mrf.mxu1  ;;  %v3028_v14 = vadd.f32 %v3027_v25, %v13988_v9  ;;  %v3101_v15 = vadd.f32 %v3100_v39, %v13992_v1 }
 0xf73   : > { %10772 = vmatpush3.bf16.msra.mxu0 %v11894_v29  ;;  %v3270_v48 = vpack.c.bf16 %v3158_v19, %v3142_v53  ;;  %v3272_v8 = vpack.c.bf16 %v3160_v22, %v3144_v20  ;;  %v3030_v6 = vadd.f32 %v3029_v32, %v13974_v28  ;;  %10812 = vmatpush3.bf16.msra.mxu1 %v11895_v27 }
 0xf74   : > { %v3031_v49 = vpop.f32.mrf.mxu0  ;;  %v3104_v60 = vpop.f32.mrf.mxu1  ;;  %v3103_v43 = vadd.f32 %v3102_v46, %v13978_v45  ;;  %v3173_v31 = vmax.f32 %v3028_v14, 0.0  ;;  %v3175_v2 = vmax.f32 %v3101_v15, 0.0 }
 0xf75   : > { %v3032_v42 = vadd.f32 %v3031_v49, %v13988_v9  ;;  %v3105_v10 = vadd.f32 %v3104_v60, %v13992_v1  ;;  %4774 = vmatprep.mubr.bf16.mxu0 %v3270_v48  ;;  %4839 = vmatprep.mubr.bf16.mxu1 %v3272_v8  ;;  %v3174_v61 = vmax.f32 %v3030_v6, 0.0 }
 0xf76   : > { %v3033_v50 = vpop.f32.mrf.mxu0  ;;  %v3106_v34 = vpop.f32.mrf.mxu1  ;;  %4775 = vmatmul.mubr.bf16.vlgmr.msra.gmra.mxu0 %v3269_v16  ;;  %4840 = vmatmul.mubr.bf16.vlgmr.msra.gmra.mxu1 %v3271_v63  ;;  %v3176_v23 = vmax.f32 %v3103_v43, 0.0 }
 0xf77   : > { %v3034_v13 = vadd.f32 %v3033_v50, %v13974_v28  ;;  %v3107_v55 = vadd.f32 %v3106_v34, %v13978_v45  ;;  %v3189_v44 = vmax.f32 %v3032_v42, 0.0  ;;  %v3191_v18 = vmax.f32 %v3105_v10, 0.0 }
 0xf78   : > { %v3037_v56 = vpop.f32.mrf.mxu0  ;;  %v3110_v51 = vpop.f32.mrf.mxu1 }
 0xf79   : > { %v3190_v21 = vmax.f32 %v3034_v13, 0.0  ;;  %v3192_v52 = vmax.f32 %v3107_v55, 0.0  ;;  %v3285_v17 = vpack.c.bf16 %v3189_v44, %v3173_v31  ;;  %v3287_v40 = vpack.c.bf16 %v3191_v18, %v3175_v2 }
 0xf7a   : > { %v3039_v58 = vpop.f32.mrf.mxu0  ;;  %v3112_v38 = vpop.f32.mrf.mxu1  ;;  %v3038_v22 = vadd.f32 %v3037_v56, %v13988_v9  ;;  %v3111_v30 = vadd.f32 %v3110_v51, %v13992_v1 }
 0xf7b   : > { %v3286_v11 = vpack.c.bf16 %v3190_v21, %v3174_v61  ;;  %v3288_v29 = vpack.c.bf16 %v3192_v52, %v3176_v23  ;;  %v3040_v25 = vadd.f32 %v3039_v58, %v13974_v28  ;;  %v3113_v53 = vadd.f32 %v3112_v38, %v13978_v45 }
 0xf7c   : > { %v3041_v39 = vpop.f32.mrf.mxu0  ;;  %v3114_v27 = vpop.f32.mrf.mxu1  ;;  %v3205_v10 = vmax.f32 %v3038_v22, 0.0  ;;  %v3207_v14 = vmax.f32 %v3111_v30, 0.0 }
 0xf7d   : > { %v3042_v20 = vadd.f32 %v3041_v39, %v13988_v9  ;;  %v3115_v19 = vadd.f32 %v3114_v27, %v13992_v1  ;;  %4782 = vmatprep.mubr.bf16.mxu0 %v3286_v11  ;;  %4847 = vmatprep.mubr.bf16.mxu1 %v3288_v29  ;;  %v3206_v49 = vmax.f32 %v3040_v25, 0.0  ;;  %v3208_v60 = vmax.f32 %v3113_v53, 0.0 }
 0xf7e   : > { %v3043_v24 = vpop.f32.mrf.mxu0  ;;  %v3116_v32 = vpop.f32.mrf.mxu1  ;;  %4783 = vmatmul.mubr.bf16.gmra.mxu0 %v3285_v17  ;;  %4848 = vmatmul.mubr.bf16.gmra.mxu1 %v3287_v40 }
 0xf7f   : > { %v3044_v46 = vadd.f32 %v3043_v24, %v13974_v28  ;;  %v3117_v48 = vadd.f32 %v3116_v32, %v13978_v45  ;;  %v3221_v8 = vmax.f32 %v3042_v20, 0.0  ;;  %v3223_v16 = vmax.f32 %v3115_v19, 0.0 }
 0xf80   : > { %v3047_v63 = vpop.f32.mrf.mxu0  ;;  %v3120_v6 = vpop.f32.mrf.mxu1 }
 0xf81   : > { %v3222_v43 = vmax.f32 %v3044_v46, 0.0  ;;  %v3224_v42 = vmax.f32 %v3117_v48, 0.0  ;;  %v3301_v55 = vpack.c.bf16 %v3221_v8, %v3205_v10  ;;  %v3303_v44 = vpack.c.bf16 %v3223_v16, %v3207_v14 }
 0xf82   : > { %v3049_v15 = vpop.f32.mrf.mxu0  ;;  %v3122_v50 = vpop.f32.mrf.mxu1  ;;  %v3048_v52 = vadd.f32 %v3047_v63, %v13988_v9  ;;  %v3121_v58 = vadd.f32 %v3120_v6, %v13992_v1 }
 0xf83   : > { %v3302_v34 = vpack.c.bf16 %v3222_v43, %v3206_v49  ;;  %v3304_v13 = vpack.c.bf16 %v3224_v42, %v3208_v60  ;;  %v3050_v18 = vadd.f32 %v3049_v15, %v13974_v28  ;;  %v3123_v61 = vadd.f32 %v3122_v50, %v13978_v45 }
 0xf84   : > { %v3051_v56 = vpop.f32.mrf.mxu0  ;;  %v3124_v51 = vpop.f32.mrf.mxu1  ;;  %v3237_v53 = vmax.f32 %v3048_v52, 0.0  ;;  %v3239_v20 = vmax.f32 %v3121_v58, 0.0 }
 0xf85   : > { %v3052_v23 = vadd.f32 %v3051_v56, %v13988_v9  ;;  %v3125_v21 = vadd.f32 %v3124_v51, %v13992_v1  ;;  %4790 = vmatprep.mubr.bf16.mxu0 %v3302_v34  ;;  %4855 = vmatprep.mubr.bf16.mxu1 %v3304_v13  ;;  %v3238_v29 = vmax.f32 %v3050_v18, 0.0  ;;  %v3240_v40 = vmax.f32 %v3123_v61, 0.0 }
 0xf86   : > { %v3053_v31 = vpop.f32.mrf.mxu0  ;;  %v3126_v2 = vpop.f32.mrf.mxu1  ;;  %4791 = vmatmul.mubr.bf16.gmra.mxu0 %v3301_v55  ;;  %4856 = vmatmul.mubr.bf16.gmra.mxu1 %v3303_v44 }
 0xf87   : > { %v3054_v38 = vadd.f32 %v3053_v31, %v13974_v28  ;;  %v3127_v11 = vadd.f32 %v3126_v2, %v13978_v45  ;;  %v3253_v17 = vmax.f32 %v3052_v23, 0.0  ;;  %v3255_v25 = vmax.f32 %v3125_v21, 0.0  ;;  %v9748_v45 = vld [vmem:[%s16125_s11] ss:$0 sm:$0xff] }
 0xf89   : > { %v3254_v39 = vmax.f32 %v3054_v38, 0.0  ;;  %v3256_v27 = vmax.f32 %v3127_v11, 0.0  ;;  %v3317_v22 = vpack.c.bf16 %v3253_v17, %v3237_v53  ;;  %v3319_v30 = vpack.c.bf16 %v3255_v25, %v3239_v20 }
 0xf8b   : > { %v3318_v19 = vpack.c.bf16 %v3254_v39, %v3238_v29  ;;  %v3320_v9 = vpack.c.bf16 %v3256_v27, %v3240_v40 }
 0xf8d   : > { %4798 = vmatprep.mubr.bf16.mxu0 %v3318_v19  ;;  %4863 = vmatprep.mubr.bf16.mxu1 %v3320_v9 }
 0xf8e   : > { %4799 = vmatmul.mubr.bf16.gmra.mxu0 %v3317_v22  ;;  %4864 = vmatmul.mubr.bf16.gmra.mxu1 %v3319_v30 }
 0xfd6   : > { %v10533_v28 = vpop.f32.mrf.mxu0  ;;  %v10573_v1 = vpop.f32.mrf.mxu1 }
 0xfd8   : > { %v10534_v24 = vpop.f32.mrf.mxu0  ;;  %v10574_v32 = vpop.f32.mrf.mxu1 }
 0xfd9   : > { %v10535_v46 = vadd.f32 %v10534_v24, %v10533_v28  ;;  %v10575_v48 = vadd.f32 %v10574_v32, %v10573_v1 }
 0xfda   : > { %v10536_v8 = vpop.f32.mrf.mxu0  ;;  %v10576_v16 = vpop.f32.mrf.mxu1 }
 0xfdb   : > { %v4387_v63 = vadd.f32 %v10535_v46, %v9748_v45 }
 0xfdc   : > { %v10537_v6 = vpop.f32.mrf.mxu0  ;;  %v10577_v49 = vpop.f32.mrf.mxu1 }
 0xfdd   : > { %v14050_v60 = vadd.f32 %v10575_v48, %v4387_v63  ;;  %v10538_v43 = vadd.f32 %v10537_v6, %v10536_v8  ;;  %v10578_v14 = vadd.f32 %v10577_v49, %v10576_v16 }
 0xfde   : > { %v10539_v42 = vpop.f32.mrf.mxu0  ;;  %v10579_v15 = vpop.f32.mrf.mxu1 }
 0xfdf   : > { %v4390_v10 = vadd.f32 %v10538_v43, %v9748_v45 }
 0xfe0   : > { %v10540_v50 = vpop.f32.mrf.mxu0  ;;  %v10580_v55 = vpop.f32.mrf.mxu1 }
 0xfe1   : > { %v14052_v34 = vadd.f32 %v10578_v14, %v4390_v10  ;;  %v10541_v13 = vadd.f32 %v10540_v50, %v10539_v42  ;;  %v10581_v44 = vadd.f32 %v10580_v55, %v10579_v15 }
 0xfe2   : > { %v10542_v18 = vpop.f32.mrf.mxu0  ;;  %v10582_v51 = vpop.f32.mrf.mxu1 }
 0xfe3   : > { %v4395_v56 = vadd.f32 %v10541_v13, %v9748_v45 }
 0xfe4   : > { %v10543_v61 = vpop.f32.mrf.mxu0  ;;  %v10583_v52 = vpop.f32.mrf.mxu1 }
 0xfe5   : > { %v14054_v23 = vadd.f32 %v10581_v44, %v4395_v56  ;;  %v10544_v21 = vadd.f32 %v10543_v61, %v10542_v18  ;;  %v10584_v58 = vadd.f32 %v10583_v52, %v10582_v51 }
 0xfe6   : > { %v10545_v31 = vpop.f32.mrf.mxu0  ;;  %v10585_v38 = vpop.f32.mrf.mxu1 }
 0xfe7   : > { %v4398_v2 = vadd.f32 %v10544_v21, %v9748_v45 }
 0xfe8   : > { %v10546_v11 = vpop.f32.mrf.mxu0  ;;  %v10586_v40 = vpop.f32.mrf.mxu1 }
 0xfe9   : > { %v14056_v29 = vadd.f32 %v10584_v58, %v4398_v2  ;;  %v10547_v17 = vadd.f32 %v10546_v11, %v10545_v31  ;;  %v10587_v25 = vadd.f32 %v10586_v40, %v10585_v38 }
 0xfea   : > { %v10548_v39 = vpop.f32.mrf.mxu0  ;;  %v10588_v53 = vpop.f32.mrf.mxu1 }
 0xfeb   : > { %v4403_v27 = vadd.f32 %v10547_v17, %v9748_v45 }
 0xfec   : > { %v10549_v20 = vpop.f32.mrf.mxu0  ;;  %v10589_v22 = vpop.f32.mrf.mxu1 }
 0xfed   : > { %v14058_v19 = vadd.f32 %v10587_v25, %v4403_v27  ;;  %v10550_v9 = vadd.f32 %v10549_v20, %v10548_v39  ;;  %v10590_v1 = vadd.f32 %v10589_v22, %v10588_v53 }
 0xfee   : > { %v10551_v30 = vpop.f32.mrf.mxu0  ;;  %v10591_v24 = vpop.f32.mrf.mxu1 }
 0xfef   : > { %v4406_v28 = vadd.f32 %v10550_v9, %v9748_v45 }
 0xff0   : > { %v10552_v32 = vpop.f32.mrf.mxu0  ;;  %v10592_v8 = vpop.f32.mrf.mxu1 }
 0xff1   : > { %v14060_v46 = vadd.f32 %v10590_v1, %v4406_v28  ;;  %v10553_v48 = vadd.f32 %v10552_v32, %v10551_v30  ;;  %v10593_v16 = vadd.f32 %v10592_v8, %v10591_v24 }
 0xff2   : > { %v10554_v63 = vpop.f32.mrf.mxu0  ;;  %v10594_v49 = vpop.f32.mrf.mxu1 }
 0xff3   : > { %v4411_v6 = vadd.f32 %v10553_v48, %v9748_v45 }
 0xff4   : > { %v10555_v43 = vpop.f32.mrf.mxu0  ;;  %v10595_v14 = vpop.f32.mrf.mxu1 }
 0xff5   : > { %v14062_v42 = vadd.f32 %v10593_v16, %v4411_v6  ;;  %v10556_v10 = vadd.f32 %v10555_v43, %v10554_v63  ;;  %v10596_v13 = vadd.f32 %v10595_v14, %v10594_v49 }
 0xff6   : > { %v10613_v15 = vpop.f32.mrf.mxu0  ;;  %v10653_v55 = vpop.f32.mrf.mxu1 }
 0xff7   : > { %16221 = vst [vmem:[#allocation23_spill] sm:$0xff] %v14062_v42  ;;  %v4414_v50 = vadd.f32 %v10556_v10, %v9748_v45 }
 0xff8   : > { %v10614_v44 = vpop.f32.mrf.mxu0  ;;  %v10654_v56 = vpop.f32.mrf.mxu1 }
 0xff9   : > { %v14064_v18 = vadd.f32 %v10596_v13, %v4414_v50  ;;  %v10655_v42 = vadd.f32 %v10654_v56, %v10653_v55 }
 0xffa   : > { %v10616_v51 = vpop.f32.mrf.mxu0  ;;  %v14066_v61 = vpop.f32.mrf.mxu1 }
 0xffb   : > { %16222 = vst [vmem:[#allocation24_spill] sm:$0xff] %v14064_v18 }
 0xffc   : > { %v10617_v21 = vpop.f32.mrf.mxu0  ;;  %v14068_v52 = vpop.f32.mrf.mxu1 }
 0xffe   : > { %v10619_v31 = vpop.f32.mrf.mxu0  ;;  %v14070_v2 = vpop.f32.mrf.mxu1 }
0x1000   : > { %v10620_v58 = vpop.f32.mrf.mxu0  ;;  %v14072_v38 = vpop.f32.mrf.mxu1 }
0x1002   : > { %v14074_v11 = vpop.f32.mrf.mxu0  ;;  %v14076_v45 = vpop.f32.mrf.mxu1 }
0x1004   : > { %v10623_v17 = vpop.f32.mrf.mxu0  ;;  %v14078_v40 = vpop.f32.mrf.mxu1 }
0x1005   : > { %v10624_v56 = vadd.f32 %v10623_v17, %v14074_v11 }
0x1006   : > { %v14080_v25 = vpop.f32.mrf.mxu0  ;;  %v14082_v39 = vpop.f32.mrf.mxu1 }
0x1008   : > { %v14084_v27 = vpop.f32.mrf.mxu0  ;;  %v14086_v53 = vpop.f32.mrf.mxu1 }
0x100a   : > { %v14088_v20 = vpop.f32.mrf.mxu0  ;;  %v14090_v9 = vpop.f32.mrf.mxu1 }
0x100c   : > { %v14092_v22 = vpop.f32.mrf.mxu0  ;;  %v14094_v30 = vpop.f32.mrf.mxu1 }
0x100d   : > { %16223 = vst [vmem:[#allocation25_spill] sm:$0xff] %v14094_v30 }
0x100e   : > { %v14096_v28 = vpop.f32.mrf.mxu0  ;;  %v14098_v1 = vpop.f32.mrf.mxu1 }
0x100f   : > { %16224 = vst [vmem:[#allocation26_spill] sm:$0xff] %v14098_v1 }
0x1010   : > { %v14100_v24 = vpop.f32.mrf.mxu0  ;;  %v14102_v32 = vpop.f32.mrf.mxu1 }
0x1011   : > { %16225 = vst [vmem:[#allocation27_spill] sm:$0xff] %v14102_v32 }
0x1012   : > { %v14104_v48 = vpop.f32.mrf.mxu0  ;;  %v14106_v8 = vpop.f32.mrf.mxu1 }
0x1013   : > { %16226 = vst [vmem:[#allocation28_spill] sm:$0xff] %v14104_v48  ;;  %16227 = vst [vmem:[#allocation29_spill] sm:$0xff] %v14106_v8  ;;  %v10615_v8 = vadd.f32 %v10614_v44, %v10613_v15  ;;  %v10621_v15 = vadd.f32 %v10620_v58, %v10619_v31 }
0x1014   : > { %v14108_v16 = vpop.f32.mrf.mxu0  ;;  %v14110_v63 = vpop.f32.mrf.mxu1 }
0x1015   : > { %16228 = vst [vmem:[#allocation30_spill] sm:$0xff] %v14108_v16  ;;  %16229 = vst [vmem:[#allocation31_spill] sm:$0xff] %v14110_v63  ;;  %v4517_v41 = vadd.f32 %v10615_v8, %v14050_v60  ;;  %v10618_v16 = vadd.f32 %v10617_v21, %v10616_v51  ;;  %v10658_v60 = vadd.f32 %v14068_v52, %v14066_v61 }
0x1016   : > { %v10693_v6 = vpop.f32.mrf.mxu0  ;;  %v10733_v49 = vpop.f32.mrf.mxu1  ;;  %v4525_v55 = vadd.f32 %v10621_v15, %v14054_v23  ;;  %v4528_v52 = vadd.f32 %v10624_v56, %v14056_v29  ;;  %v10627_v23 = vadd.f32 %v14084_v27, %v14080_v25  ;;  %v10630_v29 = vadd.f32 %v14092_v22, %v14088_v20 }
0x1018   : > { %v10694_v43 = vpop.f32.mrf.mxu0  ;;  %v10734_v10 = vpop.f32.mrf.mxu1  ;;  %v4533_v27 = vadd.f32 %v10627_v23, %v14058_v19  ;;  %v4536_v56 = vadd.f32 %v10630_v29, %v14060_v46 }
0x101a   : > { %v10696_v14 = vpop.f32.mrf.mxu0  ;;  %v10736_v50 = vpop.f32.mrf.mxu1 }
0x101c   : > { %v10697_v13 = vpop.f32.mrf.mxu0  ;;  %v10737_v47 = vpop.f32.mrf.mxu1 }
0x101d   : > { %v10698_v21 = vadd.f32 %v10697_v13, %v10696_v14  ;;  %v10738_v11 = vadd.f32 %v10737_v47, %v10736_v50 }
0x101e   : > { %v10699_v3 = vpop.f32.mrf.mxu0  ;;  %v14112_v36 = vpop.f32.mrf.mxu1 }
0x1020   : > { %v10700_v37 = vpop.f32.mrf.mxu0  ;;  %v14114_v57 = vpop.f32.mrf.mxu1 }
0x1021   : > { %v10741_v47 = vadd.f32 %v14114_v57, %v14112_v36 }
0x1022   : > { %v10702_v54 = vpop.f32.mrf.mxu0  ;;  %v14116_v59 = vpop.f32.mrf.mxu1 }
0x1024   : > { %v10703_v35 = vpop.f32.mrf.mxu0  ;;  %v14118_v4 = vpop.f32.mrf.mxu1 }
0x1026   : > { %v14120_v33 = vpop.f32.mrf.mxu0  ;;  %v14122_v12 = vpop.f32.mrf.mxu1 }
0x1027   : > { %16230 = vst [vmem:[#allocation32_spill] sm:$0xff] %v14122_v12 }
0x1028   : > { %v14124_v26 = vpop.f32.mrf.mxu0  ;;  %v14126_v62 = vpop.f32.mrf.mxu1 }
0x1029   : > { %16231 = vst [vmem:[#allocation33_spill] sm:$0xff] %v14126_v62  ;;  %v10695_v62 = vadd.f32 %v10694_v43, %v10693_v6  ;;  %v10707_v20 = vadd.f32 %v14124_v26, %v14120_v33 }
0x102a   : > { %v14128_v63 = vpop.f32.mrf.mxu0  ;;  %v14130_v5 = vpop.f32.mrf.mxu1 }
0x102b   : > { %16232 = vst [vmem:[#allocation34_spill] sm:$0xff] %v14130_v5  ;;  %v4582_v5 = vadd.f32 %v10655_v42, %v4517_v41  ;;  %v10735_v41 = vadd.f32 %v10734_v10, %v10733_v49 }
0x102c   : > { %v14132_v18 = vpop.f32.mrf.mxu0  ;;  %v14134_v32 = vpop.f32.mrf.mxu1 }
0x102d   : > { %16233 = vst [vmem:[#allocation35_spill] sm:$0xff] %v14132_v18  ;;  %16234 = vst [vmem:[#allocation36_spill] sm:$0xff] %v14134_v32  ;;  %v4520_v18 = vadd.f32 %v10618_v16, %v14052_v34  ;;  %v4647_v51 = vadd.f32 %v10695_v62, %v4582_v5  ;;  %v10661_v34 = vadd.f32 %v14072_v38, %v14070_v2 }
0x102e   : > { %v14136_v1 = vpop.f32.mrf.mxu0  ;;  %v14139_v48 = vpop.f32.mrf.mxu1  ;;  %v10701_v16 = vadd.f32 %v10700_v37, %v10699_v3  ;;  %v10664_v2 = vadd.f32 %v14078_v40, %v14076_v45  ;;  %v10704_v3 = vadd.f32 %v10703_v35, %v10702_v54  ;;  %v10667_v54 = vadd.f32 %v14086_v53, %v14082_v39 }
0x102f   : > { %16235 = vst [vmem:[#allocation37_spill] sm:$0xff] %v14136_v1  ;;  %v4585_v58 = vadd.f32 %v10658_v60, %v4520_v18  ;;  %v4712_v43 = vadd.f32 %v10735_v41, %v4647_v51  ;;  %v4590_v62 = vadd.f32 %v10661_v34, %v4525_v55  ;;  %v10744_v39 = vadd.f32 %v14118_v4, %v14116_v59 }
0x1030   : > { %v14141_v12 = vpop.f32.mrf.mxu0  ;;  %v14143_v30 = vpop.f32.mrf.mxu1  ;;  %v4593_v51 = vadd.f32 %v10664_v2, %v4528_v52 }
0x1031   : > { %v4655_v37 = vadd.f32 %v10701_v16, %v4590_v62  ;;  %v16239_v62 = vld [vmem:[#allocation23_spill] sm:$0xff] }
0x1032   : > { %v14145_v44 = vpop.f32.mrf.mxu0  ;;  %v14148_v32 = vpop.f32.mrf.mxu1 }
0x1033   : > { %16236 = vst [vmem:[#allocation38_spill] sm:$0xff] %v14148_v32  ;;  %v4650_v32 = vadd.f32 %v10698_v21, %v4585_v58  ;;  %v4720_v40 = vadd.f32 %v10741_v47, %v4655_v37  ;;  %v16244_v37 = vld [vmem:[#allocation10_spill] sm:$0xff] }
0x1034   : > { %v14150_v1 = vpop.f32.mrf.mxu0  ;;  %v14154_v8 = vpop.f32.mrf.mxu1  ;;  %v16238_v46 = vld [vmem:[#allocation35_spill] sm:$0xff] }
0x1035   : > { %v4715_v10 = vadd.f32 %v10738_v11, %v4650_v32  ;;  %v4658_v32 = vadd.f32 %v10704_v3, %v4593_v51 }
0x1036   : > { %v10773_v31 = vpop.f32.mrf.mxu0  ;;  %v10813_v42 = vpop.f32.mrf.mxu1 }
0x1037   : > { %v4723_v16 = vadd.f32 %v10744_v39, %v4658_v32  ;;  %v16253_v39 = vld [vmem:[#allocation31_spill] sm:$0xff] }
0x1038   : > { %v10774_v6 = vpop.f32.mrf.mxu0  ;;  %v10814_v5 = vpop.f32.mrf.mxu1 }
0x1039   : > { %v10775_v61 = vadd.f32 %v10774_v6, %v10773_v31  ;;  %v10815_v17 = vadd.f32 %v10814_v5, %v10813_v42  ;;  %v4598_v31 = vadd.f32 %v10667_v54, %v4533_v27  ;;  %v16237_v42 = vld [vmem:[#allocation25_spill] sm:$0xff]  ;;  %v10710_v6 = vadd.f32 %v16238_v46, %v14128_v63  ;;  %v16248_v54 = vld [vmem:[#allocation34_spill] sm:$0xff] }
0x103a   : > { %v10776_v14 = vpop.f32.mrf.mxu0  ;;  %v10816_v49 = vpop.f32.mrf.mxu1  ;;  %v10670_v34 = vadd.f32 %v16237_v42, %v14090_v9  ;;  %v16242_v9 = vld [vmem:[#allocation32_spill] sm:$0xff] }
0x103b   : > { %v4777_v18 = vadd.f32 %v10775_v61, %v4712_v43 }
0x103c   : > { %v10777_v38 = vpop.f32.mrf.mxu0  ;;  %v10817_v60 = vpop.f32.mrf.mxu1  ;;  %v4601_v5 = vadd.f32 %v10670_v34, %v4536_v56 }
0x103d   : > { %v4842_v13 = vadd.f32 %v10815_v17, %v4777_v18  ;;  %v10778_v15 = vadd.f32 %v10777_v38, %v10776_v14  ;;  %v10818_v21 = vadd.f32 %v10817_v60, %v10816_v49  ;;  %v16241_v14 = vld [vmem:[#allocation30_spill] sm:$0xff]  ;;  %v16243_v18 = vld [vmem:[#allocation33_spill] sm:$0xff] }
0x103e   : > { %v10779_v25 = vpop.f32.mrf.mxu0  ;;  %v10819_v45 = vpop.f32.mrf.mxu1  ;;  %v10747_v17 = vadd.f32 %v16243_v18, %v16242_v9  ;;  %v16245_v38 = vld [vmem:[#allocation26_spill] sm:$0xff]  ;;  %v16247_v60 = vld [vmem:[#allocation37_spill] sm:$0xff] }
0x103f   : > { %v4780_v50 = vadd.f32 %v10778_v15, %v4715_v10  ;;  %v14171_v35 = vadd.f32 %v4842_v13, %v13212_v7  ;;  %v10633_v7 = vadd.f32 %v14100_v24, %v14096_v28  ;;  %v4663_v24 = vadd.f32 %v10707_v20, %v4598_v31  ;;  %v16246_v10 = vld [vmem:[#allocation27_spill] sm:$0xff]  ;;  %v16250_v20 = vld [vmem:[#allocation24_spill] sm:$0xff]  ;;  %v16255_v9 = vld [vmem:[#allocation38_spill] sm:$0xff] }
0x1040   : > { %v10780_v55 = vpop.f32.mrf.mxu0  ;;  %v10820_v36 = vpop.f32.mrf.mxu1  ;;  %v10673_v13 = vadd.f32 %v16246_v10, %v16245_v38  ;;  %v4666_v15 = vadd.f32 %v10710_v6, %v4601_v5  ;;  %v10713_v51 = vadd.f32 %v14141_v12, %v16247_v60  ;;  %v16251_v12 = vld [vmem:[#allocation9_spill] sm:$0xff]  ;;  %v10753_v6 = vadd.f32 %v14143_v30, %v14139_v48 }
0x1041   : > { %v4845_v22 = vadd.f32 %v10818_v21, %v4780_v50  ;;  %v10781_v57 = vadd.f32 %v10780_v55, %v10779_v25  ;;  %v4882_v19 = vsel %vm628_vm0, %v14171_v35, 0.0  ;;  %v10821_v41 = vadd.f32 %v10820_v36, %v10819_v45 }
0x1042   : > { %v10782_v53 = vpop.f32.mrf.mxu0  ;;  %4883 = vadd.xlane.f32.xlu1 %v4882_v19  ;;  %v10822_v26 = vpop.f32.mrf.mxu1  ;;  %v4541_v52 = vadd.f32 %v10633_v7, %v16239_v62  ;;  %v4728_v47 = vadd.f32 %v10747_v17, %v4663_v24  ;;  %v16252_v7 = vld [vmem:[#allocation29_spill] sm:$0xff]  ;;  %v10756_v30 = vadd.f32 %v14154_v8, %v16255_v9 }
0x1043   : > { %v4785_v58 = vadd.f32 %v10781_v57, %v4720_v40  ;;  %v14185_v33 = vadd.f32 %v4845_v22, %v13216_v0  ;;  %v16240_v0 = vld [vmem:[#allocation28_spill] sm:$0xff] }
0x1044   : > { %v10783_v28 = vpop.f32.mrf.mxu0  ;;  %v10823_v59 = vpop.f32.mrf.mxu1  ;;  %v10636_v23 = vadd.f32 %v16241_v14, %v16240_v0  ;;  %v4606_v45 = vadd.f32 %v10673_v13, %v4541_v52  ;;  %v16249_v40 = vld [vmem:[#allocation36_spill] sm:$0xff] }
0x1045   : > { %v4850_v43 = vadd.f32 %v10821_v41, %v4785_v58  ;;  %v10784_v4 = vadd.f32 %v10783_v28, %v10782_v53  ;;  %v4885_v61 = vsel %vm628_vm0, %v14185_v33, 0.0  ;;  %v10824_v49 = vadd.f32 %v10823_v59, %v10822_v26 }
0x1046   : > { %v10785_v11 = vpop.f32.mrf.mxu0  ;;  %4886 = vadd.xlane.f32.xlu0 %v4885_v61  ;;  %v10825_v2 = vpop.f32.mrf.mxu1  ;;  %v10750_v32 = vadd.f32 %v16249_v40, %v16248_v54  ;;  %v4544_v22 = vadd.f32 %v10636_v23, %v16250_v20  ;;  %v10676_v53 = vadd.f32 %v16253_v39, %v16252_v7  ;;  %v4671_v58 = vadd.f32 %v10713_v51, %v4606_v45  ;;  %v16254_v61 = vld [vmem:[#allocation12_spill] sm:$0xff] }
0x1047   : > { %v4788_v63 = vadd.f32 %v10784_v4, %v4723_v16  ;;  %v14199_v3 = vadd.f32 %v4850_v43, %v16244_v37  ;;  %v10716_v26 = vadd.f32 %v14150_v1, %v14145_v44 }
0x1048   : > { %v10786_v29 = vpop.f32.mrf.mxu0  ;;  %v10826_v50 = vpop.f32.mrf.mxu1  ;;  %v4731_v31 = vadd.f32 %v10750_v32, %v4666_v15  ;;  %v4609_v24 = vadd.f32 %v10676_v53, %v4544_v22  ;;  %v4736_v62 = vadd.f32 %v10753_v6, %v4671_v58 }
0x1049   : > { %v4853_v25 = vadd.f32 %v10824_v49, %v4788_v63  ;;  %v10787_v27 = vadd.f32 %v10786_v29, %v10785_v11  ;;  %v4888_v21 = vsel %vm628_vm0, %v14199_v3, 0.0  ;;  %v10827_v36 = vadd.f32 %v10826_v50, %v10825_v2  ;;  %v16256_v63 = vld [vmem:[#allocation11_spill] sm:$0xff]  ;;  %v16257_v29 = vld [vmem:[#allocation14_spill] sm:$0xff] }
0x104a   : > { %v10788_v55 = vpop.f32.mrf.mxu0  ;;  %4889 = vadd.xlane.f32.xlu1 %v4888_v21  ;;  %v10828_v19 = vpop.f32.mrf.mxu1  ;;  %v4674_v1 = vadd.f32 %v10716_v26, %v4609_v24 }
0x104b   : > { %v4793_v57 = vadd.f32 %v10787_v27, %v4728_v47  ;;  %v14211_v56 = vadd.f32 %v4853_v25, %v16251_v12  ;;  %v16258_v27 = vld [vmem:[#allocation13_spill] sm:$0xff] }
0x104c   : > { %v10789_v41 = vpop.f32.mrf.mxu0  ;;  %v10829_v16 = vpop.f32.mrf.mxu1  ;;  %v4739_v37 = vadd.f32 %v10756_v30, %v4674_v1 }
0x104d   : > { %v4858_v42 = vadd.f32 %v10827_v36, %v4793_v57  ;;  %v10790_v34 = vadd.f32 %v10789_v41, %v10788_v55  ;;  %v4891_v46 = vsel %vm628_vm0, %v14211_v56, 0.0  ;;  %v10830_v4 = vadd.f32 %v10829_v16, %v10828_v19 }
0x104e   : > { %v10791_v28 = vpop.f32.mrf.mxu0  ;;  %4892 = vadd.xlane.f32.xlu0 %v4891_v46  ;;  %v10831_v59 = vpop.f32.mrf.mxu1 }
0x104f   : > { %v4796_v43 = vadd.f32 %v10790_v34, %v4731_v31  ;;  %v4876_v5 = vadd.f32 %v4858_v42, %v16254_v61 }
0x1050   : > { %v10792_v52 = vpop.f32.mrf.mxu0  ;;  %v10832_v14 = vpop.f32.mrf.mxu1 }
0x1051   : > { %v4861_v44 = vadd.f32 %v10830_v4, %v4796_v43  ;;  %v10793_v0 = vadd.f32 %v10792_v52, %v10791_v28  ;;  %v4894_v23 = vsel %vm628_vm0, %v4876_v5, 0.0  ;;  %v10833_v18 = vadd.f32 %v10832_v14, %v10831_v59 }
0x1052   : > { %v10794_v11 = vpop.f32.mrf.mxu0  ;;  %4895 = vadd.xlane.f32.xlu1 %v4894_v23  ;;  %v10834_v17 = vpop.f32.mrf.mxu1  ;;  %v11896_v23 = vld [vmem:[%s16204_s2 + $0x18] sm:$0xff]  }
0x1053   : > { %v4801_v48 = vadd.f32 %v10793_v0, %v4736_v62  ;;  %v4877_v49 = vadd.f32 %v4861_v44, %v16256_v63  ;;  %11391 = vmatprep.subr.bf16.mxu0 %v11896_v23 }
0x1054   : > { %v10795_v2 = vpop.f32.mrf.mxu0  ;;  %v10835_v13 = vpop.f32.mrf.mxu1  ;;  %11392 = vmatpush3.bf16.msra.mxu0 %v11896_v23 }
0x1055   : > { %v4866_v38 = vadd.f32 %v10833_v18, %v4801_v48  ;;  %v10796_v10 = vadd.f32 %v10795_v2, %v10794_v11  ;;  %v4897_v15 = vsel %vm628_vm0, %v4877_v49, 0.0  ;;  %v10836_v51 = vadd.f32 %v10835_v13, %v10834_v17  ;;  %v11897_v11 = vld [vmem:[%s16204_s2 + $0x10] sm:$0xff]  }
0x1056   : > { %4898 = vadd.xlane.f32.xlu0 %v4897_v15  ;;  %11393 = vmatprep.subr.bf16.mxu0 %v11897_v11 }
0x1057   : > { %v4804_v60 = vadd.f32 %v10796_v10, %v4739_v37  ;;  %v4878_v47 = vadd.f32 %v4866_v38, %v16257_v29 }
0x1058   : > { %11394 = vmatpush3.bf16.msra.mxu0 %v11897_v11 }
0x1059   : > { %v4869_v25 = vadd.f32 %v10836_v51, %v4804_v60  ;;  %v4900_v8 = vsel %vm628_vm0, %v4878_v47, 0.0 }
0x105a   : > { %4901 = vadd.xlane.f32.xlu1 %v4900_v8 }
0x105b   : > { %v4879_v50 = vadd.f32 %v4869_v25, %v16258_v27  ;;  %v9877_v25 = vld [vmem:[%s16126_s12] ss:$0 sm:$0xff] }
0x105d   : > { %v4903_v21 = vsel %vm628_vm0, %v4879_v50, 0.0 }
0x105e   : > { %4904 = vadd.xlane.f32.xlu0 %v4903_v21 }
0x10cb   : > { %v4884_v45 = vpop.xlane.xlu1 %4883 }
0x10cc   : > { %v4906_v54 = vmul.f32 0.03125, %v4884_v45 }
0x10ce   : > { %v14232_v40 = vsub.f32 %v14171_v35, %v4906_v54 }
0x10cf   : > { %v4887_v32 = vpop.xlane.xlu0 %4886 }
0x10d0   : > { %v4907_v55 = vmul.f32 0.03125, %v4887_v32  ;;  %v4922_v20 = vmul.f32 %v14232_v40, %v14232_v40  ;;  %v9878_v32 = vld [vmem:[%s16127_s13] ss:$0 sm:$0xff] }
0x10d2   : > { %v14237_v22 = vsub.f32 %v14185_v33, %v4907_v55  ;;  %v4930_v57 = vsel %vm628_vm0, %v4922_v20, 0.0 }
0x10d3   : > { %v4890_v36 = vpop.xlane.xlu1 %4889  ;;  %4931 = vadd.xlane.f32.xlu1 %v4930_v57 }
0x10d4   : > { %v4908_v19 = vmul.f32 0.03125, %v4890_v36  ;;  %v4923_v12 = vmul.f32 %v14237_v22, %v14237_v22 }
0x10d6   : > { %v14243_v7 = vsub.f32 %v14199_v3, %v4908_v19  ;;  %v4933_v35 = vsel %vm628_vm0, %v4923_v12, 0.0 }
0x10d7   : > { %v4893_v39 = vpop.xlane.xlu0 %4892  ;;  %4934 = vadd.xlane.f32.xlu0 %v4933_v35 }
0x10d8   : > { %v4909_v53 = vmul.f32 0.03125, %v4893_v39  ;;  %v4924_v33 = vmul.f32 %v14243_v7, %v14243_v7 }
0x10da   : > { %v14249_v31 = vsub.f32 %v14211_v56, %v4909_v53  ;;  %v4936_v58 = vsel %vm628_vm0, %v4924_v33, 0.0 }
0x10db   : > { %v4896_v41 = vpop.xlane.xlu1 %4895  ;;  %4937 = vadd.xlane.f32.xlu1 %v4936_v58 }
0x10dc   : > { %v4910_v26 = vmul.f32 0.03125, %v4896_v41  ;;  %v4925_v3 = vmul.f32 %v14249_v31, %v14249_v31 }
0x10de   : > { %v14254_v42 = vsub.f32 %v4876_v5, %v4910_v26  ;;  %v4939_v34 = vsel %vm628_vm0, %v4925_v3, 0.0 }
0x10df   : > { %v4899_v16 = vpop.xlane.xlu0 %4898  ;;  %4940 = vadd.xlane.f32.xlu0 %v4939_v34 }
0x10e0   : > { %v4911_v46 = vmul.f32 0.03125, %v4899_v16  ;;  %v4926_v6 = vmul.f32 %v14254_v42, %v14254_v42 }
0x10e2   : > { %v14259_v56 = vsub.f32 %v4877_v49, %v4911_v46  ;;  %v4942_v28 = vsel %vm628_vm0, %v4926_v6, 0.0 }
0x10e3   : > { %4943 = vadd.xlane.f32.xlu1 %v4942_v28  ;;  %v4902_v24 = vpop.xlane.xlu1 %4901 }
0x10e4   : > { %v4912_v43 = vmul.f32 0.03125, %v4902_v24  ;;  %v4927_v4 = vmul.f32 %v14259_v56, %v14259_v56 }
0x10e6   : > { %v14264_v59 = vsub.f32 %v4878_v47, %v4912_v43  ;;  %v4945_v61 = vsel %vm628_vm0, %v4927_v4, 0.0 }
0x10e7   : > { %4946 = vadd.xlane.f32.xlu0 %v4945_v61  ;;  %v4905_v5 = vpop.xlane.xlu0 %4904 }
0x10e8   : > { %v4913_v62 = vmul.f32 0.03125, %v4905_v5  ;;  %v4928_v52 = vmul.f32 %v14264_v59, %v14264_v59 }
0x10ea   : > { %v14269_v1 = vsub.f32 %v4879_v50, %v4913_v62  ;;  %v4948_v44 = vsel %vm628_vm0, %v4928_v52, 0.0 }
0x10eb   : > { %4949 = vadd.xlane.f32.xlu1 %v4948_v44 }
0x10ec   : > { %v4929_v0 = vmul.f32 %v14269_v1, %v14269_v1 }
0x10ee   : > { %v4951_v14 = vsel %vm628_vm0, %v4929_v0, 0.0 }
0x10ef   : > { %4952 = vadd.xlane.f32.xlu0 %v4951_v14 }
0x115c   : > { %v4932_v9 = vpop.xlane.xlu1 %4931 }
0x115d   : > { %v4954_v30 = vmul.f32 0.03125, %v4932_v9 }
0x115f   : > { %v4962_v48 = vadd.f32 1e-05, %v4954_v30 }
0x1160   : > { %v4935_v18 = vpop.xlane.xlu0 %4934 }
0x1161   : > { %12174 = vrsqrt.f32 %v4962_v48  ;;  %v4955_v17 = vmul.f32 0.03125, %v4935_v18 }
0x1163   : > { %v4963_v63 = vadd.f32 1e-05, %v4955_v17 }
0x1164   : > { %v4938_v49 = vpop.xlane.xlu1 %4937 }
0x1165   : > { %12176 = vrsqrt.f32 %v4963_v63  ;;  %v4956_v2 = vmul.f32 0.03125, %v4938_v49 }
0x1167   : > { %v4964_v37 = vadd.f32 1e-05, %v4956_v2 }
0x1168   : > { %v4941_v38 = vpop.xlane.xlu0 %4940 }
0x1169   : > { %12178 = vrsqrt.f32 %v4964_v37  ;;  %v4957_v10 = vmul.f32 0.03125, %v4941_v38 }
0x116b   : > { %v4965_v13 = vadd.f32 1e-05, %v4957_v10 }
0x116c   : > { %v4944_v15 = vpop.xlane.xlu1 %4943 }
0x116d   : > { %12180 = vrsqrt.f32 %v4965_v13  ;;  %v4958_v60 = vmul.f32 0.03125, %v4944_v15 }
0x116e   : > { %v12175_v51 = vpop.eup %12174 }
0x116f   : > { %v4966_v29 = vadd.f32 1e-05, %v4958_v60  ;;  %v4978_v47 = vmul.f32 %v12175_v51, %v14232_v40 }
0x1170   : > { %v4947_v8 = vpop.xlane.xlu0 %4946 }
0x1171   : > { %12182 = vrsqrt.f32 %v4966_v29  ;;  %v4959_v27 = vmul.f32 0.03125, %v4947_v8  ;;  %v4992_v54 = vmul.f32 %v9877_v25, %v4978_v47 }
0x1172   : > { %v12177_v50 = vpop.eup %12176 }
0x1173   : > { %v4967_v21 = vadd.f32 1e-05, %v4959_v27  ;;  %v4979_v45 = vmul.f32 %v12177_v50, %v14237_v22  ;;  %v14290_v12 = vadd.f32 %v9878_v32, %v4992_v54 }
0x1174   : > { %v4950_v55 = vpop.xlane.xlu1 %4949 }
0x1175   : > { %12184 = vrsqrt.f32 %v4967_v21  ;;  %v4960_v20 = vmul.f32 0.03125, %v4950_v55  ;;  %v4993_v40 = vmul.f32 %v9877_v25, %v4979_v45 }
0x1176   : > { %v12179_v57 = vpop.eup %12178 }
0x1177   : > { %v4980_v36 = vmul.f32 %v12179_v57, %v14243_v7  ;;  %v4968_v19 = vadd.f32 1e-05, %v4960_v20  ;;  %v14292_v35 = vadd.f32 %v9878_v32, %v4993_v40 }
0x1178   : > { %v4953_v39 = vpop.xlane.xlu0 %4952 }
0x1179   : > { %12186 = vrsqrt.f32 %v4968_v19  ;;  %v4961_v22 = vmul.f32 0.03125, %v4953_v39  ;;  %v5014_v53 = vpack.c.bf16 %v14292_v35, %v14290_v12  ;;  %v4994_v58 = vmul.f32 %v9877_v25, %v4980_v36 }
0x117a   : > { %v12181_v33 = vpop.eup %12180 }
0x117b   : > { %v4981_v41 = vmul.f32 %v12181_v33, %v14249_v31  ;;  %v4969_v26 = vadd.f32 1e-05, %v4961_v22  ;;  %11395 = vmatprep.mubr.msk.bf16.mxu0 %vm628_vm0, %v5014_v53  ;;  %v14298_v34 = vadd.f32 %v9878_v32, %v4994_v58 }
0x117d   : > { %v4995_v3 = vmul.f32 %v9877_v25, %v4981_v41  ;;  %12188 = vrsqrt.f32 %v4969_v26 }
0x117e   : > { %v12183_v7 = vpop.eup %12182 }
0x117f   : > { %v14300_v16 = vadd.f32 %v9878_v32, %v4995_v3  ;;  %v4982_v46 = vmul.f32 %v12183_v7, %v14254_v42 }
0x1181   : > { %v5015_v6 = vpack.c.bf16 %v14300_v16, %v14298_v34  ;;  %v4996_v24 = vmul.f32 %v9877_v25, %v4982_v46 }
0x1182   : > { %v12185_v28 = vpop.eup %12184 }
0x1183   : > { %11396 = vmatmul.mubr.msk.bf16.vlgmr.msra.gmra.mxu0 %vm628_vm0, %v5015_v6  ;;  %v4983_v31 = vmul.f32 %v12185_v28, %v14259_v56  ;;  %v14308_v5 = vadd.f32 %v9878_v32, %v4996_v24 }
0x1185   : > { %v4997_v43 = vmul.f32 %v9877_v25, %v4983_v31 }
0x1186   : > { %v12187_v4 = vpop.eup %12186 }
0x1187   : > { %v4984_v61 = vmul.f32 %v12187_v4, %v14264_v59  ;;  %v14310_v62 = vadd.f32 %v9878_v32, %v4997_v43 }
0x1189   : > { %v5016_v42 = vpack.c.bf16 %v14310_v62, %v14308_v5  ;;  %v4998_v0 = vmul.f32 %v9877_v25, %v4984_v61 }
0x118a   : > { %v12189_v52 = vpop.eup %12188 }
0x118b   : > { %v4985_v44 = vmul.f32 %v12189_v52, %v14269_v1  ;;  %11399 = vmatprep.mubr.msk.bf16.mxu0 %vm628_vm0, %v5016_v42  ;;  %v14316_v56 = vadd.f32 %v9878_v32, %v4998_v0  ;;  %v9884_v1 = vld [vmem:[%s16117_s3 + $0x1] ss:$0 sm:$0xff] }
0x118d   : > { %v4999_v14 = vmul.f32 %v9877_v25, %v4985_v44 }
0x118f   : > { %v14318_v23 = vadd.f32 %v9878_v32, %v4999_v14 }
0x1191   : > { %v5017_v59 = vpack.c.bf16 %v14318_v23, %v14316_v56 }
0x1193   : > { %11400 = vmatmul.mubr.msk.bf16.gmra.mxu0 %vm628_vm0, %v5017_v59 }
0x1243   : > { %v11397_v11 = vpop.f32.mrf.mxu0 }
0x1244   : > { %v5098_v47 = vadd.f32 %v11397_v11, %v9884_v1 }
0x1245   : > { %v5089_v9 = vpop.f32.mrf.mxu0 }
0x1246   : > { %v5090_v18 = vadd.f32 %v9884_v1, %v5089_v9 }
0x1247   : > { %v11398_v30 = vpop.f32.mrf.mxu0 }
0x1248   : > { %v5101_v15 = vadd.f32 %v11398_v30, %v9884_v1 }
0x1249   : > { %v5092_v48 = vpop.f32.mrf.mxu0 }
0x124a   : > { %v5093_v17 = vadd.f32 %v9884_v1, %v5092_v48  ;;  %v14336_v8 = vpack.c.bf16 %v5101_v15, %v5098_v47 }
0x124c   : > { %v14326_v63 = vpack.c.bf16 %v5093_v17, %v5090_v18 }
0x124e   : > { %11411 = vmatprep.mubr.msk.bf16.mxu1 %vm722_vm1, %v14326_v63 }
0x1253   : > { %v11401_v49 = vpop.f32.mrf.mxu0 }
0x1254   : > { %v5114_v38 = vadd.f32 %v11401_v49, %v9884_v1 }
0x1255   : > { %v5105_v2 = vpop.f32.mrf.mxu0 }
0x1256   : > { %v5106_v60 = vadd.f32 %v9884_v1, %v5105_v2 }
0x1257   : > { %v11402_v37 = vpop.f32.mrf.mxu0 }
0x1258   : > { %v5117_v10 = vadd.f32 %v11402_v37, %v9884_v1 }
0x1259   : > { %v5108_v13 = vpop.f32.mrf.mxu0 }
0x125a   : > { %v14330_v51 = vpack.c.bf16 %v5117_v10, %v5114_v38  ;;  %v5109_v29 = vadd.f32 %v9884_v1, %v5108_v13 }
0x125c   : > { %v14332_v25 = vpack.c.bf16 %v5109_v29, %v5106_v60  ;;  %5134 = vrot.lane.b32.xlu1 %v14330_v51, %s16259_s20 }
0x125e   : > { %5132 = vrot.lane.b32.xlu0 %v14332_v25, %s16259_s20 }
0x1260   : > { %5130 = vrot.lane.b32.xlu1 %v14336_v8, %s16259_s20 }
0x1262   : > { %5428 = vrot.lane.b32.xlu0 %v14330_v51, %s16260_s29 }
0x1264   : > { %5128 = vrot.lane.b32.xlu1 %v14326_v63, %s16259_s20  ;;  %s16270_s20 = smov 40  }
0x1266   : > { %5424 = vrot.lane.b32.xlu0 %v14336_v8, %s16260_s29 }
0x1268   : > { %5426 = vrot.lane.b32.xlu1 %v14332_v25, %s16260_s29 }
0x126a   : > { %5414 = vrot.lane.b32.xlu0 %v14326_v63, %s16261_s27 }
0x126c   : > { %5422 = vrot.lane.b32.xlu1 %v14326_v63, %s16260_s29  ;;  %s16271_s29 = smov 8  }
0x126e   : > { %5418 = vrot.lane.b32.xlu0 %v14332_v25, %s16261_s27 }
0x1270   : > { %5416 = vrot.lane.b32.xlu1 %v14336_v8, %s16261_s27 }
0x1274   : > { %5420 = vrot.lane.b32.xlu1 %v14330_v51, %s16261_s27  ;;  %s16272_s27 = smov 16  }
0x1278   : > { %5331 = vrot.lane.b32.xlu1 %v14330_v51, %s16262_s17 }
0x127c   : > { %5329 = vrot.lane.b32.xlu1 %v14332_v25, %s16262_s17 }
0x12ce   : > { %v5135_v27 = vpop.permute.xlu1 %5134 }
0x12cf   : > { %11571 = vmatprep.subr.msk.bf16.mxu1 %vm722_vm1, %v5135_v27  ;;  %v5158_v50 = vsel %vm722_vm1, %v5135_v27, 0 }
0x12d0   : > { %11404 = vmatpush3.bf16.xpose.msra.mxu1 %v5158_v50  ;;  %v5133_v21 = vpop.permute.xlu0 %5132 }
0x12d1   : > { %11572 = vmatprep.subr.msk.bf16.mxu1 %vm722_vm1, %v5133_v21  ;;  %v5155_v32 = vsel %vm722_vm1, %v5133_v21, 0 }
0x12d2   : > { %v5131_v45 = vpop.permute.xlu1 %5130 }
0x12d3   : > { %v5152_v40 = vsel %vm722_vm1, %v5131_v45, 0 }
0x12d4   : > { %v5429_v39 = vpop.permute.xlu0 %5428 }
0x12d5   : > { %v5452_v33 = vsel %vm722_vm1, %v5429_v39, 0 }
0x12d6   : > { %v5129_v54 = vpop.permute.xlu1 %5128 }
0x12d7   : > { %v5149_v19 = vsel %vm722_vm1, %v5129_v54, 0 }
0x12d8   : > { %11406 = vmatpush3.bf16.xpose.msra.mxu1 %v5155_v32  ;;  %v5425_v58 = vpop.permute.xlu0 %5424 }
0x12d9   : > { %11573 = vmatprep.subr.msk.bf16.mxu1 %vm722_vm1, %v5131_v45  ;;  %v5446_v3 = vsel %vm722_vm1, %v5425_v58, 0 }
0x12da   : > { %v5427_v55 = vpop.permute.xlu1 %5426 }
0x12db   : > { %v5449_v26 = vsel %vm722_vm1, %v5427_v55, 0 }
0x12dc   : > { %v5415_v41 = vpop.permute.xlu0 %5414 }
0x12de   : > { %v5423_v20 = vpop.permute.xlu1 %5422 }
0x12df   : > { %v5443_v7 = vsel %vm722_vm1, %v5423_v20, 0 }
0x12e0   : > { %11408 = vmatpush3.bf16.xpose.msra.mxu1 %v5152_v40  ;;  %v5419_v46 = vpop.permute.xlu0 %5418 }
0x12e1   : > { %11574 = vmatprep.subr.msk.bf16.mxu1 %vm722_vm1, %v5129_v54 }
0x12e2   : > { %v5417_v57 = vpop.permute.xlu1 %5416 }
0x12e6   : > { %v5421_v36 = vpop.permute.xlu1 %5420 }
0x12e8   : > { %11410 = vmatpush3.bf16.xpose.msra.mxu1 %v5149_v19 }
0x12e9   : > { %11575 = vmatprep.subr.msk.bf16.mxu1 %vm722_vm1, %v5429_v39 }
0x12ea   : > { %v5332_v22 = vpop.permute.xlu1 %5331 }
0x12eb   : > { %11419 = vmatprep.subr.bf16.mxu0 %v5332_v22 }
0x12ec   : > { %11420 = vmatpush3.bf16.msra.mxu0 %v5332_v22 }
0x12ee   : > { %v5330_v53 = vpop.permute.xlu1 %5329 }
0x12ef   : > { %11412 = vmatmul.mubr.msk.bf16.vlgmr.msra.gmra.mxu1 %vm722_vm1, %v14336_v8  ;;  %11421 = vmatprep.subr.bf16.mxu0 %v5330_v53 }
0x12f0   : > { %11415 = vmatprep.mubr.msk.bf16.mxu1 %vm722_vm1, %v14332_v25  ;;  %11422 = vmatpush3.bf16.msra.mxu0 %v5330_v53 }
0x12f1   : > { %11436 = vmatpush3.bf16.xpose.msra.mxu1 %v5452_v33 }
0x12f2   : > { %11576 = vmatprep.subr.msk.bf16.mxu1 %vm722_vm1, %v5427_v55 }
0x12f7   : > { %11416 = vmatmul.mubr.msk.bf16.gmra.mxu1 %vm722_vm1, %v14330_v51 }
0x12f8   : > { %11443 = vmatprep.mubr.msk.bf16.mxu1 %vm722_vm1, %v5415_v41 }
0x12f9   : > { %11438 = vmatpush3.bf16.xpose.msra.mxu1 %v5449_v26 }
0x12fa   : > { %11577 = vmatprep.subr.msk.bf16.mxu1 %vm722_vm1, %v5425_v58 }
0x1301   : > { %11440 = vmatpush3.bf16.xpose.msra.mxu1 %v5446_v3 }
0x1302   : > { %11578 = vmatprep.subr.msk.bf16.mxu1 %vm722_vm1, %v5423_v20 }
0x1309   : > { %11442 = vmatpush3.bf16.xpose.msra.mxu1 %v5443_v7 }
0x1310   : > { %11444 = vmatmul.mubr.msk.bf16.vlgmr.msra.gmra.mxu1 %vm722_vm1, %v5417_v57 }
0x1311   : > { %11447 = vmatprep.mubr.msk.bf16.mxu1 %vm722_vm1, %v5419_v46 }
0x1318   : > { %11448 = vmatmul.mubr.msk.bf16.gmra.mxu1 %vm722_vm1, %v5421_v36 }
0x13af   : > { %v11413_v6 = vpop.f32.mrf.mxu1 }
0x13b0   : > { %v14390_v28 = vmul.f32 0.35355338, %v11413_v6 }
0x13b1   : > { %v5194_v31 = vpop.f32.mrf.mxu1 }
0x13b2   : > { %v14392_v24 = vmul.f32 0.35355338, %v5194_v31  ;;  %v5239_v43 = vsel %vm820_vm2, %v14390_v28, -inf }
0x13b3   : > { %5240 = vmax.xlane.f32.xlu0 %v5239_v43  ;;  %v11414_v4 = vpop.f32.mrf.mxu1 }
0x13b4   : > { %v14396_v42 = vmul.f32 0.35355338, %v11414_v4  ;;  %v5233_v44 = vsel %vm820_vm2, %v14392_v24, -inf }
0x13b5   : > { %v5197_v61 = vpop.f32.mrf.mxu1 }
0x13b6   : > { %v14398_v52 = vmul.f32 0.35355338, %v5197_v61  ;;  %v5242_v9 = vsel %vm820_vm2, %v14396_v42, -inf }
0x13b7   : > { %5234 = vmax.xlane.f32.xlu0 %v5233_v44  ;;  %v11417_v0 = vpop.f32.mrf.mxu1 }
0x13b8   : > { %v14402_v14 = vmul.f32 0.35355338, %v11417_v0  ;;  %v5236_v59 = vsel %vm820_vm2, %v14398_v52, -inf }
0x13b9   : > { %5237 = vmax.xlane.f32.xlu1 %v5236_v59  ;;  %v5210_v11 = vpop.f32.mrf.mxu1 }
0x13ba   : > { %v14408_v1 = vmul.f32 0.35355338, %v5210_v11  ;;  %v5251_v18 = vsel %vm820_vm2, %v14402_v14, -inf }
0x13bb   : > { %5243 = vmax.xlane.f32.xlu0 %v5242_v9  ;;  %v11418_v30 = vpop.f32.mrf.mxu1 }
0x13bc   : > { %v14410_v48 = vmul.f32 0.35355338, %v11418_v30  ;;  %v5245_v37 = vsel %vm820_vm2, %v14408_v1, -inf }
0x13bd   : > { %5252 = vmax.xlane.f32.xlu1 %v5251_v18  ;;  %v5213_v17 = vpop.f32.mrf.mxu1 }
0x13be   : > { %v14414_v49 = vmul.f32 0.35355338, %v5213_v17  ;;  %v5254_v2 = vsel %vm820_vm2, %v14410_v48, -inf }
0x13bf   : > { %5255 = vmax.xlane.f32.xlu0 %v5254_v2 }
0x13c0   : > { %v5248_v38 = vsel %vm820_vm2, %v14414_v49, -inf }
0x13c1   : > { %5246 = vmax.xlane.f32.xlu1 %v5245_v37 }
0x13c3   : > { %5249 = vmax.xlane.f32.xlu0 %v5248_v38 }
0x13d0   : > { %v11445_v10 = vpop.f32.mrf.mxu1 }
0x13d1   : > { %v14422_v13 = vmul.f32 0.35355338, %v11445_v10 }
0x13d2   : > { %v5488_v15 = vpop.f32.mrf.mxu1 }
0x13d3   : > { %v14424_v60 = vmul.f32 0.35355338, %v5488_v15  ;;  %v5533_v29 = vsel %vm820_vm2, %v14422_v13, -inf }
0x13d4   : > { %5534 = vmax.xlane.f32.xlu1 %v5533_v29  ;;  %v11446_v47 = vpop.f32.mrf.mxu1 }
0x13d5   : > { %v14428_v27 = vmul.f32 0.35355338, %v11446_v47  ;;  %v5527_v45 = vsel %vm820_vm2, %v14424_v60, -inf }
0x13d6   : > { %v5491_v50 = vpop.f32.mrf.mxu1 }
0x13d7   : > { %v14430_v21 = vmul.f32 0.35355338, %v5491_v50  ;;  %v5536_v54 = vsel %vm820_vm2, %v14428_v27, -inf }
0x13d8   : > { %5528 = vmax.xlane.f32.xlu1 %v5527_v45  ;;  %5537 = vmax.xlane.f32.xlu0 %v5536_v54  ;;  %v11449_v55 = vpop.f32.mrf.mxu1 }
0x13d9   : > { %v5530_v32 = vsel %vm820_vm2, %v14430_v21, -inf  ;;  %v14448_v19 = vmul.f32 0.35355338, %v11449_v55 }
0x13da   : > { %v5504_v20 = vpop.f32.mrf.mxu1 }
0x13db   : > { %v14454_v53 = vmul.f32 0.35355338, %v5504_v20  ;;  %v5545_v33 = vsel %vm820_vm2, %v14448_v19, -inf }
0x13dc   : > { %5531 = vmax.xlane.f32.xlu0 %v5530_v32  ;;  %v11450_v40 = vpop.f32.mrf.mxu1 }
0x13dd   : > { %v14446_v57 = vmul.f32 0.35355338, %v11450_v40  ;;  %v5539_v41 = vsel %vm820_vm2, %v14454_v53, -inf }
0x13de   : > { %v5507_v36 = vpop.f32.mrf.mxu1 }
0x13df   : > { %v14450_v39 = vmul.f32 0.35355338, %v5507_v36  ;;  %v5548_v22 = vsel %vm820_vm2, %v14446_v57, -inf }
0x13e1   : > { %v5542_v58 = vsel %vm820_vm2, %v14450_v39, -inf }
0x13e9   : > { %5325 = vrot.lane.b32.xlu1 %v14326_v63, %s16262_s17 }
0x13ed   : > { %5625 = vrot.lane.b32.xlu1 %v14330_v51, %s16263_s19 }
0x13f1   : > { %5623 = vrot.lane.b32.xlu1 %v14332_v25, %s16263_s19 }
0x13f2   : > { %5327 = vrot.lane.b32.xlu0 %v14336_v8, %s16262_s17  ;;  %s10440_s17 = sshll.u32 %s12535_s25, 10 }
0x1411   : > { %5549 = vmax.xlane.f32.xlu0 %v5548_v22 }
0x1415   : > { %5546 = vmax.xlane.f32.xlu1 %v5545_v33  ;;  %5543 = vmax.xlane.f32.xlu0 %v5542_v58 }
0x1419   : > { %5540 = vmax.xlane.f32.xlu1 %v5539_v41 }
0x142a   : > { %5621 = vrot.lane.b32.xlu1 %v14336_v8, %s16263_s19 }
0x143c   : > { %v5241_v26 = vpop.xlane.xlu0 %5240 }
0x143d   : > { %v5259_v3 = vsub.f32 %v14390_v28, %v5241_v26 }
0x143f   : > { %v5269_v7 = vmul.f32 1.442695, %v5259_v3 }
0x1440   : > { %v5235_v46 = vpop.xlane.xlu0 %5234 }
0x1441   : > { %12190 = vpow2.f32 %v5269_v7  ;;  %v5257_v6 = vsub.f32 %v14392_v24, %v5235_v46 }
0x1442   : > { %v5238_v31 = vpop.xlane.xlu1 %5237 }
0x1443   : > { %v5265_v43 = vmul.f32 1.442695, %v5257_v6  ;;  %v5258_v4 = vsub.f32 %v14398_v52, %v5238_v31 }
0x1444   : > { %v5244_v61 = vpop.xlane.xlu0 %5243 }
0x1445   : > { %12192 = vpow2.f32 %v5265_v43  ;;  %v5260_v44 = vsub.f32 %v14396_v42, %v5244_v61  ;;  %v5267_v0 = vmul.f32 1.442695, %v5258_v4 }
0x1446   : > { %v5253_v59 = vpop.xlane.xlu1 %5252 }
0x1447   : > { %v5271_v11 = vmul.f32 1.442695, %v5260_v44  ;;  %v5263_v9 = vsub.f32 %v14402_v14, %v5253_v59 }
0x1448   : > { %v5256_v30 = vpop.xlane.xlu0 %5255 }
0x1449   : > { %12194 = vpow2.f32 %v5271_v11  ;;  %v5277_v28 = vmul.f32 1.442695, %v5263_v9  ;;  %v5264_v18 = vsub.f32 %v14410_v48, %v5256_v30 }
0x144a   : > { %12196 = vpow2.f32 %v5267_v0  ;;  %v5247_v24 = vpop.xlane.xlu1 %5246 }
0x144b   : > { %12198 = vpow2.f32 %v5277_v28  ;;  %v5279_v17 = vmul.f32 1.442695, %v5264_v18  ;;  %v5261_v52 = vsub.f32 %v14408_v1, %v5247_v24 }
0x144c   : > { %v5250_v2 = vpop.xlane.xlu0 %5249 }
0x144d   : > { %v5273_v37 = vmul.f32 1.442695, %v5261_v52  ;;  %v5262_v42 = vsub.f32 %v14414_v49, %v5250_v2  ;;  %12200 = vpow2.f32 %v5279_v17 }
0x144e   : > { %v14472_v38 = vpop.eup %12190 }
0x144f   : > { %12202 = vpow2.f32 %v5273_v37  ;;  %v5275_v14 = vmul.f32 1.442695, %v5262_v42  ;;  %v5287_v10 = vsel %vm820_vm2, %v14472_v38, 0.0 }
0x1450   : > { %5288 = vadd.xlane.f32.xlu1 %v5287_v10 }
0x1451   : > { %12204 = vpow2.f32 %v5275_v14 }
0x1452   : > { %v14476_v48 = vpop.eup %12192 }
0x1453   : > { %v5281_v15 = vsel %vm820_vm2, %v14476_v48, 0.0 }
0x1454   : > { %5282 = vadd.xlane.f32.xlu1 %v5281_v15 }
0x1456   : > { %v14480_v1 = vpop.eup %12194 }
0x1457   : > { %v14482_v29 = vpop.eup %12196  ;;  %v5290_v49 = vsel %vm820_vm2, %v14480_v1, 0.0 }
0x1458   : > { %v14486_v47 = vpop.eup %12198  ;;  %5291 = vadd.xlane.f32.xlu0 %v5290_v49  ;;  %v5284_v54 = vsel %vm820_vm2, %v14482_v29, 0.0 }
0x1459   : > { %v5299_v50 = vsel %vm820_vm2, %v14486_v47, 0.0 }
0x145a   : > { %5300 = vadd.xlane.f32.xlu1 %v5299_v50  ;;  %v14490_v45 = vpop.eup %12200 }
0x145b   : > { %v5302_v36 = vsel %vm820_vm2, %v14490_v45, 0.0 }
0x145c   : > { %v14494_v32 = vpop.eup %12202  ;;  %5285 = vadd.xlane.f32.xlu0 %v5284_v54 }
0x145d   : > { %v5535_v55 = vpop.xlane.xlu1 %5534  ;;  %v5293_v20 = vsel %vm820_vm2, %v14494_v32, 0.0 }
0x145e   : > { %v5553_v40 = vsub.f32 %v14422_v13, %v5535_v55  ;;  %5294 = vadd.xlane.f32.xlu1 %v5293_v20  ;;  %v14501_v22 = vpop.eup %12204 }
0x145f   : > { %v5296_v7 = vsel %vm820_vm2, %v14501_v22, 0.0 }
0x1460   : > { %v5563_v33 = vmul.f32 1.442695, %v5553_v40  ;;  %5303 = vadd.xlane.f32.xlu0 %v5302_v36 }
0x1461   : > { %v5529_v58 = vpop.xlane.xlu1 %5528  ;;  %v5538_v41 = vpop.xlane.xlu0 %5537 }
0x1462   : > { %12206 = vpow2.f32 %v5563_v33  ;;  %v5551_v26 = vsub.f32 %v14424_v60, %v5529_v58  ;;  %v5554_v3 = vsub.f32 %v14428_v27, %v5538_v41 }
0x1464   : > { %v5559_v46 = vmul.f32 1.442695, %v5551_v26  ;;  %v5565_v13 = vmul.f32 1.442695, %v5554_v3  ;;  %5297 = vadd.xlane.f32.xlu0 %v5296_v7 }
0x1465   : > { %v5532_v6 = vpop.xlane.xlu0 %5531  ;;  %v5326_v4 = vpop.permute.xlu1 %5325 }
0x1466   : > { %12208 = vpow2.f32 %v5559_v46  ;;  %v5552_v31 = vsub.f32 %v14430_v21, %v5532_v6 }
0x1467   : > { %12210 = vpow2.f32 %v5565_v13 }
0x1468   : > { %v5561_v43 = vmul.f32 1.442695, %v5552_v31 }
0x1469   : > { %v5328_v61 = vpop.permute.xlu0 %5327  ;;  %v14510_v27 = vpop.permute.xlu1 %5625 }
0x146a   : > { %11423 = vmatprep.subr.bf16.mxu0 %v5328_v61  ;;  %12212 = vpow2.f32 %v5561_v43 }
0x146b   : > { %11424 = vmatpush3.bf16.msra.mxu0 %v5328_v61 }
0x146c   : > { %11425 = vmatprep.subr.bf16.mxu0 %v5326_v4 }
0x146d   : > { %v14533_v28 = vpop.permute.xlu1 %5623 }
0x146f   : > { %v14508_v60 = vpop.eup %12206  ;;  %11426 = vmatpush3.bf16.msra.mxu0 %v5326_v4  ;;  %5722 = vrot.lane.b32.xlu1 %v14330_v51, %s16264_s26 }
0x1470   : > { %11451 = vmatprep.subr.bf16.mxu0 %v14510_v27  ;;  %v5581_v21 = vsel %vm820_vm2, %v14508_v60, 0.0 }
0x1471   : > { %5582 = vadd.xlane.f32.xlu0 %v5581_v21 }
0x1473   : > { %v14517_v44 = vpop.eup %12208  ;;  %5720 = vrot.lane.b32.xlu1 %v14332_v25, %s16264_s26 }
0x1474   : > { %v5575_v0 = vsel %vm820_vm2, %v14517_v44, 0.0  ;;  %v14523_v59 = vpop.eup %12210 }
0x1475   : > { %5576 = vadd.xlane.f32.xlu0 %v5575_v0  ;;  %v5584_v11 = vsel %vm820_vm2, %v14523_v59, 0.0 }
0x1477   : > { %v14527_v9 = vpop.eup %12212 }
0x1478   : > { %v5578_v30 = vsel %vm820_vm2, %v14527_v9, 0.0 }
0x1479   : > { %5585 = vadd.xlane.f32.xlu0 %v5584_v11 }
0x147d   : > { %5579 = vadd.xlane.f32.xlu0 %v5578_v30 }
0x1493   : > { %5619 = vrot.lane.b32.xlu0 %v14326_v63, %s16263_s19 }
0x149a   : > { %v5550_v18 = vpop.xlane.xlu0 %5549 }
0x149b   : > { %v5558_v37 = vsub.f32 %v14446_v57, %v5550_v18 }
0x149d   : > { %v5573_v49 = vmul.f32 1.442695, %v5558_v37 }
0x149e   : > { %v5547_v24 = vpop.xlane.xlu1 %5546  ;;  %v5544_v17 = vpop.xlane.xlu0 %5543 }
0x149f   : > { %v5557_v52 = vsub.f32 %v14448_v19, %v5547_v24  ;;  %v5556_v2 = vsub.f32 %v14450_v39, %v5544_v17 }
0x14a1   : > { %v5571_v42 = vmul.f32 1.442695, %v5557_v52  ;;  %v5569_v14 = vmul.f32 1.442695, %v5556_v2 }
0x14a2   : > { %v5541_v10 = vpop.xlane.xlu1 %5540 }
0x14a3   : > { %12214 = vpow2.f32 %v5571_v42  ;;  %v5555_v15 = vsub.f32 %v14454_v53, %v5541_v10 }
0x14a4   : > { %12216 = vpow2.f32 %v5569_v14 }
0x14a5   : > { %v5567_v50 = vmul.f32 1.442695, %v5555_v15 }
0x14a6   : > { %v5622_v36 = vpop.permute.xlu1 %5621 }
0x14a7   : > { %12218 = vpow2.f32 %v5567_v50 }
0x14a8   : > { %12220 = vpow2.f32 %v5573_v49 }
0x14b0   : > { %v14539_v54 = vpop.eup %12214 }
0x14b1   : > { %v5593_v19 = vsel %vm820_vm2, %v14539_v54, 0.0  ;;  %v14543_v55 = vpop.eup %12216 }
0x14b2   : > { %5594 = vadd.xlane.f32.xlu0 %v5593_v19  ;;  %v5590_v53 = vsel %vm820_vm2, %v14543_v55, 0.0 }
0x14b4   : > { %v14545_v57 = vpop.eup %12218 }
0x14b5   : > { %v5587_v39 = vsel %vm820_vm2, %v14545_v57, 0.0  ;;  %v14551_v20 = vpop.eup %12220 }
0x14b6   : > { %5588 = vadd.xlane.f32.xlu1 %v5587_v39  ;;  %5591 = vadd.xlane.f32.xlu0 %v5590_v53  ;;  %v5596_v40 = vsel %vm820_vm2, %v14551_v20, 0.0 }
0x14ba   : > { %5597 = vadd.xlane.f32.xlu1 %v5596_v40 }
0x14cb   : > { %5716 = vrot.lane.b32.xlu1 %v14326_v63, %s16264_s26 }
0x14cc   : > { %5718 = vrot.lane.b32.xlu0 %v14336_v8, %s16264_s26 }
0x14cf   : > { %5710 = vrot.lane.b32.xlu1 %v14336_v8, %s16265_s18 }
0x14d0   : > { %5708 = vrot.lane.b32.xlu0 %v14326_v63, %s16265_s18 }
0x14d3   : > { %5714 = vrot.lane.b32.xlu1 %v14330_v51, %s16265_s18 }
0x14d4   : > { %5712 = vrot.lane.b32.xlu0 %v14332_v25, %s16265_s18  ;;  %s16065_s18 = scalar_lea.hbm %s16130_s16, %s10440_s17 }
0x14d7   : > { %5919 = vrot.lane.b32.xlu1 %v14330_v51, %s16266_s23 }
0x14d9   : > { %v5289_v33 = vpop.xlane.xlu1 %5288 }
0x14dd   : > { %v5283_v58 = vpop.xlane.xlu1 %5282 }
0x14e1   : > { %v5292_v41 = vpop.xlane.xlu0 %5291 }
0x14e2   : > { %12222 = vrcp.f32 %v5292_v41 }
0x14e3   : > { %v5301_v26 = vpop.xlane.xlu1 %5300  ;;  %12224 = vrcp.f32 %v5283_v58 }
0x14e4   : > { %12226 = vrcp.f32 %v5289_v33 }
0x14e5   : > { %v5286_v3 = vpop.xlane.xlu0 %5285 }
0x14e6   : > { %12228 = vrcp.f32 %v5286_v3 }
0x14e7   : > { %v5295_v7 = vpop.xlane.xlu1 %5294 }
0x14e9   : > { %v5304_v46 = vpop.xlane.xlu0 %5303 }
0x14ea   : > { %12230 = vrcp.f32 %v5304_v46 }
0x14eb   : > { %12232 = vrcp.f32 %v5295_v7 }
0x14ec   : > { %12234 = vrcp.f32 %v5301_v26 }
0x14ed   : > { %v5298_v13 = vpop.xlane.xlu0 %5297 }
0x14ee   : > { %12236 = vrcp.f32 %v5298_v13 }
0x14ef   : > { %v12223_v6 = vpop.eup %12222 }
0x14f0   : > { %v12225_v31 = vpop.eup %12224  ;;  %v5312_v61 = vmul.f32 %v12223_v6, %v14480_v1 }
0x14f1   : > { %v12227_v43 = vpop.eup %12226  ;;  %v5306_v21 = vmul.f32 %v12225_v31, %v14476_v48 }
0x14f2   : > { %v5310_v11 = vmul.f32 %v12227_v43, %v14472_v38 }
0x14f3   : > { %v12229_v4 = vpop.eup %12228 }
0x14f4   : > { %v5308_v0 = vmul.f32 %v12229_v4, %v14482_v29  ;;  %v5322_v18 = vpack.c.bf16 %v5312_v61, %v5310_v11 }
0x14f6   : > { %v5321_v30 = vpack.c.bf16 %v5308_v0, %v5306_v21 }
0x14f7   : > { %v12231_v24 = vpop.eup %12230 }
0x14f8   : > { %11427 = vmatprep.mubr.msk.bf16.mxu0 %vm820_vm2, %v5321_v30  ;;  %v12233_v17 = vpop.eup %12232  ;;  %v5320_v48 = vmul.f32 %v12231_v24, %v14490_v45 }
0x14f9   : > { %11428 = vmatmul.mubr.msk.bf16.vlgmr.msra.gmra.mxu0 %vm820_vm2, %v5322_v18  ;;  %v12235_v52 = vpop.eup %12234  ;;  %v5314_v1 = vmul.f32 %v12233_v17, %v14494_v32 }
0x14fa   : > { %11452 = vmatpush3.bf16.msra.mxu0 %v14510_v27  ;;  %v5583_v2 = vpop.xlane.xlu0 %5582  ;;  %v5318_v29 = vmul.f32 %v12235_v52, %v14486_v47  ;;  %v5723_v47 = vpop.permute.xlu1 %5722 }
0x14fb   : > { %v12237_v37 = vpop.eup %12236  ;;  %11453 = vmatprep.subr.bf16.mxu0 %v14533_v28  ;;  %v5746_v33 = vsel %vm722_vm1, %v5723_v47, 0 }
0x14fc   : > { %v5316_v38 = vmul.f32 %v12237_v37, %v14501_v22  ;;  %v5324_v10 = vpack.c.bf16 %v5320_v48, %v5318_v29 }
0x14fe   : > { %11454 = vmatpush3.bf16.msra.mxu0 %v14533_v28  ;;  %v5577_v42 = vpop.xlane.xlu0 %5576  ;;  %v5323_v14 = vpack.c.bf16 %v5316_v38, %v5314_v1  ;;  %v5721_v58 = vpop.permute.xlu1 %5720 }
0x14ff   : > { %11455 = vmatprep.subr.bf16.mxu0 %v5622_v36 }
0x1500   : > { %11431 = vmatprep.mubr.msk.bf16.mxu0 %vm820_vm2, %v5323_v14 }
0x1501   : > { %11432 = vmatmul.mubr.msk.bf16.gmra.mxu0 %vm820_vm2, %v5324_v10 }
0x1502   : > { %11456 = vmatpush3.bf16.msra.mxu0 %v5622_v36  ;;  %v5586_v27 = vpop.xlane.xlu0 %5585 }
0x1503   : > { %12238 = vrcp.f32 %v5586_v27 }
0x1504   : > { %12240 = vrcp.f32 %v5577_v42 }
0x1505   : > { %12242 = vrcp.f32 %v5583_v2 }
0x1506   : > { %v5580_v45 = vpop.xlane.xlu0 %5579 }
0x1507   : > { %12244 = vrcp.f32 %v5580_v45 }
0x150a   : > { %v5620_v32 = vpop.permute.xlu0 %5619 }
0x150b   : > { %11457 = vmatprep.subr.bf16.mxu0 %v5620_v32 }
0x150c   : > { %11458 = vmatpush3.bf16.msra.mxu0 %v5620_v32 }
0x150d   : > { %11579 = vmatprep.subr.msk.bf16.mxu0 %vm722_vm1, %v5723_v47 }
0x1510   : > { %v12239_v22 = vpop.eup %12238 }
0x1511   : > { %v12241_v28 = vpop.eup %12240  ;;  %v5606_v50 = vmul.f32 %v12239_v22, %v14523_v59  ;;  %v5743_v59 = vsel %vm722_vm1, %v5721_v58, 0 }
0x1512   : > { %v12243_v15 = vpop.eup %12242  ;;  %v5600_v19 = vmul.f32 %v12241_v28, %v14517_v44 }
0x1513   : > { %v5604_v53 = vmul.f32 %v12243_v15, %v14508_v60 }
0x1514   : > { %v12245_v49 = vpop.eup %12244 }
0x1515   : > { %v5602_v39 = vmul.f32 %v12245_v49, %v14527_v9  ;;  %v5616_v36 = vpack.c.bf16 %v5606_v50, %v5604_v53 }
0x1517   : > { %v5615_v40 = vpack.c.bf16 %v5602_v39, %v5600_v19 }
0x1519   : > { %11459 = vmatprep.mubr.msk.bf16.mxu0 %vm820_vm2, %v5615_v40 }
0x151a   : > { %11460 = vmatmul.mubr.msk.bf16.vlgmr.msra.gmra.mxu0 %vm820_vm2, %v5616_v36 }
0x151b   : > { %11468 = vmatpush3.bf16.xpose.msra.mxu0 %v5746_v33 }
0x151c   : > { %11580 = vmatprep.subr.msk.bf16.mxu0 %vm722_vm1, %v5721_v58 }
0x1523   : > { %11470 = vmatpush3.bf16.xpose.msra.mxu0 %v5743_v59 }
0x153b   : > { %v5595_v44 = vpop.xlane.xlu0 %5594 }
0x153f   : > { %v5589_v41 = vpop.xlane.xlu1 %5588  ;;  %v5592_v9 = vpop.xlane.xlu0 %5591 }
0x1540   : > { %12246 = vrcp.f32 %v5589_v41 }
0x1541   : > { %12248 = vrcp.f32 %v5592_v9 }
0x1542   : > { %12250 = vrcp.f32 %v5595_v44 }
0x1543   : > { %v5598_v60 = vpop.xlane.xlu1 %5597  ;;  %v5719_v26 = vpop.permute.xlu0 %5718 }
0x1544   : > { %12252 = vrcp.f32 %v5598_v60  ;;  %11581 = vmatprep.subr.msk.bf16.mxu0 %vm722_vm1, %v5719_v26  ;;  %v5740_v3 = vsel %vm722_vm1, %v5719_v26, 0 }
0x1545   : > { %11472 = vmatpush3.bf16.xpose.msra.mxu0 %v5740_v3 }
0x1547   : > { %v5717_v7 = vpop.permute.xlu1 %5716  ;;  %v5709_v52 = vpop.permute.xlu0 %5708 }
0x1548   : > { %11582 = vmatprep.subr.msk.bf16.mxu0 %vm722_vm1, %v5717_v7  ;;  %v5737_v13 = vsel %vm722_vm1, %v5717_v7, 0 }
0x154b   : > { %v5711_v46 = vpop.permute.xlu1 %5710 }
0x154d   : > { %v12247_v6 = vpop.eup %12246  ;;  %11474 = vmatpush3.bf16.xpose.msra.mxu0 %v5737_v13 }
0x154e   : > { %v12249_v31 = vpop.eup %12248  ;;  %v5608_v43 = vmul.f32 %v12247_v6, %v14545_v57  ;;  %v5713_v57 = vpop.permute.xlu0 %5712 }
0x154f   : > { %v12251_v4 = vpop.eup %12250  ;;  %v5715_v61 = vpop.permute.xlu1 %5714  ;;  %v5610_v21 = vmul.f32 %v12249_v31, %v14543_v55 }
0x1550   : > { %v5612_v30 = vmul.f32 %v12251_v4, %v14539_v54 }
0x1551   : > { %v12253_v0 = vpop.eup %12252  ;;  %v5617_v11 = vpack.c.bf16 %v5610_v21, %v5608_v43 }
0x1552   : > { %v5614_v18 = vmul.f32 %v12253_v0, %v14551_v20 }
0x1553   : > { %11463 = vmatprep.mubr.msk.bf16.mxu0 %vm820_vm2, %v5617_v11  ;;  %v5920_v24 = vpop.permute.xlu1 %5919 }
0x1554   : > { %11483 = vmatprep.subr.bf16.mxu1 %v5920_v24  ;;  %v5618_v17 = vpack.c.bf16 %v5614_v18, %v5612_v30 }
0x1555   : > { %11484 = vmatpush3.bf16.msra.mxu1 %v5920_v24 }
0x1556   : > { %11464 = vmatmul.mubr.msk.bf16.gmra.mxu0 %vm820_vm2, %v5618_v17 }
0x1557   : > { %11475 = vmatprep.mubr.msk.bf16.mxu0 %vm722_vm1, %v5709_v52 }
0x155e   : > { %11476 = vmatmul.mubr.msk.bf16.vlgmr.msra.gmra.mxu0 %vm722_vm1, %v5711_v46 }
0x155f   : > { %11479 = vmatprep.mubr.msk.bf16.mxu0 %vm722_vm1, %v5713_v57 }
0x1566   : > { %11480 = vmatmul.mubr.msk.bf16.gmra.mxu0 %vm722_vm1, %v5715_v61 }
0x15b9   : > { %v14608_v54 = vpop.f32.mrf.mxu0 }
0x15bb   : > { %v14610_v55 = vpop.f32.mrf.mxu0 }
0x15bd   : > { %v14612_v20 = vpop.f32.mrf.mxu0 }
0x15bf   : > { %v14614_v2 = vpop.f32.mrf.mxu0 }
0x15c1   : > { %v14616_v37 = vpop.f32.mrf.mxu0 }
0x15c3   : > { %v14618_v48 = vpop.f32.mrf.mxu0 }
0x15c5   : > { %v14620_v1 = vpop.f32.mrf.mxu0 }
0x15c7   : > { %v14622_v38 = vpop.f32.mrf.mxu0 }
0x15da   : > { %v14624_v29 = vpop.f32.mrf.mxu0 }
0x15dc   : > { %v14626_v42 = vpop.f32.mrf.mxu0 }
0x15de   : > { %v14628_v14 = vpop.f32.mrf.mxu0 }
0x15df   : > { %v11709_v10 = vpack.i.bf16 %v14628_v14, %v14624_v29 }
0x15e0   : > { %v14632_v27 = vpop.f32.mrf.mxu0 }
0x1616   : > { %v14634_v45 = vpop.f32.mrf.mxu0 }
0x1618   : > { %v14636_v32 = vpop.f32.mrf.mxu0 }
0x161a   : > { %v14638_v47 = vpop.f32.mrf.mxu0 }
0x161b   : > { %v11739_v22 = vpack.i.bf16 %v14638_v47, %v14634_v45 }
0x161c   : > { %v14642_v28 = vpop.f32.mrf.mxu0 }
0x161e   : > { %v11477_v15 = vpop.f32.mrf.mxu0 }
0x161f   : > { %v5815_v49 = vmul.f32 0.35355338, %v11477_v15 }
0x1620   : > { %v5782_v50 = vpop.f32.mrf.mxu0 }
0x1621   : > { %v5813_v19 = vmul.f32 0.35355338, %v5782_v50  ;;  %v5827_v39 = vsel %vm820_vm2, %v5815_v49, -inf }
0x1622   : > { %5828 = vmax.xlane.f32.xlu0 %v5827_v39  ;;  %v11478_v53 = vpop.f32.mrf.mxu0 }
0x1623   : > { %v5816_v36 = vmul.f32 0.35355338, %v11478_v53  ;;  %v5821_v58 = vsel %vm820_vm2, %v5813_v19, -inf }
0x1624   : > { %v5785_v40 = vpop.f32.mrf.mxu0 }
0x1625   : > { %v5814_v33 = vmul.f32 0.35355338, %v5785_v40  ;;  %v5830_v60 = vsel %vm820_vm2, %v5816_v36, -inf }
0x1626   : > { %5822 = vmax.xlane.f32.xlu0 %v5821_v58  ;;  %v11481_v59 = vpop.f32.mrf.mxu0 }
0x1627   : > { %v14646_v44 = vmul.f32 0.35355338, %v11481_v59  ;;  %v5824_v41 = vsel %vm820_vm2, %v5814_v33, -inf }
0x1628   : > { %5825 = vmax.xlane.f32.xlu1 %v5824_v41  ;;  %v5798_v9 = vpop.f32.mrf.mxu0 }
0x1629   : > { %v5817_v3 = vmul.f32 0.35355338, %v5798_v9  ;;  %v5839_v46 = vsel %vm820_vm2, %v14646_v44, -inf }
0x162a   : > { %5831 = vmax.xlane.f32.xlu0 %v5830_v60  ;;  %v11482_v26 = vpop.f32.mrf.mxu0 }
0x162b   : > { %v5820_v7 = vmul.f32 0.35355338, %v11482_v26  ;;  %v5833_v43 = vsel %vm820_vm2, %v5817_v3, -inf }
0x162c   : > { %5840 = vmax.xlane.f32.xlu1 %v5839_v46  ;;  %v5801_v13 = vpop.f32.mrf.mxu0 }
0x162d   : > { %v5818_v6 = vmul.f32 0.35355338, %v5801_v13  ;;  %v5842_v31 = vsel %vm820_vm2, %v5820_v7, -inf }
0x162e   : > { %5843 = vmax.xlane.f32.xlu0 %v5842_v31 }
0x162f   : > { %v5836_v4 = vsel %vm820_vm2, %v5818_v6, -inf }
0x1630   : > { %5834 = vmax.xlane.f32.xlu1 %v5833_v43 }
0x1632   : > { %5837 = vmax.xlane.f32.xlu0 %v5836_v4 }
0x1641   : > { %5915 = vrot.lane.b32.xlu1 %v14336_v8, %s16266_s23 }
0x1648   : > { %5917 = vrot.lane.b32.xlu0 %v14332_v25, %s16266_s23 }
0x16ab   : > { %v5829_v61 = vpop.xlane.xlu0 %5828 }
0x16ac   : > { %v5847_v21 = vsub.f32 %v5815_v49, %v5829_v61 }
0x16ae   : > { %v5857_v0 = vmul.f32 1.442695, %v5847_v21 }
0x16af   : > { %v5823_v11 = vpop.xlane.xlu0 %5822 }
0x16b0   : > { %12254 = vpow2.f32 %v5857_v0  ;;  %v5845_v30 = vsub.f32 %v5813_v19, %v5823_v11 }
0x16b1   : > { %v5826_v18 = vpop.xlane.xlu1 %5825 }
0x16b2   : > { %v5853_v24 = vmul.f32 1.442695, %v5845_v30  ;;  %v5846_v17 = vsub.f32 %v5814_v33, %v5826_v18 }
0x16b3   : > { %v5832_v52 = vpop.xlane.xlu0 %5831 }
0x16b4   : > { %12256 = vpow2.f32 %v5853_v24  ;;  %v5848_v57 = vsub.f32 %v5816_v36, %v5832_v52  ;;  %v5855_v50 = vmul.f32 1.442695, %v5846_v17 }
0x16b5   : > { %v5841_v15 = vpop.xlane.xlu1 %5840 }
0x16b6   : > { %v5859_v39 = vmul.f32 1.442695, %v5848_v57  ;;  %v5851_v31 = vsub.f32 %v14646_v44, %v5841_v15 }
0x16b7   : > { %v5844_v53 = vpop.xlane.xlu0 %5843 }
0x16b8   : > { %12258 = vpow2.f32 %v5859_v39  ;;  %v5852_v43 = vsub.f32 %v5820_v7, %v5844_v53  ;;  %v5865_v61 = vmul.f32 1.442695, %v5851_v31 }
0x16b9   : > { %12260 = vpow2.f32 %v5855_v50  ;;  %v5835_v40 = vpop.xlane.xlu1 %5834 }
0x16ba   : > { %v5849_v13 = vsub.f32 %v5817_v3, %v5835_v40  ;;  %v5867_v21 = vmul.f32 1.442695, %v5852_v43 }
0x16bb   : > { %v5838_v58 = vpop.xlane.xlu0 %5837 }
0x16bc   : > { %v5861_v4 = vmul.f32 1.442695, %v5849_v13  ;;  %v5850_v0 = vsub.f32 %v5818_v6, %v5838_v58 }
0x16bd   : > { %v14659_v59 = vpop.eup %12254  ;;  %v5916_v41 = vpop.permute.xlu1 %5915 }
0x16be   : > { %v5875_v49 = vsel %vm820_vm2, %v14659_v59, 0.0  ;;  %12262 = vpow2.f32 %v5861_v4  ;;  %v5863_v11 = vmul.f32 1.442695, %v5850_v0 }
0x16bf   : > { %5876 = vadd.xlane.f32.xlu1 %v5875_v49  ;;  %v5918_v19 = vpop.permute.xlu0 %5917  ;;  %12264 = vpow2.f32 %v5865_v61 }
0x16c0   : > { %11485 = vmatprep.subr.bf16.mxu1 %v5918_v19  ;;  %12266 = vpow2.f32 %v5867_v21 }
0x16c1   : > { %v14663_v33 = vpop.eup %12256  ;;  %11486 = vmatpush3.bf16.msra.mxu1 %v5918_v19  ;;  %12268 = vpow2.f32 %v5863_v11 }
0x16c2   : > { %11487 = vmatprep.subr.bf16.mxu1 %v5916_v41  ;;  %v5869_v36 = vsel %vm820_vm2, %v14663_v33, 0.0 }
0x16c3   : > { %5870 = vadd.xlane.f32.xlu1 %v5869_v36 }
0x16c5   : > { %v12259_v9 = vpop.eup %12258  ;;  %11488 = vmatpush3.bf16.msra.mxu1 %v5916_v41 }
0x16c6   : > { %v5878_v60 = vsel %vm820_vm2, %v12259_v9, 0.0  ;;  %v12261_v26 = vpop.eup %12260 }
0x16c7   : > { %5879 = vadd.xlane.f32.xlu0 %v5878_v60  ;;  %v5872_v46 = vsel %vm820_vm2, %v12261_v26, 0.0 }
0x16cb   : > { %5873 = vadd.xlane.f32.xlu0 %v5872_v46  ;;  %v14676_v30 = vpop.eup %12262 }
0x16cc   : > { %v14678_v18 = vpop.eup %12264  ;;  %v5881_v24 = vsel %vm820_vm2, %v14676_v30, 0.0 }
0x16cd   : > { %v14682_v3 = vpop.eup %12266  ;;  %v5887_v44 = vsel %vm820_vm2, %v14678_v18, 0.0 }
0x16ce   : > { %v5890_v7 = vsel %vm820_vm2, %v14682_v3, 0.0  ;;  %v14688_v6 = vpop.eup %12268 }
0x16cf   : > { %v5884_v17 = vsel %vm820_vm2, %v14688_v6, 0.0 }
0x16d4   : > { %6016 = vrot.lane.b32.xlu1 %v14330_v51, %s16267_s30 }
0x16d8   : > { %6014 = vrot.lane.b32.xlu1 %v14332_v25, %s16267_s30 }
0x16e1   : > { %5913 = vrot.lane.b32.xlu0 %v14326_v63, %s16266_s23  ;;  %s16273_s23 = smov 24  }
0x16fc   : > { %5882 = vadd.xlane.f32.xlu1 %v5881_v24 }
0x1700   : > { %5888 = vadd.xlane.f32.xlu0 %v5887_v44  ;;  %5891 = vadd.xlane.f32.xlu1 %v5890_v7 }
0x1704   : > { %5885 = vadd.xlane.f32.xlu0 %v5884_v17 }
0x1711   : > { %6010 = vrot.lane.b32.xlu1 %v14326_v63, %s16267_s30 }
0x1715   : > { %6004 = vrot.lane.b32.xlu1 %v14336_v8, %s16268_s28 }
0x1719   : > { %6008 = vrot.lane.b32.xlu1 %v14330_v51, %s16268_s28 }
0x171a   : > { %6012 = vrot.lane.b32.xlu0 %v14336_v8, %s16267_s30 }
0x171e   : > { %6002 = vrot.lane.b32.xlu0 %v14326_v63, %s16268_s28 }
0x1722   : > { %6006 = vrot.lane.b32.xlu0 %v14332_v25, %s16268_s28  ;;  %s12427_s28 = smov [#allocation2]  }
0x1748   : > { %v5877_v52 = vpop.xlane.xlu1 %5876 }
0x174c   : > { %v5871_v57 = vpop.xlane.xlu1 %5870 }
0x1750   : > { %v5880_v15 = vpop.xlane.xlu0 %5879  ;;  %v6017_v53 = vpop.permute.xlu1 %6016 }
0x1751   : > { %12270 = vrcp.f32 %v5880_v15  ;;  %v6040_v43 = vsel %vm722_vm1, %v6017_v53, 0 }
0x1752   : > { %12272 = vrcp.f32 %v5871_v57 }
0x1753   : > { %12274 = vrcp.f32 %v5877_v52 }
0x1754   : > { %v5874_v50 = vpop.xlane.xlu0 %5873  ;;  %v6015_v4 = vpop.permute.xlu1 %6014 }
0x1755   : > { %12276 = vrcp.f32 %v5874_v50  ;;  %v6037_v61 = vsel %vm722_vm1, %v6015_v4, 0 }
0x1758   : > { %v5914_v39 = vpop.permute.xlu0 %5913 }
0x1759   : > { %11489 = vmatprep.subr.bf16.mxu1 %v5914_v39 }
0x175a   : > { %11490 = vmatpush3.bf16.msra.mxu1 %v5914_v39 }
0x175b   : > { %11583 = vmatprep.subr.msk.bf16.mxu1 %vm722_vm1, %v6017_v53 }
0x175e   : > { %v12271_v40 = vpop.eup %12270 }
0x175f   : > { %v12273_v58 = vpop.eup %12272  ;;  %v5900_v41 = vmul.f32 %v12271_v40, %v12259_v9 }
0x1760   : > { %v12275_v49 = vpop.eup %12274  ;;  %v5894_v36 = vmul.f32 %v12273_v58, %v14663_v33 }
0x1761   : > { %v5898_v46 = vmul.f32 %v12275_v49, %v14659_v59 }
0x1762   : > { %v12277_v19 = vpop.eup %12276 }
0x1763   : > { %v5896_v60 = vmul.f32 %v12277_v19, %v12261_v26  ;;  %v5910_v31 = vpack.c.bf16 %v5900_v41, %v5898_v46 }
0x1765   : > { %v5909_v13 = vpack.c.bf16 %v5896_v60, %v5894_v36 }
0x1767   : > { %11491 = vmatprep.mubr.msk.bf16.mxu1 %vm820_vm2, %v5909_v13 }
0x1768   : > { %11492 = vmatmul.mubr.msk.bf16.vlgmr.msra.gmra.mxu1 %vm820_vm2, %v5910_v31 }
0x1769   : > { %11500 = vmatpush3.bf16.xpose.msra.mxu1 %v6040_v43 }
0x176a   : > { %11584 = vmatprep.subr.msk.bf16.mxu1 %vm722_vm1, %v6015_v4 }
0x1771   : > { %11502 = vmatpush3.bf16.xpose.msra.mxu1 %v6037_v61 }
0x1785   : > { %v5883_v9 = vpop.xlane.xlu1 %5882 }
0x1789   : > { %v5892_v33 = vpop.xlane.xlu1 %5891  ;;  %v5889_v26 = vpop.xlane.xlu0 %5888 }
0x178a   : > { %12278 = vrcp.f32 %v5892_v33 }
0x178b   : > { %12280 = vrcp.f32 %v5889_v26 }
0x178c   : > { %12282 = vrcp.f32 %v5883_v9 }
0x178d   : > { %v5886_v59 = vpop.xlane.xlu0 %5885  ;;  %v6011_v11 = vpop.permute.xlu1 %6010 }
0x178e   : > { %12284 = vrcp.f32 %v5886_v59  ;;  %v6031_v17 = vsel %vm722_vm1, %v6011_v11, 0 }
0x1791   : > { %v6013_v21 = vpop.permute.xlu0 %6012  ;;  %v6005_v49 = vpop.permute.xlu1 %6004 }
0x1792   : > { %v6034_v0 = vsel %vm722_vm1, %v6013_v21, 0  ;;  %11585 = vmatprep.subr.msk.bf16.mxu1 %vm722_vm1, %v6013_v21 }
0x1793   : > { %11504 = vmatpush3.bf16.xpose.msra.mxu1 %v6034_v0 }
0x1794   : > { %11586 = vmatprep.subr.msk.bf16.mxu1 %vm722_vm1, %v6011_v11 }
0x1795   : > { %v6003_v58 = vpop.permute.xlu0 %6002 }
0x1797   : > { %v12279_v24 = vpop.eup %12278 }
0x1798   : > { %v12281_v44 = vpop.eup %12280  ;;  %v5908_v15 = vmul.f32 %v12279_v24, %v14682_v3 }
0x1799   : > { %v12283_v7 = vpop.eup %12282  ;;  %v5906_v57 = vmul.f32 %v12281_v44, %v14678_v18  ;;  %v6007_v19 = vpop.permute.xlu0 %6006 }
0x179a   : > { %v5902_v50 = vmul.f32 %v12283_v7, %v14676_v30  ;;  %v6009_v18 = vpop.permute.xlu1 %6008  ;;  %v16269_v30 = vmov 0  }
0x179b   : > { %v12285_v52 = vpop.eup %12284  ;;  %11506 = vmatpush3.bf16.xpose.msra.mxu1 %v6031_v17  ;;  %v5912_v40 = vpack.c.bf16 %v5908_v15, %v5906_v57 }
0x179c   : > { %v5904_v39 = vmul.f32 %v12285_v52, %v14688_v6 }
0x179e   : > { %v5911_v53 = vpack.c.bf16 %v5904_v39, %v5902_v50 }
0x17a0   : > { %11495 = vmatprep.mubr.msk.bf16.mxu1 %vm820_vm2, %v5911_v53 }
0x17a1   : > { %11496 = vmatmul.mubr.msk.bf16.gmra.mxu1 %vm820_vm2, %v5912_v40 }
0x17a2   : > { %11507 = vmatprep.mubr.msk.bf16.mxu1 %vm722_vm1, %v6003_v58 }
0x17a9   : > { %11508 = vmatmul.mubr.msk.bf16.vlgmr.msra.gmra.mxu1 %vm722_vm1, %v6005_v49 }
0x17aa   : > { %11511 = vmatprep.mubr.msk.bf16.mxu1 %vm722_vm1, %v6007_v19 }
0x17b1   : > { %11512 = vmatmul.mubr.msk.bf16.gmra.mxu1 %vm722_vm1, %v6009_v18 }
0x17b2   : > { %6992 = vmatprep.mubr.bf16.mxu1 %v16269_v30 }
0x1828   : > { %v14727_v3 = vpop.f32.mrf.mxu1 }
0x182a   : > { %v14729_v6 = vpop.f32.mrf.mxu1 }
0x182c   : > { %v14731_v41 = vpop.f32.mrf.mxu1 }
0x182d   : > { %v11719_v36 = vpack.i.bf16 %v14731_v41, %v14727_v3 }
0x182e   : > { %v14735_v60 = vpop.f32.mrf.mxu1 }
0x1861   : > { %v14737_v46 = vpop.f32.mrf.mxu1 }
0x1863   : > { %v14739_v13 = vpop.f32.mrf.mxu1 }
0x1865   : > { %v14741_v31 = vpop.f32.mrf.mxu1 }
0x1867   : > { %v14745_v4 = vpop.f32.mrf.mxu1 }
0x1869   : > { %v11509_v61 = vpop.f32.mrf.mxu1 }
0x186a   : > { %v6109_v59 = vmul.f32 0.35355338, %v11509_v61 }
0x186b   : > { %v6076_v9 = vpop.f32.mrf.mxu1 }
0x186c   : > { %v6107_v33 = vmul.f32 0.35355338, %v6076_v9  ;;  %v6121_v7 = vsel %vm820_vm2, %v6109_v59, -inf }
0x186d   : > { %v11510_v26 = vpop.f32.mrf.mxu1 }
0x186e   : > { %v6115_v21 = vsel %vm820_vm2, %v6107_v33, -inf  ;;  %v6110_v44 = vmul.f32 0.35355338, %v11510_v26 }
0x186f   : > { %6116 = vmax.xlane.f32.xlu0 %v6115_v21  ;;  %v6079_v0 = vpop.f32.mrf.mxu1 }
0x1870   : > { %v6108_v11 = vmul.f32 0.35355338, %v6079_v0  ;;  %v6124_v39 = vsel %vm820_vm2, %v6110_v44, -inf }
0x1871   : > { %v11513_v24 = vpop.f32.mrf.mxu1 }
0x1872   : > { %v6118_v17 = vsel %vm820_vm2, %v6108_v11, -inf  ;;  %v6113_v50 = vmul.f32 0.35355338, %v11513_v24 }
0x1873   : > { %6122 = vmax.xlane.f32.xlu0 %v6121_v7  ;;  %6119 = vmax.xlane.f32.xlu1 %v6118_v17  ;;  %v6092_v52 = vpop.f32.mrf.mxu1 }
0x1874   : > { %v6111_v57 = vmul.f32 0.35355338, %v6092_v52  ;;  %v6133_v19 = vsel %vm820_vm2, %v6113_v50, -inf }
0x1875   : > { %v11514_v15 = vpop.f32.mrf.mxu1 }
0x1876   : > { %v6127_v53 = vsel %vm820_vm2, %v6111_v57, -inf  ;;  %v6114_v49 = vmul.f32 0.35355338, %v11514_v15 }
0x1877   : > { %6125 = vmax.xlane.f32.xlu0 %v6124_v39  ;;  %6128 = vmax.xlane.f32.xlu1 %v6127_v53  ;;  %v6095_v40 = vpop.f32.mrf.mxu1 }
0x1878   : > { %v6112_v58 = vmul.f32 0.35355338, %v6095_v40  ;;  %v6136_v61 = vsel %vm820_vm2, %v6114_v49, -inf }
0x187a   : > { %v6130_v18 = vsel %vm820_vm2, %v6112_v58, -inf }
0x187b   : > { %6134 = vmax.xlane.f32.xlu1 %v6133_v19  ;;  %6131 = vmax.xlane.f32.xlu0 %v6130_v18 }
0x187f   : > { %6137 = vmax.xlane.f32.xlu0 %v6136_v61 }
0x188c   : > { %6213 = vrot.lane.b32.xlu1 %v14330_v51, %s16270_s20 }
0x1890   : > { %6211 = vrot.lane.b32.xlu1 %v14332_v25, %s16270_s20 }
0x18f8   : > { %v6117_v9 = vpop.xlane.xlu0 %6116 }
0x18f9   : > { %v6139_v26 = vsub.f32 %v6107_v33, %v6117_v9 }
0x18fb   : > { %v6147_v17 = vmul.f32 1.442695, %v6139_v26 }
0x18fc   : > { %v6120_v21 = vpop.xlane.xlu1 %6119  ;;  %v6123_v0 = vpop.xlane.xlu0 %6122 }
0x18fd   : > { %v6141_v24 = vsub.f32 %v6109_v59, %v6123_v0  ;;  %v6140_v52 = vsub.f32 %v6108_v11, %v6120_v21 }
0x18ff   : > { %v6151_v7 = vmul.f32 1.442695, %v6141_v24  ;;  %v6149_v19 = vmul.f32 1.442695, %v6140_v52 }
0x1900   : > { %v6129_v15 = vpop.xlane.xlu1 %6128  ;;  %v6126_v39 = vpop.xlane.xlu0 %6125 }
0x1901   : > { %v6142_v53 = vsub.f32 %v6110_v44, %v6126_v39  ;;  %12286 = vpow2.f32 %v6151_v7  ;;  %v6143_v25 = vsub.f32 %v6111_v57, %v6129_v15 }
0x1902   : > { %12288 = vpow2.f32 %v6147_v17 }
0x1903   : > { %v6153_v40 = vmul.f32 1.442695, %v6142_v53  ;;  %v6155_v59 = vmul.f32 1.442695, %v6143_v25  ;;  %v11714_v25 = vpack.i.bf16 %v14735_v60, %v14729_v6 }
0x1904   : > { %v6135_v18 = vpop.xlane.xlu1 %6134  ;;  %v6132_v51 = vpop.xlane.xlu0 %6131 }
0x1905   : > { %v6145_v61 = vsub.f32 %v6113_v50, %v6135_v18  ;;  %12290 = vpow2.f32 %v6153_v40  ;;  %v6144_v21 = vsub.f32 %v6112_v58, %v6132_v51  ;;  %v11704_v51 = vpack.i.bf16 %v14632_v27, %v14626_v42 }
0x1906   : > { %12292 = vpow2.f32 %v6149_v19 }
0x1907   : > { %v6159_v33 = vmul.f32 1.442695, %v6145_v61  ;;  %v6157_v7 = vmul.f32 1.442695, %v6144_v21 }
0x1908   : > { %v6214_v9 = vpop.permute.xlu1 %6213  ;;  %v6138_v43 = vpop.xlane.xlu0 %6137 }
0x1909   : > { %11515 = vmatprep.subr.bf16.mxu0 %v6214_v9  ;;  %12294 = vpow2.f32 %v6159_v33  ;;  %v6146_v11 = vsub.f32 %v6114_v49, %v6138_v43 }
0x190a   : > { %11516 = vmatpush3.bf16.msra.mxu0 %v6214_v9  ;;  %12296 = vpow2.f32 %v6155_v59 }
0x190b   : > { %v6161_v0 = vmul.f32 1.442695, %v6146_v11 }
0x190c   : > { %v6212_v26 = vpop.permute.xlu1 %6211 }
0x190d   : > { %11517 = vmatprep.subr.bf16.mxu0 %v6212_v26  ;;  %12298 = vpow2.f32 %v6161_v0 }
0x190e   : > { %11518 = vmatpush3.bf16.msra.mxu0 %v6212_v26  ;;  %v14759_v44 = vpop.eup %12286  ;;  %12300 = vpow2.f32 %v6157_v7 }
0x190f   : > { %v6169_v50 = vsel %vm820_vm2, %v14759_v44, 0.0  ;;  %v12289_v57 = vpop.eup %12288 }
0x1910   : > { %6170 = vadd.xlane.f32.xlu1 %v6169_v50  ;;  %v6163_v17 = vsel %vm820_vm2, %v12289_v57, 0.0 }
0x1912   : > { %v12291_v24 = vpop.eup %12290 }
0x1913   : > { %v6172_v43 = vsel %vm820_vm2, %v12291_v24, 0.0  ;;  %v12293_v49 = vpop.eup %12292 }
0x1914   : > { %6164 = vadd.xlane.f32.xlu1 %v6163_v17  ;;  %6173 = vadd.xlane.f32.xlu0 %v6172_v43  ;;  %v6166_v52 = vsel %vm820_vm2, %v12293_v49, 0.0 }
0x1916   : > { %v14766_v58 = vpop.eup %12294 }
0x1917   : > { %v6181_v15 = vsel %vm820_vm2, %v14766_v58, 0.0  ;;  %v12297_v39 = vpop.eup %12296 }
0x1918   : > { %6167 = vadd.xlane.f32.xlu0 %v6166_v52  ;;  %v6175_v53 = vsel %vm820_vm2, %v12297_v39, 0.0 }
0x191a   : > { %v12299_v40 = vpop.eup %12298 }
0x191b   : > { %v6184_v19 = vsel %vm820_vm2, %v12299_v40, 0.0  ;;  %v12301_v18 = vpop.eup %12300 }
0x191c   : > { %6182 = vadd.xlane.f32.xlu0 %v6181_v15  ;;  %v6178_v61 = vsel %vm820_vm2, %v12301_v18, 0.0 }
0x1920   : > { %6176 = vadd.xlane.f32.xlu0 %v6175_v53 }
0x1924   : > { %6185 = vadd.xlane.f32.xlu0 %v6184_v19 }
0x1925   : > { %6207 = vrot.lane.b32.xlu1 %v14326_v63, %s16270_s20 }
0x1928   : > { %6179 = vadd.xlane.f32.xlu0 %v6178_v61 }
0x1929   : > { %11705 = vrot.lane.b32.xlu1 %v11704_v51, %s16271_s29 }
0x192d   : > { %11710 = vrot.lane.b32.xlu1 %v11709_v10, %s16271_s29 }
0x1931   : > { %11715 = vrot.lane.b32.xlu1 %v11714_v25, %s16272_s27 }
0x1935   : > { %11720 = vrot.lane.b32.xlu1 %v11719_v36, %s16272_s27 }
0x193e   : > { %6209 = vrot.lane.b32.xlu0 %v14336_v8, %s16270_s20  ;;  %s12354_s20 = sshll.u32 %s12427_s28, 4  ;;  %s12355_s20 = int_to_ptr.vmem [resolvable:$false] %s12354_s20 }
0x193f   : > { %s12356_s17 = scalar_lea.vmem %s12355_s20, 2048 }
0x1999   : > { %v6171_v63 = vpop.xlane.xlu1 %6170 }
0x199d   : > { %v6165_v42 = vpop.xlane.xlu1 %6164  ;;  %v6174_v27 = vpop.xlane.xlu0 %6173 }
0x199e   : > { %12302 = vrcp.f32 %v6165_v42 }
0x19a1   : > { %v6168_v33 = vpop.xlane.xlu0 %6167  ;;  %v6208_v26 = vpop.permute.xlu1 %6207 }
0x19a2   : > { %12304 = vrcp.f32 %v6168_v33 }
0x19a3   : > { %12306 = vrcp.f32 %v6174_v27  ;;  %v11734_v27 = vpack.i.bf16 %v14642_v28, %v14636_v32 }
0x19a4   : > { %12308 = vrcp.f32 %v6171_v63 }
0x19a5   : > { %v6183_v29 = vpop.xlane.xlu0 %6182  ;;  %v11706_v45 = vpop.permute.xlu1 %11705 }
0x19a9   : > { %v6177_v14 = vpop.xlane.xlu0 %6176  ;;  %v11711_v47 = vpop.permute.xlu1 %11710 }
0x19aa   : > { %12310 = vrcp.f32 %v6177_v14  ;;  %v16274_v14 = vpack.i.bf16 %v14741_v31, %v14737_v46 }
0x19ab   : > { %v12303_v10 = vpop.eup %12302 }
0x19ac   : > { %v6188_v3 = vmul.f32 %v12303_v10, %v12289_v57 }
0x19ad   : > { %v6186_v6 = vpop.xlane.xlu0 %6185 }
0x19ae   : > { %12312 = vrcp.f32 %v6186_v6 }
0x19af   : > { %v12305_v60 = vpop.eup %12304  ;;  %12314 = vrcp.f32 %v6183_v29  ;;  %v11744_v29 = vpack.i.bf16 %v14745_v4, %v14739_v13  ;;  %v11707_v13 = vunpack.i.l.bf16 %v11706_v45  ;;  %v11713_v4 = vunpack.i.h.bf16 %v11711_v47 }
0x19b0   : > { %v6190_v41 = vmul.f32 %v12305_v60, %v12293_v49  ;;  %v12307_v9 = vpop.eup %12306  ;;  %v11708_v60 = vunpack.i.h.bf16 %v11706_v45 }
0x19b1   : > { %v6180_v36 = vpop.xlane.xlu0 %6179  ;;  %v12309_v11 = vpop.eup %12308  ;;  %v6194_v21 = vmul.f32 %v12307_v9, %v12291_v24 }
0x19b2   : > { %12316 = vrcp.f32 %v6180_v36  ;;  %v6203_v8 = vpack.c.bf16 %v6190_v41, %v6188_v3  ;;  %v6192_v0 = vmul.f32 %v12309_v11, %v14759_v44  ;;  %v11898_v44 = vld [vmem:[%s16118_s4 + $0x18] sm:$0xff]   ;;  %v11712_v3 = vunpack.i.l.bf16 %v11711_v47 }
0x19b3   : > { %v6393_v11 = vsel %vm722_vm1, %v14614_v2, %v11708_v60 }
0x19b4   : > { %11523 = vmatprep.mubr.msk.bf16.mxu0 %vm820_vm2, %v6203_v8  ;;  %v6204_v57 = vpack.c.bf16 %v6194_v21, %v6192_v0  ;;  %v6395_v21 = vsel %vm722_vm1, %v14612_v20, %v11713_v4  ;;  %v6394_v0 = vsel %vm722_vm1, %v14608_v54, %v11712_v3 }
0x19b5   : > { %v6210_v59 = vpop.permute.xlu0 %6209 }
0x19b6   : > { %11519 = vmatprep.subr.bf16.mxu0 %v6210_v59 }
0x19b7   : > { %11520 = vmatpush3.bf16.msra.mxu0 %v6210_v59  ;;  %v12311_v50 = vpop.eup %12310 }
0x19b8   : > { %11521 = vmatprep.subr.bf16.mxu0 %v6208_v26  ;;  %v6196_v49 = vmul.f32 %v12311_v50, %v12297_v39  ;;  %v11899_v39 = vld [vmem:[%s16118_s4 + $0x10] sm:$0xff]  }
0x19bb   : > { %11522 = vmatpush3.bf16.msra.mxu0 %v6208_v26  ;;  %v12313_v7 = vpop.eup %12312  ;;  %v6392_v26 = vsel %vm722_vm1, %v14610_v55, %v11707_v13 }
0x19bc   : > { %v12315_v17 = vpop.eup %12314  ;;  %v6202_v15 = vmul.f32 %v12313_v7, %v12299_v40  ;;  %11531 = vmatprep.subr.bf16.mxu0 %v11898_v44 }
0x19bd   : > { %v6200_v19 = vmul.f32 %v12315_v17, %v14766_v58 }
0x19be   : > { %11524 = vmatmul.mubr.msk.bf16.vlgmr.msra.gmra.mxu0 %vm820_vm2, %v6204_v57 }
0x19bf   : > { %v12317_v43 = vpop.eup %12316  ;;  %v6206_v24 = vpack.c.bf16 %v6202_v15, %v6200_v19  ;;  %11532 = vmatpush3.bf16.msra.mxu0 %v11898_v44 }
0x19c0   : > { %v6198_v52 = vmul.f32 %v12317_v43, %v12301_v18  ;;  %11533 = vmatprep.subr.bf16.mxu0 %v11899_v39 }
0x19c2   : > { %v6205_v53 = vpack.c.bf16 %v6198_v52, %v6196_v49 }
0x19c3   : > { %11534 = vmatpush3.bf16.msra.mxu0 %v11899_v39 }
0x19c4   : > { %11527 = vmatprep.mubr.msk.bf16.mxu0 %vm820_vm2, %v6205_v53 }
0x19c6   : > { %11528 = vmatmul.mubr.msk.bf16.gmra.mxu0 %vm820_vm2, %v6206_v24 }
0x1a7e   : > { %v11525_v40 = vpop.f32.mrf.mxu0 }
0x1a80   : > { %v6265_v18 = vpop.f32.mrf.mxu0 }
0x1a82   : > { %v11526_v58 = vpop.f32.mrf.mxu0 }
0x1a83   : > { %v11729_v51 = vpack.i.bf16 %v11526_v58, %v11525_v40 }
0x1a84   : > { %v6268_v61 = vpop.f32.mrf.mxu0 }
0x1a85   : > { %v11724_v25 = vpack.i.bf16 %v6268_v61, %v6265_v18  ;;  %11730 = vrot.lane.b32.xlu1 %v11729_v51, %s16273_s23 }
0x1a86   : > { %v11529_v63 = vpop.f32.mrf.mxu0 }
0x1a87   : > { %11725 = vrot.lane.b32.xlu0 %v11724_v25, %s16273_s23 }
0x1a88   : > { %v6281_v42 = vpop.f32.mrf.mxu0 }
0x1a89   : > { %11740 = vrot.lane.b32.xlu1 %v11739_v22, %s16271_s29  ;;  %v11716_v22 = vpop.permute.xlu1 %11715 }
0x1a8a   : > { %v11530_v33 = vpop.f32.mrf.mxu0  ;;  %v11718_v31 = vunpack.i.h.bf16 %v11716_v22  ;;  %v11717_v36 = vunpack.i.l.bf16 %v11716_v22 }
0x1a8b   : > { %11735 = vrot.lane.b32.xlu0 %v11734_v27, %s16271_s29  ;;  %v11759_v6 = vpack.i.bf16 %v11530_v33, %v11529_v63 }
0x1a8c   : > { %v6284_v10 = vpop.f32.mrf.mxu0  ;;  %v6400_v49 = vsel %vm1988_vm3, %v6392_v26, %v11717_v36  ;;  %v6401_v2 = vsel %vm1988_vm3, %v6393_v11, %v11718_v31  ;;  %v9928_v31 = vld [vmem:[%s16119_s5 + $0x1] ss:$0 sm:$0xff] }
0x1a8d   : > { %11750 = vrot.lane.b32.xlu1 %v16274_v14, %s16272_s27  ;;  %v11754_v32 = vpack.i.bf16 %v6284_v10, %v6281_v42  ;;  %v11721_v28 = vpop.permute.xlu1 %11720 }
0x1a8e   : > { %v11723_v41 = vunpack.i.h.bf16 %v11721_v28  ;;  %v11722_v46 = vunpack.i.l.bf16 %v11721_v28 }
0x1a8f   : > { %11745 = vrot.lane.b32.xlu0 %v11744_v29, %s16272_s27 }
0x1a90   : > { %v6402_v57 = vsel %vm1988_vm3, %v6394_v0, %v11722_v46  ;;  %v6403_v7 = vsel %vm1988_vm3, %v6395_v21, %v11723_v41 }
0x1a91   : > { %11760 = vrot.lane.b32.xlu1 %v11759_v6, %s16273_s23 }
0x1a93   : > { %11755 = vrot.lane.b32.xlu0 %v11754_v32, %s16273_s23  ;;  %s512_s23 = sand.u32 1, %s12402_s22  }
0x1a94   : > { %s9625_s30 = sshll.u32 %s512_s23, 6  ;;  %s16073_s25 = scalar_lea.sflag [#allocation3], %s512_s23 }
0x1a95   : > { %s514_s27 = scalar_lea.vmem [#allocation2], %s9625_s30 }
0x1a96   : > { %s9559_s19 = sshll.u32 %s514_s27, 4  ;;  %s16068_s19 = int_to_ptr.vmem [resolvable:$true] %s9559_s19 }
0x1a97   : > { %s12350_s30 = scalar_lea.vmem %s16068_s19, 1024  ;;  %p12357_p0 = scmp.lt.s32.totalorder %s16068_s19, %s12355_s20 }
0x1a98   : > { %p12351_p11 = scmp.ne.s32.totalorder %s16068_s19, %s12350_s30  ;;  %p12358_p1 = scmp.lt.s32.totalorder %s12356_s17, %s12350_s30 }
0x1a9a   : > { %p12352_p12 = pnand %p12351_p11, %p12552_p5  ;;  %p12359_p2 = por %p12358_p1, %p12357_p0 }
0x1a9c   : > { %p12353_p13 = pneg %p12352_p12 }
0x1a9e   : > { %p12360_p3 = pnand %p12359_p2, %p12353_p13 }
0x1af7   : > { %v11731_v8 = vpop.permute.xlu1 %11730 }
0x1af8   : > { %v11733_v9 = vunpack.i.h.bf16 %v11731_v8  ;;  %v11732_v59 = vunpack.i.l.bf16 %v11731_v8 }
0x1af9   : > { %v11726_v50 = vpop.permute.xlu0 %11725 }
0x1afa   : > { %v11728_v17 = vunpack.i.h.bf16 %v11726_v50  ;;  %v11727_v43 = vunpack.i.l.bf16 %v11726_v50  ;;  %v6411_v52 = vsel %vm1997_vm4, %v6403_v7, %v11733_v9  ;;  %v6410_v55 = vsel %vm1997_vm4, %v6402_v57, %v11732_v59 }
0x1afb   : > { %v11741_v15 = vpop.permute.xlu1 %11740  ;;  %v6417_v24 = vpack.c.bf16 %v6411_v52, %v6410_v55 }
0x1afc   : > { %v6409_v20 = vsel %vm1997_vm4, %v6401_v2, %v11728_v17  ;;  %v6408_v54 = vsel %vm1997_vm4, %v6400_v49, %v11727_v43  ;;  %v11743_v39 = vunpack.i.h.bf16 %v11741_v15  ;;  %v11742_v40 = vunpack.i.l.bf16 %v11741_v15 }
0x1afd   : > { %v6416_v53 = vpack.c.bf16 %v6409_v20, %v6408_v54  ;;  %v11736_v19 = vpop.permute.xlu0 %11735 }
0x1afe   : > { %v11738_v18 = vunpack.i.h.bf16 %v11736_v19  ;;  %v11737_v58 = vunpack.i.l.bf16 %v11736_v19  ;;  %v6399_v14 = vsel %vm722_vm1, %v14620_v1, %v11743_v39  ;;  %v6398_v10 = vsel %vm722_vm1, %v14616_v37, %v11742_v40 }
0x1aff   : > { %v11751_v44 = vpop.permute.xlu1 %11750  ;;  %11535 = vmatprep.mubr.msk.bf16.mxu0 %vm628_vm0, %v6416_v53 }
0x1b00   : > { %11536 = vmatmul.mubr.msk.bf16.vlgmr.msra.gmra.mxu0 %vm628_vm0, %v6417_v24  ;;  %v11753_v61 = vunpack.i.h.bf16 %v11751_v44  ;;  %v11752_v25 = vunpack.i.l.bf16 %v11751_v44  ;;  %v6397_v6 = vsel %vm722_vm1, %v14622_v38, %v11738_v18  ;;  %v6396_v32 = vsel %vm722_vm1, %v14618_v48, %v11737_v58 }
0x1b01   : > { %v11746_v51 = vpop.permute.xlu0 %11745 }
0x1b02   : > { %v11748_v63 = vunpack.i.h.bf16 %v11746_v51  ;;  %v11747_v42 = vunpack.i.l.bf16 %v11746_v51  ;;  %v6406_v47 = vsel %vm1988_vm3, %v6398_v10, %v11752_v25  ;;  %v6407_v22 = vsel %vm1988_vm3, %v6399_v14, %v11753_v61 }
0x1b03   : > { %v11761_v27 = vpop.permute.xlu1 %11760 }
0x1b04   : > { %v11763_v33 = vunpack.i.h.bf16 %v11761_v27  ;;  %v11762_v29 = vunpack.i.l.bf16 %v11761_v27  ;;  %v6404_v13 = vsel %vm1988_vm3, %v6396_v32, %v11747_v42  ;;  %v6405_v1 = vsel %vm1988_vm3, %v6397_v6, %v11748_v63 }
0x1b05   : > { %v11756_v45 = vpop.permute.xlu0 %11755 }
0x1b06   : > { %v11758_v28 = vunpack.i.h.bf16 %v11756_v45  ;;  %v11757_v60 = vunpack.i.l.bf16 %v11756_v45  ;;  %v6415_v4 = vsel %vm1997_vm4, %v6407_v22, %v11763_v33  ;;  %v6414_v37 = vsel %vm1997_vm4, %v6406_v47, %v11762_v29 }
0x1b07   : > { %v6419_v41 = vpack.c.bf16 %v6415_v4, %v6414_v37 }
0x1b08   : > { %v6413_v38 = vsel %vm1997_vm4, %v6405_v1, %v11758_v28  ;;  %v6412_v3 = vsel %vm1997_vm4, %v6404_v13, %v11757_v60 }
0x1b09   : > { %v6418_v48 = vpack.c.bf16 %v6413_v38, %v6412_v3 }
0x1b0b   : > { %11539 = vmatprep.mubr.msk.bf16.mxu0 %vm628_vm0, %v6418_v48 }
0x1b0c   : > { %11540 = vmatmul.mubr.msk.bf16.gmra.mxu0 %vm628_vm0, %v6419_v41 }
0x1b0d   : > { %7065 = vmatprep.mubr.bf16.mxu0 %v16269_v30 }
0x1bc0   : > { %v11537_v46 = vpop.f32.mrf.mxu0 }
0x1bc1   : > { %v6500_v8 = vadd.f32 %v11537_v46, %v9928_v31 }
0x1bc2   : > { %v6491_v36 = vpop.f32.mrf.mxu0 }
0x1bc3   : > { %v6492_v9 = vadd.f32 %v9928_v31, %v6491_v36  ;;  %v6524_v21 = vadd.f32 %v6500_v8, %v14298_v34 }
0x1bc4   : > { %v11538_v59 = vpop.f32.mrf.mxu0 }
0x1bc5   : > { %v6522_v11 = vadd.f32 %v6492_v9, %v14290_v12  ;;  %v6503_v0 = vadd.f32 %v11538_v59, %v9928_v31  ;;  %v6540_v49 = vsel %vm628_vm0, %v6524_v21, 0.0 }
0x1bc6   : > { %v6494_v26 = vpop.f32.mrf.mxu0 }
0x1bc7   : > { %v6495_v50 = vadd.f32 %v9928_v31, %v6494_v26  ;;  %v6534_v57 = vsel %vm628_vm0, %v6522_v11, 0.0  ;;  %v6525_v17 = vadd.f32 %v6503_v0, %v14300_v16 }
0x1bc8   : > { %6535 = vadd.xlane.f32.xlu0 %v6534_v57  ;;  %v9963_v57 = vld [vmem:[%s16122_s8 + $0x1c0] sm:$0xff] }
0x1bc9   : > { %v6523_v7 = vadd.f32 %v6495_v50, %v14292_v35  ;;  %v6543_v34 = vsel %vm628_vm0, %v6525_v17, 0.0  ;;  %v9955_v50 = vld [vmem:[%s16122_s8 + $0x180] sm:$0xff] }
0x1bcb   : > { %v6537_v43 = vsel %vm628_vm0, %v6523_v7, 0.0 }
0x1bcc   : > { %v11541_v2 = vpop.f32.mrf.mxu0  ;;  %6538 = vadd.xlane.f32.xlu1 %v6537_v43  ;;  %6541 = vadd.xlane.f32.xlu0 %v6540_v49  ;;  %v9964_v43 = vld [vmem:[%s16122_s8 + $0x1c8] sm:$0xff]  ;;  %v9989_v49 = vcombine.low %v9955_v50, %v9963_v57 }
0x1bcd   : > { %v6516_v52 = vadd.f32 %v11541_v2, %v9928_v31 }
0x1bce   : > { %v6507_v12 = vpop.f32.mrf.mxu0 }
0x1bcf   : > { %v6508_v55 = vadd.f32 %v9928_v31, %v6507_v12  ;;  %v6528_v35 = vadd.f32 %v6516_v52, %v14316_v56  ;;  %v9939_v52 = vld [vmem:[%s16122_s8 + $0x100] sm:$0xff] }
0x1bd0   : > { %v11542_v15 = vpop.f32.mrf.mxu0  ;;  %6544 = vadd.xlane.f32.xlu0 %v6543_v34  ;;  %v9940_v34 = vld [vmem:[%s16122_s8 + $0x108] sm:$0xff] }
0x1bd1   : > { %v6526_v20 = vadd.f32 %v6508_v55, %v14308_v5  ;;  %v6519_v16 = vadd.f32 %v11542_v15, %v9928_v31  ;;  %v6552_v39 = vsel %vm628_vm0, %v6528_v35, 0.0  ;;  %v9947_v55 = vld [vmem:[%s16122_s8 + $0x140] sm:$0xff] }
0x1bd2   : > { %v6510_v54 = vpop.f32.mrf.mxu0  ;;  %v9974_v15 = vcombine.high %v9939_v52, %v9947_v55 }
0x1bd3   : > { %v6511_v53 = vadd.f32 %v9928_v31, %v6510_v54  ;;  %v6546_v19 = vsel %vm628_vm0, %v6526_v20, 0.0  ;;  %v6529_v44 = vadd.f32 %v6519_v16, %v14318_v23  ;;  %v9973_v54 = vcombine.low %v9939_v52, %v9947_v55  ;;  %v15011_v55 = vld [vmem:[%s16122_s8 + $0x1a0] sm:$0xff] }
0x1bd4   : > { %6547 = vadd.xlane.f32.xlu1 %v6546_v19  ;;  %v14949_v19 = vld [vmem:[%s16122_s8 + $0x1d0] sm:$0xff] }
0x1bd5   : > { %v6527_v24 = vadd.f32 %v6511_v53, %v14310_v62  ;;  %v6555_v5 = vsel %vm628_vm0, %v6529_v44, 0.0  ;;  %v14944_v53 = vld [vmem:[%s16122_s8 + $0x190] sm:$0xff] }
0x1bd7   : > { %v6549_v40 = vsel %vm628_vm0, %v6527_v24, 0.0 }
0x1bd8   : > { %6553 = vadd.xlane.f32.xlu1 %v6552_v39  ;;  %6550 = vadd.xlane.f32.xlu0 %v6549_v40  ;;  %v9994_v39 = vcombine.high %v14944_v53, %v14949_v19  ;;  %v14963_v40 = vld [vmem:[%s16122_s8 + $0x1d8] sm:$0xff] }
0x1bdc   : > { %6556 = vadd.xlane.f32.xlu0 %v6555_v5 }
0x1c51   : > { %v6536_v18 = vpop.xlane.xlu0 %6535 }
0x1c52   : > { %v6558_v56 = vmul.f32 0.03125, %v6536_v18 }
0x1c54   : > { %v14877_v58 = vsub.f32 %v6522_v11, %v6558_v56 }
0x1c55   : > { %v6539_v51 = vpop.xlane.xlu1 %6538  ;;  %v6542_v61 = vpop.xlane.xlu0 %6541 }
0x1c56   : > { %v6559_v25 = vmul.f32 0.03125, %v6539_v51  ;;  %v6560_v63 = vmul.f32 0.03125, %v6542_v61  ;;  %v6574_v62 = vmul.f32 %v14877_v58, %v14877_v58 }
0x1c58   : > { %v14881_v23 = vsub.f32 %v6523_v7, %v6559_v25  ;;  %v14883_v42 = vsub.f32 %v6524_v21, %v6560_v63  ;;  %v6582_v27 = vsel %vm628_vm0, %v6574_v62, 0.0  ;;  %v9956_v7 = vld [vmem:[%s16122_s8 + $0x188] sm:$0xff] }
0x1c59   : > { %6583 = vadd.xlane.f32.xlu1 %v6582_v27  ;;  %v6545_v33 = vpop.xlane.xlu0 %6544  ;;  %v9991_v2 = vcombine.low %v9956_v7, %v9964_v43  ;;  %v9992_v12 = vcombine.high %v9956_v7, %v9964_v43 }
0x1c5a   : > { %v6561_v29 = vmul.f32 0.03125, %v6545_v33  ;;  %v6575_v14 = vmul.f32 %v14881_v23, %v14881_v23  ;;  %v6576_v10 = vmul.f32 %v14883_v42, %v14883_v42 }
0x1c5b   : > { %7045 = vmatprep.subr.bf16.mxu0 %v9992_v12  ;;  %v9950_v12 = vld [vmem:[%s16122_s8 + $0x158] sm:$0xff] }
0x1c5c   : > { %v14890_v6 = vsub.f32 %v6525_v17, %v6561_v29  ;;  %v6585_v32 = vsel %vm628_vm0, %v6575_v14, 0.0  ;;  %v6588_v45 = vsel %vm628_vm0, %v6576_v10, 0.0  ;;  %v9990_v17 = vcombine.high %v9955_v50, %v9963_v57  ;;  %7046 = vmatpush1.bf16.msra.mxu0 %v9991_v2  ;;  %v9949_v2 = vld [vmem:[%s16122_s8 + $0x150] sm:$0xff] }
0x1c5d   : > { %v6548_v47 = vpop.xlane.xlu1 %6547  ;;  %6586 = vadd.xlane.f32.xlu0 %v6585_v32  ;;  %6589 = vadd.xlane.f32.xlu1 %v6588_v45 }
0x1c5e   : > { %v6562_v22 = vmul.f32 0.03125, %v6548_v47  ;;  %v6577_v28 = vmul.f32 %v14890_v6, %v14890_v6  ;;  %6972 = vmatprep.subr.bf16.mxu1 %v9990_v17  ;;  %v9941_v17 = vld [vmem:[%s16122_s8 + $0x110] sm:$0xff] }
0x1c5f   : > { %6973 = vmatpush1.bf16.msra.mxu1 %v9989_v49 }
0x1c60   : > { %v14896_v60 = vsub.f32 %v6526_v20, %v6562_v22  ;;  %v6591_v13 = vsel %vm628_vm0, %v6577_v28, 0.0  ;;  %v9948_v20 = vld [vmem:[%s16122_s8 + $0x148] sm:$0xff]  ;;  %6974 = vmatprep.subr.bf16.mxu1 %v9974_v15 }
0x1c61   : > { %v6554_v1 = vpop.xlane.xlu1 %6553  ;;  %6592 = vadd.xlane.f32.xlu0 %v6591_v13  ;;  %v6551_v4 = vpop.xlane.xlu0 %6550  ;;  %v9976_v16 = vcombine.high %v9940_v34, %v9948_v20 }
0x1c62   : > { %v6564_v37 = vmul.f32 0.03125, %v6554_v1  ;;  %v6563_v38 = vmul.f32 0.03125, %v6551_v4  ;;  %v6578_v3 = vmul.f32 %v14896_v60, %v14896_v60 }
0x1c63   : > { %6975 = vmatpush1.bf16.msra.mxu1 %v9973_v54  ;;  %7047 = vmatprep.subr.bf16.mxu0 %v9976_v16  ;;  %v15021_v54 = vld [vmem:[%s16122_s8 + $0x1a8] sm:$0xff] }
0x1c64   : > { %v14901_v48 = vsub.f32 %v6528_v35, %v6564_v37  ;;  %v14903_v41 = vsub.f32 %v6527_v24, %v6563_v38  ;;  %v6594_v46 = vsel %vm628_vm0, %v6578_v3, 0.0  ;;  %v9975_v35 = vcombine.low %v9940_v34, %v9948_v20  ;;  %v14954_v24 = vld [vmem:[%s16122_s8 + $0x198] sm:$0xff]  ;;  %7118 = vmatprep.subr.bf16.mxu1 %v9994_v39  ;;  %v15016_v20 = vld [vmem:[%s16122_s8 + $0x1e0] sm:$0xff] }
0x1c65   : > { %6595 = vadd.xlane.f32.xlu1 %v6594_v46  ;;  %v6557_v31 = vpop.xlane.xlu0 %6556  ;;  %v9995_v5 = vcombine.low %v14954_v24, %v14963_v40  ;;  %v9996_v18 = vcombine.high %v14954_v24, %v14963_v40  ;;  %v9978_v34 = vcombine.high %v9941_v17, %v9949_v2 }
0x1c66   : > { %v6565_v36 = vmul.f32 0.03125, %v6557_v31  ;;  %v6580_v8 = vmul.f32 %v14901_v48, %v14901_v48  ;;  %v6579_v9 = vmul.f32 %v14903_v41, %v14903_v41  ;;  %7048 = vmatpush1.bf16.msra.mxu0 %v9975_v35  ;;  %v14973_v31 = vld [vmem:[%s16120_s6 + $0x1] ss:$0 sm:$0xff]  ;;  %v15026_v35 = vld [vmem:[%s16122_s8 + $0x1e8] sm:$0xff] }
0x1c67   : > { %7191 = vmatprep.subr.bf16.mxu0 %v9996_v18  ;;  %v9977_v18 = vcombine.low %v9941_v17, %v9949_v2 }
0x1c68   : > { %v14910_v59 = vsub.f32 %v6529_v44, %v6565_v36  ;;  %v6600_v11 = vsel %vm628_vm0, %v6580_v8, 0.0  ;;  %v6597_v26 = vsel %vm628_vm0, %v6579_v9, 0.0  ;;  %v9993_v44 = vcombine.low %v14944_v53, %v14949_v19 }
0x1c69   : > { %6601 = vadd.xlane.f32.xlu1 %v6600_v11  ;;  %6598 = vadd.xlane.f32.xlu0 %v6597_v26  ;;  %v10000_v53 = vcombine.high %v15021_v54, %v15026_v35 }
0x1c6a   : > { %v6581_v21 = vmul.f32 %v14910_v59, %v14910_v59 }
0x1c6c   : > { %v6603_v0 = vsel %vm628_vm0, %v6581_v21, 0.0 }
0x1c6d   : > { %6604 = vadd.xlane.f32.xlu0 %v6603_v0 }
0x1ce2   : > { %v6584_v56 = vpop.xlane.xlu1 %6583 }
0x1ce3   : > { %v6606_v51 = vmul.f32 0.03125, %v6584_v56 }
0x1ce5   : > { %v6614_v61 = vadd.f32 1e-05, %v6606_v51 }
0x1ce6   : > { %v6590_v25 = vpop.xlane.xlu1 %6589  ;;  %v6587_v63 = vpop.xlane.xlu0 %6586 }
0x1ce7   : > { %12318 = vrsqrt.f32 %v6614_v61  ;;  %v6608_v62 = vmul.f32 0.03125, %v6590_v25  ;;  %v6607_v27 = vmul.f32 0.03125, %v6587_v63  ;;  %v9998_v61 = vcombine.high %v15011_v55, %v15016_v20 }
0x1ce9   : > { %v6615_v33 = vadd.f32 1e-05, %v6607_v27  ;;  %v6616_v29 = vadd.f32 1e-05, %v6608_v62 }
0x1cea   : > { %v6593_v14 = vpop.xlane.xlu0 %6592 }
0x1ceb   : > { %v6609_v10 = vmul.f32 0.03125, %v6593_v14  ;;  %12320 = vrsqrt.f32 %v6615_v33 }
0x1cec   : > { %12322 = vrsqrt.f32 %v6616_v29 }
0x1ced   : > { %v6617_v32 = vadd.f32 1e-05, %v6609_v10 }
0x1cee   : > { %v6596_v45 = vpop.xlane.xlu1 %6595 }
0x1cef   : > { %12324 = vrsqrt.f32 %v6617_v32  ;;  %v6610_v47 = vmul.f32 0.03125, %v6596_v45 }
0x1cf1   : > { %v6618_v22 = vadd.f32 1e-05, %v6610_v47  ;;  %v9943_v47 = vld [vmem:[%s16122_s8 + $0x120] sm:$0xff] }
0x1cf2   : > { %v6599_v28 = vpop.xlane.xlu0 %6598  ;;  %v6602_v13 = vpop.xlane.xlu1 %6601 }
0x1cf3   : > { %v6611_v1 = vmul.f32 0.03125, %v6599_v28  ;;  %12326 = vrsqrt.f32 %v6618_v22  ;;  %v6612_v3 = vmul.f32 0.03125, %v6602_v13  ;;  %v9951_v22 = vld [vmem:[%s16122_s8 + $0x160] sm:$0xff]  ;;  %v9944_v28 = vld [vmem:[%s16122_s8 + $0x128] sm:$0xff] }
0x1cf4   : > { %v12319_v4 = vpop.eup %12318  ;;  %v9952_v13 = vld [vmem:[%s16122_s8 + $0x168] sm:$0xff] }
0x1cf5   : > { %v6619_v37 = vadd.f32 1e-05, %v6611_v1  ;;  %v6630_v38 = vmul.f32 %v12319_v4, %v14877_v58  ;;  %v6620_v21 = vadd.f32 1e-05, %v6612_v3  ;;  %v14980_v58 = vld [vmem:[%s16121_s7 + $0x1] ss:$0 sm:$0xff]  ;;  %v9997_v1 = vcombine.low %v15011_v55, %v15016_v20 }
0x1cf6   : > { %v6605_v46 = vpop.xlane.xlu0 %6604  ;;  %v9999_v4 = vcombine.low %v15021_v54, %v15026_v35  ;;  %v9984_v3 = vcombine.high %v9944_v28, %v9952_v13  ;;  %v11902_v55 = vld [vmem:[%s16124_s10 + $0x438] sm:$0xff]   ;;  %v11905_v20 = vld [vmem:[%s16124_s10 + $0x4f0] sm:$0xff]  }
0x1cf7   : > { %v6613_v36 = vmul.f32 0.03125, %v6605_v46  ;;  %12328 = vrsqrt.f32 %v6619_v37  ;;  %v6644_v11 = vmul.f32 %v14973_v31, %v6630_v38  ;;  %v9961_v37 = vld [vmem:[%s16122_s8 + $0x1b0] sm:$0xff]  ;;  %v9982_v38 = vcombine.high %v9943_v47, %v9951_v22 }
0x1cf8   : > { %v12321_v8 = vpop.eup %12320  ;;  %v9969_v46 = vld [vmem:[%s16122_s8 + $0x1f0] sm:$0xff] }
0x1cf9   : > { %v6621_v9 = vadd.f32 1e-05, %v6613_v36  ;;  %v6631_v26 = vmul.f32 %v12321_v8, %v14881_v23  ;;  %v12323_v0 = vpop.eup %12322  ;;  %v14988_v43 = vadd.f32 %v14980_v58, %v6644_v11  ;;  %v9970_v36 = vld [vmem:[%s16122_s8 + $0x1f8] sm:$0xff]  ;;  %v9981_v8 = vcombine.low %v9943_v47, %v9951_v22  ;;  %v11906_v54 = vld [vmem:[%s16124_s10 + $0x430] sm:$0xff]   ;;  %v11929_v47 = vld [vmem:[%s16124_s10 + $0x4c0] sm:$0xff]  }
0x1cfa   : > { %v6632_v23 = vmul.f32 %v12323_v0, %v14883_v42  ;;  %v10002_v11 = vcombine.high %v9961_v37, %v9969_v46  ;;  %v9953_v0 = vld [vmem:[%s16122_s8 + $0x170] sm:$0xff]  ;;  %v11930_v22 = vld [vmem:[%s16124_s10 + $0x400] sm:$0xff]  }
0x1cfb   : > { %v6645_v57 = vmul.f32 %v14973_v31, %v6631_v26  ;;  %12330 = vrsqrt.f32 %v6621_v9  ;;  %v9983_v9 = vcombine.low %v9944_v28, %v9952_v13  ;;  %v11907_v35 = vld [vmem:[%s16124_s10 + $0x4b0] sm:$0xff]   ;;  %v11931_v28 = vld [vmem:[%s16124_s10 + $0x480] sm:$0xff]   ;;  %v11932_v13 = vld [vmem:[%s16124_s10 + $0x578] sm:$0xff]  }
0x1cfc   : > { %v12325_v50 = vpop.eup %12324  ;;  %12332 = vrsqrt.f32 %v6620_v21  ;;  %v6646_v16 = vmul.f32 %v14973_v31, %v6632_v23  ;;  %v9945_v21 = vld [vmem:[%s16122_s8 + $0x130] sm:$0xff] }
0x1cfd   : > { %v6633_v7 = vmul.f32 %v12325_v50, %v14890_v6  ;;  %v14992_v49 = vadd.f32 %v14980_v58, %v6645_v57  ;;  %v9942_v6 = vld [vmem:[%s16122_s8 + $0x118] sm:$0xff]  ;;  %v10001_v57 = vcombine.low %v9961_v37, %v9969_v46  ;;  %v9986_v17 = vcombine.high %v9945_v21, %v9953_v0 }
0x1cfe   : > { %v9980_v15 = vcombine.high %v9942_v6, %v9950_v12  ;;  %v9979_v56 = vcombine.low %v9942_v6, %v9950_v12  ;;  %v15049_v24 = vadd.f32 %v14980_v58, %v6646_v16  ;;  %v9954_v50 = vld [vmem:[%s16122_s8 + $0x178] sm:$0xff]  ;;  %v9985_v2 = vcombine.low %v9945_v21, %v9953_v0  ;;  %v11909_v16 = vld [vmem:[%s16124_s10 + $0x4e8] sm:$0xff]  }
0x1cff   : > { %v15005_v52 = vpack.c.bf16 %v14992_v49, %v14988_v43  ;;  %v6647_v42 = vmul.f32 %v14973_v31, %v6633_v7  ;;  %v11900_v12 = vld [vmem:[%s16124_s10 + $0x478] sm:$0xff]  }
0x1d00   : > { %v12327_v39 = vpop.eup %12326  ;;  %16276 = vst [vmem:[#allocation35_spill] sm:$0xff] %v15049_v24  ;;  %v16282_v46 = vld [vmem:[#allocation16_spill] sm:$0xff] }
0x1d01   : > { %10005 = vmatmul.mubr.msk.bf16.vlgmr.msra.gmra.mxu1 %vm628_vm0, %v15005_v52  ;;  %10009 = vmatmul.mubr.msk.bf16.vlgmr.msra.gmra.mxu0 %vm628_vm0, %v15005_v52  ;;  %v15040_v51 = vadd.f32 %v14980_v58, %v6647_v42  ;;  %v11901_v42 = vld [vmem:[%s16124_s10 + $0x4f8] sm:$0xff]  }
0x1d02   : > { %7119 = vmatpush1.bf16.msra.mxu1 %v9993_v44  ;;  %7192 = vmatpush1.bf16.msra.mxu0 %v9995_v5  ;;  %v6634_v44 = vmul.f32 %v12327_v39, %v14896_v60  ;;  %v11910_v39 = vld [vmem:[%s16124_s10 + $0x428] sm:$0xff]  }
0x1d03   : > { %16275 = vst [vmem:[#allocation25_spill] sm:$0xff] %v15040_v51  ;;  %7002 = vmatprep.mubr.bf16.mxu1 %v16269_v30  ;;  %7075 = vmatprep.mubr.bf16.mxu0 %v16269_v30  ;;  %v15055_v5 = vpack.c.bf16 %v15040_v51, %v15049_v24 }
0x1d04   : > { %v12329_v19 = vpop.eup %12328  ;;  %7120 = vmatprep.subr.bf16.mxu1 %v9978_v34  ;;  %7193 = vmatprep.subr.bf16.mxu0 %v9980_v15  ;;  %v6648_v62 = vmul.f32 %v14973_v31, %v6634_v44  ;;  %v11903_v34 = vld [vmem:[%s16124_s10 + $0x4b8] sm:$0xff]   ;;  %v11904_v15 = vld [vmem:[%s16124_s10 + $0x470] sm:$0xff]  }
0x1d05   : > { %v6635_v40 = vmul.f32 %v12329_v19, %v14903_v41  ;;  %v11915_v19 = vld [vmem:[%s16124_s10 + $0x4a0] sm:$0xff]   ;;  %v11916_v44 = vld [vmem:[%s16124_s10 + $0x458] sm:$0xff]  }
0x1d06   : > { %7121 = vmatpush1.bf16.msra.mxu1 %v9977_v18  ;;  %7194 = vmatpush1.bf16.msra.mxu0 %v9979_v56  ;;  %v15070_v33 = vadd.f32 %v14980_v58, %v6648_v62  ;;  %v11911_v18 = vld [vmem:[%s16124_s10 + $0x4a8] sm:$0xff]   ;;  %v11912_v56 = vld [vmem:[%s16124_s10 + $0x460] sm:$0xff]   ;;  %v11921_v62 = vld [vmem:[%s16124_s10 + $0x4d0] sm:$0xff]  }
0x1d07   : > { %v6649_v25 = vmul.f32 %v14973_v31, %v6635_v40  ;;  %7264 = vmatprep.subr.bf16.mxu1 %v9998_v61  ;;  %7337 = vmatprep.subr.bf16.mxu0 %v10000_v53  ;;  %v11913_v61 = vld [vmem:[%s16124_s10 + $0x4e0] sm:$0xff]   ;;  %v11917_v40 = vld [vmem:[%s16124_s10 + $0x4d8] sm:$0xff]  }
0x1d08   : > { %v12331_v63 = vpop.eup %12330  ;;  %16278 = vst [vmem:[#allocation28_spill] sm:$0xff] %v15070_v33  ;;  %v11914_v53 = vld [vmem:[%s16124_s10 + $0x420] sm:$0xff]  }
0x1d09   : > { %10006 = vmatmul.mubr.msk.bf16.gmra.mxu1 %vm628_vm0, %v15055_v5  ;;  %10010 = vmatmul.mubr.msk.bf16.gmra.mxu0 %vm628_vm0, %v15055_v5  ;;  %v12333_v60 = vpop.eup %12332  ;;  %v15066_v41 = vadd.f32 %v14980_v58, %v6649_v25  ;;  %v6637_v27 = vmul.f32 %v12331_v63, %v14910_v59  ;;  %v11919_v25 = vld [vmem:[%s16124_s10 + $0x498] sm:$0xff]   ;;  %v11920_v63 = vld [vmem:[%s16124_s10 + $0x450] sm:$0xff]  }
0x1d0a   : > { %7012 = vmatprep.mubr.bf16.mxu1 %v16269_v30  ;;  %7085 = vmatprep.mubr.bf16.mxu0 %v16269_v30  ;;  %v6636_v29 = vmul.f32 %v12333_v60, %v14901_v48  ;;  %v11922_v60 = vld [vmem:[%s16124_s10 + $0x410] sm:$0xff]  }
0x1d0b   : > { %16277 = vst [vmem:[#allocation23_spill] sm:$0xff] %v15066_v41  ;;  %v15075_v14 = vpack.c.bf16 %v15066_v41, %v15070_v33  ;;  %v6651_v10 = vmul.f32 %v14973_v31, %v6637_v27  ;;  %v11923_v27 = vld [vmem:[%s16124_s10 + $0x490] sm:$0xff]  }
0x1d0c   : > { %v6650_v32 = vmul.f32 %v14973_v31, %v6636_v29  ;;  %v9962_v31 = vld [vmem:[%s16122_s8 + $0x1b8] sm:$0xff]  ;;  %v11924_v29 = vld [vmem:[%s16124_s10 + $0x448] sm:$0xff]  }
0x1d0d   : > { %v15086_v48 = vadd.f32 %v14980_v58, %v6651_v10  ;;  %v10004_v26 = vcombine.high %v9962_v31, %v9970_v36  ;;  %v10003_v7 = vcombine.low %v9962_v31, %v9970_v36  ;;  %v11927_v10 = vld [vmem:[%s16124_s10 + $0x488] sm:$0xff]   ;;  %v16283_v36 = vld [vmem:[#allocation17_spill] sm:$0xff] }
0x1d0e   : > { %v15089_v59 = vadd.f32 %v14980_v58, %v6650_v32  ;;  %v9946_v58 = vld [vmem:[%s16122_s8 + $0x138] sm:$0xff]  ;;  %v11928_v32 = vld [vmem:[%s16124_s10 + $0x440] sm:$0xff]  }
0x1d0f   : > { %16279 = vst [vmem:[#allocation30_spill] sm:$0xff] %v15086_v48  ;;  %v9988_v23 = vcombine.high %v9946_v58, %v9954_v50  ;;  %v9987_v6 = vcombine.low %v9946_v58, %v9954_v50 }
0x1d10   : > { %16280 = vst [vmem:[#allocation32_spill] sm:$0xff] %v15089_v59  ;;  %v15093_v45 = vpack.c.bf16 %v15086_v48, %v15089_v59 }
0x1d11   : > { %10007 = vmatmul.mubr.msk.bf16.gmra.mxu1 %vm628_vm0, %v15075_v14  ;;  %10011 = vmatmul.mubr.msk.bf16.gmra.mxu0 %vm628_vm0, %v15075_v14 }
0x1d12   : > { %7022 = vmatprep.mubr.bf16.mxu1 %v16269_v30  ;;  %7095 = vmatprep.mubr.bf16.mxu0 %v16269_v30 }
0x1d19   : > { %10008 = vmatmul.mubr.msk.bf16.gmra.mxu1 %vm628_vm0, %v15093_v45  ;;  %10012 = vmatmul.mubr.msk.bf16.gmra.mxu0 %vm628_vm0, %v15093_v45 }
0x1d1a   : > { %7138 = vmatprep.mubr.bf16.mxu1 %v16269_v30  ;;  %7211 = vmatprep.mubr.bf16.mxu0 %v16269_v30 }
0x1d21   : > { %10013 = vmatmul.mubr.msk.bf16.vlgmr.msra.gmra.mxu1 %vm628_vm0, %v15005_v52  ;;  %10017 = vmatmul.mubr.msk.bf16.vlgmr.msra.gmra.mxu0 %vm628_vm0, %v15005_v52 }
0x1d22   : > { %7265 = vmatpush1.bf16.msra.mxu1 %v9997_v1  ;;  %7338 = vmatpush1.bf16.msra.mxu0 %v9999_v4  ;;  %v15316_v1 = vld [vmem:[%s16123_s9 + $0x10] sm:$0xff] }
0x1d23   : > { %7148 = vmatprep.mubr.bf16.mxu1 %v16269_v30  ;;  %7221 = vmatprep.mubr.bf16.mxu0 %v16269_v30  ;;  %v15324_v31 = vrot.slane %v15316_v1, %v16282_v46 }
0x1d24   : > { %7266 = vmatprep.subr.bf16.mxu1 %v9982_v38  ;;  %7339 = vmatprep.subr.bf16.mxu0 %v9984_v3  ;;  %v16281_v38 = vld [vmem:[#allocation15_spill] sm:$0xff] }
0x1d25   : > { %v15320_v3 = vrot.slane %v15316_v1, %v16281_v38 }
0x1d26   : > { %7267 = vmatpush1.bf16.msra.mxu1 %v9981_v8  ;;  %7340 = vmatpush1.bf16.msra.mxu0 %v9983_v9  ;;  %v15328_v8 = vrot.slane %v15316_v1, %v16283_v36  ;;  %v16284_v9 = vld [vmem:[#allocation18_spill] sm:$0xff] }
0x1d27   : > { %7410 = vmatprep.subr.bf16.mxu1 %v10002_v11  ;;  %7483 = vmatprep.subr.bf16.mxu0 %v10004_v26  ;;  %v15332_v11 = vrot.slane %v15316_v1, %v16284_v9 }
0x1d29   : > { %10014 = vmatmul.mubr.msk.bf16.gmra.mxu1 %vm628_vm0, %v15055_v5  ;;  %10018 = vmatmul.mubr.msk.bf16.gmra.mxu0 %vm628_vm0, %v15055_v5 }
0x1d2a   : > { %7158 = vmatprep.mubr.bf16.mxu1 %v16269_v30  ;;  %7231 = vmatprep.mubr.bf16.mxu0 %v16269_v30 }
0x1d31   : > { %10015 = vmatmul.mubr.msk.bf16.gmra.mxu1 %vm628_vm0, %v15075_v14  ;;  %10019 = vmatmul.mubr.msk.bf16.gmra.mxu0 %vm628_vm0, %v15075_v14 }
0x1d32   : > { %7168 = vmatprep.mubr.bf16.mxu1 %v16269_v30  ;;  %7241 = vmatprep.mubr.bf16.mxu0 %v16269_v30 }
0x1d39   : > { %10016 = vmatmul.mubr.msk.bf16.gmra.mxu1 %vm628_vm0, %v15093_v45  ;;  %10020 = vmatmul.mubr.msk.bf16.gmra.mxu0 %vm628_vm0, %v15093_v45 }
0x1d3a   : > { %7284 = vmatprep.mubr.bf16.mxu1 %v16269_v30  ;;  %7357 = vmatprep.mubr.bf16.mxu0 %v16269_v30 }
0x1d41   : > { %10021 = vmatmul.mubr.msk.bf16.vlgmr.msra.gmra.mxu1 %vm628_vm0, %v15005_v52  ;;  %10025 = vmatmul.mubr.msk.bf16.vlgmr.msra.gmra.mxu0 %vm628_vm0, %v15005_v52 }
0x1d42   : > { %7411 = vmatpush1.bf16.msra.mxu1 %v10001_v57  ;;  %7484 = vmatpush1.bf16.msra.mxu0 %v10003_v7 }
0x1d43   : > { %7294 = vmatprep.mubr.bf16.mxu1 %v16269_v30  ;;  %7367 = vmatprep.mubr.bf16.mxu0 %v16269_v30 }
0x1d44   : > { %7412 = vmatprep.subr.bf16.mxu1 %v9986_v17  ;;  %7485 = vmatprep.subr.bf16.mxu0 %v9988_v23 }
0x1d46   : > { %7413 = vmatpush1.bf16.msra.mxu1 %v9985_v2  ;;  %7486 = vmatpush1.bf16.msra.mxu0 %v9987_v6 }
0x1d47   : > { %10913 = vmatprep.subr.bf16.mxu1 %v11900_v12  ;;  %10953 = vmatprep.subr.bf16.mxu0 %v11901_v42 }
0x1d49   : > { %10022 = vmatmul.mubr.msk.bf16.gmra.mxu1 %vm628_vm0, %v15055_v5  ;;  %10026 = vmatmul.mubr.msk.bf16.gmra.mxu0 %vm628_vm0, %v15055_v5 }
0x1d4a   : > { %7304 = vmatprep.mubr.bf16.mxu1 %v16269_v30  ;;  %7377 = vmatprep.mubr.bf16.mxu0 %v16269_v30 }
0x1d51   : > { %10023 = vmatmul.mubr.msk.bf16.gmra.mxu1 %vm628_vm0, %v15075_v14  ;;  %10027 = vmatmul.mubr.msk.bf16.gmra.mxu0 %vm628_vm0, %v15075_v14 }
0x1d52   : > { %7314 = vmatprep.mubr.bf16.mxu1 %v16269_v30  ;;  %7387 = vmatprep.mubr.bf16.mxu0 %v16269_v30 }
0x1d59   : > { %10024 = vmatmul.mubr.msk.bf16.gmra.mxu1 %vm628_vm0, %v15093_v45  ;;  %10028 = vmatmul.mubr.msk.bf16.gmra.mxu0 %vm628_vm0, %v15093_v45 }
0x1d5a   : > { %7430 = vmatprep.mubr.bf16.mxu1 %v16269_v30  ;;  %7503 = vmatprep.mubr.bf16.mxu0 %v16269_v30 }
0x1d61   : > { %10029 = vmatmul.mubr.msk.bf16.vlgmr.msra.gmra.mxu1 %vm628_vm0, %v15005_v52  ;;  %10033 = vmatmul.mubr.msk.bf16.vlgmr.msra.gmra.mxu0 %vm628_vm0, %v15005_v52  ;;  %v11908_v52 = vld [vmem:[%s16124_s10 + $0x468] sm:$0xff]  }
0x1d62   : > { %7440 = vmatprep.mubr.bf16.mxu1 %v16269_v30  ;;  %7513 = vmatprep.mubr.bf16.mxu0 %v16269_v30 }
0x1d63   : > { %10914 = vmatpush3.bf16.msra.mxu1 %v11902_v55  ;;  %10954 = vmatpush3.bf16.msra.mxu0 %v11903_v34 }
0x1d64   : > { %10915 = vmatprep.subr.bf16.mxu1 %v11904_v15  ;;  %10955 = vmatprep.subr.bf16.mxu0 %v11905_v20 }
0x1d67   : > { %10916 = vmatpush3.bf16.msra.mxu1 %v11906_v54  ;;  %10956 = vmatpush3.bf16.msra.mxu0 %v11907_v35 }
0x1d68   : > { %10917 = vmatprep.subr.bf16.mxu1 %v11908_v52  ;;  %10957 = vmatprep.subr.bf16.mxu0 %v11909_v16 }
0x1d69   : > { %10030 = vmatmul.mubr.msk.bf16.gmra.mxu1 %vm628_vm0, %v15055_v5  ;;  %10034 = vmatmul.mubr.msk.bf16.gmra.mxu0 %vm628_vm0, %v15055_v5  ;;  %v11918_v5 = vld [vmem:[%s16124_s10 + $0x418] sm:$0xff]  }
0x1d6a   : > { %7450 = vmatprep.mubr.bf16.mxu1 %v16269_v30  ;;  %7523 = vmatprep.mubr.bf16.mxu0 %v16269_v30 }
0x1d6b   : > { %10918 = vmatpush3.bf16.msra.mxu1 %v11910_v39  ;;  %10958 = vmatpush3.bf16.msra.mxu0 %v11911_v18 }
0x1d6c   : > { %10919 = vmatprep.subr.bf16.mxu1 %v11912_v56  ;;  %10959 = vmatprep.subr.bf16.mxu0 %v11913_v61 }
0x1d6f   : > { %10920 = vmatpush3.bf16.msra.mxu1 %v11914_v53  ;;  %10960 = vmatpush3.bf16.msra.mxu0 %v11915_v19 }
0x1d70   : > { %10921 = vmatprep.subr.bf16.mxu1 %v11916_v44  ;;  %10961 = vmatprep.subr.bf16.mxu0 %v11917_v40  ;;  %v11934_v40 = vld [vmem:[%s16124_s10 + $0x538] sm:$0xff]  }
0x1d71   : > { %10031 = vmatmul.mubr.msk.bf16.gmra.mxu1 %vm628_vm0, %v15075_v14  ;;  %10035 = vmatmul.mubr.msk.bf16.gmra.mxu0 %vm628_vm0, %v15075_v14  ;;  %v11926_v14 = vld [vmem:[%s16124_s10 + $0x408] sm:$0xff]  }
0x1d72   : > { %7460 = vmatprep.mubr.bf16.mxu1 %v16269_v30  ;;  %7533 = vmatprep.mubr.bf16.mxu0 %v16269_v30  ;;  %v11925_v30 = vld [vmem:[%s16124_s10 + $0x4c8] sm:$0xff]  }
0x1d73   : > { %10922 = vmatpush3.bf16.msra.mxu1 %v11918_v5  ;;  %10962 = vmatpush3.bf16.msra.mxu0 %v11919_v25  ;;  %v11935_v5 = vld [vmem:[%s16124_s10 + $0x5b8] sm:$0xff]  }
0x1d74   : > { %10923 = vmatprep.subr.bf16.mxu1 %v11920_v63  ;;  %10963 = vmatprep.subr.bf16.mxu0 %v11921_v62 }
0x1d77   : > { %10924 = vmatpush3.bf16.msra.mxu1 %v11922_v60  ;;  %10964 = vmatpush3.bf16.msra.mxu0 %v11923_v27  ;;  %v11936_v27 = vld [vmem:[%s16124_s10 + $0x570] sm:$0xff]  }
0x1d78   : > { %10925 = vmatprep.subr.bf16.mxu1 %v11924_v29  ;;  %10965 = vmatprep.subr.bf16.mxu0 %v11925_v30  ;;  %v11937_v29 = vld [vmem:[%s16124_s10 + $0x5f0] sm:$0xff]  }
0x1d79   : > { %10032 = vmatmul.mubr.msk.bf16.gmra.mxu1 %vm628_vm0, %v15093_v45  ;;  %10036 = vmatmul.mubr.msk.bf16.gmra.mxu0 %vm628_vm0, %v15093_v45  ;;  %v11933_v45 = vld [vmem:[%s16124_s10 + $0x5f8] sm:$0xff]  }
0x1d7b   : > { %10926 = vmatpush3.bf16.msra.mxu1 %v11926_v14  ;;  %10966 = vmatpush3.bf16.msra.mxu0 %v11927_v10 }
0x1d7c   : > { %10927 = vmatprep.subr.bf16.mxu1 %v11928_v32  ;;  %10967 = vmatprep.subr.bf16.mxu0 %v11929_v47 }
0x1d7f   : > { %10928 = vmatpush3.bf16.msra.mxu1 %v11930_v22  ;;  %10968 = vmatpush3.bf16.msra.mxu0 %v11931_v28 }
0x1d80   : > { %10993 = vmatprep.subr.bf16.mxu1 %v11932_v13  ;;  %11033 = vmatprep.subr.bf16.mxu0 %v11933_v45 }
0x1dc1   : > { %v6994_v4 = vpop.f32.mrf.mxu1  ;;  %v7067_v37 = vpop.f32.mrf.mxu0 }
0x1dc2   : > { %v6995_v23 = vadd.f32 %v6994_v4, %v15328_v8  ;;  %v7068_v2 = vadd.f32 %v7067_v37, %v15332_v11  ;;  %v11938_v37 = vld [vmem:[%s16124_s10 + $0x530] sm:$0xff]  }
0x1dc3   : > { %v6996_v26 = vpop.f32.mrf.mxu1  ;;  %v7069_v21 = vpop.f32.mrf.mxu0 }
0x1dc4   : > { %v6997_v50 = vadd.f32 %v6996_v26, %v15320_v3  ;;  %v7070_v57 = vadd.f32 %v7069_v21, %v15324_v31  ;;  %v7544_v18 = vmax.f32 %v6995_v23, 0.0  ;;  %v7546_v56 = vmax.f32 %v7068_v2, 0.0  ;;  %v11939_v26 = vld [vmem:[%s16124_s10 + $0x5b0] sm:$0xff]  }
0x1dc5   : > { %v6998_v0 = vpop.f32.mrf.mxu1  ;;  %v7071_v58 = vpop.f32.mrf.mxu0 }
0x1dc6   : > { %v6999_v7 = vadd.f32 %v6998_v0, %v15328_v8  ;;  %v7072_v17 = vadd.f32 %v7071_v58, %v15332_v11  ;;  %v7545_v35 = vmax.f32 %v6997_v50, 0.0  ;;  %v7547_v52 = vmax.f32 %v7070_v57, 0.0  ;;  %v11940_v57 = vld [vmem:[%s16124_s10 + $0x568] sm:$0xff]  }
0x1dc7   : > { %v7000_v6 = vpop.f32.mrf.mxu1  ;;  %v7073_v12 = vpop.f32.mrf.mxu0 }
0x1dc8   : > { %v7001_v42 = vadd.f32 %v7000_v6, %v15320_v3  ;;  %v7074_v55 = vadd.f32 %v7073_v12, %v15324_v31  ;;  %v7560_v34 = vmax.f32 %v6999_v7, 0.0  ;;  %v7562_v15 = vmax.f32 %v7072_v17, 0.0  ;;  %v11941_v7 = vld [vmem:[%s16124_s10 + $0x5e8] sm:$0xff]  }
0x1dc9   : > { %v7004_v20 = vpop.f32.mrf.mxu1  ;;  %v7077_v54 = vpop.f32.mrf.mxu0 }
0x1dca   : > { %v7561_v16 = vmax.f32 %v7001_v42, 0.0  ;;  %v7563_v39 = vmax.f32 %v7074_v55, 0.0  ;;  %v7672_v25 = vpack.c.bf16 %v7560_v34, %v7544_v18  ;;  %v7674_v63 = vpack.c.bf16 %v7562_v15, %v7546_v56  ;;  %v11943_v18 = vld [vmem:[%s16124_s10 + $0x5a8] sm:$0xff]   ;;  %v11944_v56 = vld [vmem:[%s16124_s10 + $0x560] sm:$0xff]  }
0x1dcb   : > { %v7006_v61 = vpop.f32.mrf.mxu1  ;;  %v7079_v53 = vpop.f32.mrf.mxu0  ;;  %v7005_v32 = vadd.f32 %v7004_v20, %v15328_v8  ;;  %v7078_v47 = vadd.f32 %v7077_v54, %v15332_v11  ;;  %v11942_v20 = vld [vmem:[%s16124_s10 + $0x528] sm:$0xff]  }
0x1dcc   : > { %v7673_v19 = vpack.c.bf16 %v7561_v16, %v7545_v35  ;;  %v7675_v44 = vpack.c.bf16 %v7563_v39, %v7547_v52  ;;  %v7007_v30 = vadd.f32 %v7006_v61, %v15320_v3  ;;  %v7080_v22 = vadd.f32 %v7079_v53, %v15324_v31 }
0x1dcd   : > { %v7008_v62 = vpop.f32.mrf.mxu1  ;;  %v7081_v60 = vpop.f32.mrf.mxu0  ;;  %v7576_v6 = vmax.f32 %v7005_v32, 0.0  ;;  %v7578_v12 = vmax.f32 %v7078_v47, 0.0  ;;  %v11947_v47 = vld [vmem:[%s16124_s10 + $0x5a0] sm:$0xff]  }
0x1dce   : > { %v7009_v14 = vadd.f32 %v7008_v62, %v15328_v8  ;;  %v7082_v10 = vadd.f32 %v7081_v60, %v15332_v11  ;;  %8801 = vmatprep.mubr.bf16.mxu1 %v7673_v19  ;;  %8866 = vmatprep.mubr.bf16.mxu0 %v7675_v44  ;;  %v7577_v17 = vmax.f32 %v7007_v30, 0.0  ;;  %v7579_v42 = vmax.f32 %v7080_v22, 0.0  ;;  %v11948_v22 = vld [vmem:[%s16124_s10 + $0x558] sm:$0xff]  }
0x1dcf   : > { %v7010_v28 = vpop.f32.mrf.mxu1  ;;  %v7083_v13 = vpop.f32.mrf.mxu0  ;;  %8802 = vmatmul.mubr.bf16.vlgmr.msra.gmra.mxu1 %v7672_v25  ;;  %8867 = vmatmul.mubr.bf16.vlgmr.msra.gmra.mxu0 %v7674_v63 }
0x1dd0   : > { %v7011_v45 = vadd.f32 %v7010_v28, %v15320_v3  ;;  %v7084_v4 = vadd.f32 %v7083_v13, %v15324_v31  ;;  %10994 = vmatpush3.bf16.msra.mxu1 %v11934_v40  ;;  %11034 = vmatpush3.bf16.msra.mxu0 %v11935_v5  ;;  %v7592_v21 = vmax.f32 %v7009_v14, 0.0  ;;  %v7594_v0 = vmax.f32 %v7082_v10, 0.0  ;;  %v11945_v40 = vld [vmem:[%s16124_s10 + $0x5e0] sm:$0xff]  }
0x1dd1   : > { %v7014_v58 = vpop.f32.mrf.mxu1  ;;  %v7087_v50 = vpop.f32.mrf.mxu0  ;;  %10995 = vmatprep.subr.bf16.mxu1 %v11936_v27  ;;  %11035 = vmatprep.subr.bf16.mxu0 %v11937_v29  ;;  %v11946_v29 = vld [vmem:[%s16124_s10 + $0x520] sm:$0xff]  }
0x1dd2   : > { %v7593_v23 = vmax.f32 %v7011_v45, 0.0  ;;  %v7595_v2 = vmax.f32 %v7084_v4, 0.0  ;;  %v7688_v54 = vpack.c.bf16 %v7592_v21, %v7576_v6  ;;  %v7690_v35 = vpack.c.bf16 %v7594_v0, %v7578_v12 }
0x1dd3   : > { %v7016_v55 = vpop.f32.mrf.mxu1  ;;  %v7089_v34 = vpop.f32.mrf.mxu0  ;;  %v7015_v5 = vadd.f32 %v7014_v58, %v15328_v8  ;;  %v7088_v25 = vadd.f32 %v7087_v50, %v15332_v11  ;;  %v11949_v58 = vld [vmem:[%s16124_s10 + $0x5d8] sm:$0xff]  }
0x1dd4   : > { %10996 = vmatpush3.bf16.msra.mxu1 %v11938_v37  ;;  %11036 = vmatpush3.bf16.msra.mxu0 %v11939_v26  ;;  %v7689_v15 = vpack.c.bf16 %v7593_v23, %v7577_v17  ;;  %v7691_v39 = vpack.c.bf16 %v7595_v2, %v7579_v42  ;;  %v7017_v61 = vadd.f32 %v7016_v55, %v15320_v3  ;;  %v11951_v42 = vld [vmem:[%s16124_s10 + $0x598] sm:$0xff]   ;;  %v11952_v55 = vld [vmem:[%s16124_s10 + $0x550] sm:$0xff]  }
0x1dd5   : > { %v7018_v52 = vpop.f32.mrf.mxu1  ;;  %v7091_v16 = vpop.f32.mrf.mxu0  ;;  %10997 = vmatprep.subr.bf16.mxu1 %v11940_v57  ;;  %11037 = vmatprep.subr.bf16.mxu0 %v11941_v7  ;;  %v7090_v53 = vadd.f32 %v7089_v34, %v15324_v31  ;;  %v7608_v37 = vmax.f32 %v7015_v5, 0.0  ;;  %v7610_v26 = vmax.f32 %v7088_v25, 0.0  ;;  %v11950_v7 = vld [vmem:[%s16124_s10 + $0x518] sm:$0xff]   ;;  %v11956_v25 = vld [vmem:[%s16124_s10 + $0x548] sm:$0xff]  }
0x1dd6   : > { %v7019_v19 = vadd.f32 %v7018_v52, %v15328_v8  ;;  %v7092_v44 = vadd.f32 %v7091_v16, %v15332_v11  ;;  %8809 = vmatprep.mubr.bf16.mxu1 %v7689_v15  ;;  %8874 = vmatprep.mubr.bf16.mxu0 %v7691_v39  ;;  %v7609_v28 = vmax.f32 %v7017_v61, 0.0  ;;  %v11954_v61 = vld [vmem:[%s16124_s10 + $0x510] sm:$0xff]   ;;  %v16286_v5 = vld [vmem:[#allocation20_spill] sm:$0xff] }
0x1dd7   : > { %v7020_v63 = vpop.f32.mrf.mxu1  ;;  %v7093_v62 = vpop.f32.mrf.mxu0  ;;  %8810 = vmatmul.mubr.bf16.gmra.mxu1 %v7688_v54  ;;  %8875 = vmatmul.mubr.bf16.gmra.mxu0 %v7690_v35  ;;  %v7611_v13 = vmax.f32 %v7090_v53, 0.0  ;;  %v11953_v54 = vld [vmem:[%s16124_s10 + $0x5d0] sm:$0xff]  }
0x1dd8   : > { %v7021_v60 = vadd.f32 %v7020_v63, %v15320_v3  ;;  %v7094_v27 = vadd.f32 %v7093_v62, %v15324_v31  ;;  %10998 = vmatpush3.bf16.msra.mxu1 %v11942_v20  ;;  %v7624_v30 = vmax.f32 %v7019_v19, 0.0  ;;  %v7626_v14 = vmax.f32 %v7092_v44, 0.0  ;;  %11038 = vmatpush3.bf16.msra.mxu0 %v11943_v18 }
0x1dd9   : > { %v7024_v10 = vpop.f32.mrf.mxu1  ;;  %v7097_v32 = vpop.f32.mrf.mxu0  ;;  %10999 = vmatprep.subr.bf16.mxu1 %v11944_v56  ;;  %11039 = vmatprep.subr.bf16.mxu0 %v11945_v40 }
0x1dda   : > { %v7625_v45 = vmax.f32 %v7021_v60, 0.0  ;;  %v7627_v4 = vmax.f32 %v7094_v27, 0.0  ;;  %v7704_v17 = vpack.c.bf16 %v7624_v30, %v7608_v37  ;;  %v7706_v23 = vpack.c.bf16 %v7626_v14, %v7610_v26  ;;  %v16287_v14 = vld [vmem:[#allocation21_spill] sm:$0xff]  ;;  %v11958_v37 = vld [vmem:[%s16124_s10 + $0x508] sm:$0xff]  }
0x1ddb   : > { %v7026_v21 = vpop.f32.mrf.mxu1  ;;  %v7099_v0 = vpop.f32.mrf.mxu0  ;;  %v7025_v35 = vadd.f32 %v7024_v10, %v15328_v8  ;;  %v7098_v52 = vadd.f32 %v7097_v32, %v15332_v11  ;;  %v15445_v10 = vrot.slane %v15316_v1, %v16287_v14  ;;  %v16288_v32 = vld [vmem:[#allocation22_spill] sm:$0xff] }
0x1ddc   : > { %11000 = vmatpush3.bf16.msra.mxu1 %v11946_v29  ;;  %v7705_v50 = vpack.c.bf16 %v7625_v45, %v7609_v28  ;;  %v7707_v57 = vpack.c.bf16 %v7627_v4, %v7611_v13  ;;  %v7027_v2 = vadd.f32 %v7026_v21, %v15320_v3  ;;  %11040 = vmatpush3.bf16.msra.mxu0 %v11947_v47  ;;  %v11957_v13 = vld [vmem:[%s16124_s10 + $0x5c8] sm:$0xff]  }
0x1ddd   : > { %v7028_v6 = vpop.f32.mrf.mxu1  ;;  %v7101_v12 = vpop.f32.mrf.mxu0  ;;  %11001 = vmatprep.subr.bf16.mxu1 %v11948_v22  ;;  %v7100_v34 = vadd.f32 %v7099_v0, %v15324_v31  ;;  %11041 = vmatprep.subr.bf16.mxu0 %v11949_v58  ;;  %v7640_v29 = vmax.f32 %v7025_v35, 0.0  ;;  %v7642_v30 = vmax.f32 %v7098_v52, 0.0  ;;  %v15449_v47 = vrot.slane %v15316_v1, %v16288_v32 }
0x1dde   : > { %v7029_v15 = vadd.f32 %v7028_v6, %v15328_v8  ;;  %v7102_v20 = vadd.f32 %v7101_v12, %v15332_v11  ;;  %8817 = vmatprep.mubr.bf16.mxu1 %v7705_v50  ;;  %8882 = vmatprep.mubr.bf16.mxu0 %v7707_v57  ;;  %v16285_v11 = vld [vmem:[#allocation19_spill] sm:$0xff]  ;;  %v7641_v63 = vmax.f32 %v7027_v2, 0.0  ;;  %v11959_v50 = vld [vmem:[%s16124_s10 + $0x588] sm:$0xff]   ;;  %v11960_v57 = vld [vmem:[%s16124_s10 + $0x540] sm:$0xff]  }
0x1ddf   : > { %v7030_v16 = vpop.f32.mrf.mxu1  ;;  %v7103_v39 = vpop.f32.mrf.mxu0  ;;  %8818 = vmatmul.mubr.bf16.gmra.mxu1 %v7704_v17  ;;  %8883 = vmatmul.mubr.bf16.gmra.mxu0 %v7706_v23  ;;  %v15431_v40 = vrot.slane %v15316_v1, %v16285_v11  ;;  %v7643_v62 = vmax.f32 %v7100_v34, 0.0  ;;  %v11961_v2 = vld [vmem:[%s16124_s10 + $0x5c0] sm:$0xff]  }
0x1de0   : > { %v7031_v18 = vadd.f32 %v7030_v16, %v15320_v3  ;;  %v7104_v56 = vadd.f32 %v7103_v39, %v15324_v31  ;;  %11002 = vmatpush3.bf16.msra.mxu1 %v11950_v7  ;;  %v7656_v53 = vmax.f32 %v7029_v15, 0.0  ;;  %v7658_v19 = vmax.f32 %v7102_v20, 0.0  ;;  %11042 = vmatpush3.bf16.msra.mxu0 %v11951_v42  ;;  %v11955_v31 = vld [vmem:[%s16124_s10 + $0x590] sm:$0xff]   ;;  %v11962_v20 = vld [vmem:[%s16124_s10 + $0x500] sm:$0xff]  }
0x1de1   : > { %v7140_v8 = vpop.f32.mrf.mxu1  ;;  %v7213_v44 = vpop.f32.mrf.mxu0  ;;  %v15435_v3 = vrot.slane %v15316_v1, %v16286_v5  ;;  %11003 = vmatprep.subr.bf16.mxu1 %v11952_v55  ;;  %11043 = vmatprep.subr.bf16.mxu0 %v11953_v54  ;;  %v11963_v39 = vld [vmem:[%s16124_s10 + $0x580] sm:$0xff]  }
0x1de2   : > { %v7657_v60 = vmax.f32 %v7031_v18, 0.0  ;;  %v7659_v27 = vmax.f32 %v7104_v56, 0.0  ;;  %v7720_v26 = vpack.c.bf16 %v7656_v53, %v7640_v29  ;;  %v7722_v21 = vpack.c.bf16 %v7658_v19, %v7642_v30  ;;  %v11964_v18 = vld [vmem:[%s16124_s10 + $0x678] sm:$0xff]  }
0x1de3   : > { %v7142_v22 = vpop.f32.mrf.mxu1  ;;  %v7215_v28 = vpop.f32.mrf.mxu0  ;;  %v7141_v6 = vadd.f32 %v7140_v8, %v15445_v10  ;;  %v7214_v12 = vadd.f32 %v7213_v44, %v15449_v47 }
0x1de4   : > { %11004 = vmatpush3.bf16.msra.mxu1 %v11954_v61  ;;  %v7721_v45 = vpack.c.bf16 %v7657_v60, %v7641_v63  ;;  %v7723_v4 = vpack.c.bf16 %v7659_v27, %v7643_v62  ;;  %v7143_v0 = vadd.f32 %v7142_v22, %v15431_v40  ;;  %11044 = vmatpush3.bf16.msra.mxu0 %v11955_v31  ;;  %v11965_v63 = vld [vmem:[%s16124_s10 + $0x6f8] sm:$0xff]  }
0x1de5   : > { %v7144_v1 = vpop.f32.mrf.mxu1  ;;  %v7217_v58 = vpop.f32.mrf.mxu0  ;;  %11005 = vmatprep.subr.bf16.mxu1 %v11956_v25  ;;  %v7216_v7 = vadd.f32 %v7215_v28, %v15435_v3  ;;  %11045 = vmatprep.subr.bf16.mxu0 %v11957_v13  ;;  %v7548_v8 = vmax.f32 %v7141_v6, 0.0  ;;  %v7550_v44 = vmax.f32 %v7214_v12, 0.0  ;;  %v11966_v27 = vld [vmem:[%s16124_s10 + $0x638] sm:$0xff]  }
0x1de6   : > { %v7145_v17 = vadd.f32 %v7144_v1, %v15445_v10  ;;  %v7218_v23 = vadd.f32 %v7217_v58, %v15449_v47  ;;  %8825 = vmatprep.mubr.bf16.mxu1 %v7721_v45  ;;  %8890 = vmatprep.mubr.bf16.mxu0 %v7723_v4  ;;  %v7549_v56 = vmax.f32 %v7143_v0, 0.0  ;;  %v11967_v45 = vld [vmem:[%s16124_s10 + $0x6b8] sm:$0xff]   ;;  %v11968_v4 = vld [vmem:[%s16124_s10 + $0x670] sm:$0xff]  }
0x1de7   : > { %v7146_v42 = vpop.f32.mrf.mxu1  ;;  %v7219_v55 = vpop.f32.mrf.mxu0  ;;  %8826 = vmatmul.mubr.bf16.gmra.mxu1 %v7720_v26  ;;  %8891 = vmatmul.mubr.bf16.gmra.mxu0 %v7722_v21  ;;  %v7551_v61 = vmax.f32 %v7216_v7, 0.0  ;;  %v11969_v0 = vld [vmem:[%s16124_s10 + $0x6f0] sm:$0xff]  }
0x1de8   : > { %v7147_v34 = vadd.f32 %v7146_v42, %v15431_v40  ;;  %v7220_v15 = vadd.f32 %v7219_v55, %v15435_v3  ;;  %11006 = vmatpush3.bf16.msra.mxu1 %v11958_v37  ;;  %v7564_v54 = vmax.f32 %v7145_v17, 0.0  ;;  %v7566_v35 = vmax.f32 %v7218_v23, 0.0  ;;  %11046 = vmatpush3.bf16.msra.mxu0 %v11959_v50  ;;  %v11970_v23 = vld [vmem:[%s16124_s10 + $0x630] sm:$0xff]  }
0x1de9   : > { %v7150_v52 = vpop.f32.mrf.mxu1  ;;  %v7223_v16 = vpop.f32.mrf.mxu0  ;;  %11007 = vmatprep.subr.bf16.mxu1 %v11960_v57  ;;  %11047 = vmatprep.subr.bf16.mxu0 %v11961_v2  ;;  %v11971_v55 = vld [vmem:[%s16124_s10 + $0x6b0] sm:$0xff]  }
0x1dea   : > { %v7565_v53 = vmax.f32 %v7147_v34, 0.0  ;;  %v7567_v19 = vmax.f32 %v7220_v15, 0.0  ;;  %v7676_v29 = vpack.c.bf16 %v7564_v54, %v7548_v8  ;;  %v7678_v30 = vpack.c.bf16 %v7566_v35, %v7550_v44  ;;  %v11972_v34 = vld [vmem:[%s16124_s10 + $0x668] sm:$0xff]  }
0x1deb   : > { %v7152_v31 = vpop.f32.mrf.mxu1  ;;  %v7225_v25 = vpop.f32.mrf.mxu0  ;;  %v7151_v1 = vadd.f32 %v7150_v52, %v15445_v10  ;;  %v7224_v58 = vadd.f32 %v7223_v16, %v15449_v47 }
0x1dec   : > { %v7679_v62 = vpack.c.bf16 %v7567_v19, %v7551_v61  ;;  %11008 = vmatpush3.bf16.msra.mxu1 %v11962_v20  ;;  %v7677_v60 = vpack.c.bf16 %v7565_v53, %v7549_v56  ;;  %v7153_v22 = vadd.f32 %v7152_v31, %v15431_v40  ;;  %11048 = vmatpush3.bf16.msra.mxu0 %v11963_v39  ;;  %v11973_v56 = vld [vmem:[%s16124_s10 + $0x6e8] sm:$0xff]  }
0x1ded   : > { %v7154_v28 = vpop.f32.mrf.mxu1  ;;  %v7227_v13 = vpop.f32.mrf.mxu0  ;;  %11073 = vmatprep.subr.bf16.mxu1 %v11964_v18  ;;  %v7226_v37 = vadd.f32 %v7225_v25, %v15435_v3  ;;  %11113 = vmatprep.subr.bf16.mxu0 %v11965_v63  ;;  %v7580_v52 = vmax.f32 %v7151_v1, 0.0  ;;  %v7582_v16 = vmax.f32 %v7224_v58, 0.0  ;;  %v11974_v19 = vld [vmem:[%s16124_s10 + $0x628] sm:$0xff]  }
0x1dee   : > { %v7155_v26 = vadd.f32 %v7154_v28, %v15445_v10  ;;  %v7228_v21 = vadd.f32 %v7227_v13, %v15449_v47  ;;  %8931 = vmatprep.mubr.bf16.mxu1 %v7677_v60  ;;  %8996 = vmatprep.mubr.bf16.mxu0 %v7679_v62  ;;  %v7581_v15 = vmax.f32 %v7153_v22, 0.0  ;;  %v11975_v62 = vld [vmem:[%s16124_s10 + $0x6a8] sm:$0xff]   ;;  %v11976_v60 = vld [vmem:[%s16124_s10 + $0x660] sm:$0xff]  }
0x1def   : > { %v7156_v50 = vpop.f32.mrf.mxu1  ;;  %v7229_v57 = vpop.f32.mrf.mxu0  ;;  %8932 = vmatmul.mubr.bf16.vlgmr.msra.gmra.mxu1 %v7676_v29  ;;  %8997 = vmatmul.mubr.bf16.vlgmr.msra.gmra.mxu0 %v7678_v30  ;;  %v7583_v20 = vmax.f32 %v7226_v37, 0.0  ;;  %v11977_v22 = vld [vmem:[%s16124_s10 + $0x6e0] sm:$0xff]  }
0x1df0   : > { %v7157_v7 = vadd.f32 %v7156_v50, %v15431_v40  ;;  %v7230_v17 = vadd.f32 %v7229_v57, %v15435_v3  ;;  %11074 = vmatpush3.bf16.msra.mxu1 %v11966_v27  ;;  %v7596_v2 = vmax.f32 %v7155_v26, 0.0  ;;  %v7598_v6 = vmax.f32 %v7228_v21, 0.0  ;;  %11114 = vmatpush3.bf16.msra.mxu0 %v11967_v45  ;;  %v11978_v21 = vld [vmem:[%s16124_s10 + $0x620] sm:$0xff]  }
0x1df1   : > { %v7160_v12 = vpop.f32.mrf.mxu1  ;;  %v7233_v42 = vpop.f32.mrf.mxu0  ;;  %11075 = vmatprep.subr.bf16.mxu1 %v11968_v4  ;;  %11115 = vmatprep.subr.bf16.mxu0 %v11969_v0  ;;  %v11979_v57 = vld [vmem:[%s16124_s10 + $0x6a0] sm:$0xff]  }
0x1df2   : > { %v7597_v54 = vmax.f32 %v7157_v7, 0.0  ;;  %v7599_v35 = vmax.f32 %v7230_v17, 0.0  ;;  %v7692_v8 = vpack.c.bf16 %v7596_v2, %v7580_v52  ;;  %v7694_v44 = vpack.c.bf16 %v7598_v6, %v7582_v16  ;;  %v11980_v7 = vld [vmem:[%s16124_s10 + $0x658] sm:$0xff]  }
0x1df3   : > { %v7162_v39 = vpop.f32.mrf.mxu1  ;;  %v7235_v18 = vpop.f32.mrf.mxu0  ;;  %v7161_v28 = vadd.f32 %v7160_v12, %v15445_v10  ;;  %v7234_v13 = vadd.f32 %v7233_v42, %v15449_v47 }
0x1df4   : > { %v7695_v61 = vpack.c.bf16 %v7599_v35, %v7583_v20  ;;  %11076 = vmatpush3.bf16.msra.mxu1 %v11970_v23  ;;  %v7693_v53 = vpack.c.bf16 %v7597_v54, %v7581_v15  ;;  %v7163_v31 = vadd.f32 %v7162_v39, %v15431_v40  ;;  %11116 = vmatpush3.bf16.msra.mxu0 %v11971_v55  ;;  %v11981_v15 = vld [vmem:[%s16124_s10 + $0x6d8] sm:$0xff]  }
0x1df5   : > { %v7164_v25 = vpop.f32.mrf.mxu1  ;;  %v7237_v63 = vpop.f32.mrf.mxu0  ;;  %11077 = vmatprep.subr.bf16.mxu1 %v11972_v34  ;;  %v7236_v27 = vadd.f32 %v7235_v18, %v15435_v3  ;;  %11117 = vmatprep.subr.bf16.mxu0 %v11973_v56  ;;  %v7612_v12 = vmax.f32 %v7161_v28, 0.0  ;;  %v7614_v42 = vmax.f32 %v7234_v13, 0.0  ;;  %v11982_v35 = vld [vmem:[%s16124_s10 + $0x618] sm:$0xff]  }
0x1df6   : > { %v7165_v29 = vadd.f32 %v7164_v25, %v15445_v10  ;;  %v7238_v30 = vadd.f32 %v7237_v63, %v15449_v47  ;;  %8939 = vmatprep.mubr.bf16.mxu1 %v7693_v53  ;;  %9004 = vmatprep.mubr.bf16.mxu0 %v7695_v61  ;;  %v7613_v17 = vmax.f32 %v7163_v31, 0.0  ;;  %v11983_v61 = vld [vmem:[%s16124_s10 + $0x698] sm:$0xff]   ;;  %v11984_v53 = vld [vmem:[%s16124_s10 + $0x650] sm:$0xff]  }
0x1df7   : > { %v7166_v45 = vpop.f32.mrf.mxu1  ;;  %v7239_v4 = vpop.f32.mrf.mxu0  ;;  %8940 = vmatmul.mubr.bf16.gmra.mxu1 %v7692_v8  ;;  %9005 = vmatmul.mubr.bf16.gmra.mxu0 %v7694_v44  ;;  %v7615_v23 = vmax.f32 %v7236_v27, 0.0  ;;  %v11985_v31 = vld [vmem:[%s16124_s10 + $0x6d0] sm:$0xff]  }
0x1df8   : > { %v7167_v37 = vadd.f32 %v7166_v45, %v15431_v40  ;;  %v7240_v26 = vadd.f32 %v7239_v4, %v15435_v3  ;;  %11078 = vmatpush3.bf16.msra.mxu1 %v11974_v19  ;;  %v7628_v0 = vmax.f32 %v7165_v29, 0.0  ;;  %v7630_v1 = vmax.f32 %v7238_v30, 0.0  ;;  %11118 = vmatpush3.bf16.msra.mxu0 %v11975_v62  ;;  %v15573_v30 = vld [vmem:[%s16123_s9 + $0x18] sm:$0xff]  ;;  %v11987_v45 = vld [vmem:[%s16124_s10 + $0x690] sm:$0xff]   ;;  %v11988_v4 = vld [vmem:[%s16124_s10 + $0x648] sm:$0xff]  }
0x1df9   : > { %v7170_v58 = vpop.f32.mrf.mxu1  ;;  %v7243_v50 = vpop.f32.mrf.mxu0  ;;  %11079 = vmatprep.subr.bf16.mxu1 %v11976_v60  ;;  %11119 = vmatprep.subr.bf16.mxu0 %v11977_v22 }
0x1dfa   : > { %v7629_v2 = vmax.f32 %v7167_v37, 0.0  ;;  %v7631_v6 = vmax.f32 %v7240_v26, 0.0  ;;  %v7708_v52 = vpack.c.bf16 %v7628_v0, %v7612_v12  ;;  %v7710_v16 = vpack.c.bf16 %v7630_v1, %v7614_v42 }
0x1dfb   : > { %v7172_v55 = vpop.f32.mrf.mxu1  ;;  %v7245_v34 = vpop.f32.mrf.mxu0  ;;  %v7171_v25 = vadd.f32 %v7170_v58, %v15445_v10  ;;  %v7244_v63 = vadd.f32 %v7243_v50, %v15449_v47  ;;  %v15598_v58 = vrot.slane %v15573_v30, %v16284_v9 }
0x1dfc   : > { %v7709_v20 = vpack.c.bf16 %v7629_v2, %v7613_v17  ;;  %v7711_v54 = vpack.c.bf16 %v7631_v6, %v7615_v23  ;;  %11080 = vmatpush3.bf16.msra.mxu1 %v11978_v21  ;;  %v7173_v39 = vadd.f32 %v7172_v55, %v15431_v40  ;;  %11120 = vmatpush3.bf16.msra.mxu0 %v11979_v57  ;;  %v11990_v2 = vld [vmem:[%s16124_s10 + $0x608] sm:$0xff]  }
0x1dfd   : > { %v7174_v18 = vpop.f32.mrf.mxu1  ;;  %v7247_v56 = vpop.f32.mrf.mxu0  ;;  %11081 = vmatprep.subr.bf16.mxu1 %v11980_v7  ;;  %v7246_v19 = vadd.f32 %v7245_v34, %v15435_v3  ;;  %11121 = vmatprep.subr.bf16.mxu0 %v11981_v15  ;;  %v7646_v1 = vmax.f32 %v7244_v63, 0.0  ;;  %v11989_v7 = vld [vmem:[%s16124_s10 + $0x6c8] sm:$0xff]   ;;  %v11992_v34 = vld [vmem:[%s16124_s10 + $0x640] sm:$0xff]   ;;  %v11996_v63 = vld [vmem:[%s16124_s10 + $0x778] sm:$0xff]  }
0x1dfe   : > { %v7175_v8 = vadd.f32 %v7174_v18, %v15445_v10  ;;  %v7248_v44 = vadd.f32 %v7247_v56, %v15449_v47  ;;  %8947 = vmatprep.mubr.bf16.mxu1 %v7709_v20  ;;  %9012 = vmatprep.mubr.bf16.mxu0 %v7711_v54  ;;  %v11986_v10 = vld [vmem:[%s16124_s10 + $0x610] sm:$0xff]   ;;  %v7645_v37 = vmax.f32 %v7173_v39, 0.0  ;;  %v11991_v55 = vld [vmem:[%s16124_s10 + $0x688] sm:$0xff]  }
0x1dff   : > { %v7176_v62 = vpop.f32.mrf.mxu1  ;;  %v7249_v60 = vpop.f32.mrf.mxu0  ;;  %8948 = vmatmul.mubr.bf16.gmra.mxu1 %v7708_v52  ;;  %9013 = vmatmul.mubr.bf16.gmra.mxu0 %v7710_v16  ;;  %v7647_v26 = vmax.f32 %v7246_v19, 0.0 }
0x1e00   : > { %v7177_v27 = vadd.f32 %v7176_v62, %v15431_v40  ;;  %v7250_v29 = vadd.f32 %v7249_v60, %v15435_v3  ;;  %11082 = vmatpush3.bf16.msra.mxu1 %v11982_v35  ;;  %v7660_v47 = vmax.f32 %v7175_v8, 0.0  ;;  %v7662_v22 = vmax.f32 %v7248_v44, 0.0  ;;  %11122 = vmatpush3.bf16.msra.mxu0 %v11983_v61  ;;  %v11993_v35 = vld [vmem:[%s16124_s10 + $0x6c0] sm:$0xff]  }
0x1e01   : > { %v7286_v28 = vpop.f32.mrf.mxu1  ;;  %v7359_v13 = vpop.f32.mrf.mxu0  ;;  %v15580_v40 = vrot.slane %v15573_v30, %v16281_v38  ;;  %v15584_v3 = vrot.slane %v15573_v30, %v16282_v46  ;;  %11083 = vmatprep.subr.bf16.mxu1 %v11984_v53  ;;  %11123 = vmatprep.subr.bf16.mxu0 %v11985_v31  ;;  %v7644_v38 = vmax.f32 %v7171_v25, 0.0  ;;  %v15594_v46 = vrot.slane %v15573_v30, %v16283_v36  ;;  %v11994_v53 = vld [vmem:[%s16124_s10 + $0x600] sm:$0xff]  }
0x1e02   : > { %v7661_v21 = vmax.f32 %v7177_v27, 0.0  ;;  %v7663_v0 = vmax.f32 %v7250_v29, 0.0  ;;  %v7726_v36 = vpack.c.bf16 %v7662_v22, %v7646_v1  ;;  %v7360_v16 = vadd.f32 %v7359_v13, %v15598_v58  ;;  %v11995_v25 = vld [vmem:[%s16124_s10 + $0x680] sm:$0xff]   ;;  %v11997_v13 = vld [vmem:[%s16124_s10 + $0x7f8] sm:$0xff]  }
0x1e03   : > { %v7288_v50 = vpop.f32.mrf.mxu1  ;;  %v7361_v57 = vpop.f32.mrf.mxu0  ;;  %v7724_v6 = vpack.c.bf16 %v7660_v47, %v7644_v38  ;;  %v7287_v52 = vadd.f32 %v7286_v28, %v15594_v46 }
0x1e04   : > { %v7725_v17 = vpack.c.bf16 %v7661_v21, %v7645_v37  ;;  %v7727_v23 = vpack.c.bf16 %v7663_v0, %v7647_v26  ;;  %11084 = vmatpush3.bf16.msra.mxu1 %v11986_v10  ;;  %v7289_v12 = vadd.f32 %v7288_v50, %v15580_v40  ;;  %11124 = vmatpush3.bf16.msra.mxu0 %v11987_v45  ;;  %v7554_v47 = vmax.f32 %v7360_v16, 0.0  ;;  %v11998_v37 = vld [vmem:[%s16124_s10 + $0x738] sm:$0xff]   ;;  %v12004_v16 = vld [vmem:[%s16124_s10 + $0x768] sm:$0xff]  }
0x1e05   : > { %v7290_v9 = vpop.f32.mrf.mxu1  ;;  %v7363_v42 = vpop.f32.mrf.mxu0  ;;  %11085 = vmatprep.subr.bf16.mxu1 %v11988_v4  ;;  %v7362_v15 = vadd.f32 %v7361_v57, %v15584_v3  ;;  %11125 = vmatprep.subr.bf16.mxu0 %v11989_v7  ;;  %v7552_v10 = vmax.f32 %v7287_v52, 0.0  ;;  %v11999_v50 = vld [vmem:[%s16124_s10 + $0x7b8] sm:$0xff]   ;;  %v12000_v57 = vld [vmem:[%s16124_s10 + $0x770] sm:$0xff]  }
0x1e06   : > { %v7291_v20 = vadd.f32 %v7290_v9, %v15594_v46  ;;  %v7364_v54 = vadd.f32 %v7363_v42, %v15598_v58  ;;  %8955 = vmatprep.mubr.bf16.mxu1 %v7725_v17  ;;  %9020 = vmatprep.mubr.bf16.mxu0 %v7727_v23  ;;  %v7553_v62 = vmax.f32 %v7289_v12, 0.0  ;;  %v12003_v52 = vld [vmem:[%s16124_s10 + $0x7b0] sm:$0xff]  }
0x1e07   : > { %v7292_v39 = vpop.f32.mrf.mxu1  ;;  %v7365_v18 = vpop.f32.mrf.mxu0  ;;  %8956 = vmatmul.mubr.bf16.gmra.mxu1 %v7724_v6  ;;  %9021 = vmatmul.mubr.bf16.gmra.mxu0 %v7726_v36  ;;  %v7555_v60 = vmax.f32 %v7362_v15, 0.0 }
0x1e08   : > { %v7293_v56 = vadd.f32 %v7292_v39, %v15580_v40  ;;  %v7366_v61 = vadd.f32 %v7365_v18, %v15584_v3  ;;  %11086 = vmatpush3.bf16.msra.mxu1 %v11990_v2  ;;  %v7568_v19 = vmax.f32 %v7291_v20, 0.0  ;;  %v7570_v8 = vmax.f32 %v7364_v54, 0.0  ;;  %11126 = vmatpush3.bf16.msra.mxu0 %v11991_v55  ;;  %v12001_v2 = vld [vmem:[%s16124_s10 + $0x7f0] sm:$0xff]  }
0x1e09   : > { %v7296_v44 = vpop.f32.mrf.mxu1  ;;  %v7369_v31 = vpop.f32.mrf.mxu0  ;;  %11087 = vmatprep.subr.bf16.mxu1 %v11992_v34  ;;  %11127 = vmatprep.subr.bf16.mxu0 %v11993_v35  ;;  %v12002_v34 = vld [vmem:[%s16124_s10 + $0x730] sm:$0xff]  }
0x1e0a   : > { %v7569_v27 = vmax.f32 %v7293_v56, 0.0  ;;  %v7571_v29 = vmax.f32 %v7366_v61, 0.0  ;;  %v7680_v26 = vpack.c.bf16 %v7568_v19, %v7552_v10  ;;  %v7682_v21 = vpack.c.bf16 %v7570_v8, %v7554_v47 }
0x1e0b   : > { %v7298_v22 = vpop.f32.mrf.mxu1  ;;  %v7371_v28 = vpop.f32.mrf.mxu0  ;;  %v7297_v6 = vadd.f32 %v7296_v44, %v15594_v46  ;;  %v7370_v36 = vadd.f32 %v7369_v31, %v15598_v58  ;;  %v12005_v31 = vld [vmem:[%s16124_s10 + $0x7e8] sm:$0xff]  }
0x1e0c   : > { %v7681_v45 = vpack.c.bf16 %v7569_v27, %v7553_v62  ;;  %v7683_v4 = vpack.c.bf16 %v7571_v29, %v7555_v60  ;;  %11088 = vmatpush3.bf16.msra.mxu1 %v11994_v53  ;;  %v7299_v0 = vadd.f32 %v7298_v22, %v15580_v40  ;;  %11128 = vmatpush3.bf16.msra.mxu0 %v11995_v25  ;;  %v12006_v62 = vld [vmem:[%s16124_s10 + $0x728] sm:$0xff]  }
0x1e0d   : > { %v7300_v38 = vpop.f32.mrf.mxu1  ;;  %v7373_v1 = vpop.f32.mrf.mxu0  ;;  %11153 = vmatprep.subr.bf16.mxu1 %v11996_v63  ;;  %v7372_v7 = vadd.f32 %v7371_v28, %v15584_v3  ;;  %11193 = vmatprep.subr.bf16.mxu0 %v11997_v13  ;;  %v7584_v53 = vmax.f32 %v7297_v6, 0.0  ;;  %v7586_v19 = vmax.f32 %v7370_v36, 0.0  ;;  %v12007_v22 = vld [vmem:[%s16124_s10 + $0x7a8] sm:$0xff]   ;;  %v12008_v28 = vld [vmem:[%s16124_s10 + $0x760] sm:$0xff]   ;;  %v12012_v36 = vld [vmem:[%s16124_s10 + $0x758] sm:$0xff]  }
0x1e0e   : > { %v7301_v17 = vadd.f32 %v7300_v38, %v15594_v46  ;;  %v7374_v23 = vadd.f32 %v7373_v1, %v15598_v58  ;;  %9061 = vmatprep.mubr.bf16.mxu1 %v7681_v45  ;;  %9126 = vmatprep.mubr.bf16.mxu0 %v7683_v4  ;;  %v7585_v39 = vmax.f32 %v7299_v0, 0.0  ;;  %v12011_v6 = vld [vmem:[%s16124_s10 + $0x7a0] sm:$0xff]  }
0x1e0f   : > { %v7302_v12 = vpop.f32.mrf.mxu1  ;;  %v7375_v9 = vpop.f32.mrf.mxu0  ;;  %9062 = vmatmul.mubr.bf16.vlgmr.msra.gmra.mxu1 %v7680_v26  ;;  %9127 = vmatmul.mubr.bf16.vlgmr.msra.gmra.mxu0 %v7682_v21  ;;  %v7587_v18 = vmax.f32 %v7372_v7, 0.0 }
0x1e10   : > { %v7303_v42 = vadd.f32 %v7302_v12, %v15580_v40  ;;  %v7376_v55 = vadd.f32 %v7375_v9, %v15584_v3  ;;  %11154 = vmatpush3.bf16.msra.mxu1 %v11998_v37  ;;  %v7600_v15 = vmax.f32 %v7301_v17, 0.0  ;;  %v7602_v20 = vmax.f32 %v7374_v23, 0.0  ;;  %11194 = vmatpush3.bf16.msra.mxu0 %v11999_v50  ;;  %v12009_v37 = vld [vmem:[%s16124_s10 + $0x7e0] sm:$0xff]  }
0x1e11   : > { %v7306_v54 = vpop.f32.mrf.mxu1  ;;  %v7379_v35 = vpop.f32.mrf.mxu0  ;;  %11155 = vmatprep.subr.bf16.mxu1 %v12000_v57  ;;  %11195 = vmatprep.subr.bf16.mxu0 %v12001_v2  ;;  %v12010_v57 = vld [vmem:[%s16124_s10 + $0x720] sm:$0xff]  }
0x1e12   : > { %v7601_v56 = vmax.f32 %v7303_v42, 0.0  ;;  %v7603_v61 = vmax.f32 %v7376_v55, 0.0  ;;  %v7696_v60 = vpack.c.bf16 %v7600_v15, %v7584_v53  ;;  %v7698_v27 = vpack.c.bf16 %v7602_v20, %v7586_v19 }
0x1e13   : > { %v7308_v8 = vpop.f32.mrf.mxu1  ;;  %v7381_v44 = vpop.f32.mrf.mxu0  ;;  %v7307_v26 = vadd.f32 %v7306_v54, %v15594_v46  ;;  %v7380_v21 = vadd.f32 %v7379_v35, %v15598_v58  ;;  %v12013_v35 = vld [vmem:[%s16124_s10 + $0x7d8] sm:$0xff]  }
0x1e14   : > { %v7697_v25 = vpack.c.bf16 %v7601_v56, %v7585_v39  ;;  %v7699_v63 = vpack.c.bf16 %v7603_v61, %v7587_v18  ;;  %11156 = vmatpush3.bf16.msra.mxu1 %v12002_v34  ;;  %v7309_v29 = vadd.f32 %v7308_v8, %v15580_v40  ;;  %11196 = vmatpush3.bf16.msra.mxu0 %v12003_v52  ;;  %v12014_v39 = vld [vmem:[%s16124_s10 + $0x718] sm:$0xff]  }
0x1e15   : > { %v7310_v10 = vpop.f32.mrf.mxu1  ;;  %v7383_v47 = vpop.f32.mrf.mxu0  ;;  %11157 = vmatprep.subr.bf16.mxu1 %v12004_v16  ;;  %v7382_v13 = vadd.f32 %v7381_v44, %v15584_v3  ;;  %11197 = vmatprep.subr.bf16.mxu0 %v12005_v31  ;;  %v7616_v34 = vmax.f32 %v7307_v26, 0.0  ;;  %v7618_v15 = vmax.f32 %v7380_v21, 0.0  ;;  %v12015_v8 = vld [vmem:[%s16124_s10 + $0x798] sm:$0xff]   ;;  %v12016_v44 = vld [vmem:[%s16124_s10 + $0x750] sm:$0xff]  }
0x1e16   : > { %v7311_v45 = vadd.f32 %v7310_v10, %v15594_v46  ;;  %v7384_v4 = vadd.f32 %v7383_v47, %v15598_v58  ;;  %9069 = vmatprep.mubr.bf16.mxu1 %v7697_v25  ;;  %9134 = vmatprep.mubr.bf16.mxu0 %v7699_v63  ;;  %v7617_v12 = vmax.f32 %v7309_v29, 0.0 }
0x1e17   : > { %v7312_v0 = vpop.f32.mrf.mxu1  ;;  %v7385_v38 = vpop.f32.mrf.mxu0  ;;  %9070 = vmatmul.mubr.bf16.gmra.mxu1 %v7696_v60  ;;  %9135 = vmatmul.mubr.bf16.gmra.mxu0 %v7698_v27  ;;  %v7619_v9 = vmax.f32 %v7382_v13, 0.0 }
0x1e18   : > { %v7313_v1 = vadd.f32 %v7312_v0, %v15580_v40  ;;  %v7386_v50 = vadd.f32 %v7385_v38, %v15584_v3  ;;  %11158 = vmatpush3.bf16.msra.mxu1 %v12006_v62  ;;  %v7632_v7 = vmax.f32 %v7311_v45, 0.0  ;;  %v7634_v17 = vmax.f32 %v7384_v4, 0.0  ;;  %11198 = vmatpush3.bf16.msra.mxu0 %v12007_v22  ;;  %v12017_v62 = vld [vmem:[%s16124_s10 + $0x7d0] sm:$0xff]  }
0x1e19   : > { %v7316_v23 = vpop.f32.mrf.mxu1  ;;  %v7389_v2 = vpop.f32.mrf.mxu0  ;;  %11159 = vmatprep.subr.bf16.mxu1 %v12008_v28  ;;  %11199 = vmatprep.subr.bf16.mxu0 %v12009_v37  ;;  %v12018_v28 = vld [vmem:[%s16124_s10 + $0x710] sm:$0xff]   ;;  %v12020_v37 = vld [vmem:[%s16124_s10 + $0x748] sm:$0xff]  }
0x1e1a   : > { %v7633_v42 = vmax.f32 %v7313_v1, 0.0  ;;  %v7635_v55 = vmax.f32 %v7386_v50, 0.0  ;;  %v7712_v18 = vpack.c.bf16 %v7632_v7, %v7616_v34  ;;  %v7714_v56 = vpack.c.bf16 %v7634_v17, %v7618_v15  ;;  %v12021_v17 = vld [vmem:[%s16124_s10 + $0x7c8] sm:$0xff]  }
0x1e1b   : > { %v7318_v20 = vpop.f32.mrf.mxu1  ;;  %v7391_v54 = vpop.f32.mrf.mxu0  ;;  %v7317_v60 = vadd.f32 %v7316_v23, %v15594_v46  ;;  %v7390_v27 = vadd.f32 %v7389_v2, %v15598_v58  ;;  %v15742_v50 = vrot.slane %v15573_v30, %v16288_v32 }
0x1e1c   : > { %v7713_v52 = vpack.c.bf16 %v7633_v42, %v7617_v12  ;;  %v7715_v16 = vpack.c.bf16 %v7635_v55, %v7619_v9  ;;  %11160 = vmatpush3.bf16.msra.mxu1 %v12010_v57  ;;  %v7319_v61 = vadd.f32 %v7318_v20, %v15580_v40  ;;  %11200 = vmatpush3.bf16.msra.mxu0 %v12011_v6  ;;  %v12022_v6 = vld [vmem:[%s16124_s10 + $0x708] sm:$0xff]   ;;  %v12024_v42 = vld [vmem:[%s16124_s10 + $0x740] sm:$0xff]  }
0x1e1d   : > { %v7320_v53 = vpop.f32.mrf.mxu1  ;;  %v7393_v19 = vpop.f32.mrf.mxu0  ;;  %11161 = vmatprep.subr.bf16.mxu1 %v12012_v36  ;;  %v7392_v31 = vadd.f32 %v7391_v54, %v15584_v3  ;;  %11201 = vmatprep.subr.bf16.mxu0 %v12013_v35  ;;  %v7650_v1 = vmax.f32 %v7390_v27, 0.0  ;;  %v12023_v9 = vld [vmem:[%s16124_s10 + $0x788] sm:$0xff]   ;;  %v12025_v20 = vld [vmem:[%s16124_s10 + $0x7c0] sm:$0xff]  }
0x1e1e   : > { %v7321_v25 = vadd.f32 %v7320_v53, %v15594_v46  ;;  %v7394_v63 = vadd.f32 %v7393_v19, %v15598_v58  ;;  %9077 = vmatprep.mubr.bf16.mxu1 %v7713_v52  ;;  %9142 = vmatprep.mubr.bf16.mxu0 %v7715_v16  ;;  %v15724_v58 = vrot.slane %v15573_v30, %v16285_v11  ;;  %v7649_v26 = vmax.f32 %v7319_v61, 0.0 }
0x1e1f   : > { %v7322_v29 = vpop.f32.mrf.mxu1  ;;  %v7395_v10 = vpop.f32.mrf.mxu0  ;;  %9078 = vmatmul.mubr.bf16.gmra.mxu1 %v7712_v18  ;;  %9143 = vmatmul.mubr.bf16.gmra.mxu0 %v7714_v56  ;;  %v7651_v21 = vmax.f32 %v7392_v31, 0.0  ;;  %v7648_v11 = vmax.f32 %v7317_v60, 0.0  ;;  %v12026_v56 = vld [vmem:[%s16124_s10 + $0x700] sm:$0xff]  }
0x1e20   : > { %v7323_v47 = vadd.f32 %v7322_v29, %v15580_v40  ;;  %v7396_v22 = vadd.f32 %v7395_v10, %v15584_v3  ;;  %11162 = vmatpush3.bf16.msra.mxu1 %v12014_v39  ;;  %v7664_v13 = vmax.f32 %v7321_v25, 0.0  ;;  %v7666_v45 = vmax.f32 %v7394_v63, 0.0  ;;  %11202 = vmatpush3.bf16.msra.mxu0 %v12015_v8  ;;  %v12019_v3 = vld [vmem:[%s16124_s10 + $0x790] sm:$0xff]  }
0x1e21   : > { %v7432_v46 = vpop.f32.mrf.mxu1  ;;  %v7505_v4 = vpop.f32.mrf.mxu0  ;;  %v15728_v40 = vrot.slane %v15573_v30, %v16286_v5  ;;  %11163 = vmatprep.subr.bf16.mxu1 %v12016_v44  ;;  %11203 = vmatprep.subr.bf16.mxu0 %v12017_v62  ;;  %v15738_v5 = vrot.slane %v15573_v30, %v16287_v14  ;;  %v12027_v44 = vld [vmem:[%s16124_s10 + $0x780] sm:$0xff]  }
0x1e22   : > { %v7665_v0 = vmax.f32 %v7323_v47, 0.0  ;;  %v7667_v38 = vmax.f32 %v7396_v22, 0.0  ;;  %v7728_v36 = vpack.c.bf16 %v7664_v13, %v7648_v11  ;;  %v7730_v14 = vpack.c.bf16 %v7666_v45, %v7650_v1 }
0x1e23   : > { %v7434_v57 = vpop.f32.mrf.mxu1  ;;  %v7507_v7 = vpop.f32.mrf.mxu0  ;;  %v7433_v54 = vadd.f32 %v7432_v46, %v15738_v5  ;;  %v7506_v35 = vadd.f32 %v7505_v4, %v15742_v50 }
0x1e24   : > { %v7729_v23 = vpack.c.bf16 %v7665_v0, %v7649_v26  ;;  %v7731_v2 = vpack.c.bf16 %v7667_v38, %v7651_v21  ;;  %11164 = vmatpush3.bf16.msra.mxu1 %v12018_v28  ;;  %v7435_v12 = vadd.f32 %v7434_v57, %v15724_v58  ;;  %11204 = vmatpush3.bf16.msra.mxu0 %v12019_v3 }
0x1e25   : > { %v7436_v32 = vpop.f32.mrf.mxu1  ;;  %v7509_v30 = vpop.f32.mrf.mxu0  ;;  %11165 = vmatprep.subr.bf16.mxu1 %v12020_v37  ;;  %v7508_v55 = vadd.f32 %v7507_v7, %v15728_v40  ;;  %11205 = vmatprep.subr.bf16.mxu0 %v12021_v17  ;;  %v7556_v60 = vmax.f32 %v7433_v54, 0.0  ;;  %v7558_v27 = vmax.f32 %v7506_v35, 0.0 }
0x1e26   : > { %v7437_v34 = vadd.f32 %v7436_v32, %v15738_v5  ;;  %v7510_v15 = vadd.f32 %v7509_v30, %v15742_v50  ;;  %9085 = vmatprep.mubr.bf16.mxu1 %v7729_v23  ;;  %9150 = vmatprep.mubr.bf16.mxu0 %v7731_v2  ;;  %v7557_v31 = vmax.f32 %v7435_v12, 0.0 }
0x1e27   : > { %v7438_v52 = vpop.f32.mrf.mxu1  ;;  %v7511_v16 = vpop.f32.mrf.mxu0  ;;  %9086 = vmatmul.mubr.bf16.gmra.mxu1 %v7728_v36  ;;  %9151 = vmatmul.mubr.bf16.gmra.mxu0 %v7730_v14  ;;  %v7559_v25 = vmax.f32 %v7508_v55, 0.0 }
0x1e28   : > { %v7439_v39 = vadd.f32 %v7438_v52, %v15724_v58  ;;  %v7512_v18 = vadd.f32 %v7511_v16, %v15728_v40  ;;  %11166 = vmatpush3.bf16.msra.mxu1 %v12022_v6  ;;  %v7572_v61 = vmax.f32 %v7437_v34, 0.0  ;;  %v7574_v53 = vmax.f32 %v7510_v15, 0.0  ;;  %11206 = vmatpush3.bf16.msra.mxu0 %v12023_v9 }
0x1e29   : > { %v7442_v19 = vpop.f32.mrf.mxu1  ;;  %v7515_v8 = vpop.f32.mrf.mxu0  ;;  %11167 = vmatprep.subr.bf16.mxu1 %v12024_v42  ;;  %11207 = vmatprep.subr.bf16.mxu0 %v12025_v20 }
0x1e2a   : > { %v7573_v63 = vmax.f32 %v7439_v39, 0.0  ;;  %v7575_v62 = vmax.f32 %v7512_v18, 0.0  ;;  %v7684_v28 = vpack.c.bf16 %v7572_v61, %v7556_v60  ;;  %v7686_v13 = vpack.c.bf16 %v7574_v53, %v7558_v27 }
0x1e2b   : > { %v7444_v29 = vpop.f32.mrf.mxu1  ;;  %v7517_v10 = vpop.f32.mrf.mxu0  ;;  %v7443_v21 = vadd.f32 %v7442_v19, %v15738_v5  ;;  %v7516_v0 = vadd.f32 %v7515_v8, %v15742_v50 }
0x1e2c   : > { %v7685_v47 = vpack.c.bf16 %v7573_v63, %v7557_v31  ;;  %v7687_v22 = vpack.c.bf16 %v7575_v62, %v7559_v25  ;;  %11168 = vmatpush3.bf16.msra.mxu1 %v12026_v56  ;;  %v7445_v45 = vadd.f32 %v7444_v29, %v15724_v58  ;;  %11208 = vmatpush3.bf16.msra.mxu0 %v12027_v44 }
0x1e2d   : > { %v7446_v46 = vpop.f32.mrf.mxu1  ;;  %v7519_v4 = vpop.f32.mrf.mxu0  ;;  %v7518_v3 = vadd.f32 %v7517_v10, %v15728_v40  ;;  %v7588_v32 = vmax.f32 %v7443_v21, 0.0  ;;  %v7590_v30 = vmax.f32 %v7516_v0, 0.0 }
0x1e2e   : > { %v7447_v37 = vadd.f32 %v7446_v46, %v15738_v5  ;;  %v7520_v26 = vadd.f32 %v7519_v4, %v15742_v50  ;;  %9191 = vmatprep.mubr.bf16.mxu1 %v7685_v47  ;;  %9256 = vmatprep.mubr.bf16.mxu0 %v7687_v22  ;;  %v7589_v6 = vmax.f32 %v7445_v45, 0.0 }
0x1e2f   : > { %v7448_v38 = vpop.f32.mrf.mxu1  ;;  %v7521_v11 = vpop.f32.mrf.mxu0  ;;  %9192 = vmatmul.mubr.bf16.vlgmr.msra.gmra.mxu1 %v7684_v28  ;;  %9257 = vmatmul.mubr.bf16.vlgmr.msra.gmra.mxu0 %v7686_v13  ;;  %v7591_v36 = vmax.f32 %v7518_v3, 0.0 }
0x1e30   : > { %v7449_v1 = vadd.f32 %v7448_v38, %v15724_v58  ;;  %v7522_v57 = vadd.f32 %v7521_v11, %v15728_v40  ;;  %v7604_v7 = vmax.f32 %v7447_v37, 0.0  ;;  %v7606_v17 = vmax.f32 %v7520_v26, 0.0 }
0x1e31   : > { %v7452_v23 = vpop.f32.mrf.mxu1  ;;  %v7525_v2 = vpop.f32.mrf.mxu0 }
0x1e32   : > { %v7605_v14 = vmax.f32 %v7449_v1, 0.0  ;;  %v7607_v12 = vmax.f32 %v7522_v57, 0.0  ;;  %v7700_v15 = vpack.c.bf16 %v7604_v7, %v7588_v32  ;;  %v7702_v20 = vpack.c.bf16 %v7606_v17, %v7590_v30 }
0x1e33   : > { %v7454_v9 = vpop.f32.mrf.mxu1  ;;  %v7527_v42 = vpop.f32.mrf.mxu0  ;;  %v7453_v56 = vadd.f32 %v7452_v23, %v15738_v5  ;;  %v7526_v61 = vadd.f32 %v7525_v2, %v15742_v50 }
0x1e34   : > { %v7701_v55 = vpack.c.bf16 %v7605_v14, %v7589_v6  ;;  %v7703_v34 = vpack.c.bf16 %v7607_v12, %v7591_v36  ;;  %v7455_v54 = vadd.f32 %v7454_v9, %v15724_v58  ;;  %v7528_v16 = vadd.f32 %v7527_v42, %v15728_v40 }
0x1e35   : > { %v7456_v35 = vpop.f32.mrf.mxu1  ;;  %v7529_v52 = vpop.f32.mrf.mxu0  ;;  %v7620_v47 = vmax.f32 %v7453_v56, 0.0  ;;  %v7622_v22 = vmax.f32 %v7526_v61, 0.0 }
0x1e36   : > { %v7457_v39 = vadd.f32 %v7456_v35, %v15738_v5  ;;  %v7530_v18 = vadd.f32 %v7529_v52, %v15742_v50  ;;  %9199 = vmatprep.mubr.bf16.mxu1 %v7701_v55  ;;  %9264 = vmatprep.mubr.bf16.mxu0 %v7703_v34  ;;  %v7621_v60 = vmax.f32 %v7455_v54, 0.0  ;;  %v7623_v27 = vmax.f32 %v7528_v16, 0.0 }
0x1e37   : > { %v7458_v53 = vpop.f32.mrf.mxu1  ;;  %v7531_v19 = vpop.f32.mrf.mxu0  ;;  %9200 = vmatmul.mubr.bf16.gmra.mxu1 %v7700_v15  ;;  %9265 = vmatmul.mubr.bf16.gmra.mxu0 %v7702_v20 }
0x1e38   : > { %v7459_v8 = vadd.f32 %v7458_v53, %v15724_v58  ;;  %v7532_v44 = vadd.f32 %v7531_v19, %v15728_v40  ;;  %v7636_v31 = vmax.f32 %v7457_v39, 0.0  ;;  %v7638_v25 = vmax.f32 %v7530_v18, 0.0 }
0x1e39   : > { %v7462_v63 = vpop.f32.mrf.mxu1  ;;  %v7535_v62 = vpop.f32.mrf.mxu0 }
0x1e3a   : > { %v7637_v29 = vmax.f32 %v7459_v8, 0.0  ;;  %v7639_v10 = vmax.f32 %v7532_v44, 0.0  ;;  %v7716_v4 = vpack.c.bf16 %v7636_v31, %v7620_v47  ;;  %v7718_v3 = vpack.c.bf16 %v7638_v25, %v7622_v22 }
0x1e3b   : > { %v7464_v28 = vpop.f32.mrf.mxu1  ;;  %v7537_v13 = vpop.f32.mrf.mxu0  ;;  %v7463_v1 = vadd.f32 %v7462_v63, %v15738_v5  ;;  %v7536_v17 = vadd.f32 %v7535_v62, %v15742_v50 }
0x1e3c   : > { %v7717_v45 = vpack.c.bf16 %v7637_v29, %v7621_v60  ;;  %v7719_v46 = vpack.c.bf16 %v7639_v10, %v7623_v27  ;;  %v7465_v37 = vadd.f32 %v7464_v28, %v15724_v58  ;;  %v7538_v0 = vadd.f32 %v7537_v13, %v15728_v40 }
0x1e3d   : > { %v7466_v26 = vpop.f32.mrf.mxu1  ;;  %v7539_v21 = vpop.f32.mrf.mxu0  ;;  %v7652_v9 = vmax.f32 %v7463_v1, 0.0  ;;  %v7654_v42 = vmax.f32 %v7536_v17, 0.0 }
0x1e3e   : > { %v7467_v38 = vadd.f32 %v7466_v26, %v15738_v5  ;;  %v7540_v11 = vadd.f32 %v7539_v21, %v15742_v50  ;;  %9207 = vmatprep.mubr.bf16.mxu1 %v7717_v45  ;;  %9272 = vmatprep.mubr.bf16.mxu0 %v7719_v46  ;;  %v7653_v6 = vmax.f32 %v7465_v37, 0.0  ;;  %v7655_v14 = vmax.f32 %v7538_v0, 0.0 }
0x1e3f   : > { %v7468_v57 = vpop.f32.mrf.mxu1  ;;  %v7541_v7 = vpop.f32.mrf.mxu0  ;;  %9208 = vmatmul.mubr.bf16.gmra.mxu1 %v7716_v4  ;;  %9273 = vmatmul.mubr.bf16.gmra.mxu0 %v7718_v3 }
0x1e40   : > { %v7469_v23 = vadd.f32 %v7468_v57, %v15724_v58  ;;  %v7542_v2 = vadd.f32 %v7541_v7, %v15728_v40  ;;  %v7668_v36 = vmax.f32 %v7467_v38, 0.0  ;;  %v7670_v12 = vmax.f32 %v7540_v11, 0.0  ;;  %v10294_v40 = vld [vmem:[%s16125_s11 + $0x1] ss:$0 sm:$0xff] }
0x1e42   : > { %v7669_v32 = vmax.f32 %v7469_v23, 0.0  ;;  %v7671_v30 = vmax.f32 %v7542_v2, 0.0  ;;  %v7732_v34 = vpack.c.bf16 %v7668_v36, %v7652_v9  ;;  %v7734_v15 = vpack.c.bf16 %v7670_v12, %v7654_v42 }
0x1e44   : > { %v7733_v55 = vpack.c.bf16 %v7669_v32, %v7653_v6  ;;  %v7735_v5 = vpack.c.bf16 %v7671_v30, %v7655_v14 }
0x1e46   : > { %9215 = vmatprep.mubr.bf16.mxu1 %v7733_v55  ;;  %9280 = vmatprep.mubr.bf16.mxu0 %v7735_v5 }
0x1e47   : > { %9216 = vmatmul.mubr.bf16.gmra.mxu1 %v7732_v34  ;;  %9281 = vmatmul.mubr.bf16.gmra.mxu0 %v7734_v15 }
0x1e8f   : > { %v10929_v58 = vpop.f32.mrf.mxu1  ;;  %v10969_v50 = vpop.f32.mrf.mxu0 }
0x1e91   : > { %v10930_v20 = vpop.f32.mrf.mxu1  ;;  %v10970_v54 = vpop.f32.mrf.mxu0 }
0x1e92   : > { %v10931_v35 = vadd.f32 %v10930_v20, %v10929_v58  ;;  %v10971_v52 = vadd.f32 %v10970_v54, %v10969_v50 }
0x1e93   : > { %v10932_v16 = vpop.f32.mrf.mxu1  ;;  %v10972_v39 = vpop.f32.mrf.mxu0 }
0x1e94   : > { %v8804_v18 = vadd.f32 %v10931_v35, %v10294_v40 }
0x1e95   : > { %v10933_v56 = vpop.f32.mrf.mxu1  ;;  %v10973_v61 = vpop.f32.mrf.mxu0 }
0x1e96   : > { %v15800_v53 = vadd.f32 %v10971_v52, %v8804_v18  ;;  %v10934_v19 = vadd.f32 %v10933_v56, %v10932_v16  ;;  %v10974_v8 = vadd.f32 %v10973_v61, %v10972_v39 }
0x1e97   : > { %v10935_v44 = vpop.f32.mrf.mxu1  ;;  %v10975_v25 = vpop.f32.mrf.mxu0 }
0x1e98   : > { %v8807_v31 = vadd.f32 %v10934_v19, %v10294_v40 }
0x1e99   : > { %v10936_v63 = vpop.f32.mrf.mxu1  ;;  %v10976_v27 = vpop.f32.mrf.mxu0 }
0x1e9a   : > { %v15802_v62 = vadd.f32 %v10974_v8, %v8807_v31  ;;  %v10937_v60 = vadd.f32 %v10936_v63, %v10935_v44  ;;  %v10977_v29 = vadd.f32 %v10976_v27, %v10975_v25 }
0x1e9b   : > { %v10938_v10 = vpop.f32.mrf.mxu1  ;;  %v10978_v22 = vpop.f32.mrf.mxu0 }
0x1e9c   : > { %v8812_v47 = vadd.f32 %v10937_v60, %v10294_v40 }
0x1e9d   : > { %v10939_v28 = vpop.f32.mrf.mxu1  ;;  %v10979_v46 = vpop.f32.mrf.mxu0 }
0x1e9e   : > { %v15804_v13 = vadd.f32 %v10977_v29, %v8812_v47  ;;  %v10940_v45 = vadd.f32 %v10939_v28, %v10938_v10  ;;  %v10980_v4 = vadd.f32 %v10979_v46, %v10978_v22 }
0x1e9f   : > { %v10941_v3 = vpop.f32.mrf.mxu1  ;;  %v10981_v26 = vpop.f32.mrf.mxu0 }
0x1ea0   : > { %v8815_v37 = vadd.f32 %v10940_v45, %v10294_v40 }
0x1ea1   : > { %v10942_v21 = vpop.f32.mrf.mxu1  ;;  %v10982_v11 = vpop.f32.mrf.mxu0 }
0x1ea2   : > { %v15806_v0 = vadd.f32 %v10980_v4, %v8815_v37  ;;  %v10943_v38 = vadd.f32 %v10942_v21, %v10941_v3  ;;  %v10983_v1 = vadd.f32 %v10982_v11, %v10981_v26 }
0x1ea3   : > { %v10944_v57 = vpop.f32.mrf.mxu1  ;;  %v10984_v17 = vpop.f32.mrf.mxu0 }
0x1ea4   : > { %v8820_v7 = vadd.f32 %v10943_v38, %v10294_v40 }
0x1ea5   : > { %v10945_v23 = vpop.f32.mrf.mxu1  ;;  %v10985_v36 = vpop.f32.mrf.mxu0 }
0x1ea6   : > { %v15808_v2 = vadd.f32 %v10983_v1, %v8820_v7  ;;  %v10946_v6 = vadd.f32 %v10945_v23, %v10944_v57  ;;  %v10986_v14 = vadd.f32 %v10985_v36, %v10984_v17 }
0x1ea7   : > { %v10947_v12 = vpop.f32.mrf.mxu1  ;;  %v10987_v30 = vpop.f32.mrf.mxu0 }
0x1ea8   : > { %v8823_v32 = vadd.f32 %v10946_v6, %v10294_v40 }
0x1ea9   : > { %v10948_v9 = vpop.f32.mrf.mxu1  ;;  %v10988_v5 = vpop.f32.mrf.mxu0 }
0x1eaa   : > { %v15810_v42 = vadd.f32 %v10986_v14, %v8823_v32  ;;  %v10949_v55 = vadd.f32 %v10948_v9, %v10947_v12  ;;  %v10989_v34 = vadd.f32 %v10988_v5, %v10987_v30 }
0x1eab   : > { %v10950_v15 = vpop.f32.mrf.mxu1  ;;  %v10990_v50 = vpop.f32.mrf.mxu0 }
0x1eac   : > { %v8828_v58 = vadd.f32 %v10949_v55, %v10294_v40 }
0x1ead   : > { %v10951_v20 = vpop.f32.mrf.mxu1  ;;  %v10991_v52 = vpop.f32.mrf.mxu0 }
0x1eae   : > { %v15812_v54 = vadd.f32 %v10989_v34, %v8828_v58  ;;  %v10952_v35 = vadd.f32 %v10951_v20, %v10950_v15  ;;  %v10992_v16 = vadd.f32 %v10991_v52, %v10990_v50 }
0x1eaf   : > { %v11009_v39 = vpop.f32.mrf.mxu1  ;;  %v11049_v56 = vpop.f32.mrf.mxu0 }
0x1eb0   : > { %16289 = vst [vmem:[#allocation33_spill] sm:$0xff] %v15812_v54  ;;  %v8831_v18 = vadd.f32 %v10952_v35, %v10294_v40 }
0x1eb1   : > { %v11010_v61 = vpop.f32.mrf.mxu1  ;;  %v11050_v8 = vpop.f32.mrf.mxu0 }
0x1eb2   : > { %v15814_v19 = vadd.f32 %v10992_v16, %v8831_v18  ;;  %v11051_v54 = vadd.f32 %v11050_v8, %v11049_v56 }
0x1eb3   : > { %v11012_v44 = vpop.f32.mrf.mxu1  ;;  %v15816_v31 = vpop.f32.mrf.mxu0 }
0x1eb4   : > { %16290 = vst [vmem:[#allocation10_spill] sm:$0xff] %v15814_v19 }
0x1eb5   : > { %v11013_v25 = vpop.f32.mrf.mxu1  ;;  %v15818_v63 = vpop.f32.mrf.mxu0 }
0x1eb7   : > { %v11015_v60 = vpop.f32.mrf.mxu1  ;;  %v15820_v27 = vpop.f32.mrf.mxu0 }
0x1eb9   : > { %v11016_v29 = vpop.f32.mrf.mxu1  ;;  %v15822_v10 = vpop.f32.mrf.mxu0 }
0x1ebb   : > { %v15824_v47 = vpop.f32.mrf.mxu1  ;;  %v15826_v40 = vpop.f32.mrf.mxu0 }
0x1ebd   : > { %v11019_v22 = vpop.f32.mrf.mxu1  ;;  %v15828_v28 = vpop.f32.mrf.mxu0 }
0x1ebe   : > { %v11020_v8 = vadd.f32 %v11019_v22, %v15824_v47 }
0x1ebf   : > { %v15830_v45 = vpop.f32.mrf.mxu1  ;;  %v15832_v46 = vpop.f32.mrf.mxu0 }
0x1ec1   : > { %v15834_v4 = vpop.f32.mrf.mxu1  ;;  %v15836_v3 = vpop.f32.mrf.mxu0 }
0x1ec3   : > { %v15838_v37 = vpop.f32.mrf.mxu1  ;;  %v15840_v26 = vpop.f32.mrf.mxu0 }
0x1ec5   : > { %v15842_v21 = vpop.f32.mrf.mxu1  ;;  %v15844_v38 = vpop.f32.mrf.mxu0 }
0x1ec6   : > { %16291 = vst [vmem:[#allocation26_spill] sm:$0xff] %v15844_v38 }
0x1ec7   : > { %v15846_v11 = vpop.f32.mrf.mxu1  ;;  %v15848_v1 = vpop.f32.mrf.mxu0 }
0x1ec8   : > { %16292 = vst [vmem:[#allocation27_spill] sm:$0xff] %v15848_v1 }
0x1ec9   : > { %v15850_v57 = vpop.f32.mrf.mxu1  ;;  %v15852_v7 = vpop.f32.mrf.mxu0 }
0x1eca   : > { %16293 = vst [vmem:[#allocation37_spill] sm:$0xff] %v15852_v7 }
0x1ecb   : > { %v15854_v17 = vpop.f32.mrf.mxu1  ;;  %v15856_v23 = vpop.f32.mrf.mxu0 }
0x1ecc   : > { %16294 = vst [vmem:[#allocation34_spill] sm:$0xff] %v15854_v17  ;;  %16295 = vst [vmem:[#allocation36_spill] sm:$0xff] %v15856_v23  ;;  %v11011_v23 = vadd.f32 %v11010_v61, %v11009_v39  ;;  %v11017_v39 = vadd.f32 %v11016_v29, %v11015_v60 }
0x1ecd   : > { %v15858_v6 = vpop.f32.mrf.mxu1  ;;  %v15860_v36 = vpop.f32.mrf.mxu0 }
0x1ece   : > { %16296 = vst [vmem:[#allocation24_spill] sm:$0xff] %v15858_v6  ;;  %16297 = vst [vmem:[#allocation9_spill] sm:$0xff] %v15860_v36  ;;  %v8934_v24 = vadd.f32 %v11011_v23, %v15800_v53  ;;  %v11014_v6 = vadd.f32 %v11013_v25, %v11012_v44  ;;  %v11054_v53 = vadd.f32 %v15818_v63, %v15816_v31 }
0x1ecf   : > { %v11089_v14 = vpop.f32.mrf.mxu1  ;;  %v11129_v12 = vpop.f32.mrf.mxu0  ;;  %v8942_v56 = vadd.f32 %v11017_v39, %v15804_v13  ;;  %v8945_v63 = vadd.f32 %v11020_v8, %v15806_v0  ;;  %v11023_v13 = vadd.f32 %v15834_v4, %v15830_v45  ;;  %v11026_v0 = vadd.f32 %v15842_v21, %v15838_v37 }
0x1ed1   : > { %v11090_v32 = vpop.f32.mrf.mxu1  ;;  %v11130_v30 = vpop.f32.mrf.mxu0  ;;  %v8953_v8 = vadd.f32 %v11026_v0, %v15810_v42 }
0x1ed3   : > { %v11092_v9 = vpop.f32.mrf.mxu1  ;;  %v11132_v55 = vpop.f32.mrf.mxu0 }
0x1ed5   : > { %v11093_v5 = vpop.f32.mrf.mxu1  ;;  %v11133_v34 = vpop.f32.mrf.mxu0 }
0x1ed6   : > { %v11094_v25 = vadd.f32 %v11093_v5, %v11092_v9  ;;  %v11134_v47 = vadd.f32 %v11133_v34, %v11132_v55  ;;  %v8950_v55 = vadd.f32 %v11023_v13, %v15808_v2 }
0x1ed7   : > { %v11095_v15 = vpop.f32.mrf.mxu1  ;;  %v15862_v58 = vpop.f32.mrf.mxu0 }
0x1ed9   : > { %v11096_v50 = vpop.f32.mrf.mxu1  ;;  %v15864_v20 = vpop.f32.mrf.mxu0 }
0x1eda   : > { %v11137_v45 = vadd.f32 %v15864_v20, %v15862_v58 }
0x1edb   : > { %v11098_v35 = vpop.f32.mrf.mxu1  ;;  %v15866_v52 = vpop.f32.mrf.mxu0 }
0x1edd   : > { %v11099_v16 = vpop.f32.mrf.mxu1  ;;  %v15868_v18 = vpop.f32.mrf.mxu0 }
0x1edf   : > { %v15870_v48 = vpop.f32.mrf.mxu1  ;;  %v15872_v59 = vpop.f32.mrf.mxu0 }
0x1ee0   : > { %16298 = vst [vmem:[#allocation29_spill] sm:$0xff] %v15872_v59 }
0x1ee1   : > { %v15874_v41 = vpop.f32.mrf.mxu1  ;;  %v15876_v33 = vpop.f32.mrf.mxu0 }
0x1ee2   : > { %16299 = vst [vmem:[#allocation31_spill] sm:$0xff] %v15876_v33  ;;  %v11091_v33 = vadd.f32 %v11090_v32, %v11089_v14  ;;  %v11103_v37 = vadd.f32 %v15874_v41, %v15870_v48 }
0x1ee3   : > { %v15878_v36 = vpop.f32.mrf.mxu1  ;;  %v15880_v51 = vpop.f32.mrf.mxu0 }
0x1ee4   : > { %16300 = vst [vmem:[#allocation12_spill] sm:$0xff] %v15880_v51  ;;  %v8999_v51 = vadd.f32 %v11051_v54, %v8934_v24  ;;  %v11131_v24 = vadd.f32 %v11130_v30, %v11129_v12  ;;  %v11100_v30 = vadd.f32 %v11099_v16, %v11098_v35 }
0x1ee5   : > { %v15882_v19 = vpop.f32.mrf.mxu1  ;;  %v15884_v7 = vpop.f32.mrf.mxu0 }
0x1ee6   : > { %16301 = vst [vmem:[#allocation38_spill] sm:$0xff] %v15882_v19  ;;  %16302 = vst [vmem:[#allocation11_spill] sm:$0xff] %v15884_v7  ;;  %v8937_v19 = vadd.f32 %v11014_v6, %v15802_v62  ;;  %v9064_v44 = vadd.f32 %v11091_v33, %v8999_v51  ;;  %v11057_v62 = vadd.f32 %v15822_v10, %v15820_v27 }
0x1ee7   : > { %v15886_v1 = vpop.f32.mrf.mxu1  ;;  %v15889_v17 = vpop.f32.mrf.mxu0  ;;  %v11097_v6 = vadd.f32 %v11096_v50, %v11095_v15  ;;  %v11060_v27 = vadd.f32 %v15828_v28, %v15826_v40 }
0x1ee8   : > { %16303 = vst [vmem:[#allocation14_spill] sm:$0xff] %v15886_v1  ;;  %v9002_v29 = vadd.f32 %v11054_v53, %v8937_v19  ;;  %v9129_v32 = vadd.f32 %v11131_v24, %v9064_v44  ;;  %v9007_v33 = vadd.f32 %v11057_v62, %v8942_v56 }
0x1ee9   : > { %v15891_v59 = vpop.f32.mrf.mxu1  ;;  %v15893_v38 = vpop.f32.mrf.mxu0  ;;  %v9010_v44 = vadd.f32 %v11060_v27, %v8945_v63 }
0x1eea   : > { %v9072_v10 = vadd.f32 %v11097_v6, %v9007_v33  ;;  %v16307_v33 = vld [vmem:[#allocation33_spill] sm:$0xff] }
0x1eeb   : > { %v15895_v61 = vpop.f32.mrf.mxu1  ;;  %v15898_v7 = vpop.f32.mrf.mxu0  ;;  %v9075_v16 = vadd.f32 %v11100_v30, %v9010_v44 }
0x1eec   : > { %16304 = vst [vmem:[#allocation13_spill] sm:$0xff] %v15898_v7  ;;  %v9067_v7 = vadd.f32 %v11094_v25, %v9002_v29  ;;  %v9137_v35 = vadd.f32 %v11137_v45, %v9072_v10  ;;  %v16312_v10 = vld [vmem:[#allocation35_spill] sm:$0xff] }
0x1eed   : > { %v15900_v1 = vpop.f32.mrf.mxu1  ;;  %v15904_v23 = vpop.f32.mrf.mxu0  ;;  %v16306_v42 = vld [vmem:[#allocation38_spill] sm:$0xff] }
0x1eee   : > { %v9132_v15 = vadd.f32 %v11134_v47, %v9067_v7  ;;  %v11063_v7 = vadd.f32 %v15836_v3, %v15832_v46  ;;  %v11140_v46 = vadd.f32 %v15868_v18, %v15866_v52 }
0x1eef   : > { %v11169_v60 = vpop.f32.mrf.mxu1  ;;  %v11209_v54 = vpop.f32.mrf.mxu0 }
0x1ef0   : > { %v9140_v6 = vadd.f32 %v11140_v46, %v9075_v16  ;;  %v16321_v46 = vld [vmem:[#allocation9_spill] sm:$0xff] }
0x1ef1   : > { %v11170_v14 = vpop.f32.mrf.mxu1  ;;  %v11210_v51 = vpop.f32.mrf.mxu0 }
0x1ef2   : > { %v11171_v31 = vadd.f32 %v11170_v14, %v11169_v60  ;;  %v11211_v22 = vadd.f32 %v11210_v51, %v11209_v54  ;;  %v9015_v60 = vadd.f32 %v11063_v7, %v8950_v55  ;;  %v16305_v54 = vld [vmem:[#allocation26_spill] sm:$0xff]  ;;  %v11106_v14 = vadd.f32 %v16306_v42, %v15878_v36  ;;  %v16316_v7 = vld [vmem:[#allocation12_spill] sm:$0xff] }
0x1ef3   : > { %v11172_v9 = vpop.f32.mrf.mxu1  ;;  %v11212_v12 = vpop.f32.mrf.mxu0  ;;  %v11066_v62 = vadd.f32 %v16305_v54, %v15840_v26  ;;  %v16310_v26 = vld [vmem:[#allocation29_spill] sm:$0xff] }
0x1ef4   : > { %v9194_v19 = vadd.f32 %v11171_v31, %v9129_v32 }
0x1ef5   : > { %v11173_v5 = vpop.f32.mrf.mxu1  ;;  %v11213_v53 = vpop.f32.mrf.mxu0  ;;  %v9018_v51 = vadd.f32 %v11066_v62, %v8953_v8 }
0x1ef6   : > { %v9259_v50 = vadd.f32 %v11211_v22, %v9194_v19  ;;  %v11174_v39 = vadd.f32 %v11173_v5, %v11172_v9  ;;  %v11214_v25 = vadd.f32 %v11213_v53, %v11212_v12  ;;  %v16309_v9 = vld [vmem:[#allocation24_spill] sm:$0xff]  ;;  %v16311_v19 = vld [vmem:[#allocation31_spill] sm:$0xff]  ;;  %v16315_v53 = vld [vmem:[#allocation14_spill] sm:$0xff] }
0x1ef7   : > { %v11175_v4 = vpop.f32.mrf.mxu1  ;;  %v11215_v40 = vpop.f32.mrf.mxu0  ;;  %v11143_v22 = vadd.f32 %v16311_v19, %v16310_v26  ;;  %v16313_v5 = vld [vmem:[#allocation27_spill] sm:$0xff]  ;;  %v11109_v44 = vadd.f32 %v15891_v59, %v16315_v53  ;;  %v16319_v59 = vld [vmem:[#allocation25_spill] sm:$0xff] }
0x1ef8   : > { %v9197_v34 = vadd.f32 %v11174_v39, %v9132_v15  ;;  %v15921_v28 = vadd.f32 %v9259_v50, %v14988_v43  ;;  %v11029_v43 = vadd.f32 %v15850_v57, %v15846_v11  ;;  %v9080_v57 = vadd.f32 %v11103_v37, %v9015_v60  ;;  %v16314_v15 = vld [vmem:[#allocation37_spill] sm:$0xff]  ;;  %v16318_v37 = vld [vmem:[#allocation10_spill] sm:$0xff] }
0x1ef9   : > { %v11176_v56 = vpop.f32.mrf.mxu1  ;;  %v11216_v20 = vpop.f32.mrf.mxu0  ;;  %v11069_v50 = vadd.f32 %v16314_v15, %v16313_v5  ;;  %v9083_v39 = vadd.f32 %v11106_v14, %v9018_v51  ;;  %v11149_v14 = vadd.f32 %v15893_v38, %v15889_v17  ;;  %v16323_v26 = vld [vmem:[#allocation13_spill] sm:$0xff] }
0x1efa   : > { %v9262_v21 = vadd.f32 %v11214_v25, %v9197_v34  ;;  %v11177_v58 = vadd.f32 %v11176_v56, %v11175_v4  ;;  %v9301_v2 = vsel %vm628_vm0, %v15921_v28, 0.0  ;;  %v11217_v24 = vadd.f32 %v11216_v20, %v11215_v40 }
0x1efb   : > { %v11178_v3 = vpop.f32.mrf.mxu1  ;;  %9302 = vadd.xlane.f32.xlu1 %v9301_v2  ;;  %v11218_v41 = vpop.f32.mrf.mxu0  ;;  %v8958_v63 = vadd.f32 %v11029_v43, %v16307_v33  ;;  %v9145_v45 = vadd.f32 %v11143_v22, %v9080_v57  ;;  %v16320_v43 = vld [vmem:[#allocation36_spill] sm:$0xff]  ;;  %v11152_v38 = vadd.f32 %v15904_v23, %v16323_v26 }
0x1efc   : > { %v9202_v29 = vadd.f32 %v11177_v58, %v9137_v35  ;;  %v15935_v48 = vadd.f32 %v9262_v21, %v14992_v49  ;;  %v16308_v49 = vld [vmem:[#allocation34_spill] sm:$0xff]  ;;  %v16317_v35 = vld [vmem:[#allocation11_spill] sm:$0xff] }
0x1efd   : > { %v11179_v11 = vpop.f32.mrf.mxu1  ;;  %v11219_v18 = vpop.f32.mrf.mxu0  ;;  %v11032_v13 = vadd.f32 %v16309_v9, %v16308_v49  ;;  %v9023_v40 = vadd.f32 %v11069_v50, %v8958_v63  ;;  %v11146_v16 = vadd.f32 %v16317_v35, %v16316_v7 }
0x1efe   : > { %v9267_v32 = vadd.f32 %v11217_v24, %v9202_v29  ;;  %v11180_v52 = vadd.f32 %v11179_v11, %v11178_v3  ;;  %v9304_v31 = vsel %vm628_vm0, %v15935_v48, 0.0  ;;  %v11220_v12 = vadd.f32 %v11219_v18, %v11218_v41 }
0x1eff   : > { %v11181_v47 = vpop.f32.mrf.mxu1  ;;  %9305 = vadd.xlane.f32.xlu0 %v9304_v31  ;;  %v11221_v27 = vpop.f32.mrf.mxu0  ;;  %v8961_v21 = vadd.f32 %v11032_v13, %v16318_v37  ;;  %v11072_v3 = vadd.f32 %v16321_v46, %v16320_v43  ;;  %v9148_v60 = vadd.f32 %v11146_v16, %v9083_v39  ;;  %v9088_v29 = vadd.f32 %v11109_v44, %v9023_v40  ;;  %v16322_v31 = vld [vmem:[#allocation28_spill] sm:$0xff] }
0x1f00   : > { %v9205_v36 = vadd.f32 %v11180_v52, %v9140_v6  ;;  %v15949_v30 = vadd.f32 %v9267_v32, %v16312_v10  ;;  %v11112_v41 = vadd.f32 %v15900_v1, %v15895_v61 }
0x1f01   : > { %v11182_v0 = vpop.f32.mrf.mxu1  ;;  %v11222_v34 = vpop.f32.mrf.mxu0  ;;  %v9026_v57 = vadd.f32 %v11072_v3, %v8961_v21  ;;  %v9153_v33 = vadd.f32 %v11149_v14, %v9088_v29 }
0x1f02   : > { %v9270_v4 = vadd.f32 %v11220_v12, %v9205_v36  ;;  %v11183_v55 = vadd.f32 %v11182_v0, %v11181_v47  ;;  %v9307_v25 = vsel %vm628_vm0, %v15949_v30, 0.0  ;;  %v11223_v20 = vadd.f32 %v11222_v34, %v11221_v27  ;;  %v16324_v36 = vld [vmem:[#allocation23_spill] sm:$0xff]  ;;  %v16325_v0 = vld [vmem:[#allocation32_spill] sm:$0xff] }
0x1f03   : > { %v11184_v56 = vpop.f32.mrf.mxu1  ;;  %9308 = vadd.xlane.f32.xlu1 %v9307_v25  ;;  %v11224_v2 = vpop.f32.mrf.mxu0  ;;  %v9091_v1 = vadd.f32 %v11112_v41, %v9026_v57 }
0x1f04   : > { %v9210_v58 = vadd.f32 %v11183_v55, %v9145_v45  ;;  %v15961_v8 = vadd.f32 %v9270_v4, %v16319_v59  ;;  %v16326_v55 = vld [vmem:[#allocation30_spill] sm:$0xff] }
0x1f05   : > { %v11185_v24 = vpop.f32.mrf.mxu1  ;;  %v11225_v6 = vpop.f32.mrf.mxu0  ;;  %v9156_v10 = vadd.f32 %v11152_v38, %v9091_v1 }
0x1f06   : > { %v9275_v54 = vadd.f32 %v11223_v20, %v9210_v58  ;;  %v11186_v62 = vadd.f32 %v11185_v24, %v11184_v56  ;;  %v9310_v42 = vsel %vm628_vm0, %v15961_v8, 0.0  ;;  %v11226_v52 = vadd.f32 %v11225_v6, %v11224_v2 }
0x1f07   : > { %v11187_v11 = vpop.f32.mrf.mxu1  ;;  %9311 = vadd.xlane.f32.xlu0 %v9310_v42  ;;  %v11227_v18 = vpop.f32.mrf.mxu0 }
0x1f08   : > { %v9213_v32 = vadd.f32 %v11186_v62, %v9148_v60  ;;  %v9293_v51 = vadd.f32 %v9275_v54, %v16322_v31 }
0x1f09   : > { %v11188_v63 = vpop.f32.mrf.mxu1  ;;  %v11228_v9 = vpop.f32.mrf.mxu0 }
0x1f0a   : > { %v9278_v61 = vadd.f32 %v11226_v52, %v9213_v32  ;;  %v11189_v49 = vadd.f32 %v11188_v63, %v11187_v11  ;;  %v9313_v13 = vsel %vm628_vm0, %v9293_v51, 0.0  ;;  %v11229_v19 = vadd.f32 %v11228_v9, %v11227_v18 }
0x1f0b   : > { %v11190_v47 = vpop.f32.mrf.mxu1  ;;  %9314 = vadd.xlane.f32.xlu1 %v9313_v13  ;;  %v11230_v22 = vpop.f32.mrf.mxu0  ;;  %v12028_v13 = vld [vmem:[%s16128_s14 + $0x8] sm:$0xff]  }
0x1f0c   : > { %v9218_v17 = vadd.f32 %v11189_v49, %v9153_v33  ;;  %v9294_v12 = vadd.f32 %v9278_v61, %v16324_v36  ;;  %11543 = vmatprep.subr.bf16.mxu1 %v12028_v13 }
0x1f0d   : > { %v11191_v27 = vpop.f32.mrf.mxu1  ;;  %v11231_v50 = vpop.f32.mrf.mxu0  ;;  %11544 = vmatpush3.bf16.msra.mxu1 %v12028_v13 }
0x1f0e   : > { %v9283_v5 = vadd.f32 %v11229_v19, %v9218_v17  ;;  %v11192_v15 = vadd.f32 %v11191_v27, %v11190_v47  ;;  %v9316_v39 = vsel %vm628_vm0, %v9294_v12, 0.0  ;;  %v11232_v44 = vadd.f32 %v11231_v50, %v11230_v22  ;;  %v12029_v47 = vld [vmem:[%s16128_s14] sm:$0xff]  }
0x1f0f   : > { %9317 = vadd.xlane.f32.xlu0 %v9316_v39  ;;  %11545 = vmatprep.subr.bf16.mxu1 %v12029_v47 }
0x1f10   : > { %v9221_v53 = vadd.f32 %v11192_v15, %v9156_v10  ;;  %v9295_v45 = vadd.f32 %v9283_v5, %v16325_v0 }
0x1f11   : > { %11546 = vmatpush3.bf16.msra.mxu1 %v12029_v47 }
0x1f12   : > { %v9286_v4 = vadd.f32 %v11232_v44, %v9221_v53  ;;  %v9319_v23 = vsel %vm628_vm0, %v9295_v45, 0.0 }
0x1f13   : > { %9320 = vadd.xlane.f32.xlu1 %v9319_v23 }
0x1f14   : > { %v9296_v34 = vadd.f32 %v9286_v4, %v16326_v55  ;;  %v10425_v4 = vld [vmem:[%s16126_s12 + $0x1] ss:$0 sm:$0xff] }
0x1f16   : > { %v9322_v25 = vsel %vm628_vm0, %v9296_v34, 0.0 }
0x1f17   : > { %9323 = vadd.xlane.f32.xlu0 %v9322_v25 }
0x1f84   : > { %v9303_v40 = vpop.xlane.xlu1 %9302 }
0x1f85   : > { %v9325_v7 = vmul.f32 0.03125, %v9303_v40 }
0x1f87   : > { %v15982_v35 = vsub.f32 %v15921_v28, %v9325_v7 }
0x1f88   : > { %v9306_v16 = vpop.xlane.xlu0 %9305 }
0x1f89   : > { %v9326_v56 = vmul.f32 0.03125, %v9306_v16  ;;  %v9341_v37 = vmul.f32 %v15982_v35, %v15982_v35  ;;  %v10426_v16 = vld [vmem:[%s16127_s13 + $0x1] ss:$0 sm:$0xff] }
0x1f8b   : > { %v15987_v21 = vsub.f32 %v15935_v48, %v9326_v56  ;;  %v9349_v58 = vsel %vm628_vm0, %v9341_v37, 0.0 }
0x1f8c   : > { %v9309_v20 = vpop.xlane.xlu1 %9308  ;;  %9350 = vadd.xlane.f32.xlu1 %v9349_v58 }
0x1f8d   : > { %v9327_v2 = vmul.f32 0.03125, %v9309_v20  ;;  %v9342_v59 = vmul.f32 %v15987_v21, %v15987_v21 }
0x1f8f   : > { %v15993_v43 = vsub.f32 %v15949_v30, %v9327_v2  ;;  %v9352_v28 = vsel %vm628_vm0, %v9342_v59, 0.0 }
0x1f90   : > { %v9312_v46 = vpop.xlane.xlu0 %9311  ;;  %9353 = vadd.xlane.f32.xlu0 %v9352_v28 }
0x1f91   : > { %v9328_v3 = vmul.f32 0.03125, %v9312_v46  ;;  %v9343_v48 = vmul.f32 %v15993_v43, %v15993_v43 }
0x1f93   : > { %v15999_v60 = vsub.f32 %v15961_v8, %v9328_v3  ;;  %v9355_v29 = vsel %vm628_vm0, %v9343_v48, 0.0 }
0x1f94   : > { %v9315_v24 = vpop.xlane.xlu1 %9314  ;;  %9356 = vadd.xlane.f32.xlu1 %v9355_v29 }
0x1f95   : > { %v9329_v41 = vmul.f32 0.03125, %v9315_v24  ;;  %v9344_v30 = vmul.f32 %v15999_v60, %v15999_v60 }
0x1f97   : > { %v16004_v54 = vsub.f32 %v9293_v51, %v9329_v41  ;;  %v9358_v62 = vsel %vm628_vm0, %v9344_v30, 0.0 }
0x1f98   : > { %v9318_v6 = vpop.xlane.xlu0 %9317  ;;  %9359 = vadd.xlane.f32.xlu0 %v9358_v62 }
0x1f99   : > { %v9330_v42 = vmul.f32 0.03125, %v9318_v6  ;;  %v9345_v14 = vmul.f32 %v16004_v54, %v16004_v54 }
0x1f9b   : > { %v16009_v8 = vsub.f32 %v9294_v12, %v9330_v42  ;;  %v9361_v11 = vsel %vm628_vm0, %v9345_v14, 0.0 }
0x1f9c   : > { %9362 = vadd.xlane.f32.xlu1 %v9361_v11  ;;  %v9321_v57 = vpop.xlane.xlu1 %9320 }
0x1f9d   : > { %v9331_v32 = vmul.f32 0.03125, %v9321_v57  ;;  %v9346_v52 = vmul.f32 %v16009_v8, %v16009_v8 }
0x1f9f   : > { %v16014_v18 = vsub.f32 %v9295_v45, %v9331_v32  ;;  %v9364_v31 = vsel %vm628_vm0, %v9346_v52, 0.0 }
0x1fa0   : > { %9365 = vadd.xlane.f32.xlu0 %v9364_v31  ;;  %v9324_v51 = vpop.xlane.xlu0 %9323 }
0x1fa1   : > { %v9332_v33 = vmul.f32 0.03125, %v9324_v51  ;;  %v9347_v63 = vmul.f32 %v16014_v18, %v16014_v18 }
0x1fa3   : > { %v16019_v1 = vsub.f32 %v9296_v34, %v9332_v33  ;;  %v9367_v61 = vsel %vm628_vm0, %v9347_v63, 0.0 }
0x1fa4   : > { %9368 = vadd.xlane.f32.xlu1 %v9367_v61 }
0x1fa5   : > { %v9348_v49 = vmul.f32 %v16019_v1, %v16019_v1 }
0x1fa7   : > { %v9370_v9 = vsel %vm628_vm0, %v9348_v49, 0.0 }
0x1fa8   : > { %9371 = vadd.xlane.f32.xlu0 %v9370_v9 }
0x2015   : > { %v9351_v26 = vpop.xlane.xlu1 %9350 }
0x2016   : > { %v9373_v38 = vmul.f32 0.03125, %v9351_v26 }
0x2018   : > { %v9381_v17 = vadd.f32 1e-05, %v9373_v38 }
0x2019   : > { %v9354_v19 = vpop.xlane.xlu0 %9353 }
0x201a   : > { %12334 = vrsqrt.f32 %v9381_v17  ;;  %v9374_v22 = vmul.f32 0.03125, %v9354_v19 }
0x201c   : > { %v9382_v36 = vadd.f32 1e-05, %v9374_v22 }
0x201d   : > { %v9357_v12 = vpop.xlane.xlu1 %9356 }
0x201e   : > { %12336 = vrsqrt.f32 %v9382_v36  ;;  %v9375_v27 = vmul.f32 0.03125, %v9357_v12 }
0x2020   : > { %v9383_v10 = vadd.f32 1e-05, %v9375_v27 }
0x2021   : > { %v9360_v5 = vpop.xlane.xlu0 %9359 }
0x2022   : > { %12338 = vrsqrt.f32 %v9383_v10  ;;  %v9376_v15 = vmul.f32 0.03125, %v9360_v5 }
0x2024   : > { %v9384_v50 = vadd.f32 1e-05, %v9376_v15 }
0x2025   : > { %v9363_v39 = vpop.xlane.xlu1 %9362 }
0x2026   : > { %12340 = vrsqrt.f32 %v9384_v50  ;;  %v9377_v53 = vmul.f32 0.03125, %v9363_v39 }
0x2027   : > { %v12335_v44 = vpop.eup %12334 }
0x2028   : > { %v9385_v0 = vadd.f32 1e-05, %v9377_v53  ;;  %v9397_v45 = vmul.f32 %v12335_v44, %v15982_v35 }
0x2029   : > { %v9366_v23 = vpop.xlane.xlu0 %9365 }
0x202a   : > { %12342 = vrsqrt.f32 %v9385_v0  ;;  %v9378_v55 = vmul.f32 0.03125, %v9366_v23  ;;  %v9411_v7 = vmul.f32 %v10425_v4, %v9397_v45 }
0x202b   : > { %v12337_v34 = vpop.eup %12336 }
0x202c   : > { %v9386_v25 = vadd.f32 1e-05, %v9378_v55  ;;  %v9398_v40 = vmul.f32 %v12337_v34, %v15987_v21  ;;  %v9425_v59 = vadd.f32 %v10426_v16, %v9411_v7 }
0x202d   : > { %v9369_v56 = vpop.xlane.xlu1 %9368 }
0x202e   : > { %12344 = vrsqrt.f32 %v9386_v25  ;;  %v9379_v37 = vmul.f32 0.03125, %v9369_v56  ;;  %v9412_v35 = vmul.f32 %v10425_v4, %v9398_v40 }
0x202f   : > { %v12339_v58 = vpop.eup %12338 }
0x2030   : > { %v9399_v20 = vmul.f32 %v12339_v58, %v15993_v43  ;;  %v9387_v2 = vadd.f32 1e-05, %v9379_v37  ;;  %v9426_v28 = vadd.f32 %v10426_v16, %v9412_v35 }
0x2031   : > { %v9372_v46 = vpop.xlane.xlu0 %9371 }
0x2032   : > { %12346 = vrsqrt.f32 %v9387_v2  ;;  %v9380_v3 = vmul.f32 0.03125, %v9372_v46  ;;  %v9433_v48 = vpack.c.bf16 %v9426_v28, %v9425_v59  ;;  %v9413_v29 = vmul.f32 %v10425_v4, %v9399_v20 }
0x2033   : > { %v12341_v21 = vpop.eup %12340 }
0x2034   : > { %v9400_v24 = vmul.f32 %v12341_v21, %v15999_v60  ;;  %v9388_v41 = vadd.f32 1e-05, %v9380_v3  ;;  %11547 = vmatprep.mubr.msk.bf16.mxu1 %vm628_vm0, %v9433_v48  ;;  %v9427_v6 = vadd.f32 %v10426_v16, %v9413_v29 }
0x2036   : > { %v9414_v30 = vmul.f32 %v10425_v4, %v9400_v24  ;;  %12348 = vrsqrt.f32 %v9388_v41 }
0x2037   : > { %v12343_v62 = vpop.eup %12342 }
0x2038   : > { %v9428_v42 = vadd.f32 %v10426_v16, %v9414_v30  ;;  %v9401_v43 = vmul.f32 %v12343_v62, %v16004_v54 }
0x203a   : > { %v9434_v14 = vpack.c.bf16 %v9428_v42, %v9427_v6  ;;  %v9415_v32 = vmul.f32 %v10425_v4, %v9401_v43 }
0x203b   : > { %v12345_v11 = vpop.eup %12344 }
0x203c   : > { %11548 = vmatmul.mubr.msk.bf16.vlgmr.msra.gmra.mxu1 %vm628_vm0, %v9434_v14  ;;  %v9402_v57 = vmul.f32 %v12345_v11, %v16009_v8  ;;  %v9429_v51 = vadd.f32 %v10426_v16, %v9415_v32 }
0x203e   : > { %v9416_v52 = vmul.f32 %v10425_v4, %v9402_v57 }
0x203f   : > { %v12347_v60 = vpop.eup %12346 }
0x2040   : > { %v9403_v31 = vmul.f32 %v12347_v60, %v16014_v18  ;;  %v9430_v33 = vadd.f32 %v10426_v16, %v9416_v52  ;;  %v10427_v18 = vld [vmem:[%s16129_s15] ss:$0 sm:$0xff] }
0x2042   : > { %v9435_v63 = vpack.c.bf16 %v9430_v33, %v9429_v51  ;;  %v9417_v54 = vmul.f32 %v10425_v4, %v9403_v31 }
0x2043   : > { %v12349_v61 = vpop.eup %12348 }
0x2044   : > { %v9404_v49 = vmul.f32 %v12349_v61, %v16019_v1  ;;  %11551 = vmatprep.mubr.msk.bf16.mxu1 %vm628_vm0, %v9435_v63  ;;  %v9431_v13 = vadd.f32 %v10426_v16, %v9417_v54 }
0x2046   : > { %v9418_v9 = vmul.f32 %v10425_v4, %v9404_v49 }
0x2048   : > { %v9432_v47 = vadd.f32 %v10426_v16, %v9418_v9 }
0x204a   : > { %v9436_v8 = vpack.c.bf16 %v9432_v47, %v9431_v13 }
0x204c   : > { %11552 = vmatmul.mubr.msk.bf16.gmra.mxu1 %vm628_vm0, %v9436_v8 }
0x20fc   : > { %v11549_v26 = vpop.f32.mrf.mxu1 }
0x20fd   : > { %v9515_v38 = vadd.f32 %v11549_v26, %v10427_v18 }
0x20fe   : > { %v9506_v17 = vpop.f32.mrf.mxu1 }
0x20ff   : > { %9539 = vst.msk [vmem:[%s514_s27 + $0x10] sm:$0xff] %vm820_vm2, %v9515_v38  ;;  %v9507_v1 = vadd.f32 %v10427_v18, %v9506_v17 }
0x2100   : > { %v11550_v19 = vpop.f32.mrf.mxu1 }
0x2101   : > { %9537 = vst.msk [vmem:[%s514_s27] sm:$0xff] %vm820_vm2, %v9507_v1  ;;  %v9518_v22 = vadd.f32 %v11550_v19, %v10427_v18 }
0x2102   : > { %v9509_v36 = vpop.f32.mrf.mxu1 }
0x2103   : > { %9540 = vst.msk [vmem:[%s514_s27 + $0x18] sm:$0xff] %vm820_vm2, %v9518_v22  ;;  %v9510_v12 = vadd.f32 %v10427_v18, %v9509_v36 }
0x2105   : > { %9538 = vst.msk [vmem:[%s514_s27 + $0x8] sm:$0xff] %vm820_vm2, %v9510_v12 }
0x210c   : > { %v11553_v27 = vpop.f32.mrf.mxu1 }
0x210d   : > { %v9531_v10 = vadd.f32 %v11553_v27, %v10427_v18 }
0x210e   : > { %v9522_v5 = vpop.f32.mrf.mxu1 }
0x210f   : > { %9543 = vst.msk [vmem:[%s514_s27 + $0x30] sm:$0xff] %vm820_vm2, %v9531_v10  ;;  %v9523_v15 = vadd.f32 %v10427_v18, %v9522_v5 }
0x2110   : > { %v11554_v50 = vpop.f32.mrf.mxu1 }
0x2111   : > { %9541 = vst.msk [vmem:[%s514_s27 + $0x20] sm:$0xff] %vm820_vm2, %v9523_v15  ;;  %v9534_v39 = vadd.f32 %v11554_v50, %v10427_v18 }
0x2112   : > { %v9525_v53 = vpop.f32.mrf.mxu1 }
0x2113   : > { %9544 = vst.msk [vmem:[%s514_s27 + $0x38] sm:$0xff] %vm820_vm2, %v9534_v39  ;;  %v9526_v44 = vadd.f32 %v10427_v18, %v9525_v53 }
0x2115   : > { %9542 = vst.msk [vmem:[%s514_s27 + $0x28] sm:$0xff] %vm820_vm2, %v9526_v44 }
0x2116   : > { %12363 = shalt.err (!%p12360_p3)
}
0x2117   : > { %s12364_s23 = scalar_lea.hbm %s16065_s18, 1024  ;;  %s12368_s1 = scalar_lea.hbm %s16130_s16, 2048 }
0x2118   : > { %p12365_p4 = scmp.ne.s32.totalorder %s16065_s18, %s12364_s23  ;;  %p12369_p9 = scmp.lt.s32.totalorder %s16065_s18, %s16130_s16 }
0x2119   : > { %p12370_p10 = scmp.lt.s32.totalorder %s12368_s1, %s12364_s23 }
0x211a   : > { %p12366_p7 = pnand %p12365_p4, %p12552_p5 }
0x211b   : > { %p12371_p11 = por %p12370_p10, %p12369_p9 }
0x211c   : > { %p12367_p8 = pneg %p12366_p7 }
0x211e   : > { %p12372_p12 = pnand %p12371_p11, %p12367_p8 }
0x2120   : > { %12375 = shalt.err (!%p12372_p12)
}
0x2121   : > { %s12428_s30 = smov 128  }
0x2122   : > { %11587 = dma.vmem_to_hbm [thread:$0]  (%p12552_p5), %s16068_s19, 1024, %s16065_s18, %s16073_s25, %s12428_s30, %s12428_s30, %s16271_s29  }
0x2123 PF: > { %p11593_p13 = scmp.ge.s32.totalorder %s12410_s24, 2  ;;  %s9574_s17 = sand.u32 1, %s12398_s21  }
0x2124   : > { %s9575_s2 = scalar_lea.sflag [#allocation3], %s9574_s17 }
0x2125   : > { %p11590_p0 = pnand %p11593_p13, %p12556_p6 }
0x2127   : > { %p11591_p1 = pneg %p11590_p0 }
0x2129   : > { %12393 = dma.done.wait (%p11591_p1), %s9575_s2, 1024  }
0x212a   : > { %12395 = vsyncadd (%p11591_p1), %s9575_s2, 4294966272  ;;  %s16328_s24 = sld [smem:[#allocation6_spill]]  ;;  %s16331_s21 = smov %s12402_s22 }
0x212b   : > { %s16329_s0 = sld [smem:[#allocation5_spill]] }
0x212c   : > { %s16330_s23 = sld [smem:[#allocation7_spill]] }
0x2130   : > { %p26_p2 = scmp.ge.s32.totalorder %s16328_s24, 4  }
0x2131   : > { %s16332_s22 = smov %s16329_s0 }
0x2132   :  { %28 = sbr.rel (!%p26_p2) target bundleno = 7 (0x7), region = 131 }
0x2137   :  { %9580 = vsyncpa [#allocation3], 1 }
0x2138   :  { %9582 = vsyncpa [#allocation3 + $0x1], 1 }

</bundles_post_ra>
